<compile_context>
chip_gen: v5e
topology: v5e:2x2
jax: 0.10.0
libtpu: 0.0.40
codegen_flags: <defaults>
</compile_context>

<pallas_src>
import jax
import jax.numpy as jnp
from jax.experimental import pallas as pl
from jax.experimental.pallas import tpu as pltpu


# ----------------------------- Pallas kernels ------------------------------ #

def _make_conv_kernel(relu: bool, has_residual: bool):
    """Fused (im2col-matmul) + folded-BN bias + optional residual + optional ReLU."""
    if has_residual:
        def kernel(a_ref, w_ref, b_ref, r_ref, o_ref):
            acc = jnp.dot(a_ref[...], w_ref[...],
                          preferred_element_type=jnp.float32)       # MXU, f32 accumulate
            acc = acc + b_ref[...] + r_ref[...].astype(jnp.float32)  # f32 epilogue
            if relu:
                acc = jnp.maximum(acc, 0.0)
            o_ref[...] = acc.astype(o_ref.dtype)
    else:
        def kernel(a_ref, w_ref, b_ref, o_ref):
            acc = jnp.dot(a_ref[...], w_ref[...],
                          preferred_element_type=jnp.float32)
            acc = acc + b_ref[...]
            if relu:
                acc = jnp.maximum(acc, 0.0)
            o_ref[...] = acc.astype(o_ref.dtype)
    return kernel


def _pick_tile_m(m, target=512):
    if m <= target:
        return m
    for t in (target, 256, 128, 64, 32, 16, 8):
        if m % t == 0:
            return t
    return m


def conv_bn_act(cols, w, bias, residual=None, relu=True, tile_m=512):
    """cols:(M,K) bf16, w:(K,Cout) bf16 (BN-folded), bias:(1,Cout) f32, residual:(M,Cout) bf16."""
    M, K = cols.shape
    Cout = w.shape[1]
    tm = _pick_tile_m(M, tile_m)
    grid = (pl.cdiv(M, tm),)
    in_specs = [
        pl.BlockSpec((tm, K), lambda i: (i, 0)),        # im2col tile
        pl.BlockSpec((K, Cout), lambda i: (0, 0)),      # folded weight (resident)
        pl.BlockSpec((1, Cout), lambda i: (0, 0)),      # folded bias
    ]
    args = [cols, w, bias]
    if residual is not None:
        in_specs.append(pl.BlockSpec((tm, Cout), lambda i: (i, 0)))
        args.append(residual)
    return pl.pallas_call(
        _make_conv_kernel(relu, residual is not None),
        grid=grid,
        in_specs=in_specs,
        out_specs=pl.BlockSpec((tm, Cout), lambda i: (i, 0)),
        out_shape=jax.ShapeDtypeStruct((M, Cout), jnp.bfloat16),
        compiler_params=pltpu.CompilerParams(
            dimension_semantics=("parallel",),
            vmem_limit_bytes=32 * 1024 * 1024,
        ),
    )(*args)


def _maxpool_kernel(ee_ref, eo_ref, oe_ref, oo_ref, o_ref):
    # 3x3 stride-2 max pool expressed over even/odd row/col phase slabs; all slices are
    # contiguous (no strided VMEM access) and the max tree stays in VMEM.
    Ho, Wo = o_ref.shape[1], o_ref.shape[2]
    ee = ee_ref[...]
    eo = eo_ref[...]
    oe = oe_ref[...]
    oo = oo_ref[...]
    m = ee[:, :Ho, :Wo, :]
    m = jnp.maximum(m, ee[:, :Ho, 1:Wo + 1, :])
    m = jnp.maximum(m, ee[:, 1:Ho + 1, :Wo, :])
    m = jnp.maximum(m, ee[:, 1:Ho + 1, 1:Wo + 1, :])
    m = jnp.maximum(m, eo[:, :Ho, :Wo, :])
    m = jnp.maximum(m, eo[:, 1:Ho + 1, :Wo, :])
    m = jnp.maximum(m, oe[:, :Ho, :Wo, :])
    m = jnp.maximum(m, oe[:, :Ho, 1:Wo + 1, :])
    m = jnp.maximum(m, oo[:, :Ho, :Wo, :])
    o_ref[...] = m


def maxpool_3x3_s2_p1(x):
    # x is post-ReLU (>= 0), so zero-padding is exactly equivalent to -inf padding here.
    N, H, W, C = x.shape
    assert H % 2 == 0 and W % 2 == 0
    Ho = (H + 2 - 3) // 2 + 1
    Wo = (W + 2 - 3) // 2 + 1
    xp = jnp.pad(x, ((0, 0), (1, 1), (1, 1), (0, 0)))
    ee = xp[:, 0::2, 0::2, :]     # four phase slabs: total bytes == padded tensor (1x, not 9x)
    eo = xp[:, 0::2, 1::2, :]
    oe = xp[:, 1::2, 0::2, :]
    oo = xp[:, 1::2, 1::2, :]
    return pl.pallas_call(
        _maxpool_kernel,
        out_shape=jax.ShapeDtypeStruct((N, Ho, Wo, C), x.dtype),
    )(ee, eo, oe, oo)


def _pool_dist_kernel(x_ref, c_ref, o_ref, f_ref):
    # Fused global average pool + center distance: dist = |f|^2 - 2 f c^T + |c|^2
    x = x_ref[...].astype(jnp.float32)                   # (N, H*W, C)
    f = jnp.mean(x, axis=1)                              # (N, C)
    c = c_ref[...]                                       # (classnum, C)
    f2 = jnp.sum(f * f, axis=1, keepdims=True)           # (N, 1)
    c2 = jnp.sum(c * c, axis=1, keepdims=True)           # (classnum, 1)
    prod = jax.lax.dot_general(f, c, (((1,), (1,)), ((), ())),
                               preferred_element_type=jnp.float32)  # f @ c.T
    o_ref[...] = f2 - 2.0 * prod + c2.T
    f_ref[...] = f


def pool_and_distance(x_nhwc, centers):
    N, H, W, C = x_nhwc.shape
    Cn = centers.shape[0]
    vmem = pl.BlockSpec(memory_space=pltpu.MemorySpace.VMEM)
    return pl.pallas_call(
        _pool_dist_kernel,
        in_specs=[vmem, vmem],
        out_specs=(vmem, vmem),
        out_shape=(jax.ShapeDtypeStruct((N, Cn), jnp.float32),
                   jax.ShapeDtypeStruct((N, C), jnp.float32)),
    )(x_nhwc.reshape(N, H * W, C), centers)


# ------------------------------ glue / layers ------------------------------ #

def im2col(x, kh, kw, stride, pad):
    # x: [N, H, W, C] (NHWC, bf16).  Patch ordering matches the (kh,kw,cin,cout) weight reshape.
    if pad > 0:
        x = jnp.pad(x, ((0, 0), (pad, pad), (pad, pad), (0, 0)))
    N, H, W, C = x.shape
    Ho = (H - kh) // stride + 1
    Wo = (W - kw) // stride + 1
    cols = []
    for i in range(kh):
        for j in range(kw):
            cols.append(x[:, i:i + (Ho - 1) * stride + 1:stride,
                           j:j + (Wo - 1) * stride + 1:stride, :])
    patches = jnp.stack(cols, axis=3)                     # [N, Ho, Wo, kh*kw, C]
    return patches.reshape(N * Ho * Wo, kh * kw * C), (N, Ho, Wo)


def basic_block(x, p, stride):
    N, H, W, Cin = x.shape
    Cout = p["w1"].shape[1]
    cols1, (n, Ho, Wo) = im2col(x, 3, 3, stride, 1)
    out1 = conv_bn_act(cols1, p["w1"], p["b1"], relu=True)            # conv1+bn1+relu
    if "wd" in p:                                                     # downsample shortcut
        sc_cols = x[:, ::stride, ::stride, :].reshape(n * Ho * Wo, Cin)
        sc = conv_bn_act(sc_cols, p["wd"], p["bd"], relu=False)       # 1x1 conv + bn
    else:
        sc = x.reshape(N * H * W, Cin)
    cols2, _ = im2col(out1.reshape(n, Ho, Wo, Cout), 3, 3, 1, 1)
    out = conv_bn_act(cols2, p["w2"], p["b2"], residual=sc, relu=True)  # conv2+bn2+add+relu
    return out.reshape(n, Ho, Wo, Cout)


# ------------------------------ parameters --------------------------------- #

def init_bn(c):
    return {"gamma": jnp.ones((c,), jnp.float32),
            "beta": jnp.zeros((c,), jnp.float32),
            "mean": jnp.zeros((c,), jnp.float32),
            "var": jnp.ones((c,), jnp.float32)}


def init_conv(key, cout, cin, kh, kw):
    fan_in = cin * kh * kw
    std = (2.0 / fan_in) ** 0.5
    return jax.random.normal(key, (cout, cin, kh, kw), jnp.float32) * std


def init_params(key, widths=(16, 32, 64, 128), blocks=(2, 2, 2, 2), classnum=8, in_ch=3):
    keys = iter(jax.random.split(key, 64))
    params = {"conv1": init_conv(next(keys), widths[0], in_ch, 7, 7),
              "bn1": init_bn(widths[0])}
    in_c = widths[0]
    layers = []
    for li, (w, nb) in enumerate(zip(widths, blocks)):
        blks = []
        for bi in range(nb):
            stride = 2 if (li > 0 and bi == 0) else 1
            p = {"conv1": init_conv(next(keys), w, in_c, 3, 3),
                 "bn1": init_bn(w),
                 "conv2": init_conv(next(keys), w, w, 3, 3),
                 "bn2": init_bn(w)}
            if stride != 1 or in_c != w:
                p["down_conv"] = init_conv(next(keys), w, in_c, 1, 1)
                p["down_bn"] = init_bn(w)
            blks.append(p)
            in_c = w
        layers.append(blks)
    params["layers"] = layers
    # self.centers = nn.Parameter(torch.rand(classnum, fc.in_features))
    params["centers"] = jax.random.uniform(next(keys), (classnum, widths[-1]), jnp.float32)
    return params


def _fold_conv_bn(w_oihw, bn, eps=1e-5):
    """Fold inference-mode BN into the conv: returns (K,Cout) bf16 weight and (1,Cout) f32 bias."""
    scale = bn["gamma"] / jnp.sqrt(bn["var"] + eps)
    bias = bn["beta"] - bn["mean"] * scale
    cout, cin, kh, kw = w_oihw.shape
    w_mat = jnp.transpose(w_oihw, (2, 3, 1, 0)).reshape(kh * kw * cin, cout)
    w_mat = w_mat * scale[None, :]
    return w_mat.astype(jnp.bfloat16), bias.reshape(1, cout).astype(jnp.float32)


def fold_params(params, eps=1e-5):
    """One-time preprocessing: BN folding + matmul-layout reshape (hoisted off the forward path)."""
    fp = {}
    fp["conv1_w"], fp["conv1_b"] = _fold_conv_bn(params["conv1"], params["bn1"], eps)
    layers = []
    for blks in params["layers"]:
        fb = []
        for p in blks:
            q = {}
            q["w1"], q["b1"] = _fold_conv_bn(p["conv1"], p["bn1"], eps)
            q["w2"], q["b2"] = _fold_conv_bn(p["conv2"], p["bn2"], eps)
            if "down_conv" in p:
                q["wd"], q["bd"] = _fold_conv_bn(p["down_conv"], p["down_bn"], eps)
            fb.append(q)
        layers.append(fb)
    fp["layers"] = layers
    fp["centers"] = params["centers"].astype(jnp.float32)
    return fp


# --------------------------------- forward --------------------------------- #

def custom_resnet_forward(params, x_nchw):
    # layout: input is NCHW (PyTorch); transpose to NHWC + bf16 for the TPU kernels.
    x = jnp.transpose(x_nchw, (0, 2, 3, 1)).astype(jnp.bfloat16)
    cols, (N, Ho, Wo) = im2col(x, 7, 7, 2, 3)
    x = conv_bn_act(cols, params["conv1_w"], params["conv1_b"], relu=True)   # conv1+bn1+relu
    x = x.reshape(N, Ho, Wo, -1)
    x = maxpool_3x3_s2_p1(x)                                                 # resnet.maxpool
    for li, blks in enumerate(params["layers"]):                             # layer1..layer4
        for bi, p in enumerate(blks):
            stride = 2 if (li > 0 and bi == 0) else 1
            x = basic_block(x, p, stride)
    out, features = pool_and_distance(x, params["centers"])                  # avgpool + distance
    return out, features, params["centers"]


if __name__ == "__main__":
    key = jax.random.PRNGKey(0)
    kp, kx = jax.random.split(key)
    params = init_params(kp, classnum=8)
    folded = fold_params(params)
    x = jax.random.normal(kx, (2, 3, 64, 64), jnp.float32)      # NCHW, like PyTorch
    fwd = jax.jit(custom_resnet_forward)
    out, feats, centers = fwd(folded, x)
    jax.block_until_ready((out, feats, centers))
    assert out.shape == (2, 8) and feats.shape == (2, 128) and centers.shape == (8, 128)
    print("KERNEL_OK")
</pallas_src>

<mosaic_0001>
module attributes {stable_mosaic.version = 11 : i64} {
  func.func @kernel(%arg0: i32, %arg1: memref<512x147xbf16, #tpu.memory_space<vmem>>, %arg2: memref<147x16xbf16, #tpu.memory_space<vmem>>, %arg3: memref<1x16xf32, #tpu.memory_space<vmem>>, %arg4: memref<512x16xbf16, #tpu.memory_space<vmem>>) attributes {dimension_semantics = [#tpu.dimension_semantics<parallel>], iteration_bounds = array<i64: 4>, scalar_prefetch = 0 : i64, scratch_operands = 0 : i64, tpu.core_type = #tpu.core_type<tc>, window_params = [{transform_indices = @transform_0, window_bounds = array<i64: 512, 147>}, {pipeline_mode = #tpu.pipeline_mode<synchronous>, transform_indices = @transform_1, window_bounds = array<i64: 147, 16>}, {pipeline_mode = #tpu.pipeline_mode<synchronous>, transform_indices = @transform_2, window_bounds = array<i64: 1, 16>}, {transform_indices = @transform_3, window_bounds = array<i64: 512, 16>}]} {
    %c0 = arith.constant 0 : index
    %c0_0 = arith.constant 0 : index
    %0 = vector.load %arg1[%c0, %c0_0] : memref<512x147xbf16, #tpu.memory_space<vmem>>, vector<512x147xbf16>
    %c0_1 = arith.constant 0 : index
    %c0_2 = arith.constant 0 : index
    %1 = vector.load %arg2[%c0_1, %c0_2] : memref<147x16xbf16, #tpu.memory_space<vmem>>, vector<147x16xbf16>
    %cst = arith.constant dense<0.000000e+00> : vector<512x16xf32>
    %2 = tpu.matmul %0, %1, %cst {dimension_numbers = #tpu.dot_dimension_numbers<[1], [0], [0], [1], [0, 0, 1, 1], [], []>} : vector<512x147xbf16>, vector<147x16xbf16>, vector<512x16xf32> -> vector<512x16xf32>
    %c0_3 = arith.constant 0 : index
    %c0_4 = arith.constant 0 : index
    %3 = vector.load %arg3[%c0_3, %c0_4] : memref<1x16xf32, #tpu.memory_space<vmem>>, vector<1x16xf32>
    %4 = vector.broadcast %3 : vector<1x16xf32> to vector<512x16xf32>
    %5 = arith.addf %2, %4 : vector<512x16xf32>
    %cst_5 = arith.constant 0.000000e+00 : f32
    %6 = vector.broadcast %cst_5 : f32 to vector<512x16xf32>
    %7 = arith.maximumf %5, %6 : vector<512x16xf32>
    %8 = arith.truncf %7 : vector<512x16xf32> to vector<512x16xbf16>
    %c0_6 = arith.constant 0 : index
    %c0_7 = arith.constant 0 : index
    %9 = vector.load %arg4[%c0_6, %c0_7] : memref<512x16xbf16, #tpu.memory_space<vmem>>, vector<512x16xbf16>
    tpu.vector_store %arg4[%c0_6, %c0_7], %8 {strides = array<i32>} : memref<512x16xbf16, #tpu.memory_space<vmem>>, vector<512x16xbf16>,
    return
  }
  func.func @transform_0(%arg0: i32) -> (i32, i32) {
    %c0_i32 = arith.constant 0 : i32
    %c0_i32_0 = arith.constant 0 : i32
    return %arg0, %c0_i32 : i32, i32
  }
  func.func @transform_1(%arg0: i32) -> (i32, i32) {
    %c0_i32 = arith.constant 0 : i32
    %c0_i32_0 = arith.constant 0 : i32
    %c0_i32_1 = arith.constant 0 : i32
    return %c0_i32, %c0_i32_0 : i32, i32
  }
  func.func @transform_2(%arg0: i32) -> (i32, i32) {
    %c0_i32 = arith.constant 0 : i32
    %c0_i32_0 = arith.constant 0 : i32
    %c0_i32_1 = arith.constant 0 : i32
    return %c0_i32, %c0_i32_0 : i32, i32
  }
  func.func @transform_3(%arg0: i32) -> (i32, i32) {
    %c0_i32 = arith.constant 0 : i32
    %c0_i32_0 = arith.constant 0 : i32
    return %arg0, %c0_i32 : i32, i32
  }
}

module attributes {stable_mosaic.version = 11 : i64} {
  func.func @_maxpool_kernel(%arg0: memref<2x17x17x16xbf16, #tpu.memory_space<vmem>>, %arg1: memref<2x17x17x16xbf16, #tpu.memory_space<vmem>>, %arg2: memref<2x17x17x16xbf16, #tpu.memory_space<vmem>>, %arg3: memref<2x17x17x16xbf16, #tpu.memory_space<vmem>>, %arg4: memref<2x16x16x16xbf16, #tpu.memory_space<vmem>>) attributes {dimension_semantics = [], scalar_prefetch = 0 : i64, scratch_operands = 0 : i64, tpu.core_type = #tpu.core_type<tc>} {
    %c0 = arith.constant 0 : index
    %c0_0 = arith.constant 0 : index
    %c0_1 = arith.constant 0 : index
    %c0_2 = arith.constant 0 : index
    %0 = vector.load %arg0[%c0, %c0_0, %c0_1, %c0_2] : memref<2x17x17x16xbf16, #tpu.memory_space<vmem>>, vector<2x17x17x16xbf16>
    %c0_3 = arith.constant 0 : index
    %c0_4 = arith.constant 0 : index
    %c0_5 = arith.constant 0 : index
    %c0_6 = arith.constant 0 : index
    %1 = vector.load %arg1[%c0_3, %c0_4, %c0_5, %c0_6] : memref<2x17x17x16xbf16, #tpu.memory_space<vmem>>, vector<2x17x17x16xbf16>
    %c0_7 = arith.constant 0 : index
    %c0_8 = arith.constant 0 : index
    %c0_9 = arith.constant 0 : index
    %c0_10 = arith.constant 0 : index
    %2 = vector.load %arg2[%c0_7, %c0_8, %c0_9, %c0_10] : memref<2x17x17x16xbf16, #tpu.memory_space<vmem>>, vector<2x17x17x16xbf16>
    %c0_11 = arith.constant 0 : index
    %c0_12 = arith.constant 0 : index
    %c0_13 = arith.constant 0 : index
    %c0_14 = arith.constant 0 : index
    %3 = vector.load %arg3[%c0_11, %c0_12, %c0_13, %c0_14] : memref<2x17x17x16xbf16, #tpu.memory_space<vmem>>, vector<2x17x17x16xbf16>
    %4 = vector.extract_strided_slice %0 {offsets = [0, 0, 0, 0], sizes = [2, 16, 16, 16], strides = [1, 1, 1, 1]} : vector<2x17x17x16xbf16> to vector<2x16x16x16xbf16>
    %5 = vector.extract_strided_slice %0 {offsets = [0, 0, 1, 0], sizes = [2, 16, 16, 16], strides = [1, 1, 1, 1]} : vector<2x17x17x16xbf16> to vector<2x16x16x16xbf16>
    %6 = arith.maximumf %4, %5 : vector<2x16x16x16xbf16>
    %7 = vector.extract_strided_slice %0 {offsets = [0, 1, 0, 0], sizes = [2, 16, 16, 16], strides = [1, 1, 1, 1]} : vector<2x17x17x16xbf16> to vector<2x16x16x16xbf16>
    %8 = arith.maximumf %6, %7 : vector<2x16x16x16xbf16>
    %9 = vector.extract_strided_slice %0 {offsets = [0, 1, 1, 0], sizes = [2, 16, 16, 16], strides = [1, 1, 1, 1]} : vector<2x17x17x16xbf16> to vector<2x16x16x16xbf16>
    %10 = arith.maximumf %8, %9 : vector<2x16x16x16xbf16>
    %11 = vector.extract_strided_slice %1 {offsets = [0, 0, 0, 0], sizes = [2, 16, 16, 16], strides = [1, 1, 1, 1]} : vector<2x17x17x16xbf16> to vector<2x16x16x16xbf16>
    %12 = arith.maximumf %10, %11 : vector<2x16x16x16xbf16>
    %13 = vector.extract_strided_slice %1 {offsets = [0, 1, 0, 0], sizes = [2, 16, 16, 16], strides = [1, 1, 1, 1]} : vector<2x17x17x16xbf16> to vector<2x16x16x16xbf16>
    %14 = arith.maximumf %12, %13 : vector<2x16x16x16xbf16>
    %15 = vector.extract_strided_slice %2 {offsets = [0, 0, 0, 0], sizes = [2, 16, 16, 16], strides = [1, 1, 1, 1]} : vector<2x17x17x16xbf16> to vector<2x16x16x16xbf16>
    %16 = arith.maximumf %14, %15 : vector<2x16x16x16xbf16>
    %17 = vector.extract_strided_slice %2 {offsets = [0, 0, 1, 0], sizes = [2, 16, 16, 16], strides = [1, 1, 1, 1]} : vector<2x17x17x16xbf16> to vector<2x16x16x16xbf16>
    %18 = arith.maximumf %16, %17 : vector<2x16x16x16xbf16>
    %19 = vector.extract_strided_slice %3 {offsets = [0, 0, 0, 0], sizes = [2, 16, 16, 16], strides = [1, 1, 1, 1]} : vector<2x17x17x16xbf16> to vector<2x16x16x16xbf16>
    %20 = arith.maximumf %18, %19 : vector<2x16x16x16xbf16>
    %c0_15 = arith.constant 0 : index
    %c0_16 = arith.constant 0 : index
    %c0_17 = arith.constant 0 : index
    %c0_18 = arith.constant 0 : index
    %21 = vector.load %arg4[%c0_15, %c0_16, %c0_17, %c0_18] : memref<2x16x16x16xbf16, #tpu.memory_space<vmem>>, vector<2x16x16x16xbf16>
    tpu.vector_store %arg4[%c0_15, %c0_16, %c0_17, %c0_18], %20 {strides = array<i32>} : memref<2x16x16x16xbf16, #tpu.memory_space<vmem>>, vector<2x16x16x16xbf16>,
    return
  }
}

module attributes {stable_mosaic.version = 11 : i64} {
  func.func @kernel(%arg0: i32, %arg1: memref<512x144xbf16, #tpu.memory_space<vmem>>, %arg2: memref<144x16xbf16, #tpu.memory_space<vmem>>, %arg3: memref<1x16xf32, #tpu.memory_space<vmem>>, %arg4: memref<512x16xbf16, #tpu.memory_space<vmem>>) attributes {dimension_semantics = [#tpu.dimension_semantics<parallel>], iteration_bounds = array<i64: 1>, scalar_prefetch = 0 : i64, scratch_operands = 0 : i64, tpu.core_type = #tpu.core_type<tc>, window_params = [{transform_indices = @transform_0, window_bounds = array<i64: 512, 144>}, {pipeline_mode = #tpu.pipeline_mode<synchronous>, transform_indices = @transform_1, window_bounds = array<i64: 144, 16>}, {pipeline_mode = #tpu.pipeline_mode<synchronous>, transform_indices = @transform_2, window_bounds = array<i64: 1, 16>}, {transform_indices = @transform_3, window_bounds = array<i64: 512, 16>}]} {
    %c0 = arith.constant 0 : index
    %c0_0 = arith.constant 0 : index
    %0 = vector.load %arg1[%c0, %c0_0] : memref<512x144xbf16, #tpu.memory_space<vmem>>, vector<512x144xbf16>
    %c0_1 = arith.constant 0 : index
    %c0_2 = arith.constant 0 : index
    %1 = vector.load %arg2[%c0_1, %c0_2] : memref<144x16xbf16, #tpu.memory_space<vmem>>, vector<144x16xbf16>
    %cst = arith.constant dense<0.000000e+00> : vector<512x16xf32>
    %2 = tpu.matmul %0, %1, %cst {dimension_numbers = #tpu.dot_dimension_numbers<[1], [0], [0], [1], [0, 0, 1, 1], [], []>} : vector<512x144xbf16>, vector<144x16xbf16>, vector<512x16xf32> -> vector<512x16xf32>
    %c0_3 = arith.constant 0 : index
    %c0_4 = arith.constant 0 : index
    %3 = vector.load %arg3[%c0_3, %c0_4] : memref<1x16xf32, #tpu.memory_space<vmem>>, vector<1x16xf32>
    %4 = vector.broadcast %3 : vector<1x16xf32> to vector<512x16xf32>
    %5 = arith.addf %2, %4 : vector<512x16xf32>
    %cst_5 = arith.constant 0.000000e+00 : f32
    %6 = vector.broadcast %cst_5 : f32 to vector<512x16xf32>
    %7 = arith.maximumf %5, %6 : vector<512x16xf32>
    %8 = arith.truncf %7 : vector<512x16xf32> to vector<512x16xbf16>
    %c0_6 = arith.constant 0 : index
    %c0_7 = arith.constant 0 : index
    %9 = vector.load %arg4[%c0_6, %c0_7] : memref<512x16xbf16, #tpu.memory_space<vmem>>, vector<512x16xbf16>
    tpu.vector_store %arg4[%c0_6, %c0_7], %8 {strides = array<i32>} : memref<512x16xbf16, #tpu.memory_space<vmem>>, vector<512x16xbf16>,
    return
  }
  func.func @transform_0(%arg0: i32) -> (i32, i32) {
    %c0_i32 = arith.constant 0 : i32
    %c0_i32_0 = arith.constant 0 : i32
    return %arg0, %c0_i32 : i32, i32
  }
  func.func @transform_1(%arg0: i32) -> (i32, i32) {
    %c0_i32 = arith.constant 0 : i32
    %c0_i32_0 = arith.constant 0 : i32
    %c0_i32_1 = arith.constant 0 : i32
    return %c0_i32, %c0_i32_0 : i32, i32
  }
  func.func @transform_2(%arg0: i32) -> (i32, i32) {
    %c0_i32 = arith.constant 0 : i32
    %c0_i32_0 = arith.constant 0 : i32
    %c0_i32_1 = arith.constant 0 : i32
    return %c0_i32, %c0_i32_0 : i32, i32
  }
  func.func @transform_3(%arg0: i32) -> (i32, i32) {
    %c0_i32 = arith.constant 0 : i32
    %c0_i32_0 = arith.constant 0 : i32
    return %arg0, %c0_i32 : i32, i32
  }
}

module attributes {stable_mosaic.version = 11 : i64} {
  func.func @kernel(%arg0: i32, %arg1: memref<512x144xbf16, #tpu.memory_space<vmem>>, %arg2: memref<144x16xbf16, #tpu.memory_space<vmem>>, %arg3: memref<1x16xf32, #tpu.memory_space<vmem>>, %arg4: memref<512x16xbf16, #tpu.memory_space<vmem>>, %arg5: memref<512x16xbf16, #tpu.memory_space<vmem>>) attributes {dimension_semantics = [#tpu.dimension_semantics<parallel>], iteration_bounds = array<i64: 1>, scalar_prefetch = 0 : i64, scratch_operands = 0 : i64, tpu.core_type = #tpu.core_type<tc>, window_params = [{transform_indices = @transform_0, window_bounds = array<i64: 512, 144>}, {pipeline_mode = #tpu.pipeline_mode<synchronous>, transform_indices = @transform_1, window_bounds = array<i64: 144, 16>}, {pipeline_mode = #tpu.pipeline_mode<synchronous>, transform_indices = @transform_2, window_bounds = array<i64: 1, 16>}, {transform_indices = @transform_3, window_bounds = array<i64: 512, 16>}, {transform_indices = @transform_4, window_bounds = array<i64: 512, 16>}]} {
    %c0 = arith.constant 0 : index
    %c0_0 = arith.constant 0 : index
    %0 = vector.load %arg1[%c0, %c0_0] : memref<512x144xbf16, #tpu.memory_space<vmem>>, vector<512x144xbf16>
    %c0_1 = arith.constant 0 : index
    %c0_2 = arith.constant 0 : index
    %1 = vector.load %arg2[%c0_1, %c0_2] : memref<144x16xbf16, #tpu.memory_space<vmem>>, vector<144x16xbf16>
    %cst = arith.constant dense<0.000000e+00> : vector<512x16xf32>
    %2 = tpu.matmul %0, %1, %cst {dimension_numbers = #tpu.dot_dimension_numbers<[1], [0], [0], [1], [0, 0, 1, 1], [], []>} : vector<512x144xbf16>, vector<144x16xbf16>, vector<512x16xf32> -> vector<512x16xf32>
    %c0_3 = arith.constant 0 : index
    %c0_4 = arith.constant 0 : index
    %3 = vector.load %arg3[%c0_3, %c0_4] : memref<1x16xf32, #tpu.memory_space<vmem>>, vector<1x16xf32>
    %4 = vector.broadcast %3 : vector<1x16xf32> to vector<512x16xf32>
    %5 = arith.addf %2, %4 : vector<512x16xf32>
    %c0_5 = arith.constant 0 : index
    %c0_6 = arith.constant 0 : index
    %6 = vector.load %arg4[%c0_5, %c0_6] : memref<512x16xbf16, #tpu.memory_space<vmem>>, vector<512x16xbf16>
    %7 = arith.extf %6 : vector<512x16xbf16> to vector<512x16xf32>
    %8 = arith.addf %5, %7 : vector<512x16xf32>
    %cst_7 = arith.constant 0.000000e+00 : f32
    %9 = vector.broadcast %cst_7 : f32 to vector<512x16xf32>
    %10 = arith.maximumf %8, %9 : vector<512x16xf32>
    %11 = arith.truncf %10 : vector<512x16xf32> to vector<512x16xbf16>
    %c0_8 = arith.constant 0 : index
    %c0_9 = arith.constant 0 : index
    %12 = vector.load %arg5[%c0_8, %c0_9] : memref<512x16xbf16, #tpu.memory_space<vmem>>, vector<512x16xbf16>
    tpu.vector_store %arg5[%c0_8, %c0_9], %11 {strides = array<i32>} : memref<512x16xbf16, #tpu.memory_space<vmem>>, vector<512x16xbf16>,
    return
  }
  func.func @transform_0(%arg0: i32) -> (i32, i32) {
    %c0_i32 = arith.constant 0 : i32
    %c0_i32_0 = arith.constant 0 : i32
    return %arg0, %c0_i32 : i32, i32
  }
  func.func @transform_1(%arg0: i32) -> (i32, i32) {
    %c0_i32 = arith.constant 0 : i32
    %c0_i32_0 = arith.constant 0 : i32
    %c0_i32_1 = arith.constant 0 : i32
    return %c0_i32, %c0_i32_0 : i32, i32
  }
  func.func @transform_2(%arg0: i32) -> (i32, i32) {
    %c0_i32 = arith.constant 0 : i32
    %c0_i32_0 = arith.constant 0 : i32
    %c0_i32_1 = arith.constant 0 : i32
    return %c0_i32, %c0_i32_0 : i32, i32
  }
  func.func @transform_3(%arg0: i32) -> (i32, i32) {
    %c0_i32 = arith.constant 0 : i32
    %c0_i32_0 = arith.constant 0 : i32
    return %arg0, %c0_i32 : i32, i32
  }
  func.func @transform_4(%arg0: i32) -> (i32, i32) {
    %c0_i32 = arith.constant 0 : i32
    %c0_i32_0 = arith.constant 0 : i32
    return %arg0, %c0_i32 : i32, i32
  }
}

module attributes {stable_mosaic.version = 11 : i64} {
  func.func @kernel(%arg0: i32, %arg1: memref<128x144xbf16, #tpu.memory_space<vmem>>, %arg2: memref<144x32xbf16, #tpu.memory_space<vmem>>, %arg3: memref<1x32xf32, #tpu.memory_space<vmem>>, %arg4: memref<128x32xbf16, #tpu.memory_space<vmem>>) attributes {dimension_semantics = [#tpu.dimension_semantics<parallel>], iteration_bounds = array<i64: 1>, scalar_prefetch = 0 : i64, scratch_operands = 0 : i64, tpu.core_type = #tpu.core_type<tc>, window_params = [{transform_indices = @transform_0, window_bounds = array<i64: 128, 144>}, {pipeline_mode = #tpu.pipeline_mode<synchronous>, transform_indices = @transform_1, window_bounds = array<i64: 144, 32>}, {pipeline_mode = #tpu.pipeline_mode<synchronous>, transform_indices = @transform_2, window_bounds = array<i64: 1, 32>}, {transform_indices = @transform_3, window_bounds = array<i64: 128, 32>}]} {
    %c0 = arith.constant 0 : index
    %c0_0 = arith.constant 0 : index
    %0 = vector.load %arg1[%c0, %c0_0] : memref<128x144xbf16, #tpu.memory_space<vmem>>, vector<128x144xbf16>
    %c0_1 = arith.constant 0 : index
    %c0_2 = arith.constant 0 : index
    %1 = vector.load %arg2[%c0_1, %c0_2] : memref<144x32xbf16, #tpu.memory_space<vmem>>, vector<144x32xbf16>
    %cst = arith.constant dense<0.000000e+00> : vector<128x32xf32>
    %2 = tpu.matmul %0, %1, %cst {dimension_numbers = #tpu.dot_dimension_numbers<[1], [0], [0], [1], [0, 0, 1, 1], [], []>} : vector<128x144xbf16>, vector<144x32xbf16>, vector<128x32xf32> -> vector<128x32xf32>
    %c0_3 = arith.constant 0 : index
    %c0_4 = arith.constant 0 : index
    %3 = vector.load %arg3[%c0_3, %c0_4] : memref<1x32xf32, #tpu.memory_space<vmem>>, vector<1x32xf32>
    %4 = vector.broadcast %3 : vector<1x32xf32> to vector<128x32xf32>
    %5 = arith.addf %2, %4 : vector<128x32xf32>
    %cst_5 = arith.constant 0.000000e+00 : f32
    %6 = vector.broadcast %cst_5 : f32 to vector<128x32xf32>
    %7 = arith.maximumf %5, %6 : vector<128x32xf32>
    %8 = arith.truncf %7 : vector<128x32xf32> to vector<128x32xbf16>
    %c0_6 = arith.constant 0 : index
    %c0_7 = arith.constant 0 : index
    %9 = vector.load %arg4[%c0_6, %c0_7] : memref<128x32xbf16, #tpu.memory_space<vmem>>, vector<128x32xbf16>
    tpu.vector_store %arg4[%c0_6, %c0_7], %8 {strides = array<i32>} : memref<128x32xbf16, #tpu.memory_space<vmem>>, vector<128x32xbf16>,
    return
  }
  func.func @transform_0(%arg0: i32) -> (i32, i32) {
    %c0_i32 = arith.constant 0 : i32
    %c0_i32_0 = arith.constant 0 : i32
    return %arg0, %c0_i32 : i32, i32
  }
  func.func @transform_1(%arg0: i32) -> (i32, i32) {
    %c0_i32 = arith.constant 0 : i32
    %c0_i32_0 = arith.constant 0 : i32
    %c0_i32_1 = arith.constant 0 : i32
    return %c0_i32, %c0_i32_0 : i32, i32
  }
  func.func @transform_2(%arg0: i32) -> (i32, i32) {
    %c0_i32 = arith.constant 0 : i32
    %c0_i32_0 = arith.constant 0 : i32
    %c0_i32_1 = arith.constant 0 : i32
    return %c0_i32, %c0_i32_0 : i32, i32
  }
  func.func @transform_3(%arg0: i32) -> (i32, i32) {
    %c0_i32 = arith.constant 0 : i32
    %c0_i32_0 = arith.constant 0 : i32
    return %arg0, %c0_i32 : i32, i32
  }
}

module attributes {stable_mosaic.version = 11 : i64} {
  func.func @kernel(%arg0: i32, %arg1: memref<128x16xbf16, #tpu.memory_space<vmem>>, %arg2: memref<16x32xbf16, #tpu.memory_space<vmem>>, %arg3: memref<1x32xf32, #tpu.memory_space<vmem>>, %arg4: memref<128x32xbf16, #tpu.memory_space<vmem>>) attributes {dimension_semantics = [#tpu.dimension_semantics<parallel>], iteration_bounds = array<i64: 1>, scalar_prefetch = 0 : i64, scratch_operands = 0 : i64, tpu.core_type = #tpu.core_type<tc>, window_params = [{transform_indices = @transform_0, window_bounds = array<i64: 128, 16>}, {pipeline_mode = #tpu.pipeline_mode<synchronous>, transform_indices = @transform_1, window_bounds = array<i64: 16, 32>}, {pipeline_mode = #tpu.pipeline_mode<synchronous>, transform_indices = @transform_2, window_bounds = array<i64: 1, 32>}, {transform_indices = @transform_3, window_bounds = array<i64: 128, 32>}]} {
    %c0 = arith.constant 0 : index
    %c0_0 = arith.constant 0 : index
    %0 = vector.load %arg1[%c0, %c0_0] : memref<128x16xbf16, #tpu.memory_space<vmem>>, vector<128x16xbf16>
    %c0_1 = arith.constant 0 : index
    %c0_2 = arith.constant 0 : index
    %1 = vector.load %arg2[%c0_1, %c0_2] : memref<16x32xbf16, #tpu.memory_space<vmem>>, vector<16x32xbf16>
    %cst = arith.constant dense<0.000000e+00> : vector<128x32xf32>
    %2 = tpu.matmul %0, %1, %cst {dimension_numbers = #tpu.dot_dimension_numbers<[1], [0], [0], [1], [0, 0, 1, 1], [], []>} : vector<128x16xbf16>, vector<16x32xbf16>, vector<128x32xf32> -> vector<128x32xf32>
    %c0_3 = arith.constant 0 : index
    %c0_4 = arith.constant 0 : index
    %3 = vector.load %arg3[%c0_3, %c0_4] : memref<1x32xf32, #tpu.memory_space<vmem>>, vector<1x32xf32>
    %4 = vector.broadcast %3 : vector<1x32xf32> to vector<128x32xf32>
    %5 = arith.addf %2, %4 : vector<128x32xf32>
    %6 = arith.truncf %5 : vector<128x32xf32> to vector<128x32xbf16>
    %c0_5 = arith.constant 0 : index
    %c0_6 = arith.constant 0 : index
    %7 = vector.load %arg4[%c0_5, %c0_6] : memref<128x32xbf16, #tpu.memory_space<vmem>>, vector<128x32xbf16>
    tpu.vector_store %arg4[%c0_5, %c0_6], %6 {strides = array<i32>} : memref<128x32xbf16, #tpu.memory_space<vmem>>, vector<128x32xbf16>,
    return
  }
  func.func @transform_0(%arg0: i32) -> (i32, i32) {
    %c0_i32 = arith.constant 0 : i32
    %c0_i32_0 = arith.constant 0 : i32
    return %arg0, %c0_i32 : i32, i32
  }
  func.func @transform_1(%arg0: i32) -> (i32, i32) {
    %c0_i32 = arith.constant 0 : i32
    %c0_i32_0 = arith.constant 0 : i32
    %c0_i32_1 = arith.constant 0 : i32
    return %c0_i32, %c0_i32_0 : i32, i32
  }
  func.func @transform_2(%arg0: i32) -> (i32, i32) {
    %c0_i32 = arith.constant 0 : i32
    %c0_i32_0 = arith.constant 0 : i32
    %c0_i32_1 = arith.constant 0 : i32
    return %c0_i32, %c0_i32_0 : i32, i32
  }
  func.func @transform_3(%arg0: i32) -> (i32, i32) {
    %c0_i32 = arith.constant 0 : i32
    %c0_i32_0 = arith.constant 0 : i32
    return %arg0, %c0_i32 : i32, i32
  }
}

module attributes {stable_mosaic.version = 11 : i64} {
  func.func @kernel(%arg0: i32, %arg1: memref<128x288xbf16, #tpu.memory_space<vmem>>, %arg2: memref<288x32xbf16, #tpu.memory_space<vmem>>, %arg3: memref<1x32xf32, #tpu.memory_space<vmem>>, %arg4: memref<128x32xbf16, #tpu.memory_space<vmem>>, %arg5: memref<128x32xbf16, #tpu.memory_space<vmem>>) attributes {dimension_semantics = [#tpu.dimension_semantics<parallel>], iteration_bounds = array<i64: 1>, scalar_prefetch = 0 : i64, scratch_operands = 0 : i64, tpu.core_type = #tpu.core_type<tc>, window_params = [{transform_indices = @transform_0, window_bounds = array<i64: 128, 288>}, {pipeline_mode = #tpu.pipeline_mode<synchronous>, transform_indices = @transform_1, window_bounds = array<i64: 288, 32>}, {pipeline_mode = #tpu.pipeline_mode<synchronous>, transform_indices = @transform_2, window_bounds = array<i64: 1, 32>}, {transform_indices = @transform_3, window_bounds = array<i64: 128, 32>}, {transform_indices = @transform_4, window_bounds = array<i64: 128, 32>}]} {
    %c0 = arith.constant 0 : index
    %c0_0 = arith.constant 0 : index
    %0 = vector.load %arg1[%c0, %c0_0] : memref<128x288xbf16, #tpu.memory_space<vmem>>, vector<128x288xbf16>
    %c0_1 = arith.constant 0 : index
    %c0_2 = arith.constant 0 : index
    %1 = vector.load %arg2[%c0_1, %c0_2] : memref<288x32xbf16, #tpu.memory_space<vmem>>, vector<288x32xbf16>
    %cst = arith.constant dense<0.000000e+00> : vector<128x32xf32>
    %2 = tpu.matmul %0, %1, %cst {dimension_numbers = #tpu.dot_dimension_numbers<[1], [0], [0], [1], [0, 0, 1, 1], [], []>} : vector<128x288xbf16>, vector<288x32xbf16>, vector<128x32xf32> -> vector<128x32xf32>
    %c0_3 = arith.constant 0 : index
    %c0_4 = arith.constant 0 : index
    %3 = vector.load %arg3[%c0_3, %c0_4] : memref<1x32xf32, #tpu.memory_space<vmem>>, vector<1x32xf32>
    %4 = vector.broadcast %3 : vector<1x32xf32> to vector<128x32xf32>
    %5 = arith.addf %2, %4 : vector<128x32xf32>
    %c0_5 = arith.constant 0 : index
    %c0_6 = arith.constant 0 : index
    %6 = vector.load %arg4[%c0_5, %c0_6] : memref<128x32xbf16, #tpu.memory_space<vmem>>, vector<128x32xbf16>
    %7 = arith.extf %6 : vector<128x32xbf16> to vector<128x32xf32>
    %8 = arith.addf %5, %7 : vector<128x32xf32>
    %cst_7 = arith.constant 0.000000e+00 : f32
    %9 = vector.broadcast %cst_7 : f32 to vector<128x32xf32>
    %10 = arith.maximumf %8, %9 : vector<128x32xf32>
    %11 = arith.truncf %10 : vector<128x32xf32> to vector<128x32xbf16>
    %c0_8 = arith.constant 0 : index
    %c0_9 = arith.constant 0 : index
    %12 = vector.load %arg5[%c0_8, %c0_9] : memref<128x32xbf16, #tpu.memory_space<vmem>>, vector<128x32xbf16>
    tpu.vector_store %arg5[%c0_8, %c0_9], %11 {strides = array<i32>} : memref<128x32xbf16, #tpu.memory_space<vmem>>, vector<128x32xbf16>,
    return
  }
  func.func @transform_0(%arg0: i32) -> (i32, i32) {
    %c0_i32 = arith.constant 0 : i32
    %c0_i32_0 = arith.constant 0 : i32
    return %arg0, %c0_i32 : i32, i32
  }
  func.func @transform_1(%arg0: i32) -> (i32, i32) {
    %c0_i32 = arith.constant 0 : i32
    %c0_i32_0 = arith.constant 0 : i32
    %c0_i32_1 = arith.constant 0 : i32
    return %c0_i32, %c0_i32_0 : i32, i32
  }
  func.func @transform_2(%arg0: i32) -> (i32, i32) {
    %c0_i32 = arith.constant 0 : i32
    %c0_i32_0 = arith.constant 0 : i32
    %c0_i32_1 = arith.constant 0 : i32
    return %c0_i32, %c0_i32_0 : i32, i32
  }
  func.func @transform_3(%arg0: i32) -> (i32, i32) {
    %c0_i32 = arith.constant 0 : i32
    %c0_i32_0 = arith.constant 0 : i32
    return %arg0, %c0_i32 : i32, i32
  }
  func.func @transform_4(%arg0: i32) -> (i32, i32) {
    %c0_i32 = arith.constant 0 : i32
    %c0_i32_0 = arith.constant 0 : i32
    return %arg0, %c0_i32 : i32, i32
  }
}

module attributes {stable_mosaic.version = 11 : i64} {
  func.func @kernel(%arg0: i32, %arg1: memref<128x288xbf16, #tpu.memory_space<vmem>>, %arg2: memref<288x32xbf16, #tpu.memory_space<vmem>>, %arg3: memref<1x32xf32, #tpu.memory_space<vmem>>, %arg4: memref<128x32xbf16, #tpu.memory_space<vmem>>) attributes {dimension_semantics = [#tpu.dimension_semantics<parallel>], iteration_bounds = array<i64: 1>, scalar_prefetch = 0 : i64, scratch_operands = 0 : i64, tpu.core_type = #tpu.core_type<tc>, window_params = [{transform_indices = @transform_0, window_bounds = array<i64: 128, 288>}, {pipeline_mode = #tpu.pipeline_mode<synchronous>, transform_indices = @transform_1, window_bounds = array<i64: 288, 32>}, {pipeline_mode = #tpu.pipeline_mode<synchronous>, transform_indices = @transform_2, window_bounds = array<i64: 1, 32>}, {transform_indices = @transform_3, window_bounds = array<i64: 128, 32>}]} {
    %c0 = arith.constant 0 : index
    %c0_0 = arith.constant 0 : index
    %0 = vector.load %arg1[%c0, %c0_0] : memref<128x288xbf16, #tpu.memory_space<vmem>>, vector<128x288xbf16>
    %c0_1 = arith.constant 0 : index
    %c0_2 = arith.constant 0 : index
    %1 = vector.load %arg2[%c0_1, %c0_2] : memref<288x32xbf16, #tpu.memory_space<vmem>>, vector<288x32xbf16>
    %cst = arith.constant dense<0.000000e+00> : vector<128x32xf32>
    %2 = tpu.matmul %0, %1, %cst {dimension_numbers = #tpu.dot_dimension_numbers<[1], [0], [0], [1], [0, 0, 1, 1], [], []>} : vector<128x288xbf16>, vector<288x32xbf16>, vector<128x32xf32> -> vector<128x32xf32>
    %c0_3 = arith.constant 0 : index
    %c0_4 = arith.constant 0 : index
    %3 = vector.load %arg3[%c0_3, %c0_4] : memref<1x32xf32, #tpu.memory_space<vmem>>, vector<1x32xf32>
    %4 = vector.broadcast %3 : vector<1x32xf32> to vector<128x32xf32>
    %5 = arith.addf %2, %4 : vector<128x32xf32>
    %cst_5 = arith.constant 0.000000e+00 : f32
    %6 = vector.broadcast %cst_5 : f32 to vector<128x32xf32>
    %7 = arith.maximumf %5, %6 : vector<128x32xf32>
    %8 = arith.truncf %7 : vector<128x32xf32> to vector<128x32xbf16>
    %c0_6 = arith.constant 0 : index
    %c0_7 = arith.constant 0 : index
    %9 = vector.load %arg4[%c0_6, %c0_7] : memref<128x32xbf16, #tpu.memory_space<vmem>>, vector<128x32xbf16>
    tpu.vector_store %arg4[%c0_6, %c0_7], %8 {strides = array<i32>} : memref<128x32xbf16, #tpu.memory_space<vmem>>, vector<128x32xbf16>,
    return
  }
  func.func @transform_0(%arg0: i32) -> (i32, i32) {
    %c0_i32 = arith.constant 0 : i32
    %c0_i32_0 = arith.constant 0 : i32
    return %arg0, %c0_i32 : i32, i32
  }
  func.func @transform_1(%arg0: i32) -> (i32, i32) {
    %c0_i32 = arith.constant 0 : i32
    %c0_i32_0 = arith.constant 0 : i32
    %c0_i32_1 = arith.constant 0 : i32
    return %c0_i32, %c0_i32_0 : i32, i32
  }
  func.func @transform_2(%arg0: i32) -> (i32, i32) {
    %c0_i32 = arith.constant 0 : i32
    %c0_i32_0 = arith.constant 0 : i32
    %c0_i32_1 = arith.constant 0 : i32
    return %c0_i32, %c0_i32_0 : i32, i32
  }
  func.func @transform_3(%arg0: i32) -> (i32, i32) {
    %c0_i32 = arith.constant 0 : i32
    %c0_i32_0 = arith.constant 0 : i32
    return %arg0, %c0_i32 : i32, i32
  }
}

module attributes {stable_mosaic.version = 11 : i64} {
  func.func @kernel(%arg0: i32, %arg1: memref<32x288xbf16, #tpu.memory_space<vmem>>, %arg2: memref<288x64xbf16, #tpu.memory_space<vmem>>, %arg3: memref<1x64xf32, #tpu.memory_space<vmem>>, %arg4: memref<32x64xbf16, #tpu.memory_space<vmem>>) attributes {dimension_semantics = [#tpu.dimension_semantics<parallel>], iteration_bounds = array<i64: 1>, scalar_prefetch = 0 : i64, scratch_operands = 0 : i64, tpu.core_type = #tpu.core_type<tc>, window_params = [{transform_indices = @transform_0, window_bounds = array<i64: 32, 288>}, {pipeline_mode = #tpu.pipeline_mode<synchronous>, transform_indices = @transform_1, window_bounds = array<i64: 288, 64>}, {pipeline_mode = #tpu.pipeline_mode<synchronous>, transform_indices = @transform_2, window_bounds = array<i64: 1, 64>}, {transform_indices = @transform_3, window_bounds = array<i64: 32, 64>}]} {
    %c0 = arith.constant 0 : index
    %c0_0 = arith.constant 0 : index
    %0 = vector.load %arg1[%c0, %c0_0] : memref<32x288xbf16, #tpu.memory_space<vmem>>, vector<32x288xbf16>
    %c0_1 = arith.constant 0 : index
    %c0_2 = arith.constant 0 : index
    %1 = vector.load %arg2[%c0_1, %c0_2] : memref<288x64xbf16, #tpu.memory_space<vmem>>, vector<288x64xbf16>
    %cst = arith.constant dense<0.000000e+00> : vector<32x64xf32>
    %2 = tpu.matmul %0, %1, %cst {dimension_numbers = #tpu.dot_dimension_numbers<[1], [0], [0], [1], [0, 0, 1, 1], [], []>} : vector<32x288xbf16>, vector<288x64xbf16>, vector<32x64xf32> -> vector<32x64xf32>
    %c0_3 = arith.constant 0 : index
    %c0_4 = arith.constant 0 : index
    %3 = vector.load %arg3[%c0_3, %c0_4] : memref<1x64xf32, #tpu.memory_space<vmem>>, vector<1x64xf32>
    %4 = vector.broadcast %3 : vector<1x64xf32> to vector<32x64xf32>
    %5 = arith.addf %2, %4 : vector<32x64xf32>
    %cst_5 = arith.constant 0.000000e+00 : f32
    %6 = vector.broadcast %cst_5 : f32 to vector<32x64xf32>
    %7 = arith.maximumf %5, %6 : vector<32x64xf32>
    %8 = arith.truncf %7 : vector<32x64xf32> to vector<32x64xbf16>
    %c0_6 = arith.constant 0 : index
    %c0_7 = arith.constant 0 : index
    %9 = vector.load %arg4[%c0_6, %c0_7] : memref<32x64xbf16, #tpu.memory_space<vmem>>, vector<32x64xbf16>
    tpu.vector_store %arg4[%c0_6, %c0_7], %8 {strides = array<i32>} : memref<32x64xbf16, #tpu.memory_space<vmem>>, vector<32x64xbf16>,
    return
  }
  func.func @transform_0(%arg0: i32) -> (i32, i32) {
    %c0_i32 = arith.constant 0 : i32
    %c0_i32_0 = arith.constant 0 : i32
    return %arg0, %c0_i32 : i32, i32
  }
  func.func @transform_1(%arg0: i32) -> (i32, i32) {
    %c0_i32 = arith.constant 0 : i32
    %c0_i32_0 = arith.constant 0 : i32
    %c0_i32_1 = arith.constant 0 : i32
    return %c0_i32, %c0_i32_0 : i32, i32
  }
  func.func @transform_2(%arg0: i32) -> (i32, i32) {
    %c0_i32 = arith.constant 0 : i32
    %c0_i32_0 = arith.constant 0 : i32
    %c0_i32_1 = arith.constant 0 : i32
    return %c0_i32, %c0_i32_0 : i32, i32
  }
  func.func @transform_3(%arg0: i32) -> (i32, i32) {
    %c0_i32 = arith.constant 0 : i32
    %c0_i32_0 = arith.constant 0 : i32
    return %arg0, %c0_i32 : i32, i32
  }
}

module attributes {stable_mosaic.version = 11 : i64} {
  func.func @kernel(%arg0: i32, %arg1: memref<32x32xbf16, #tpu.memory_space<vmem>>, %arg2: memref<32x64xbf16, #tpu.memory_space<vmem>>, %arg3: memref<1x64xf32, #tpu.memory_space<vmem>>, %arg4: memref<32x64xbf16, #tpu.memory_space<vmem>>) attributes {dimension_semantics = [#tpu.dimension_semantics<parallel>], iteration_bounds = array<i64: 1>, scalar_prefetch = 0 : i64, scratch_operands = 0 : i64, tpu.core_type = #tpu.core_type<tc>, window_params = [{transform_indices = @transform_0, window_bounds = array<i64: 32, 32>}, {pipeline_mode = #tpu.pipeline_mode<synchronous>, transform_indices = @transform_1, window_bounds = array<i64: 32, 64>}, {pipeline_mode = #tpu.pipeline_mode<synchronous>, transform_indices = @transform_2, window_bounds = array<i64: 1, 64>}, {transform_indices = @transform_3, window_bounds = array<i64: 32, 64>}]} {
    %c0 = arith.constant 0 : index
    %c0_0 = arith.constant 0 : index
    %0 = vector.load %arg1[%c0, %c0_0] : memref<32x32xbf16, #tpu.memory_space<vmem>>, vector<32x32xbf16>
    %c0_1 = arith.constant 0 : index
    %c0_2 = arith.constant 0 : index
    %1 = vector.load %arg2[%c0_1, %c0_2] : memref<32x64xbf16, #tpu.memory_space<vmem>>, vector<32x64xbf16>
    %cst = arith.constant dense<0.000000e+00> : vector<32x64xf32>
    %2 = tpu.matmul %0, %1, %cst {dimension_numbers = #tpu.dot_dimension_numbers<[1], [0], [0], [1], [0, 0, 1, 1], [], []>} : vector<32x32xbf16>, vector<32x64xbf16>, vector<32x64xf32> -> vector<32x64xf32>
    %c0_3 = arith.constant 0 : index
    %c0_4 = arith.constant 0 : index
    %3 = vector.load %arg3[%c0_3, %c0_4] : memref<1x64xf32, #tpu.memory_space<vmem>>, vector<1x64xf32>
    %4 = vector.broadcast %3 : vector<1x64xf32> to vector<32x64xf32>
    %5 = arith.addf %2, %4 : vector<32x64xf32>
    %6 = arith.truncf %5 : vector<32x64xf32> to vector<32x64xbf16>
    %c0_5 = arith.constant 0 : index
    %c0_6 = arith.constant 0 : index
    %7 = vector.load %arg4[%c0_5, %c0_6] : memref<32x64xbf16, #tpu.memory_space<vmem>>, vector<32x64xbf16>
    tpu.vector_store %arg4[%c0_5, %c0_6], %6 {strides = array<i32>} : memref<32x64xbf16, #tpu.memory_space<vmem>>, vector<32x64xbf16>,
    return
  }
  func.func @transform_0(%arg0: i32) -> (i32, i32) {
    %c0_i32 = arith.constant 0 : i32
    %c0_i32_0 = arith.constant 0 : i32
    return %arg0, %c0_i32 : i32, i32
  }
  func.func @transform_1(%arg0: i32) -> (i32, i32) {
    %c0_i32 = arith.constant 0 : i32
    %c0_i32_0 = arith.constant 0 : i32
    %c0_i32_1 = arith.constant 0 : i32
    return %c0_i32, %c0_i32_0 : i32, i32
  }
  func.func @transform_2(%arg0: i32) -> (i32, i32) {
    %c0_i32 = arith.constant 0 : i32
    %c0_i32_0 = arith.constant 0 : i32
    %c0_i32_1 = arith.constant 0 : i32
    return %c0_i32, %c0_i32_0 : i32, i32
  }
  func.func @transform_3(%arg0: i32) -> (i32, i32) {
    %c0_i32 = arith.constant 0 : i32
    %c0_i32_0 = arith.constant 0 : i32
    return %arg0, %c0_i32 : i32, i32
  }
}

module attributes {stable_mosaic.version = 11 : i64} {
  func.func @kernel(%arg0: i32, %arg1: memref<32x576xbf16, #tpu.memory_space<vmem>>, %arg2: memref<576x64xbf16, #tpu.memory_space<vmem>>, %arg3: memref<1x64xf32, #tpu.memory_space<vmem>>, %arg4: memref<32x64xbf16, #tpu.memory_space<vmem>>, %arg5: memref<32x64xbf16, #tpu.memory_space<vmem>>) attributes {dimension_semantics = [#tpu.dimension_semantics<parallel>], iteration_bounds = array<i64: 1>, scalar_prefetch = 0 : i64, scratch_operands = 0 : i64, tpu.core_type = #tpu.core_type<tc>, window_params = [{transform_indices = @transform_0, window_bounds = array<i64: 32, 576>}, {pipeline_mode = #tpu.pipeline_mode<synchronous>, transform_indices = @transform_1, window_bounds = array<i64: 576, 64>}, {pipeline_mode = #tpu.pipeline_mode<synchronous>, transform_indices = @transform_2, window_bounds = array<i64: 1, 64>}, {transform_indices = @transform_3, window_bounds = array<i64: 32, 64>}, {transform_indices = @transform_4, window_bounds = array<i64: 32, 64>}]} {
    %c0 = arith.constant 0 : index
    %c0_0 = arith.constant 0 : index
    %0 = vector.load %arg1[%c0, %c0_0] : memref<32x576xbf16, #tpu.memory_space<vmem>>, vector<32x576xbf16>
    %c0_1 = arith.constant 0 : index
    %c0_2 = arith.constant 0 : index
    %1 = vector.load %arg2[%c0_1, %c0_2] : memref<576x64xbf16, #tpu.memory_space<vmem>>, vector<576x64xbf16>
    %cst = arith.constant dense<0.000000e+00> : vector<32x64xf32>
    %2 = tpu.matmul %0, %1, %cst {dimension_numbers = #tpu.dot_dimension_numbers<[1], [0], [0], [1], [0, 0, 1, 1], [], []>} : vector<32x576xbf16>, vector<576x64xbf16>, vector<32x64xf32> -> vector<32x64xf32>
    %c0_3 = arith.constant 0 : index
    %c0_4 = arith.constant 0 : index
    %3 = vector.load %arg3[%c0_3, %c0_4] : memref<1x64xf32, #tpu.memory_space<vmem>>, vector<1x64xf32>
    %4 = vector.broadcast %3 : vector<1x64xf32> to vector<32x64xf32>
    %5 = arith.addf %2, %4 : vector<32x64xf32>
    %c0_5 = arith.constant 0 : index
    %c0_6 = arith.constant 0 : index
    %6 = vector.load %arg4[%c0_5, %c0_6] : memref<32x64xbf16, #tpu.memory_space<vmem>>, vector<32x64xbf16>
    %7 = arith.extf %6 : vector<32x64xbf16> to vector<32x64xf32>
    %8 = arith.addf %5, %7 : vector<32x64xf32>
    %cst_7 = arith.constant 0.000000e+00 : f32
    %9 = vector.broadcast %cst_7 : f32 to vector<32x64xf32>
    %10 = arith.maximumf %8, %9 : vector<32x64xf32>
    %11 = arith.truncf %10 : vector<32x64xf32> to vector<32x64xbf16>
    %c0_8 = arith.constant 0 : index
    %c0_9 = arith.constant 0 : index
    %12 = vector.load %arg5[%c0_8, %c0_9] : memref<32x64xbf16, #tpu.memory_space<vmem>>, vector<32x64xbf16>
    tpu.vector_store %arg5[%c0_8, %c0_9], %11 {strides = array<i32>} : memref<32x64xbf16, #tpu.memory_space<vmem>>, vector<32x64xbf16>,
    return
  }
  func.func @transform_0(%arg0: i32) -> (i32, i32) {
    %c0_i32 = arith.constant 0 : i32
    %c0_i32_0 = arith.constant 0 : i32
    return %arg0, %c0_i32 : i32, i32
  }
  func.func @transform_1(%arg0: i32) -> (i32, i32) {
    %c0_i32 = arith.constant 0 : i32
    %c0_i32_0 = arith.constant 0 : i32
    %c0_i32_1 = arith.constant 0 : i32
    return %c0_i32, %c0_i32_0 : i32, i32
  }
  func.func @transform_2(%arg0: i32) -> (i32, i32) {
    %c0_i32 = arith.constant 0 : i32
    %c0_i32_0 = arith.constant 0 : i32
    %c0_i32_1 = arith.constant 0 : i32
    return %c0_i32, %c0_i32_0 : i32, i32
  }
  func.func @transform_3(%arg0: i32) -> (i32, i32) {
    %c0_i32 = arith.constant 0 : i32
    %c0_i32_0 = arith.constant 0 : i32
    return %arg0, %c0_i32 : i32, i32
  }
  func.func @transform_4(%arg0: i32) -> (i32, i32) {
    %c0_i32 = arith.constant 0 : i32
    %c0_i32_0 = arith.constant 0 : i32
    return %arg0, %c0_i32 : i32, i32
  }
}

module attributes {stable_mosaic.version = 11 : i64} {
  func.func @kernel(%arg0: i32, %arg1: memref<32x576xbf16, #tpu.memory_space<vmem>>, %arg2: memref<576x64xbf16, #tpu.memory_space<vmem>>, %arg3: memref<1x64xf32, #tpu.memory_space<vmem>>, %arg4: memref<32x64xbf16, #tpu.memory_space<vmem>>) attributes {dimension_semantics = [#tpu.dimension_semantics<parallel>], iteration_bounds = array<i64: 1>, scalar_prefetch = 0 : i64, scratch_operands = 0 : i64, tpu.core_type = #tpu.core_type<tc>, window_params = [{transform_indices = @transform_0, window_bounds = array<i64: 32, 576>}, {pipeline_mode = #tpu.pipeline_mode<synchronous>, transform_indices = @transform_1, window_bounds = array<i64: 576, 64>}, {pipeline_mode = #tpu.pipeline_mode<synchronous>, transform_indices = @transform_2, window_bounds = array<i64: 1, 64>}, {transform_indices = @transform_3, window_bounds = array<i64: 32, 64>}]} {
    %c0 = arith.constant 0 : index
    %c0_0 = arith.constant 0 : index
    %0 = vector.load %arg1[%c0, %c0_0] : memref<32x576xbf16, #tpu.memory_space<vmem>>, vector<32x576xbf16>
    %c0_1 = arith.constant 0 : index
    %c0_2 = arith.constant 0 : index
    %1 = vector.load %arg2[%c0_1, %c0_2] : memref<576x64xbf16, #tpu.memory_space<vmem>>, vector<576x64xbf16>
    %cst = arith.constant dense<0.000000e+00> : vector<32x64xf32>
    %2 = tpu.matmul %0, %1, %cst {dimension_numbers = #tpu.dot_dimension_numbers<[1], [0], [0], [1], [0, 0, 1, 1], [], []>} : vector<32x576xbf16>, vector<576x64xbf16>, vector<32x64xf32> -> vector<32x64xf32>
    %c0_3 = arith.constant 0 : index
    %c0_4 = arith.constant 0 : index
    %3 = vector.load %arg3[%c0_3, %c0_4] : memref<1x64xf32, #tpu.memory_space<vmem>>, vector<1x64xf32>
    %4 = vector.broadcast %3 : vector<1x64xf32> to vector<32x64xf32>
    %5 = arith.addf %2, %4 : vector<32x64xf32>
    %cst_5 = arith.constant 0.000000e+00 : f32
    %6 = vector.broadcast %cst_5 : f32 to vector<32x64xf32>
    %7 = arith.maximumf %5, %6 : vector<32x64xf32>
    %8 = arith.truncf %7 : vector<32x64xf32> to vector<32x64xbf16>
    %c0_6 = arith.constant 0 : index
    %c0_7 = arith.constant 0 : index
    %9 = vector.load %arg4[%c0_6, %c0_7] : memref<32x64xbf16, #tpu.memory_space<vmem>>, vector<32x64xbf16>
    tpu.vector_store %arg4[%c0_6, %c0_7], %8 {strides = array<i32>} : memref<32x64xbf16, #tpu.memory_space<vmem>>, vector<32x64xbf16>,
    return
  }
  func.func @transform_0(%arg0: i32) -> (i32, i32) {
    %c0_i32 = arith.constant 0 : i32
    %c0_i32_0 = arith.constant 0 : i32
    return %arg0, %c0_i32 : i32, i32
  }
  func.func @transform_1(%arg0: i32) -> (i32, i32) {
    %c0_i32 = arith.constant 0 : i32
    %c0_i32_0 = arith.constant 0 : i32
    %c0_i32_1 = arith.constant 0 : i32
    return %c0_i32, %c0_i32_0 : i32, i32
  }
  func.func @transform_2(%arg0: i32) -> (i32, i32) {
    %c0_i32 = arith.constant 0 : i32
    %c0_i32_0 = arith.constant 0 : i32
    %c0_i32_1 = arith.constant 0 : i32
    return %c0_i32, %c0_i32_0 : i32, i32
  }
  func.func @transform_3(%arg0: i32) -> (i32, i32) {
    %c0_i32 = arith.constant 0 : i32
    %c0_i32_0 = arith.constant 0 : i32
    return %arg0, %c0_i32 : i32, i32
  }
}

module attributes {stable_mosaic.version = 11 : i64} {
  func.func @kernel(%arg0: i32, %arg1: memref<8x576xbf16, #tpu.memory_space<vmem>>, %arg2: memref<576x128xbf16, #tpu.memory_space<vmem>>, %arg3: memref<1x128xf32, #tpu.memory_space<vmem>>, %arg4: memref<8x128xbf16, #tpu.memory_space<vmem>>) attributes {dimension_semantics = [#tpu.dimension_semantics<parallel>], iteration_bounds = array<i64: 1>, scalar_prefetch = 0 : i64, scratch_operands = 0 : i64, tpu.core_type = #tpu.core_type<tc>, window_params = [{transform_indices = @transform_0, window_bounds = array<i64: 8, 576>}, {pipeline_mode = #tpu.pipeline_mode<synchronous>, transform_indices = @transform_1, window_bounds = array<i64: 576, 128>}, {pipeline_mode = #tpu.pipeline_mode<synchronous>, transform_indices = @transform_2, window_bounds = array<i64: 1, 128>}, {transform_indices = @transform_3, window_bounds = array<i64: 8, 128>}]} {
    %c0 = arith.constant 0 : index
    %c0_0 = arith.constant 0 : index
    %0 = vector.load %arg1[%c0, %c0_0] : memref<8x576xbf16, #tpu.memory_space<vmem>>, vector<8x576xbf16>
    %c0_1 = arith.constant 0 : index
    %c0_2 = arith.constant 0 : index
    %1 = vector.load %arg2[%c0_1, %c0_2] : memref<576x128xbf16, #tpu.memory_space<vmem>>, vector<576x128xbf16>
    %cst = arith.constant dense<0.000000e+00> : vector<8x128xf32>
    %2 = tpu.matmul %0, %1, %cst {dimension_numbers = #tpu.dot_dimension_numbers<[1], [0], [0], [1], [0, 0, 1, 1], [], []>} : vector<8x576xbf16>, vector<576x128xbf16>, vector<8x128xf32> -> vector<8x128xf32>
    %c0_3 = arith.constant 0 : index
    %c0_4 = arith.constant 0 : index
    %3 = vector.load %arg3[%c0_3, %c0_4] : memref<1x128xf32, #tpu.memory_space<vmem>>, vector<1x128xf32>
    %4 = vector.broadcast %3 : vector<1x128xf32> to vector<8x128xf32>
    %5 = arith.addf %2, %4 : vector<8x128xf32>
    %cst_5 = arith.constant 0.000000e+00 : f32
    %6 = vector.broadcast %cst_5 : f32 to vector<8x128xf32>
    %7 = arith.maximumf %5, %6 : vector<8x128xf32>
    %8 = arith.truncf %7 : vector<8x128xf32> to vector<8x128xbf16>
    %c0_6 = arith.constant 0 : index
    %c0_7 = arith.constant 0 : index
    %9 = vector.load %arg4[%c0_6, %c0_7] : memref<8x128xbf16, #tpu.memory_space<vmem>>, vector<8x128xbf16>
    tpu.vector_store %arg4[%c0_6, %c0_7], %8 {strides = array<i32>} : memref<8x128xbf16, #tpu.memory_space<vmem>>, vector<8x128xbf16>,
    return
  }
  func.func @transform_0(%arg0: i32) -> (i32, i32) {
    %c0_i32 = arith.constant 0 : i32
    %c0_i32_0 = arith.constant 0 : i32
    return %arg0, %c0_i32 : i32, i32
  }
  func.func @transform_1(%arg0: i32) -> (i32, i32) {
    %c0_i32 = arith.constant 0 : i32
    %c0_i32_0 = arith.constant 0 : i32
    %c0_i32_1 = arith.constant 0 : i32
    return %c0_i32, %c0_i32_0 : i32, i32
  }
  func.func @transform_2(%arg0: i32) -> (i32, i32) {
    %c0_i32 = arith.constant 0 : i32
    %c0_i32_0 = arith.constant 0 : i32
    %c0_i32_1 = arith.constant 0 : i32
    return %c0_i32, %c0_i32_0 : i32, i32
  }
  func.func @transform_3(%arg0: i32) -> (i32, i32) {
    %c0_i32 = arith.constant 0 : i32
    %c0_i32_0 = arith.constant 0 : i32
    return %arg0, %c0_i32 : i32, i32
  }
}

module attributes {stable_mosaic.version = 11 : i64} {
  func.func @kernel(%arg0: i32, %arg1: memref<8x1152xbf16, #tpu.memory_space<vmem>>, %arg2: memref<1152x128xbf16, #tpu.memory_space<vmem>>, %arg3: memref<1x128xf32, #tpu.memory_space<vmem>>, %arg4: memref<8x128xbf16, #tpu.memory_space<vmem>>, %arg5: memref<8x128xbf16, #tpu.memory_space<vmem>>) attributes {dimension_semantics = [#tpu.dimension_semantics<parallel>], iteration_bounds = array<i64: 1>, scalar_prefetch = 0 : i64, scratch_operands = 0 : i64, tpu.core_type = #tpu.core_type<tc>, window_params = [{transform_indices = @transform_0, window_bounds = array<i64: 8, 1152>}, {pipeline_mode = #tpu.pipeline_mode<synchronous>, transform_indices = @transform_1, window_bounds = array<i64: 1152, 128>}, {pipeline_mode = #tpu.pipeline_mode<synchronous>, transform_indices = @transform_2, window_bounds = array<i64: 1, 128>}, {transform_indices = @transform_3, window_bounds = array<i64: 8, 128>}, {transform_indices = @transform_4, window_bounds = array<i64: 8, 128>}]} {
    %c0 = arith.constant 0 : index
    %c0_0 = arith.constant 0 : index
    %0 = vector.load %arg1[%c0, %c0_0] : memref<8x1152xbf16, #tpu.memory_space<vmem>>, vector<8x1152xbf16>
    %c0_1 = arith.constant 0 : index
    %c0_2 = arith.constant 0 : index
    %1 = vector.load %arg2[%c0_1, %c0_2] : memref<1152x128xbf16, #tpu.memory_space<vmem>>, vector<1152x128xbf16>
    %cst = arith.constant dense<0.000000e+00> : vector<8x128xf32>
    %2 = tpu.matmul %0, %1, %cst {dimension_numbers = #tpu.dot_dimension_numbers<[1], [0], [0], [1], [0, 0, 1, 1], [], []>} : vector<8x1152xbf16>, vector<1152x128xbf16>, vector<8x128xf32> -> vector<8x128xf32>
    %c0_3 = arith.constant 0 : index
    %c0_4 = arith.constant 0 : index
    %3 = vector.load %arg3[%c0_3, %c0_4] : memref<1x128xf32, #tpu.memory_space<vmem>>, vector<1x128xf32>
    %4 = vector.broadcast %3 : vector<1x128xf32> to vector<8x128xf32>
    %5 = arith.addf %2, %4 : vector<8x128xf32>
    %c0_5 = arith.constant 0 : index
    %c0_6 = arith.constant 0 : index
    %6 = vector.load %arg4[%c0_5, %c0_6] : memref<8x128xbf16, #tpu.memory_space<vmem>>, vector<8x128xbf16>
    %7 = arith.extf %6 : vector<8x128xbf16> to vector<8x128xf32>
    %8 = arith.addf %5, %7 : vector<8x128xf32>
    %cst_7 = arith.constant 0.000000e+00 : f32
    %9 = vector.broadcast %cst_7 : f32 to vector<8x128xf32>
    %10 = arith.maximumf %8, %9 : vector<8x128xf32>
    %11 = arith.truncf %10 : vector<8x128xf32> to vector<8x128xbf16>
    %c0_8 = arith.constant 0 : index
    %c0_9 = arith.constant 0 : index
    %12 = vector.load %arg5[%c0_8, %c0_9] : memref<8x128xbf16, #tpu.memory_space<vmem>>, vector<8x128xbf16>
    tpu.vector_store %arg5[%c0_8, %c0_9], %11 {strides = array<i32>} : memref<8x128xbf16, #tpu.memory_space<vmem>>, vector<8x128xbf16>,
    return
  }
  func.func @transform_0(%arg0: i32) -> (i32, i32) {
    %c0_i32 = arith.constant 0 : i32
    %c0_i32_0 = arith.constant 0 : i32
    return %arg0, %c0_i32 : i32, i32
  }
  func.func @transform_1(%arg0: i32) -> (i32, i32) {
    %c0_i32 = arith.constant 0 : i32
    %c0_i32_0 = arith.constant 0 : i32
    %c0_i32_1 = arith.constant 0 : i32
    return %c0_i32, %c0_i32_0 : i32, i32
  }
  func.func @transform_2(%arg0: i32) -> (i32, i32) {
    %c0_i32 = arith.constant 0 : i32
    %c0_i32_0 = arith.constant 0 : i32
    %c0_i32_1 = arith.constant 0 : i32
    return %c0_i32, %c0_i32_0 : i32, i32
  }
  func.func @transform_3(%arg0: i32) -> (i32, i32) {
    %c0_i32 = arith.constant 0 : i32
    %c0_i32_0 = arith.constant 0 : i32
    return %arg0, %c0_i32 : i32, i32
  }
  func.func @transform_4(%arg0: i32) -> (i32, i32) {
    %c0_i32 = arith.constant 0 : i32
    %c0_i32_0 = arith.constant 0 : i32
    return %arg0, %c0_i32 : i32, i32
  }
}

module attributes {stable_mosaic.version = 11 : i64} {
  func.func @kernel(%arg0: i32, %arg1: memref<8x64xbf16, #tpu.memory_space<vmem>>, %arg2: memref<64x128xbf16, #tpu.memory_space<vmem>>, %arg3: memref<1x128xf32, #tpu.memory_space<vmem>>, %arg4: memref<8x128xbf16, #tpu.memory_space<vmem>>) attributes {dimension_semantics = [#tpu.dimension_semantics<parallel>], iteration_bounds = array<i64: 1>, scalar_prefetch = 0 : i64, scratch_operands = 0 : i64, tpu.core_type = #tpu.core_type<tc>, window_params = [{transform_indices = @transform_0, window_bounds = array<i64: 8, 64>}, {pipeline_mode = #tpu.pipeline_mode<synchronous>, transform_indices = @transform_1, window_bounds = array<i64: 64, 128>}, {pipeline_mode = #tpu.pipeline_mode<synchronous>, transform_indices = @transform_2, window_bounds = array<i64: 1, 128>}, {transform_indices = @transform_3, window_bounds = array<i64: 8, 128>}]} {
    %c0 = arith.constant 0 : index
    %c0_0 = arith.constant 0 : index
    %0 = vector.load %arg1[%c0, %c0_0] : memref<8x64xbf16, #tpu.memory_space<vmem>>, vector<8x64xbf16>
    %c0_1 = arith.constant 0 : index
    %c0_2 = arith.constant 0 : index
    %1 = vector.load %arg2[%c0_1, %c0_2] : memref<64x128xbf16, #tpu.memory_space<vmem>>, vector<64x128xbf16>
    %cst = arith.constant dense<0.000000e+00> : vector<8x128xf32>
    %2 = tpu.matmul %0, %1, %cst {dimension_numbers = #tpu.dot_dimension_numbers<[1], [0], [0], [1], [0, 0, 1, 1], [], []>} : vector<8x64xbf16>, vector<64x128xbf16>, vector<8x128xf32> -> vector<8x128xf32>
    %c0_3 = arith.constant 0 : index
    %c0_4 = arith.constant 0 : index
    %3 = vector.load %arg3[%c0_3, %c0_4] : memref<1x128xf32, #tpu.memory_space<vmem>>, vector<1x128xf32>
    %4 = vector.broadcast %3 : vector<1x128xf32> to vector<8x128xf32>
    %5 = arith.addf %2, %4 : vector<8x128xf32>
    %6 = arith.truncf %5 : vector<8x128xf32> to vector<8x128xbf16>
    %c0_5 = arith.constant 0 : index
    %c0_6 = arith.constant 0 : index
    %7 = vector.load %arg4[%c0_5, %c0_6] : memref<8x128xbf16, #tpu.memory_space<vmem>>, vector<8x128xbf16>
    tpu.vector_store %arg4[%c0_5, %c0_6], %6 {strides = array<i32>} : memref<8x128xbf16, #tpu.memory_space<vmem>>, vector<8x128xbf16>,
    return
  }
  func.func @transform_0(%arg0: i32) -> (i32, i32) {
    %c0_i32 = arith.constant 0 : i32
    %c0_i32_0 = arith.constant 0 : i32
    return %arg0, %c0_i32 : i32, i32
  }
  func.func @transform_1(%arg0: i32) -> (i32, i32) {
    %c0_i32 = arith.constant 0 : i32
    %c0_i32_0 = arith.constant 0 : i32
    %c0_i32_1 = arith.constant 0 : i32
    return %c0_i32, %c0_i32_0 : i32, i32
  }
  func.func @transform_2(%arg0: i32) -> (i32, i32) {
    %c0_i32 = arith.constant 0 : i32
    %c0_i32_0 = arith.constant 0 : i32
    %c0_i32_1 = arith.constant 0 : i32
    return %c0_i32, %c0_i32_0 : i32, i32
  }
  func.func @transform_3(%arg0: i32) -> (i32, i32) {
    %c0_i32 = arith.constant 0 : i32
    %c0_i32_0 = arith.constant 0 : i32
    return %arg0, %c0_i32 : i32, i32
  }
}

module attributes {stable_mosaic.version = 11 : i64} {
  func.func @kernel(%arg0: i32, %arg1: memref<8x1152xbf16, #tpu.memory_space<vmem>>, %arg2: memref<1152x128xbf16, #tpu.memory_space<vmem>>, %arg3: memref<1x128xf32, #tpu.memory_space<vmem>>, %arg4: memref<8x128xbf16, #tpu.memory_space<vmem>>) attributes {dimension_semantics = [#tpu.dimension_semantics<parallel>], iteration_bounds = array<i64: 1>, scalar_prefetch = 0 : i64, scratch_operands = 0 : i64, tpu.core_type = #tpu.core_type<tc>, window_params = [{transform_indices = @transform_0, window_bounds = array<i64: 8, 1152>}, {pipeline_mode = #tpu.pipeline_mode<synchronous>, transform_indices = @transform_1, window_bounds = array<i64: 1152, 128>}, {pipeline_mode = #tpu.pipeline_mode<synchronous>, transform_indices = @transform_2, window_bounds = array<i64: 1, 128>}, {transform_indices = @transform_3, window_bounds = array<i64: 8, 128>}]} {
    %c0 = arith.constant 0 : index
    %c0_0 = arith.constant 0 : index
    %0 = vector.load %arg1[%c0, %c0_0] : memref<8x1152xbf16, #tpu.memory_space<vmem>>, vector<8x1152xbf16>
    %c0_1 = arith.constant 0 : index
    %c0_2 = arith.constant 0 : index
    %1 = vector.load %arg2[%c0_1, %c0_2] : memref<1152x128xbf16, #tpu.memory_space<vmem>>, vector<1152x128xbf16>
    %cst = arith.constant dense<0.000000e+00> : vector<8x128xf32>
    %2 = tpu.matmul %0, %1, %cst {dimension_numbers = #tpu.dot_dimension_numbers<[1], [0], [0], [1], [0, 0, 1, 1], [], []>} : vector<8x1152xbf16>, vector<1152x128xbf16>, vector<8x128xf32> -> vector<8x128xf32>
    %c0_3 = arith.constant 0 : index
    %c0_4 = arith.constant 0 : index
    %3 = vector.load %arg3[%c0_3, %c0_4] : memref<1x128xf32, #tpu.memory_space<vmem>>, vector<1x128xf32>
    %4 = vector.broadcast %3 : vector<1x128xf32> to vector<8x128xf32>
    %5 = arith.addf %2, %4 : vector<8x128xf32>
    %cst_5 = arith.constant 0.000000e+00 : f32
    %6 = vector.broadcast %cst_5 : f32 to vector<8x128xf32>
    %7 = arith.maximumf %5, %6 : vector<8x128xf32>
    %8 = arith.truncf %7 : vector<8x128xf32> to vector<8x128xbf16>
    %c0_6 = arith.constant 0 : index
    %c0_7 = arith.constant 0 : index
    %9 = vector.load %arg4[%c0_6, %c0_7] : memref<8x128xbf16, #tpu.memory_space<vmem>>, vector<8x128xbf16>
    tpu.vector_store %arg4[%c0_6, %c0_7], %8 {strides = array<i32>} : memref<8x128xbf16, #tpu.memory_space<vmem>>, vector<8x128xbf16>,
    return
  }
  func.func @transform_0(%arg0: i32) -> (i32, i32) {
    %c0_i32 = arith.constant 0 : i32
    %c0_i32_0 = arith.constant 0 : i32
    return %arg0, %c0_i32 : i32, i32
  }
  func.func @transform_1(%arg0: i32) -> (i32, i32) {
    %c0_i32 = arith.constant 0 : i32
    %c0_i32_0 = arith.constant 0 : i32
    %c0_i32_1 = arith.constant 0 : i32
    return %c0_i32, %c0_i32_0 : i32, i32
  }
  func.func @transform_2(%arg0: i32) -> (i32, i32) {
    %c0_i32 = arith.constant 0 : i32
    %c0_i32_0 = arith.constant 0 : i32
    %c0_i32_1 = arith.constant 0 : i32
    return %c0_i32, %c0_i32_0 : i32, i32
  }
  func.func @transform_3(%arg0: i32) -> (i32, i32) {
    %c0_i32 = arith.constant 0 : i32
    %c0_i32_0 = arith.constant 0 : i32
    return %arg0, %c0_i32 : i32, i32
  }
}

module attributes {stable_mosaic.version = 11 : i64} {
  func.func @_pool_dist_kernel(%arg0: memref<2x4x128xbf16, #tpu.memory_space<vmem>>, %arg1: memref<8x128xf32, #tpu.memory_space<vmem>>, %arg2: memref<2x8xf32, #tpu.memory_space<vmem>>, %arg3: memref<2x128xf32, #tpu.memory_space<vmem>>) attributes {dimension_semantics = [], scalar_prefetch = 0 : i64, scratch_operands = 0 : i64, tpu.core_type = #tpu.core_type<tc>} {
    %c0 = arith.constant 0 : index
    %c0_0 = arith.constant 0 : index
    %c0_1 = arith.constant 0 : index
    %0 = vector.load %arg0[%c0, %c0_0, %c0_1] : memref<2x4x128xbf16, #tpu.memory_space<vmem>>, vector<2x4x128xbf16>
    %1 = arith.extf %0 : vector<2x4x128xbf16> to vector<2x4x128xf32>
    %cst = arith.constant dense<0.000000e+00> : vector<2x128xf32>
    %2 = vector.multi_reduction <add>, %1, %cst [1] : vector<2x4x128xf32> to vector<2x128xf32>
    %cst_2 = arith.constant 4.000000e+00 : f32
    %3 = vector.broadcast %cst_2 : f32 to vector<2x128xf32>
    %4 = arith.divf %2, %3 : vector<2x128xf32>
    %c0_3 = arith.constant 0 : index
    %c0_4 = arith.constant 0 : index
    %5 = vector.load %arg1[%c0_3, %c0_4] : memref<8x128xf32, #tpu.memory_space<vmem>>, vector<8x128xf32>
    %6 = arith.mulf %4, %4 : vector<2x128xf32>
    %cst_5 = arith.constant dense<0.000000e+00> : vector<2xf32>
    %7 = vector.multi_reduction <add>, %6, %cst_5 [1] : vector<2x128xf32> to vector<2xf32>
    %8 = vector.shape_cast %7 : vector<2xf32> to vector<2x1xf32>
    %9 = arith.mulf %5, %5 : vector<8x128xf32>
    %cst_6 = arith.constant dense<0.000000e+00> : vector<8xf32>
    %10 = vector.multi_reduction <add>, %9, %cst_6 [1] : vector<8x128xf32> to vector<8xf32>
    %11 = vector.shape_cast %10 : vector<8xf32> to vector<8x1xf32>
    %cst_7 = arith.constant dense<0.000000e+00> : vector<2x8xf32>
    %12 = tpu.matmul %4, %5, %cst_7 {dimension_numbers = #tpu.dot_dimension_numbers<[1], [1], [0], [0], [0, 0, 1, 0], [], []>} : vector<2x128xf32>, vector<8x128xf32>, vector<2x8xf32> -> vector<2x8xf32>
    %cst_8 = arith.constant 2.000000e+00 : f32
    %13 = vector.broadcast %cst_8 : f32 to vector<2x8xf32>
    %14 = arith.mulf %13, %12 : vector<2x8xf32>
    %15 = vector.broadcast %8 : vector<2x1xf32> to vector<2x8xf32>
    %16 = arith.subf %15, %14 : vector<2x8xf32>
    %17 = tpu.transpose %11, [1, 0] : vector<8x1xf32> -> vector<1x8xf32>
    %18 = vector.broadcast %17 : vector<1x8xf32> to vector<2x8xf32>
    %19 = arith.addf %16, %18 : vector<2x8xf32>
    %c0_9 = arith.constant 0 : index
    %c0_10 = arith.constant 0 : index
    %20 = vector.load %arg2[%c0_9, %c0_10] : memref<2x8xf32, #tpu.memory_space<vmem>>, vector<2x8xf32>
    tpu.vector_store %arg2[%c0_9, %c0_10], %19 {strides = array<i32>} : memref<2x8xf32, #tpu.memory_space<vmem>>, vector<2x8xf32>,
    %c0_11 = arith.constant 0 : index
    %c0_12 = arith.constant 0 : index
    %21 = vector.load %arg3[%c0_11, %c0_12] : memref<2x128xf32, #tpu.memory_space<vmem>>, vector<2x128xf32>
    tpu.vector_store %arg3[%c0_11, %c0_12], %4 {strides = array<i32>} : memref<2x128xf32, #tpu.memory_space<vmem>>, vector<2x128xf32>,
    return
  }
}

</mosaic_0001>

<bundles_post_ra>
// kernel: custom_resnet_forward.22
= control target key start
LH: loop header
LB: loop body
LE: loop exit
PB: predicated region body
PF: predicated region fallthrough
CT: control target
= control target key end

     0   :  { %s1761_s12 = smov 0   ;;  %s2221_s0 = inlined_call_operand.vmem [shape: bf16[2048,147], index: 0, kind: input, shape index: {}]   ;;  %s2222_s1 = inlined_call_operand.vmem [shape: bf16[147,16], index: 1, kind: input, shape index: {}]   ;;  %s2223_s2 = inlined_call_operand.vmem [shape: f32[1,16], index: 2, kind: input, shape index: {}]   ;;  %s2224_s3 = inlined_call_operand.vmem [shape: bf16[2048,16], index: 3, kind: output, shape index: {}]  }
   0x1 LB: > { %s1301_s13 = sadd.s32 4294967295, %s1738_s12   ;;  %p1305_p0 = scmp.ge.s32.totalorder %s1738_s12, 1  ;;  %s1738_s12 = sphi %s1761_s12, %s13_s12  }
   0x2   : > { %p139_p1 = scmp.lt.s32.totalorder %s1738_s12, 5 }
   0x4   : > { %p140_p2 = pnand %p1305_p0, %p139_p1 }
   0x5   : > { %s1306_s18 = sshll.u32 (!%p140_p2), %s1301_s13, 6 }
   0x6   : > { %143 = sbr.rel (%p140_p2) target bundleno = 432 (0x1b0), region = 32  ;;  %p165_p3 = scmp.lt.s32.totalorder (!%p140_p2), %s1306_s18, 255 }
   0xb   : > { %v1709_v0 = vld [vmem:[%s2222_s1 + $0x38] sm:$0xff]  ;;  %v260_v1 = vld [vmem:[%s2222_s1 + $0x48] sm:$0x3]  ;;  %vm707_vm0 = vcmask 1040384   ;;  %vm708_vm1 = vcmask 1041408   ;;  %v1708_v3 = vld [vmem:[%s2222_s1 + $0x30] sm:$0xff] }
   0xc   : > { %v590_v2 = vunpack.c.l.b16 %v260_v1  ;;  %714 = vmatpush.bf16.msra.mxu0 %v1709_v0  ;;  %1711 = vmatpush.bf16.msra.mxu2 %v1709_v0  ;;  %v1740_v4 = vmov 65535   ;;  %s2226_s18 = smov (!%p165_p3, %s1306_s18), 255  ;;  %v1707_v9 = vld [vmem:[%s2222_s1 + $0x28] sm:$0xff]  ;;  %v1710_v10 = vld [vmem:[%s2222_s1 + $0x40] sm:$0xff]  ;;  %vm610_vm2 = vcmask 154624   ;;  %v1705_v18 = vld [vmem:[%s2222_s1 + $0x18] sm:$0xff] }
   0xd   : > { %v709_v5 = vsel %vm707_vm0, 4294967295, %v1740_v4  ;;  %s1637_s23 = sshll.u32 %s2226_s18, 3  ;;  %v1706_v14 = vld [vmem:[%s2222_s1 + $0x20] sm:$0xff]  ;;  %v1704_v19 = vld [vmem:[%s2222_s1 + $0x10] sm:$0xff]  ;;  %v1703_v20 = vld [vmem:[%s2222_s1 + $0x8] sm:$0xff]  ;;  %s1310_s15 = sshll.u32 %s2226_s18, 2 }
   0xe   : > { %v600_v6 = vpack.c.b16 %v590_v2, %v590_v2  ;;  %v710_v7 = vsel %vm708_vm1, %v709_v5, 0  ;;  %s1790_s28 = scalar_lea.vmem %s2221_s0, %s1637_s23  ;;  %v1702_v26 = vld [vmem:[%s2222_s1] sm:$0xff]  ;;  %s1919_s19 = scalar_lea.vmem %s2224_s3, %s1310_s15  ;;  %vm1180_vm3 = vcmask 125952  }
   0xf   : > { %v1638_v11 = vld [vmem:[%s1790_s28 + $0x4] sm:$0xf]  ;;  %v1315_v12 = vld [vmem:[%s1790_s28 + $0x8] sm:$0xf0]  ;;  %v1672_v15 = vld [vmem:[%s1790_s28 + $0x114] sm:$0xf] }
  0x10   : > { %v712_v8 = vand.u32 %v710_v7, %v600_v6  ;;  %715 = vmatpush.bf16.msra.mxu0 %v1708_v3  ;;  %1712 = vmatpush.bf16.msra.mxu2 %v1708_v3  ;;  %v1318_v13 = vor.u32 %v1638_v11, %v1315_v12  ;;  %v1451_v16 = vld [vmem:[%s1790_s28 + $0x118] sm:$0xf0]  ;;  %v1640_v21 = vld [vmem:[%s1790_s28 + $0x14] sm:$0xf]  ;;  %v1674_v23 = vld [vmem:[%s1790_s28 + $0x124] sm:$0xf] }
  0x11   : > { %v1454_v17 = vor.u32 %v1672_v15, %v1451_v16  ;;  %v1323_v22 = vld [vmem:[%s1790_s28 + $0x18] sm:$0xf0]  ;;  %v1459_v24 = vld [vmem:[%s1790_s28 + $0x128] sm:$0xf0]  ;;  %v1313_v27 = vld [vmem:[%s1790_s28] sm:$0xf] }
  0x12   : > { %889 = vmatpush.bf16.msra.mxu1 %v712_v8  ;;  %1719 = vmatpush.bf16.msra.mxu3 %v712_v8  ;;  %v1326_v25 = vor.u32 %v1640_v21, %v1323_v22  ;;  %v1639_v28 = vld [vmem:[%s1790_s28 + $0x4] sm:$0xf0]  ;;  %v1441_v29 = vld [vmem:[%s1790_s28 + $0x100] sm:$0xf]  ;;  %v1462_v31 = vor.u32 %v1674_v23, %v1459_v24  ;;  %v1642_v34 = vld [vmem:[%s1790_s28 + $0x24] sm:$0xf] }
  0x13   : > { %v1671_v30 = vld [vmem:[%s1790_s28 + $0x104] sm:$0xf0]  ;;  %v1314_v32 = vor.u32 %v1639_v28, %v1313_v27  ;;  %v1331_v35 = vld [vmem:[%s1790_s28 + $0x28] sm:$0xf0]  ;;  %v1676_v36 = vld [vmem:[%s1790_s28 + $0x134] sm:$0xf] }
  0x14   : > { %716 = vmatpush.bf16.msra.mxu0 %v1707_v9  ;;  %1713 = vmatpush.bf16.msra.mxu2 %v1707_v9  ;;  %v1442_v33 = vor.u32 %v1671_v30, %v1441_v29  ;;  %v1467_v37 = vld [vmem:[%s1790_s28 + $0x138] sm:$0xf0]  ;;  %v1334_v38 = vor.u32 %v1642_v34, %v1331_v35  ;;  %v1321_v39 = vld [vmem:[%s1790_s28 + $0x10] sm:$0xf]  ;;  %v1641_v40 = vld [vmem:[%s1790_s28 + $0x14] sm:$0xf0] }
  0x15   : > { %v1449_v41 = vld [vmem:[%s1790_s28 + $0x110] sm:$0xf]  ;;  %v1673_v42 = vld [vmem:[%s1790_s28 + $0x114] sm:$0xf0]  ;;  %v1470_v43 = vor.u32 %v1676_v36, %v1467_v37  ;;  %v1322_v44 = vor.u32 %v1641_v40, %v1321_v39  ;;  %v1644_v46 = vld [vmem:[%s1790_s28 + $0x34] sm:$0xf] }
  0x16   : > { %890 = vmatpush.bf16.msra.mxu1 %v1710_v10  ;;  %1720 = vmatpush.bf16.msra.mxu3 %v1710_v10  ;;  %v1450_v45 = vor.u32 %v1673_v42, %v1449_v41  ;;  %v1339_v47 = vld [vmem:[%s1790_s28 + $0x38] sm:$0xf0]  ;;  %v1678_v48 = vld [vmem:[%s1790_s28 + $0x144] sm:$0xf]  ;;  %v1475_v49 = vld [vmem:[%s1790_s28 + $0x148] sm:$0xf0] }
  0x17   : > { %v1342_v50 = vor.u32 %v1644_v46, %v1339_v47  ;;  %v1329_v51 = vld [vmem:[%s1790_s28 + $0x20] sm:$0xf]  ;;  %v1643_v52 = vld [vmem:[%s1790_s28 + $0x24] sm:$0xf0]  ;;  %v1478_v55 = vor.u32 %v1678_v48, %v1475_v49  ;;  %v1646_v58 = vld [vmem:[%s1790_s28 + $0x44] sm:$0xf] }
  0x18   : > { %717 = vmatpush.bf16.msra.mxu0 %v1706_v14  ;;  %1714 = vmatpush.bf16.msra.mxu2 %v1706_v14  ;;  %v1457_v53 = vld [vmem:[%s1790_s28 + $0x120] sm:$0xf]  ;;  %v1675_v54 = vld [vmem:[%s1790_s28 + $0x124] sm:$0xf0]  ;;  %v1330_v56 = vor.u32 %v1643_v52, %v1329_v51  ;;  %v1347_v59 = vld [vmem:[%s1790_s28 + $0x48] sm:$0xf0] }
  0x19   : > { %1603 = vmatmul.msk.bf16.vlgmr.msra.gmra.mxu1 %vm610_vm2, %v1318_v13  ;;  %1620 = vmatmul.msk.bf16.vlgmr.msra.gmra.mxu3 %vm610_vm2, %v1454_v17  ;;  %v1458_v57 = vor.u32 %v1675_v54, %v1457_v53  ;;  %v1680_v60 = vld [vmem:[%s1790_s28 + $0x154] sm:$0xf]  ;;  %v1483_v61 = vld [vmem:[%s1790_s28 + $0x158] sm:$0xf0]  ;;  %v1350_v62 = vor.u32 %v1646_v58, %v1347_v59  ;;  %v1337_v63 = vld [vmem:[%s1790_s28 + $0x30] sm:$0xf] }
  0x1a   : > { %v1645_v0 = vld [vmem:[%s1790_s28 + $0x34] sm:$0xf0]  ;;  %v1465_v1 = vld [vmem:[%s1790_s28 + $0x130] sm:$0xf]  ;;  %v1486_v3 = vor.u32 %v1680_v60, %v1483_v61  ;;  %v1648_v6 = vld [vmem:[%s1790_s28 + $0x54] sm:$0xf] }
  0x1b   : > { %v1677_v2 = vld [vmem:[%s1790_s28 + $0x134] sm:$0xf0]  ;;  %v1338_v4 = vor.u32 %v1645_v0, %v1337_v63  ;;  %v1355_v7 = vld [vmem:[%s1790_s28 + $0x58] sm:$0xf0]  ;;  %v1682_v8 = vld [vmem:[%s1790_s28 + $0x164] sm:$0xf] }
  0x1c   : > { %718 = vmatpush.bf16.msra.mxu0 %v1705_v18  ;;  %1715 = vmatpush.bf16.msra.mxu2 %v1705_v18  ;;  %v1466_v5 = vor.u32 %v1677_v2, %v1465_v1  ;;  %v1491_v9 = vld [vmem:[%s1790_s28 + $0x168] sm:$0xf0]  ;;  %v1358_v10 = vor.u32 %v1648_v6, %v1355_v7  ;;  %v1345_v11 = vld [vmem:[%s1790_s28 + $0x40] sm:$0xf]  ;;  %v1647_v12 = vld [vmem:[%s1790_s28 + $0x44] sm:$0xf0] }
  0x1d   : > { %v1473_v13 = vld [vmem:[%s1790_s28 + $0x140] sm:$0xf]  ;;  %v1679_v14 = vld [vmem:[%s1790_s28 + $0x144] sm:$0xf0]  ;;  %v1494_v15 = vor.u32 %v1682_v8, %v1491_v9  ;;  %v1346_v16 = vor.u32 %v1647_v12, %v1345_v11  ;;  %v1650_v18 = vld [vmem:[%s1790_s28 + $0x64] sm:$0xf] }
  0x1e   : > { %v1474_v17 = vor.u32 %v1679_v14, %v1473_v13  ;;  %v1499_v21 = vld [vmem:[%s1790_s28 + $0x178] sm:$0xf0]  ;;  %v1353_v23 = vld [vmem:[%s1790_s28 + $0x50] sm:$0xf]  ;;  %v1649_v24 = vld [vmem:[%s1790_s28 + $0x54] sm:$0xf0] }
  0x1f   : > { %v1354_v28 = vor.u32 %v1649_v24, %v1353_v23  ;;  %v1652_v30 = vld [vmem:[%s1790_s28 + $0x74] sm:$0xf]  ;;  %v1361_v35 = vld [vmem:[%s1790_s28 + $0x60] sm:$0xf]  ;;  %v1651_v36 = vld [vmem:[%s1790_s28 + $0x64] sm:$0xf0] }
  0x20   : > { %719 = vmatpush.bf16.msra.mxu0 %v1704_v19  ;;  %1716 = vmatpush.bf16.msra.mxu2 %v1704_v19  ;;  %v1363_v19 = vld [vmem:[%s1790_s28 + $0x68] sm:$0xf0]  ;;  %v1489_v37 = vld [vmem:[%s1790_s28 + $0x160] sm:$0xf]  ;;  %v1362_v40 = vor.u32 %v1651_v36, %v1361_v35  ;;  %v1654_v42 = vld [vmem:[%s1790_s28 + $0x84] sm:$0xf] }
  0x21   : > { %v1366_v22 = vor.u32 %v1650_v18, %v1363_v19  ;;  %v1369_v47 = vld [vmem:[%s1790_s28 + $0x70] sm:$0xf]  ;;  %v1653_v48 = vld [vmem:[%s1790_s28 + $0x74] sm:$0xf0]  ;;  %v1387_v58 = vld [vmem:[%s1790_s28 + $0x98] sm:$0xf0] }
  0x22   : > { %v1685_v51 = vld [vmem:[%s1790_s28 + $0x174] sm:$0xf0]  ;;  %v1370_v53 = vor.u32 %v1653_v48, %v1369_v47  ;;  %v1690_v59 = vld [vmem:[%s1790_s28 + $0x1a4] sm:$0xf]  ;;  %v1523_v60 = vld [vmem:[%s1790_s28 + $0x1a8] sm:$0xf0] }
  0x23   : > { %v1655_v63 = vld [vmem:[%s1790_s28 + $0x84] sm:$0xf0]  ;;  %v1906_v2 = vld [vmem:[%s2223_s2] ss:$0 sm:$0xff]  ;;  %v1658_v18 = vld [vmem:[%s1790_s28 + $0xa4] sm:$0xf] }
  0x24   : > { %720 = vmatpush.bf16.msra.mxu0 %v1703_v20  ;;  %1717 = vmatpush.bf16.msra.mxu2 %v1703_v20  ;;  %v1684_v20 = vld [vmem:[%s1790_s28 + $0x174] sm:$0xf]  ;;  %v1395_v19 = vld [vmem:[%s1790_s28 + $0xa8] sm:$0xf0]  ;;  %v1385_v24 = vld [vmem:[%s1790_s28 + $0x90] sm:$0xf] }
  0x25   : > { %v1502_v27 = vor.u32 %v1684_v20, %v1499_v21  ;;  %v1692_v21 = vld [vmem:[%s1790_s28 + $0x1b4] sm:$0xf]  ;;  %v1398_v23 = vor.u32 %v1658_v18, %v1395_v19  ;;  %v1403_v48 = vld [vmem:[%s1790_s28 + $0xb8] sm:$0xf0] }
  0x26   : > { %v1660_v47 = vld [vmem:[%s1790_s28 + $0xb4] sm:$0xf] }
  0x28   : > { %721 = vmatpush.bf16.msra.mxu0 %v1702_v26  ;;  %1718 = vmatpush.bf16.msra.mxu2 %v1702_v26  ;;  %v1681_v26 = vld [vmem:[%s1790_s28 + $0x154] sm:$0xf0] }
  0x29   : > { %1604 = vmatmul.msk.bf16.gmra.mxu1 %vm610_vm2, %v1326_v25  ;;  %1621 = vmatmul.msk.bf16.gmra.mxu3 %vm610_vm2, %v1462_v31  ;;  %v1481_v25 = vld [vmem:[%s1790_s28 + $0x150] sm:$0xf]  ;;  %v1371_v31 = vld [vmem:[%s1790_s28 + $0x78] sm:$0xf0] }
  0x2a   : > { %v1482_v29 = vor.u32 %v1681_v26, %v1481_v25  ;;  %v1374_v34 = vor.u32 %v1652_v30, %v1371_v31  ;;  %v1657_v25 = vld [vmem:[%s1790_s28 + $0x94] sm:$0xf0] }
  0x2b   : > { %722 = vmatmul.bf16.vlgmr.msra.gmra.mxu0 %v1314_v32  ;;  %802 = vmatmul.bf16.vlgmr.msra.gmra.mxu2 %v1442_v33  ;;  %v1686_v32 = vld [vmem:[%s1790_s28 + $0x184] sm:$0xf]  ;;  %v1507_v33 = vld [vmem:[%s1790_s28 + $0x188] sm:$0xf0]  ;;  %v1689_v30 = vld [vmem:[%s1790_s28 + $0x194] sm:$0xf0] }
  0x2c   : > { %v1510_v39 = vor.u32 %v1686_v32, %v1507_v33 }
  0x39   : > { %1605 = vmatmul.msk.bf16.gmra.mxu1 %vm610_vm2, %v1334_v38  ;;  %1622 = vmatmul.msk.bf16.gmra.mxu3 %vm610_vm2, %v1470_v43  ;;  %v1683_v38 = vld [vmem:[%s1790_s28 + $0x164] sm:$0xf0]  ;;  %v1379_v43 = vld [vmem:[%s1790_s28 + $0x88] sm:$0xf0] }
  0x3a   : > { %v1490_v41 = vor.u32 %v1683_v38, %v1489_v37  ;;  %v1382_v46 = vor.u32 %v1654_v42, %v1379_v43 }
  0x3b   : > { %727 = vmatmul.bf16.gmra.mxu0 %v1322_v44  ;;  %807 = vmatmul.bf16.gmra.mxu2 %v1450_v45  ;;  %v1688_v44 = vld [vmem:[%s1790_s28 + $0x194] sm:$0xf]  ;;  %v1515_v45 = vld [vmem:[%s1790_s28 + $0x198] sm:$0xf0] }
  0x3c   : > { %v1518_v52 = vor.u32 %v1688_v44, %v1515_v45 }
  0x49   : > { %1606 = vmatmul.msk.bf16.gmra.mxu1 %vm610_vm2, %v1342_v50  ;;  %1623 = vmatmul.msk.bf16.gmra.mxu3 %vm610_vm2, %v1478_v55  ;;  %v1497_v50 = vld [vmem:[%s1790_s28 + $0x170] sm:$0xf] }
  0x4a   : > { %v1498_v54 = vor.u32 %v1685_v51, %v1497_v50  ;;  %v1694_v51 = vld [vmem:[%s1790_s28 + $0x1c4] sm:$0xf] }
  0x4b   : > { %732 = vmatmul.bf16.gmra.mxu0 %v1330_v56  ;;  %812 = vmatmul.bf16.gmra.mxu2 %v1458_v57  ;;  %v1656_v57 = vld [vmem:[%s1790_s28 + $0x94] sm:$0xf] }
  0x4c   : > { %v1390_v61 = vor.u32 %v1656_v57, %v1387_v58  ;;  %v1659_v57 = vld [vmem:[%s1790_s28 + $0xa4] sm:$0xf0] }
  0x59   : > { %1607 = vmatmul.msk.bf16.gmra.mxu1 %vm610_vm2, %v1350_v62  ;;  %1624 = vmatmul.msk.bf16.gmra.mxu3 %vm610_vm2, %v1486_v3  ;;  %v1377_v62 = vld [vmem:[%s1790_s28 + $0x80] sm:$0xf] }
  0x5a   : > { %v1505_v3 = vld [vmem:[%s1790_s28 + $0x180] sm:$0xf]  ;;  %v1378_v6 = vor.u32 %v1655_v63, %v1377_v62  ;;  %v1691_v62 = vld [vmem:[%s1790_s28 + $0x1a4] sm:$0xf0] }
  0x5b   : > { %737 = vmatmul.bf16.gmra.mxu0 %v1338_v4  ;;  %817 = vmatmul.bf16.gmra.mxu2 %v1466_v5  ;;  %v1687_v4 = vld [vmem:[%s1790_s28 + $0x184] sm:$0xf0]  ;;  %v1526_v5 = vor.u32 %v1690_v59, %v1523_v60 }
  0x5c   : > { %v1506_v8 = vor.u32 %v1687_v4, %v1505_v3 }
  0x69   : > { %1608 = vmatmul.msk.bf16.gmra.mxu1 %vm610_vm2, %v1358_v10  ;;  %1625 = vmatmul.msk.bf16.gmra.mxu3 %vm610_vm2, %v1494_v15 }
  0x6b   : > { %742 = vmatmul.bf16.gmra.mxu0 %v1346_v16  ;;  %822 = vmatmul.bf16.gmra.mxu2 %v1474_v17 }
  0x79   : > { %1609 = vmatmul.msk.bf16.gmra.mxu1 %vm610_vm2, %v1366_v22  ;;  %1626 = vmatmul.msk.bf16.gmra.mxu3 %vm610_vm2, %v1502_v27  ;;  %v1531_v22 = vld [vmem:[%s1790_s28 + $0x1b8] sm:$0xf0] }
  0x7a   : > { %v1534_v31 = vor.u32 %v1692_v21, %v1531_v22  ;;  %v1662_v22 = vld [vmem:[%s1790_s28 + $0xc4] sm:$0xf] }
  0x7b   : > { %747 = vmatmul.bf16.gmra.mxu0 %v1354_v28  ;;  %827 = vmatmul.bf16.gmra.mxu2 %v1482_v29  ;;  %v1513_v29 = vld [vmem:[%s1790_s28 + $0x190] sm:$0xf] }
  0x7c   : > { %v1514_v36 = vor.u32 %v1689_v30, %v1513_v29 }
  0x89   : > { %1610 = vmatmul.msk.bf16.gmra.mxu1 %vm610_vm2, %v1374_v34  ;;  %1627 = vmatmul.msk.bf16.gmra.mxu3 %vm610_vm2, %v1510_v39  ;;  %v1386_v34 = vor.u32 %v1657_v25, %v1385_v24 }
  0x8b   : > { %752 = vmatmul.bf16.gmra.mxu0 %v1362_v40  ;;  %832 = vmatmul.bf16.gmra.mxu2 %v1490_v41 }
  0x96   : > { %v892_v49 = vpop.f32.mrf.mxu1 }
  0x99   : > { %1611 = vmatmul.msk.bf16.gmra.mxu1 %vm610_vm2, %v1382_v46  ;;  %1628 = vmatmul.msk.bf16.gmra.mxu3 %vm610_vm2, %v1518_v52  ;;  %v1539_v52 = vld [vmem:[%s1790_s28 + $0x1c8] sm:$0xf0] }
  0x9a   : > { %v1542_v63 = vor.u32 %v1694_v51, %v1539_v52 }
  0x9b   : > { %757 = vmatmul.bf16.gmra.mxu0 %v1370_v53  ;;  %837 = vmatmul.bf16.gmra.mxu2 %v1498_v54  ;;  %v1406_v54 = vor.u32 %v1660_v47, %v1403_v48 }
  0x9c   : > { %v1893_v55 = vpop.f32.mrf.mxu3 }
  0x9e   : > { %v894_v56 = vpop.f32.mrf.mxu1 }
  0xa4   : > { %v1901_v0 = vpop.f32.mrf.mxu3 }
  0xa6   : > { %v897_v1 = vpop.f32.mrf.mxu1 }
  0xa8   : > { %v723_v7 = vpop.f32.mrf.mxu0 }
  0xa9   : > { %1612 = vmatmul.msk.bf16.gmra.mxu1 %vm610_vm2, %v1390_v61  ;;  %v724_v9 = vadd.f32 %v1906_v2, %v723_v7  ;;  %1629 = vmatmul.msk.bf16.gmra.mxu3 %vm610_vm2, %v1526_v5  ;;  %v1521_v61 = vld [vmem:[%s1790_s28 + $0x1a0] sm:$0xf] }
  0xaa   : > { %v1522_v7 = vor.u32 %v1691_v62, %v1521_v61  ;;  %v1664_v61 = vld [vmem:[%s1790_s28 + $0xd4] sm:$0xf]  ;;  %v1419_v62 = vld [vmem:[%s1790_s28 + $0xd8] sm:$0xf0] }
  0xab   : > { %v893_v10 = vadd.f32 %v892_v49, %v724_v9  ;;  %762 = vmatmul.bf16.gmra.mxu0 %v1378_v6  ;;  %842 = vmatmul.bf16.gmra.mxu2 %v1506_v8 }
  0xac   : > { %v1914_v11 = vpop.f32.mrf.mxu3 }
  0xad   : > { %v1052_v12 = vmax.f32 %v893_v10, 0.0 }
  0xae   : > { %v899_v13 = vpop.f32.mrf.mxu1  ;;  %v1921_v15 = vpop.f32.mrf.mxu2 }
  0xaf   : > { %v1116_v14 = vpack.c.bf16 %v1052_v12, %v1052_v12 }
  0xb0   : > { %v725_v16 = vpop.f32.mrf.mxu0 }
  0xb1   : > { %1181 = vst.msk [vmem:[%s1919_s19] sm:$0xf] %vm1180_vm3, %v1116_v14  ;;  %v726_v17 = vadd.f32 %v1906_v2, %v725_v16 }
  0xb3   : > { %v895_v20 = vadd.f32 %v894_v56, %v726_v17  ;;  %v1393_v56 = vld [vmem:[%s1790_s28 + $0xa0] sm:$0xf] }
  0xb4   : > { %v1932_v26 = vpop.f32.mrf.mxu3 }
  0xb5   : > { %v1053_v27 = vmax.f32 %v895_v20, 0.0 }
  0xb6   : > { %v902_v28 = vpop.f32.mrf.mxu1  ;;  %v1936_v33 = vpop.f32.mrf.mxu2 }
  0xb7   : > { %v1117_v32 = vpack.c.bf16 %v1053_v27, %v1053_v27  ;;  %v1696_v27 = vld [vmem:[%s1790_s28 + $0x1d4] sm:$0xf] }
  0xb8   : > { %v728_v35 = vpop.f32.mrf.mxu0 }
  0xb9   : > { %1613 = vmatmul.msk.bf16.gmra.mxu1 %vm610_vm2, %v1398_v23  ;;  %1182 = vst.msk [vmem:[%s1919_s19 + $0x4] sm:$0xf] %vm1180_vm3, %v1117_v32  ;;  %v729_v37 = vadd.f32 %v1906_v2, %v728_v35  ;;  %1630 = vmatmul.msk.bf16.gmra.mxu3 %vm610_vm2, %v1534_v31  ;;  %v1411_v23 = vld [vmem:[%s1790_s28 + $0xc8] sm:$0xf0]  ;;  %v1401_v31 = vld [vmem:[%s1790_s28 + $0xb0] sm:$0xf] }
  0xba   : > { %v1414_v30 = vor.u32 %v1662_v22, %v1411_v23  ;;  %v1661_v32 = vld [vmem:[%s1790_s28 + $0xb4] sm:$0xf0] }
  0xbb   : > { %v898_v38 = vadd.f32 %v897_v1, %v729_v37  ;;  %767 = vmatmul.bf16.gmra.mxu0 %v1386_v34  ;;  %847 = vmatmul.bf16.gmra.mxu2 %v1514_v36  ;;  %v1529_v37 = vld [vmem:[%s1790_s28 + $0x1b0] sm:$0xf] }
  0xbc   : > { %v1943_v39 = vpop.f32.mrf.mxu3 }
  0xbd   : > { %v1054_v40 = vmax.f32 %v898_v38, 0.0  ;;  %v1693_v38 = vld [vmem:[%s1790_s28 + $0x1b4] sm:$0xf0] }
  0xbe   : > { %v904_v41 = vpop.f32.mrf.mxu1  ;;  %v808_v43 = vpop.f32.mrf.mxu2 }
  0xbf   : > { %v1118_v42 = vpack.c.bf16 %v1054_v40, %v1054_v40  ;;  %v809_v44 = vadd.f32 %v1906_v2, %v808_v43 }
  0xc0   : > { %v730_v45 = vpop.f32.mrf.mxu0 }
  0xc1   : > { %1183 = vst.msk [vmem:[%s1919_s19 + $0x8] sm:$0xf] %vm1180_vm3, %v1118_v42  ;;  %v731_v46 = vadd.f32 %v1906_v2, %v730_v45  ;;  %v978_v49 = vadd.f32 %v1893_v55, %v809_v44  ;;  %v1394_v55 = vor.u32 %v1659_v57, %v1393_v56 }
  0xc3   : > { %v900_v50 = vadd.f32 %v899_v13, %v731_v46  ;;  %v1086_v53 = vmax.f32 %v978_v49, 0.0  ;;  %v1530_v46 = vor.u32 %v1693_v38, %v1529_v37  ;;  %v1666_v37 = vld [vmem:[%s1790_s28 + $0xe4] sm:$0xf]  ;;  %v1427_v38 = vld [vmem:[%s1790_s28 + $0xe8] sm:$0xf0] }
  0xc4   : > { %v1956_v58 = vpop.f32.mrf.mxu3 }
  0xc5   : > { %v1055_v59 = vmax.f32 %v900_v50, 0.0  ;;  %v1150_v1 = vpack.c.bf16 %v1086_v53, %v1086_v53 }
  0xc6   : > { %v907_v60 = vpop.f32.mrf.mxu1  ;;  %v810_v4 = vpop.f32.mrf.mxu2 }
  0xc7   : > { %v1119_v3 = vpack.c.bf16 %v1055_v59, %v1055_v59  ;;  %1215 = vst.msk [vmem:[%s1919_s19 + $0x88] sm:$0xf] %vm1180_vm3, %v1150_v1  ;;  %v811_v5 = vadd.f32 %v1906_v2, %v810_v4  ;;  %v1555_v4 = vld [vmem:[%s1790_s28 + $0x1e8] sm:$0xf0] }
  0xc8   : > { %v733_v6 = vpop.f32.mrf.mxu0 }
  0xc9   : > { %1614 = vmatmul.msk.bf16.gmra.mxu1 %vm610_vm2, %v1406_v54  ;;  %1184 = vst.msk [vmem:[%s1919_s19 + $0xc] sm:$0xf] %vm1180_vm3, %v1119_v3  ;;  %v734_v8 = vadd.f32 %v1906_v2, %v733_v6  ;;  %1631 = vmatmul.msk.bf16.gmra.mxu3 %vm610_vm2, %v1542_v63  ;;  %v980_v9 = vadd.f32 %v1901_v0, %v811_v5  ;;  %v1698_v3 = vld [vmem:[%s1790_s28 + $0x1e4] sm:$0xf]  ;;  %v1409_v6 = vld [vmem:[%s1790_s28 + $0xc0] sm:$0xf] }
  0xca   : > { %v1422_v5 = vor.u32 %v1664_v61, %v1419_v62 }
  0xcb   : > { %v903_v10 = vadd.f32 %v902_v28, %v734_v8  ;;  %772 = vmatmul.bf16.gmra.mxu0 %v1394_v55  ;;  %v1087_v12 = vmax.f32 %v980_v9, 0.0  ;;  %852 = vmatmul.bf16.gmra.mxu2 %v1522_v7  ;;  %v1547_v28 = vld [vmem:[%s1790_s28 + $0x1d8] sm:$0xf0]  ;;  %v1663_v7 = vld [vmem:[%s1790_s28 + $0xc4] sm:$0xf0] }
  0xcc   : > { %v1969_v13 = vpop.f32.mrf.mxu3  ;;  %v1550_v40 = vor.u32 %v1696_v27, %v1547_v28 }
  0xcd   : > { %v1056_v14 = vmax.f32 %v903_v10, 0.0  ;;  %v1151_v17 = vpack.c.bf16 %v1087_v12, %v1087_v12  ;;  %v1537_v12 = vld [vmem:[%s1790_s28 + $0x1c0] sm:$0xf] }
  0xce   : > { %v909_v16 = vpop.f32.mrf.mxu1  ;;  %v813_v19 = vpop.f32.mrf.mxu2 }
  0xcf   : > { %v1120_v18 = vpack.c.bf16 %v1056_v14, %v1056_v14  ;;  %1216 = vst.msk [vmem:[%s1919_s19 + $0x8c] sm:$0xf] %vm1180_vm3, %v1151_v17  ;;  %v814_v0 = vadd.f32 %v1906_v2, %v813_v19  ;;  %v1695_v14 = vld [vmem:[%s1790_s28 + $0x1c4] sm:$0xf0]  ;;  %v1558_v17 = vor.u32 %v1698_v3, %v1555_v4 }
  0xd0   : > { %v735_v20 = vpop.f32.mrf.mxu0 }
  0xd1   : > { %1185 = vst.msk [vmem:[%s1919_s19 + $0x10] sm:$0xf] %vm1180_vm3, %v1120_v18  ;;  %v736_v21 = vadd.f32 %v1906_v2, %v735_v20  ;;  %v983_v24 = vadd.f32 %v1914_v11, %v814_v0  ;;  %v1402_v11 = vor.u32 %v1661_v32, %v1401_v31 }
  0xd3   : > { %v905_v25 = vadd.f32 %v904_v41, %v736_v21  ;;  %v1088_v29 = vmax.f32 %v983_v24, 0.0  ;;  %v1538_v21 = vor.u32 %v1695_v14, %v1537_v12  ;;  %v1668_v12 = vld [vmem:[%s1790_s28 + $0xf4] sm:$0xf]  ;;  %v1435_v14 = vld [vmem:[%s1790_s28 + $0xf8] sm:$0xf0] }
  0xd4   : > { %v1984_v34 = vpop.f32.mrf.mxu3 }
  0xd5   : > { %v1057_v35 = vmax.f32 %v905_v25, 0.0  ;;  %v1152_v42 = vpack.c.bf16 %v1088_v29, %v1088_v29 }
  0xd6   : > { %v912_v36 = vpop.f32.mrf.mxu1  ;;  %v815_v44 = vpop.f32.mrf.mxu2 }
  0xd7   : > { %v1121_v43 = vpack.c.bf16 %v1057_v35, %v1057_v35  ;;  %1217 = vst.msk [vmem:[%s1919_s19 + $0x90] sm:$0xf] %vm1180_vm3, %v1152_v42  ;;  %v816_v41 = vadd.f32 %v1906_v2, %v815_v44  ;;  %v1563_v44 = vld [vmem:[%s1790_s28 + $0x1f8] sm:$0xf0] }
  0xd8   : > { %v738_v45 = vpop.f32.mrf.mxu0 }
  0xd9   : > { %1615 = vmatmul.msk.bf16.gmra.mxu1 %vm610_vm2, %v1414_v30  ;;  %1186 = vst.msk [vmem:[%s1919_s19 + $0x14] sm:$0xf] %vm1180_vm3, %v1121_v43  ;;  %v739_v47 = vadd.f32 %v1906_v2, %v738_v45  ;;  %1632 = vmatmul.msk.bf16.gmra.mxu3 %vm610_vm2, %v1550_v40  ;;  %v985_v48 = vadd.f32 %v1932_v26, %v816_v41  ;;  %v1700_v43 = vld [vmem:[%s1790_s28 + $0x1f4] sm:$0xf]  ;;  %v1417_v45 = vld [vmem:[%s1790_s28 + $0xd0] sm:$0xf] }
  0xda   : > { %v1430_v41 = vor.u32 %v1666_v37, %v1427_v38 }
  0xdb   : > { %v908_v49 = vadd.f32 %v907_v60, %v739_v47  ;;  %777 = vmatmul.bf16.gmra.mxu0 %v1402_v11  ;;  %v1089_v50 = vmax.f32 %v985_v48, 0.0  ;;  %857 = vmatmul.bf16.gmra.mxu2 %v1530_v46  ;;  %v1665_v46 = vld [vmem:[%s1790_s28 + $0xd4] sm:$0xf0] }
  0xdc   : > { %v1997_v51 = vpop.f32.mrf.mxu3 }
  0xdd   : > { %v1058_v52 = vmax.f32 %v908_v49, 0.0  ;;  %v1153_v54 = vpack.c.bf16 %v1089_v50, %v1089_v50  ;;  %v1545_v49 = vld [vmem:[%s1790_s28 + $0x1d0] sm:$0xf]  ;;  %v1697_v50 = vld [vmem:[%s1790_s28 + $0x1d4] sm:$0xf0] }
  0xde   : > { %v914_v53 = vpop.f32.mrf.mxu1  ;;  %v818_v57 = vpop.f32.mrf.mxu2 }
  0xdf   : > { %v1122_v56 = vpack.c.bf16 %v1058_v52, %v1058_v52  ;;  %1218 = vst.msk [vmem:[%s1919_s19 + $0x94] sm:$0xf] %vm1180_vm3, %v1153_v54  ;;  %v819_v26 = vadd.f32 %v1906_v2, %v818_v57  ;;  %v1566_v54 = vor.u32 %v1700_v43, %v1563_v44 }
  0xe0   : > { %v740_v59 = vpop.f32.mrf.mxu0 }
  0xe1   : > { %1187 = vst.msk [vmem:[%s1919_s19 + $0x18] sm:$0xf] %vm1180_vm3, %v1122_v56  ;;  %v741_v60 = vadd.f32 %v1906_v2, %v740_v59  ;;  %v988_v63 = vadd.f32 %v1943_v39, %v819_v26  ;;  %v1410_v39 = vor.u32 %v1663_v7, %v1409_v6 }
  0xe3   : > { %v910_v1 = vadd.f32 %v909_v16, %v741_v60  ;;  %v1090_v55 = vmax.f32 %v988_v63, 0.0  ;;  %v1546_v60 = vor.u32 %v1697_v50, %v1545_v49 }
  0xe4   : > { %v2012_v8 = vpop.f32.mrf.mxu3 }
  0xe5   : > { %v1059_v9 = vmax.f32 %v910_v1, 0.0  ;;  %v1154_v18 = vpack.c.bf16 %v1090_v55, %v1090_v55 }
  0xe6   : > { %v917_v10 = vpop.f32.mrf.mxu1  ;;  %v820_v0 = vpop.f32.mrf.mxu2 }
  0xe7   : > { %v1123_v19 = vpack.c.bf16 %v1059_v9, %v1059_v9  ;;  %1219 = vst.msk [vmem:[%s1919_s19 + $0x98] sm:$0xf] %vm1180_vm3, %v1154_v18  ;;  %v821_v16 = vadd.f32 %v1906_v2, %v820_v0  ;;  %v1438_v0 = vor.u32 %v1668_v12, %v1435_v14 }
  0xe8   : > { %v743_v20 = vpop.f32.mrf.mxu0 }
  0xe9   : > { %1616 = vmatmul.msk.bf16.gmra.mxu1 %vm610_vm2, %v1422_v5  ;;  %1188 = vst.msk [vmem:[%s1919_s19 + $0x1c] sm:$0xf] %vm1180_vm3, %v1123_v19  ;;  %v744_v22 = vadd.f32 %v1906_v2, %v743_v20  ;;  %1633 = vmatmul.msk.bf16.gmra.mxu3 %vm610_vm2, %v1558_v17  ;;  %v990_v23 = vadd.f32 %v1956_v58, %v821_v16  ;;  %v1667_v16 = vld [vmem:[%s1790_s28 + $0xe4] sm:$0xf0] }
  0xeb   : > { %v913_v24 = vadd.f32 %v912_v36, %v744_v22  ;;  %782 = vmatmul.bf16.gmra.mxu0 %v1410_v39  ;;  %v1091_v25 = vmax.f32 %v990_v23, 0.0  ;;  %862 = vmatmul.bf16.gmra.mxu2 %v1538_v21  ;;  %v1425_v39 = vld [vmem:[%s1790_s28 + $0xe0] sm:$0xf]  ;;  %v1699_v23 = vld [vmem:[%s1790_s28 + $0x1e4] sm:$0xf0] }
  0xec   : > { %v2025_v27 = vpop.f32.mrf.mxu3  ;;  %v1553_v22 = vld [vmem:[%s1790_s28 + $0x1e0] sm:$0xf] }
  0xed   : > { %v1060_v28 = vmax.f32 %v913_v24, 0.0  ;;  %v1155_v30 = vpack.c.bf16 %v1091_v25, %v1091_v25 }
  0xee   : > { %v919_v29 = vpop.f32.mrf.mxu1  ;;  %v823_v32 = vpop.f32.mrf.mxu2 }
  0xef   : > { %v1124_v31 = vpack.c.bf16 %v1060_v28, %v1060_v28  ;;  %1220 = vst.msk [vmem:[%s1919_s19 + $0x9c] sm:$0xf] %vm1180_vm3, %v1155_v30  ;;  %v824_v58 = vadd.f32 %v1906_v2, %v823_v32  ;;  %v1426_v30 = vor.u32 %v1667_v16, %v1425_v39 }
  0xf0   : > { %v745_v35 = vpop.f32.mrf.mxu0 }
  0xf1   : > { %1189 = vst.msk [vmem:[%s1919_s19 + $0x20] sm:$0xf] %vm1180_vm3, %v1124_v31  ;;  %v746_v36 = vadd.f32 %v1906_v2, %v745_v35  ;;  %v993_v40 = vadd.f32 %v1969_v13, %v824_v58  ;;  %v1418_v13 = vor.u32 %v1665_v46, %v1417_v45  ;;  %v1670_v45 = vld [vmem:[%s1790_s28 + $0x104] sm:$0xf]  ;;  %v1443_v46 = vld [vmem:[%s1790_s28 + $0x108] sm:$0xf0] }
  0xf3   : > { %v915_v42 = vadd.f32 %v914_v53, %v746_v36  ;;  %v1092_v11 = vmax.f32 %v993_v40, 0.0 }
  0xf4   : > { %v2042_v52 = vpop.f32.mrf.mxu3 }
  0xf5   : > { %v1061_v47 = vmax.f32 %v915_v42, 0.0  ;;  %v1156_v56 = vpack.c.bf16 %v1092_v11, %v1092_v11 }
  0xf6   : > { %v922_v48 = vpop.f32.mrf.mxu1  ;;  %v825_v26 = vpop.f32.mrf.mxu2 }
  0xf7   : > { %v1125_v57 = vpack.c.bf16 %v1061_v47, %v1061_v47  ;;  %1221 = vst.msk [vmem:[%s1919_s19 + $0xa0] sm:$0xf] %vm1180_vm3, %v1156_v56  ;;  %v826_v53 = vadd.f32 %v1906_v2, %v825_v26  ;;  %v1433_v56 = vld [vmem:[%s1790_s28 + $0xf0] sm:$0xf] }
  0xf8   : > { %v748_v59 = vpop.f32.mrf.mxu0 }
  0xf9   : > { %1617 = vmatmul.msk.bf16.gmra.mxu1 %vm610_vm2, %v1430_v41  ;;  %1190 = vst.msk [vmem:[%s1919_s19 + $0x24] sm:$0xf] %vm1180_vm3, %v1125_v57  ;;  %v749_v61 = vadd.f32 %v1906_v2, %v748_v59  ;;  %1634 = vmatmul.msk.bf16.gmra.mxu3 %vm610_vm2, %v1566_v54  ;;  %v995_v62 = vadd.f32 %v1984_v34, %v826_v53  ;;  %v1669_v57 = vld [vmem:[%s1790_s28 + $0xf4] sm:$0xf0]  ;;  %v1561_v53 = vld [vmem:[%s1790_s28 + $0x1f0] sm:$0xf] }
  0xfa   : > { %v1446_v54 = vor.u32 %v1670_v45, %v1443_v46  ;;  %v1701_v59 = vld [vmem:[%s1790_s28 + $0x1f4] sm:$0xf0] }
  0xfb   : > { %v918_v63 = vadd.f32 %v917_v10, %v749_v61  ;;  %787 = vmatmul.bf16.gmra.mxu0 %v1418_v13  ;;  %v1093_v1 = vmax.f32 %v995_v62, 0.0  ;;  %867 = vmatmul.bf16.gmra.mxu2 %v1546_v60 }
  0xfc   : > { %v2053_v7 = vpop.f32.mrf.mxu3 }
  0xfd   : > { %v1062_v3 = vmax.f32 %v918_v63, 0.0  ;;  %v1157_v55 = vpack.c.bf16 %v1093_v1, %v1093_v1  ;;  %v1434_v63 = vor.u32 %v1669_v57, %v1433_v56 }
  0xfe   : > { %v924_v4 = vpop.f32.mrf.mxu1  ;;  %v828_v6 = vpop.f32.mrf.mxu2 }
  0xff   : > { %v1126_v5 = vpack.c.bf16 %v1062_v3, %v1062_v3  ;;  %1222 = vst.msk [vmem:[%s1919_s19 + $0xa4] sm:$0xf] %vm1180_vm3, %v1157_v55  ;;  %v829_v34 = vadd.f32 %v1906_v2, %v828_v6  ;;  %v1562_v3 = vor.u32 %v1701_v59, %v1561_v53 }
 0x100   : > { %v750_v9 = vpop.f32.mrf.mxu0 }
 0x101   : > { %1191 = vst.msk [vmem:[%s1919_s19 + $0x28] sm:$0xf] %vm1180_vm3, %v1126_v5  ;;  %v751_v10 = vadd.f32 %v1906_v2, %v750_v9  ;;  %v998_v17 = vadd.f32 %v1997_v51, %v829_v34 }
 0x103   : > { %v920_v18 = vadd.f32 %v919_v29, %v751_v10  ;;  %v1094_v19 = vmax.f32 %v998_v17, 0.0  ;;  %v1554_v29 = vor.u32 %v1699_v23, %v1553_v22 }
 0x104   : > { %v2075_v58 = vpop.f32.mrf.mxu3 }
 0x105   : > { %v1063_v20 = vmax.f32 %v920_v18, 0.0  ;;  %v1158_v24 = vpack.c.bf16 %v1094_v19, %v1094_v19 }
 0x106   : > { %v927_v21 = vpop.f32.mrf.mxu1  ;;  %v830_v28 = vpop.f32.mrf.mxu2 }
 0x107   : > { %v1127_v25 = vpack.c.bf16 %v1063_v20, %v1063_v20  ;;  %1223 = vst.msk [vmem:[%s1919_s19 + $0xa8] sm:$0xf] %vm1180_vm3, %v1158_v24  ;;  %v831_v31 = vadd.f32 %v1906_v2, %v830_v28 }
 0x108   : > { %v753_v51 = vpop.f32.mrf.mxu0 }
 0x109   : > { %1618 = vmatmul.msk.bf16.gmra.mxu1 %vm610_vm2, %v1438_v0  ;;  %1192 = vst.msk [vmem:[%s1919_s19 + $0x2c] sm:$0xf] %vm1180_vm3, %v1127_v25  ;;  %v754_v32 = vadd.f32 %v1906_v2, %v753_v51  ;;  %v1000_v35 = vadd.f32 %v2012_v8, %v831_v31 }
 0x10b   : > { %v923_v36 = vadd.f32 %v922_v48, %v754_v32  ;;  %792 = vmatmul.bf16.gmra.mxu0 %v1426_v30  ;;  %v1095_v37 = vmax.f32 %v1000_v35, 0.0  ;;  %872 = vmatmul.bf16.gmra.mxu2 %v1554_v29 }
 0x10c   : > { %v2087_v49 = vpop.f32.mrf.mxu3 }
 0x10d   : > { %v1064_v38 = vmax.f32 %v923_v36, 0.0  ;;  %v1159_v42 = vpack.c.bf16 %v1095_v37, %v1095_v37 }
 0x10e   : > { %v929_v40 = vpop.f32.mrf.mxu1  ;;  %v833_v44 = vpop.f32.mrf.mxu2 }
 0x10f   : > { %v1128_v43 = vpack.c.bf16 %v1064_v38, %v1064_v38  ;;  %1224 = vst.msk [vmem:[%s1919_s19 + $0xac] sm:$0xf] %vm1180_vm3, %v1159_v42  ;;  %v834_v11 = vadd.f32 %v1906_v2, %v833_v44 }
 0x110   : > { %v755_v41 = vpop.f32.mrf.mxu0 }
 0x111   : > { %1193 = vst.msk [vmem:[%s1919_s19 + $0x30] sm:$0xf] %vm1180_vm3, %v1128_v43  ;;  %v756_v8 = vadd.f32 %v1906_v2, %v755_v41  ;;  %v1003_v47 = vadd.f32 %v2025_v27, %v834_v11 }
 0x113   : > { %v925_v48 = vadd.f32 %v924_v4, %v756_v8  ;;  %v1096_v50 = vmax.f32 %v1003_v47, 0.0 }
 0x114   : > { %v1014_v10 = vpop.f32.mrf.mxu3 }
 0x115   : > { %v1065_v26 = vmax.f32 %v925_v48, 0.0  ;;  %v1160_v60 = vpack.c.bf16 %v1096_v50, %v1096_v50 }
 0x116   : > { %v932_v13 = vpop.f32.mrf.mxu1  ;;  %v835_v62 = vpop.f32.mrf.mxu2 }
 0x117   : > { %v1129_v61 = vpack.c.bf16 %v1065_v26, %v1065_v26  ;;  %1225 = vst.msk [vmem:[%s1919_s19 + $0xb0] sm:$0xf] %vm1180_vm3, %v1160_v60  ;;  %v836_v27 = vadd.f32 %v1906_v2, %v835_v62 }
 0x118   : > { %v758_v1 = vpop.f32.mrf.mxu0 }
 0x119   : > { %1619 = vmatmul.msk.bf16.gmra.mxu1 %vm610_vm2, %v1446_v54  ;;  %1194 = vst.msk [vmem:[%s1919_s19 + $0x34] sm:$0xf] %vm1180_vm3, %v1129_v61  ;;  %v759_v4 = vadd.f32 %v1906_v2, %v758_v1  ;;  %v1005_v55 = vadd.f32 %v2042_v52, %v836_v27 }
 0x11b   : > { %v928_v5 = vadd.f32 %v927_v21, %v759_v4  ;;  %797 = vmatmul.bf16.gmra.mxu0 %v1434_v63  ;;  %v1097_v6 = vmax.f32 %v1005_v55, 0.0  ;;  %877 = vmatmul.bf16.gmra.mxu2 %v1562_v3 }
 0x11c   : > { %v1017_v25 = vpop.f32.mrf.mxu3 }
 0x11d   : > { %v1066_v34 = vmax.f32 %v928_v5, 0.0  ;;  %v1161_v12 = vpack.c.bf16 %v1097_v6, %v1097_v6 }
 0x11e   : > { %v934_v9 = vpop.f32.mrf.mxu1  ;;  %v838_v17 = vpop.f32.mrf.mxu2 }
 0x11f   : > { %v1130_v14 = vpack.c.bf16 %v1066_v34, %v1066_v34  ;;  %1226 = vst.msk [vmem:[%s1919_s19 + $0xb4] sm:$0xf] %vm1180_vm3, %v1161_v12  ;;  %v839_v18 = vadd.f32 %v1906_v2, %v838_v17 }
 0x120   : > { %v760_v19 = vpop.f32.mrf.mxu0 }
 0x121   : > { %1195 = vst.msk [vmem:[%s1919_s19 + $0x38] sm:$0xf] %vm1180_vm3, %v1130_v14  ;;  %v761_v52 = vadd.f32 %v1906_v2, %v760_v19  ;;  %v1008_v0 = vadd.f32 %v2053_v7, %v839_v18 }
 0x123   : > { %v930_v39 = vadd.f32 %v929_v40, %v761_v52  ;;  %v1098_v16 = vmax.f32 %v1008_v0, 0.0 }
 0x124   : > { %v1019_v44 = vpop.f32.mrf.mxu3 }
 0x125   : > { %v1067_v20 = vmax.f32 %v930_v39, 0.0  ;;  %v1162_v22 = vpack.c.bf16 %v1098_v16, %v1098_v16 }
 0x126   : > { %v937_v21 = vpop.f32.mrf.mxu1  ;;  %v840_v24 = vpop.f32.mrf.mxu2 }
 0x127   : > { %v1131_v23 = vpack.c.bf16 %v1067_v20, %v1067_v20  ;;  %1227 = vst.msk [vmem:[%s1919_s19 + $0xb8] sm:$0xf] %vm1180_vm3, %v1162_v22  ;;  %v841_v28 = vadd.f32 %v1906_v2, %v840_v24 }
 0x128   : > { %v763_v30 = vpop.f32.mrf.mxu0 }
 0x129   : > { %1196 = vst.msk [vmem:[%s1919_s19 + $0x3c] sm:$0xf] %vm1180_vm3, %v1131_v23  ;;  %v764_v31 = vadd.f32 %v1906_v2, %v763_v30  ;;  %v1010_v7 = vadd.f32 %v2075_v58, %v841_v28 }
 0x12b   : > { %v933_v51 = vadd.f32 %v932_v13, %v764_v31  ;;  %v1099_v29 = vmax.f32 %v1010_v7, 0.0 }
 0x12c   : > { %v1022_v26 = vpop.f32.mrf.mxu3 }
 0x12d   : > { %v1068_v32 = vmax.f32 %v933_v51, 0.0  ;;  %v1163_v36 = vpack.c.bf16 %v1099_v29, %v1099_v29 }
 0x12e   : > { %v939_v35 = vpop.f32.mrf.mxu1  ;;  %v843_v38 = vpop.f32.mrf.mxu2 }
 0x12f   : > { %v1132_v37 = vpack.c.bf16 %v1068_v32, %v1068_v32  ;;  %1228 = vst.msk [vmem:[%s1919_s19 + $0xbc] sm:$0xf] %vm1180_vm3, %v1163_v36  ;;  %v844_v40 = vadd.f32 %v1906_v2, %v843_v38 }
 0x130   : > { %v765_v42 = vpop.f32.mrf.mxu0 }
 0x131   : > { %1197 = vst.msk [vmem:[%s1919_s19 + $0x40] sm:$0xf] %vm1180_vm3, %v1132_v37  ;;  %v766_v43 = vadd.f32 %v1906_v2, %v765_v42  ;;  %v1013_v58 = vadd.f32 %v2087_v49, %v844_v40 }
 0x133   : > { %v935_v11 = vadd.f32 %v934_v9, %v766_v43  ;;  %v1100_v41 = vmax.f32 %v1013_v58, 0.0 }
 0x134   : > { %v1024_v34 = vpop.f32.mrf.mxu3 }
 0x135   : > { %v1069_v8 = vmax.f32 %v935_v11, 0.0  ;;  %v1164_v46 = vpack.c.bf16 %v1100_v41, %v1100_v41 }
 0x136   : > { %v942_v45 = vpop.f32.mrf.mxu1  ;;  %v845_v48 = vpop.f32.mrf.mxu2 }
 0x137   : > { %v1133_v47 = vpack.c.bf16 %v1069_v8, %v1069_v8  ;;  %1229 = vst.msk [vmem:[%s1919_s19 + $0xc0] sm:$0xf] %vm1180_vm3, %v1164_v46  ;;  %v846_v50 = vadd.f32 %v1906_v2, %v845_v48 }
 0x138   : > { %v768_v54 = vpop.f32.mrf.mxu0 }
 0x139   : > { %1198 = vst.msk [vmem:[%s1919_s19 + $0x44] sm:$0xf] %vm1180_vm3, %v1133_v47  ;;  %v769_v56 = vadd.f32 %v1906_v2, %v768_v54  ;;  %v1015_v57 = vadd.f32 %v1014_v10, %v846_v50 }
 0x13b   : > { %v938_v49 = vadd.f32 %v937_v21, %v769_v56  ;;  %v1101_v13 = vmax.f32 %v1015_v57, 0.0 }
 0x13c   : > { %v1027_v23 = vpop.f32.mrf.mxu3 }
 0x13d   : > { %v1070_v53 = vmax.f32 %v938_v49, 0.0  ;;  %v1165_v60 = vpack.c.bf16 %v1101_v13, %v1101_v13 }
 0x13e   : > { %v944_v59 = vpop.f32.mrf.mxu1  ;;  %v848_v62 = vpop.f32.mrf.mxu2 }
 0x13f   : > { %v1134_v61 = vpack.c.bf16 %v1070_v53, %v1070_v53  ;;  %1230 = vst.msk [vmem:[%s1919_s19 + $0xc4] sm:$0xf] %vm1180_vm3, %v1165_v60  ;;  %v849_v63 = vadd.f32 %v1906_v2, %v848_v62 }
 0x140   : > { %v770_v27 = vpop.f32.mrf.mxu0 }
 0x141   : > { %1199 = vst.msk [vmem:[%s1919_s19 + $0x48] sm:$0xf] %vm1180_vm3, %v1134_v61  ;;  %v771_v1 = vadd.f32 %v1906_v2, %v770_v27  ;;  %v1018_v3 = vadd.f32 %v1017_v25, %v849_v63 }
 0x143   : > { %v940_v4 = vadd.f32 %v939_v35, %v771_v1  ;;  %v1102_v55 = vmax.f32 %v1018_v3, 0.0 }
 0x144   : > { %v1029_v42 = vpop.f32.mrf.mxu3 }
 0x145   : > { %v1071_v5 = vmax.f32 %v940_v4, 0.0  ;;  %v1166_v9 = vpack.c.bf16 %v1102_v55, %v1102_v55 }
 0x146   : > { %v947_v6 = vpop.f32.mrf.mxu1  ;;  %v850_v12 = vpop.f32.mrf.mxu2 }
 0x147   : > { %v1135_v10 = vpack.c.bf16 %v1071_v5, %v1071_v5  ;;  %1231 = vst.msk [vmem:[%s1919_s19 + $0xc8] sm:$0xf] %vm1180_vm3, %v1166_v9  ;;  %v851_v14 = vadd.f32 %v1906_v2, %v850_v12 }
 0x148   : > { %v773_v17 = vpop.f32.mrf.mxu0 }
 0x149   : > { %1200 = vst.msk [vmem:[%s1919_s19 + $0x4c] sm:$0xf] %vm1180_vm3, %v1135_v10  ;;  %v774_v18 = vadd.f32 %v1906_v2, %v773_v17  ;;  %v1020_v19 = vadd.f32 %v1019_v44, %v851_v14 }
 0x14b   : > { %v943_v52 = vadd.f32 %v942_v45, %v774_v18  ;;  %v1103_v0 = vmax.f32 %v1020_v19, 0.0 }
 0x14c   : > { %v1032_v57 = vpop.f32.mrf.mxu3 }
 0x14d   : > { %v1072_v39 = vmax.f32 %v943_v52, 0.0  ;;  %v1167_v20 = vpack.c.bf16 %v1103_v0, %v1103_v0 }
 0x14e   : > { %v949_v16 = vpop.f32.mrf.mxu1  ;;  %v853_v22 = vpop.f32.mrf.mxu2 }
 0x14f   : > { %v1136_v21 = vpack.c.bf16 %v1072_v39, %v1072_v39  ;;  %1232 = vst.msk [vmem:[%s1919_s19 + $0xcc] sm:$0xf] %vm1180_vm3, %v1167_v20  ;;  %v854_v24 = vadd.f32 %v1906_v2, %v853_v22 }
 0x150   : > { %v775_v25 = vpop.f32.mrf.mxu0 }
 0x151   : > { %1201 = vst.msk [vmem:[%s1919_s19 + $0x50] sm:$0xf] %vm1180_vm3, %v1136_v21  ;;  %v776_v28 = vadd.f32 %v1906_v2, %v775_v25  ;;  %v1023_v30 = vadd.f32 %v1022_v26, %v854_v24 }
 0x153   : > { %v945_v31 = vadd.f32 %v944_v59, %v776_v28  ;;  %v1104_v7 = vmax.f32 %v1023_v30, 0.0 }
 0x154   : > { %v1034_v5 = vpop.f32.mrf.mxu3 }
 0x155   : > { %v1073_v51 = vmax.f32 %v945_v31, 0.0  ;;  %v1168_v32 = vpack.c.bf16 %v1104_v7, %v1104_v7 }
 0x156   : > { %v952_v29 = vpop.f32.mrf.mxu1  ;;  %v855_v36 = vpop.f32.mrf.mxu2 }
 0x157   : > { %v1137_v35 = vpack.c.bf16 %v1073_v51, %v1073_v51  ;;  %1233 = vst.msk [vmem:[%s1919_s19 + $0xd0] sm:$0xf] %vm1180_vm3, %v1168_v32  ;;  %v856_v37 = vadd.f32 %v1906_v2, %v855_v36 }
 0x158   : > { %v778_v38 = vpop.f32.mrf.mxu0 }
 0x159   : > { %1202 = vst.msk [vmem:[%s1919_s19 + $0x54] sm:$0xf] %vm1180_vm3, %v1137_v35  ;;  %v779_v40 = vadd.f32 %v1906_v2, %v778_v38  ;;  %v1025_v43 = vadd.f32 %v1024_v34, %v856_v37 }
 0x15b   : > { %v948_v44 = vadd.f32 %v947_v6, %v779_v40  ;;  %v1105_v58 = vmax.f32 %v1025_v43, 0.0 }
 0x15c   : > { %v1037_v21 = vpop.f32.mrf.mxu3 }
 0x15d   : > { %v1074_v11 = vmax.f32 %v948_v44, 0.0  ;;  %v1169_v8 = vpack.c.bf16 %v1105_v58, %v1105_v58 }
 0x15e   : > { %v954_v41 = vpop.f32.mrf.mxu1  ;;  %v858_v46 = vpop.f32.mrf.mxu2 }
 0x15f   : > { %v1138_v45 = vpack.c.bf16 %v1074_v11, %v1074_v11  ;;  %1234 = vst.msk [vmem:[%s1919_s19 + $0xd4] sm:$0xf] %vm1180_vm3, %v1169_v8  ;;  %v859_v47 = vadd.f32 %v1906_v2, %v858_v46 }
 0x160   : > { %v780_v48 = vpop.f32.mrf.mxu0 }
 0x161   : > { %1203 = vst.msk [vmem:[%s1919_s19 + $0x58] sm:$0xf] %vm1180_vm3, %v1138_v45  ;;  %v781_v50 = vadd.f32 %v1906_v2, %v780_v48  ;;  %v1028_v54 = vadd.f32 %v1027_v23, %v859_v47 }
 0x163   : > { %v950_v56 = vadd.f32 %v949_v16, %v781_v50  ;;  %v1106_v49 = vmax.f32 %v1028_v54, 0.0 }
 0x164   : > { %v1039_v38 = vpop.f32.mrf.mxu3 }
 0x165   : > { %v1075_v26 = vmax.f32 %v950_v56, 0.0  ;;  %v1170_v53 = vpack.c.bf16 %v1106_v49, %v1106_v49 }
 0x166   : > { %v957_v13 = vpop.f32.mrf.mxu1  ;;  %v860_v60 = vpop.f32.mrf.mxu2 }
 0x167   : > { %v1139_v59 = vpack.c.bf16 %v1075_v26, %v1075_v26  ;;  %1235 = vst.msk [vmem:[%s1919_s19 + $0xd8] sm:$0xf] %vm1180_vm3, %v1170_v53  ;;  %v861_v61 = vadd.f32 %v1906_v2, %v860_v60 }
 0x168   : > { %v783_v62 = vpop.f32.mrf.mxu0 }
 0x169   : > { %1204 = vst.msk [vmem:[%s1919_s19 + $0x5c] sm:$0xf] %vm1180_vm3, %v1139_v59  ;;  %v784_v63 = vadd.f32 %v1906_v2, %v783_v62  ;;  %v1030_v27 = vadd.f32 %v1029_v42, %v861_v61 }
 0x16b   : > { %v953_v1 = vadd.f32 %v952_v29, %v784_v63  ;;  %v1107_v3 = vmax.f32 %v1030_v27, 0.0  ;;  %v804_v27 = vadd.f32 %v1906_v2, %v1921_v15 }
 0x16c   : > { %v1042_v54 = vpop.f32.mrf.mxu3 }
 0x16d   : > { %v1076_v4 = vmax.f32 %v953_v1, 0.0  ;;  %v1171_v6 = vpack.c.bf16 %v1107_v3, %v1107_v3 }
 0x16e   : > { %v959_v55 = vpop.f32.mrf.mxu1  ;;  %v863_v9 = vpop.f32.mrf.mxu2 }
 0x16f   : > { %v1140_v34 = vpack.c.bf16 %v1076_v4, %v1076_v4  ;;  %1236 = vst.msk [vmem:[%s1919_s19 + $0xdc] sm:$0xf] %vm1180_vm3, %v1171_v6  ;;  %v864_v10 = vadd.f32 %v1906_v2, %v863_v9 }
 0x170   : > { %v785_v12 = vpop.f32.mrf.mxu0 }
 0x171   : > { %1205 = vst.msk [vmem:[%s1919_s19 + $0x60] sm:$0xf] %vm1180_vm3, %v1140_v34  ;;  %v786_v14 = vadd.f32 %v1906_v2, %v785_v12  ;;  %v1033_v17 = vadd.f32 %v1032_v57, %v864_v10  ;;  %v1731_v12 = vld [vmem:[%s2223_s2] ss:$0 sm:$0xff] }
 0x173   : > { %v955_v18 = vadd.f32 %v954_v41, %v786_v14  ;;  %v1108_v19 = vmax.f32 %v1033_v17, 0.0 }
 0x174   : > { %v1044_v4 = vpop.f32.mrf.mxu3 }
 0x175   : > { %v1077_v52 = vmax.f32 %v955_v18, 0.0  ;;  %v1172_v39 = vpack.c.bf16 %v1108_v19, %v1108_v19 }
 0x176   : > { %v962_v0 = vpop.f32.mrf.mxu1  ;;  %v865_v20 = vpop.f32.mrf.mxu2 }
 0x177   : > { %v1141_v16 = vpack.c.bf16 %v1077_v52, %v1077_v52  ;;  %1237 = vst.msk [vmem:[%s1919_s19 + $0xe0] sm:$0xf] %vm1180_vm3, %v1172_v39  ;;  %v866_v22 = vadd.f32 %v1906_v2, %v865_v20  ;;  %v806_v52 = vadd.f32 %v1731_v12, %v1936_v33 }
 0x178   : > { %v788_v23 = vpop.f32.mrf.mxu0 }
 0x179   : > { %1206 = vst.msk [vmem:[%s1919_s19 + $0x64] sm:$0xf] %vm1180_vm3, %v1141_v16  ;;  %v789_v24 = vadd.f32 %v1906_v2, %v788_v23  ;;  %v1035_v25 = vadd.f32 %v1034_v5, %v866_v22 }
 0x17b   : > { %v958_v28 = vadd.f32 %v957_v13, %v789_v24  ;;  %v1109_v30 = vmax.f32 %v1035_v25, 0.0 }
 0x17c   : > { %v1047_v23 = vpop.f32.mrf.mxu3 }
 0x17d   : > { %v1078_v31 = vmax.f32 %v958_v28, 0.0  ;;  %v1173_v51 = vpack.c.bf16 %v1109_v30, %v1109_v30 }
 0x17e   : > { %v964_v7 = vpop.f32.mrf.mxu1  ;;  %v868_v32 = vpop.f32.mrf.mxu2 }
 0x17f   : > { %v1142_v29 = vpack.c.bf16 %v1078_v31, %v1078_v31  ;;  %1238 = vst.msk [vmem:[%s1919_s19 + $0xe4] sm:$0xf] %vm1180_vm3, %v1173_v51  ;;  %v869_v35 = vadd.f32 %v1906_v2, %v868_v32 }
 0x180   : > { %v790_v36 = vpop.f32.mrf.mxu0 }
 0x181   : > { %1207 = vst.msk [vmem:[%s1919_s19 + $0x68] sm:$0xf] %vm1180_vm3, %v1142_v29  ;;  %v791_v37 = vadd.f32 %v1906_v2, %v790_v36  ;;  %v1038_v40 = vadd.f32 %v1037_v21, %v869_v35 }
 0x183   : > { %v960_v42 = vadd.f32 %v959_v55, %v791_v37  ;;  %v1110_v43 = vmax.f32 %v1038_v40, 0.0 }
 0x184   : > { %v1049_v40 = vpop.f32.mrf.mxu3 }
 0x185   : > { %v1079_v44 = vmax.f32 %v960_v42, 0.0  ;;  %v1174_v11 = vpack.c.bf16 %v1110_v43, %v1110_v43 }
 0x186   : > { %v967_v58 = vpop.f32.mrf.mxu1  ;;  %v870_v8 = vpop.f32.mrf.mxu2 }
 0x187   : > { %v1143_v41 = vpack.c.bf16 %v1079_v44, %v1079_v44  ;;  %1239 = vst.msk [vmem:[%s1919_s19 + $0xe8] sm:$0xf] %vm1180_vm3, %v1174_v11  ;;  %v871_v45 = vadd.f32 %v1906_v2, %v870_v8 }
 0x188   : > { %v793_v46 = vpop.f32.mrf.mxu0 }
 0x189   : > { %1208 = vst.msk [vmem:[%s1919_s19 + $0x6c] sm:$0xf] %vm1180_vm3, %v1143_v41  ;;  %v794_v47 = vadd.f32 %v1906_v2, %v793_v46  ;;  %v1040_v48 = vadd.f32 %v1039_v38, %v871_v45 }
 0x18b   : > { %v963_v50 = vadd.f32 %v962_v0, %v794_v47  ;;  %v1111_v56 = vmax.f32 %v1040_v48, 0.0 }
 0x18d   : > { %v1080_v57 = vmax.f32 %v963_v50, 0.0  ;;  %v1175_v26 = vpack.c.bf16 %v1111_v56, %v1111_v56 }
 0x18e   : > { %v969_v49 = vpop.f32.mrf.mxu1  ;;  %v873_v53 = vpop.f32.mrf.mxu2 }
 0x18f   : > { %v1144_v13 = vpack.c.bf16 %v1080_v57, %v1080_v57  ;;  %1240 = vst.msk [vmem:[%s1919_s19 + $0xec] sm:$0xf] %vm1180_vm3, %v1175_v26  ;;  %v874_v59 = vadd.f32 %v1906_v2, %v873_v53 }
 0x190   : > { %v795_v60 = vpop.f32.mrf.mxu0 }
 0x191   : > { %1209 = vst.msk [vmem:[%s1919_s19 + $0x70] sm:$0xf] %vm1180_vm3, %v1144_v13  ;;  %v796_v61 = vadd.f32 %v1906_v2, %v795_v60  ;;  %v1043_v62 = vadd.f32 %v1042_v54, %v874_v59 }
 0x193   : > { %v965_v63 = vadd.f32 %v964_v7, %v796_v61  ;;  %v1112_v1 = vmax.f32 %v1043_v62, 0.0 }
 0x195   : > { %v1081_v3 = vmax.f32 %v965_v63, 0.0  ;;  %v1176_v5 = vpack.c.bf16 %v1112_v1, %v1112_v1 }
 0x196   : > { %v972_v55 = vpop.f32.mrf.mxu1  ;;  %v875_v9 = vpop.f32.mrf.mxu2 }
 0x197   : > { %v973_v6 = vadd.f32 %v972_v55, %v804_v27  ;;  %v1145_v34 = vpack.c.bf16 %v1081_v3, %v1081_v3  ;;  %1241 = vst.msk [vmem:[%s1919_s19 + $0xf0] sm:$0xf] %vm1180_vm3, %v1176_v5  ;;  %v876_v14 = vadd.f32 %v1731_v12, %v875_v9 }
 0x198   : > { %v798_v17 = vpop.f32.mrf.mxu0 }
 0x199   : > { %v1084_v10 = vmax.f32 %v973_v6, 0.0  ;;  %1210 = vst.msk [vmem:[%s1919_s19 + $0x74] sm:$0xf] %vm1180_vm3, %v1145_v34  ;;  %v799_v2 = vadd.f32 %v1731_v12, %v798_v17  ;;  %v1045_v18 = vadd.f32 %v1044_v4, %v876_v14 }
 0x19b   : > { %v1148_v15 = vpack.c.bf16 %v1084_v10, %v1084_v10  ;;  %v968_v19 = vadd.f32 %v967_v58, %v799_v2  ;;  %v1113_v0 = vmax.f32 %v1045_v18, 0.0 }
 0x19d   : > { %1213 = vst.msk [vmem:[%s1919_s19 + $0x80] sm:$0xf] %vm1180_vm3, %v1148_v15  ;;  %v1082_v39 = vmax.f32 %v968_v19, 0.0  ;;  %v1177_v20 = vpack.c.bf16 %v1113_v0, %v1113_v0 }
 0x19e   : > { %v974_v16 = vpop.f32.mrf.mxu1  ;;  %v878_v24 = vpop.f32.mrf.mxu2 }
 0x19f   : > { %v975_v21 = vadd.f32 %v974_v16, %v806_v52  ;;  %v1146_v22 = vpack.c.bf16 %v1082_v39, %v1082_v39  ;;  %1242 = vst.msk [vmem:[%s1919_s19 + $0xf4] sm:$0xf] %vm1180_vm3, %v1177_v20  ;;  %v879_v28 = vadd.f32 %v1731_v12, %v878_v24 }
 0x1a0   : > { %v800_v30 = vpop.f32.mrf.mxu0 }
 0x1a1   : > { %v1085_v25 = vmax.f32 %v975_v21, 0.0  ;;  %1211 = vst.msk [vmem:[%s1919_s19 + $0x78] sm:$0xf] %vm1180_vm3, %v1146_v22  ;;  %v801_v33 = vadd.f32 %v1731_v12, %v800_v30  ;;  %v1048_v7 = vadd.f32 %v1047_v23, %v879_v28 }
 0x1a3   : > { %v1149_v31 = vpack.c.bf16 %v1085_v25, %v1085_v25  ;;  %v970_v51 = vadd.f32 %v969_v49, %v801_v33  ;;  %v1114_v29 = vmax.f32 %v1048_v7, 0.0 }
 0x1a5   : > { %1214 = vst.msk [vmem:[%s1919_s19 + $0x84] sm:$0xf] %vm1180_vm3, %v1149_v31  ;;  %v1083_v32 = vmax.f32 %v970_v51, 0.0  ;;  %v1178_v35 = vpack.c.bf16 %v1114_v29, %v1114_v29 }
 0x1a6   : > { %v880_v37 = vpop.f32.mrf.mxu2 }
 0x1a7   : > { %v1147_v36 = vpack.c.bf16 %v1083_v32, %v1083_v32  ;;  %1243 = vst.msk [vmem:[%s1919_s19 + $0xf8] sm:$0xf] %vm1180_vm3, %v1178_v35  ;;  %v881_v38 = vadd.f32 %v1731_v12, %v880_v37 }
 0x1a9   : > { %1212 = vst.msk [vmem:[%s1919_s19 + $0x7c] sm:$0xf] %vm1180_vm3, %v1147_v36  ;;  %v1050_v42 = vadd.f32 %v1049_v40, %v881_v38 }
 0x1ab   : > { %v1115_v43 = vmax.f32 %v1050_v42, 0.0 }
 0x1ad   : > { %v1179_v44 = vpack.c.bf16 %v1115_v43, %v1115_v43 }
 0x1af   : > { %1244 = vst.msk [vmem:[%s1919_s19 + $0xfc] sm:$0xf] %vm1180_vm3, %v1179_v44 }
 0x1b0 PF: > { %s13_s12 = sadd.s32 1, %s1738_s12  }
 0x1b1   : > { %p10_p4 = scmp.ge.s32.totalorder %s13_s12, 6  }
 0x1b3   :  { %12 = sbr.rel (!%p10_p4) target bundleno = 1 (0x1), region = 62 }

// kernel: custom_resnet_forward.23
= control target key start
LH: loop header
LB: loop body
LE: loop exit
PB: predicated region body
PF: predicated region fallthrough
CT: control target
= control target key end

     0   :  { %vm539_vm0 = vcmask 1046528   ;;  %vm2810_vm1 = vcmask 125952   ;;  %s5079_s0 = inlined_call_operand.vmem [shape: bf16[2,17,17,16], index: 0, kind: input, shape index: {}]   ;;  %s5080_s1 = inlined_call_operand.vmem [shape: bf16[2,17,17,16], index: 1, kind: input, shape index: {}]   ;;  %s5081_s2 = inlined_call_operand.vmem [shape: bf16[2,17,17,16], index: 2, kind: input, shape index: {}]   ;;  %s5082_s3 = inlined_call_operand.vmem [shape: bf16[2,17,17,16], index: 3, kind: input, shape index: {}]   ;;  %s5083_s4 = inlined_call_operand.vmem [shape: bf16[2,16,16,16], index: 4, kind: output, shape index: {}]  }
   0x1   :  { %v2880_v0 = vld [vmem:[%s5079_s0] sm:$0xff]   ;;  %v20_v1 = vld [vmem:[%s5079_s0 + $0xc] sm:$0xff]   ;;  %v19_v12 = vld [vmem:[%s5079_s0 + $0x8] sm:$0x1] }
   0x2   :  { %v3239_v2 = vld [vmem:[%s5080_s1] sm:$0xff]   ;;  %v2881_v3 = vunpack.c.l.bf16 %v2880_v0  ;;  %v2882_v4 = vunpack.c.h.bf16 %v2880_v0  ;;  %v349_v7 = vunpack.c.l.bf16 %v20_v1  ;;  %v3254_v8 = vld [vmem:[%s5080_s1 + $0xc] sm:$0xff]   ;;  %v3258_v11 = vunpack.c.h.bf16 %v20_v1  ;;  %v22_v13 = vld [vmem:[%s5079_s0 + $0x14] sm:$0x1] }
   0x3   :  { %v3244_v5 = vld [vmem:[%s5081_s2] sm:$0xff]   ;;  %v2949_v14 = vunpack.c.l.bf16 %v3239_v2  ;;  %v189_v22 = vld [vmem:[%s5081_s2 + $0x8] sm:$0x1]  ;;  %v1368_v24 = vunpack.c.l.bf16 %v3254_v8  ;;  %v411_v25 = vunpack.c.l.bf16 %v19_v12  ;;  %v412_v26 = vunpack.c.l.bf16 %v22_v13  ;;  %v3143_v27 = vld [vmem:[%s5079_s0 + $0x18] sm:$0xff]  }
   0x4   :  { %v3249_v6 = vld [vmem:[%s5082_s3] sm:$0xff]   ;;  %v3017_v9 = vunpack.c.l.bf16 %v3244_v5  ;;  %v3018_v10 = vunpack.c.h.bf16 %v3244_v5  ;;  %v540_v15 = vrot.slane %v2881_v3, 1  ;;  %v541_v16 = vrot.slane %v2882_v4, 1  ;;  %v3287_v32 = vld [vmem:[%s5081_s2 + $0xc] sm:$0xff]   ;;  %v3299_v44 = vld [vmem:[%s5080_s1 + $0x18] sm:$0xff]  }
   0x5   :  { %v545_v17 = vrot.slane %v349_v7, 1  ;;  %v3081_v18 = vunpack.c.l.bf16 %v3249_v6  ;;  %v546_v19 = vrot.slane %v3258_v11, 1  ;;  %v2950_v30 = vunpack.c.h.bf16 %v3239_v2  ;;  %v25_v50 = vld [vmem:[%s5079_s0 + $0x20] sm:$0x1]  ;;  %v3311_v52 = vld [vmem:[%s5082_s3 + $0xc] sm:$0xff]   ;;  %v3331_v13 = vld [vmem:[%s5081_s2 + $0x18] sm:$0xff]  }
   0x6   :  { %v2202_v20 = vrot.slane %v3017_v9, 1  ;;  %v2203_v21 = vrot.slane %v3018_v10, 1  ;;  %v542_v23 = vsel %vm539_vm0, %v540_v15, %v541_v16  ;;  %v3082_v31 = vunpack.c.h.bf16 %v3249_v6  ;;  %v192_v60 = vld [vmem:[%s5081_s2 + $0x14] sm:$0x1] }
   0x7   :  { %v547_v28 = vsel %vm539_vm0, %v545_v17, %v546_v19  ;;  %v764_v29 = vmax.f32 %v2881_v3, %v542_v23  ;;  %v543_v34 = vrot.slane %v411_v25, 1  ;;  %v548_v35 = vrot.slane %v412_v26, 1  ;;  %v3144_v6 = vld [vmem:[%s5079_s0 + $0x30] sm:$0xff]  }
   0x8   :  { %v766_v33 = vmax.f32 %v349_v7, %v547_v28  ;;  %v2074_v36 = vunpack.c.l.bf16 %v189_v22  ;;  %v2204_v38 = vsel %vm539_vm0, %v2202_v20, %v2203_v21  ;;  %v3290_v39 = vunpack.c.l.bf16 %v3143_v27 }
   0x9   :  { %v960_v37 = vmax.f32 %v764_v29, %v349_v7  ;;  %v3292_v40 = vunpack.c.h.bf16 %v3143_v27  ;;  %v544_v41 = vsel %vm539_vm0, %v541_v16, %v543_v34  ;;  %v549_v42 = vsel %vm539_vm0, %v546_v19, %v548_v35  ;;  %v26_v19 = vld [vmem:[%s5079_s0 + $0x24] sm:$0xff]  }
   0xa   :  { %v2205_v43 = vrot.slane %v2074_v36, 1  ;;  %v1820_v45 = vunpack.c.l.bf16 %v3287_v32  ;;  %v765_v47 = vmax.f32 %v2882_v4, %v544_v41  ;;  %v1369_v48 = vunpack.c.h.bf16 %v3254_v8  ;;  %v3354_v36 = vld [vmem:[%s5082_s3 + $0x18] sm:$0xff]  }
   0xb   :  { %v1174_v46 = vmax.f32 %v960_v37, %v547_v28  ;;  %v550_v49 = vrot.slane %v3290_v39, 1  ;;  %v767_v51 = vmax.f32 %v3258_v11, %v549_v42  ;;  %v551_v53 = vrot.slane %v3292_v40, 1 }
   0xc   :  { %v962_v54 = vmax.f32 %v766_v33, %v3290_v39  ;;  %v1821_v55 = vunpack.c.h.bf16 %v3287_v32  ;;  %v961_v57 = vmax.f32 %v765_v47, %v3258_v11  ;;  %v2206_v58 = vsel %vm539_vm0, %v2203_v21, %v2205_v43  ;;  %v3365_v43 = vld [vmem:[%s5080_s1 + $0x24] sm:$0xff]  }
   0xd   :  { %v1430_v56 = vmax.f32 %v1174_v46, %v2949_v14  ;;  %v2953_v59 = vunpack.c.l.bf16 %v3299_v44  ;;  %v552_v61 = vsel %vm539_vm0, %v550_v49, %v551_v53  ;;  %v2207_v62 = vrot.slane %v1820_v45, 1 }
   0xe   :  { %v2208_v63 = vrot.slane %v1821_v55, 1  ;;  %v413_v0 = vunpack.c.l.bf16 %v25_v50  ;;  %v1175_v2 = vmax.f32 %v961_v57, %v549_v42  ;;  %v1176_v3 = vmax.f32 %v962_v54, %v552_v61 }
   0xf   :  { %v1626_v1 = vmax.f32 %v1430_v56, %v1368_v24  ;;  %v2620_v4 = vunpack.c.l.bf16 %v3311_v52  ;;  %v2954_v7 = vunpack.c.h.bf16 %v3299_v44  ;;  %v963_v11 = vmax.f32 %v767_v51, %v3292_v40 }
  0x10   :  { %v553_v8 = vrot.slane %v413_v0, 1  ;;  %v2075_v12 = vunpack.c.l.bf16 %v192_v60  ;;  %v1431_v15 = vmax.f32 %v1175_v2, %v2950_v30  ;;  %v768_v16 = vmax.f32 %v3290_v39, %v552_v61 }
  0x11   :  { %v1882_v14 = vmax.f32 %v1626_v1, %v3017_v9  ;;  %v1432_v17 = vmax.f32 %v1176_v3, %v1368_v24  ;;  %v2209_v20 = vsel %vm539_vm0, %v2207_v62, %v2208_v63  ;;  %v2621_v23 = vunpack.c.h.bf16 %v3311_v52 }
  0x12   :  { %v554_v21 = vsel %vm539_vm0, %v551_v53, %v553_v8  ;;  %v2210_v22 = vrot.slane %v2075_v12, 1  ;;  %v1627_v26 = vmax.f32 %v1431_v15, %v1369_v48  ;;  %v3021_v27 = vunpack.c.l.bf16 %v3331_v13  ;;  %v195_v53 = vld [vmem:[%s5081_s2 + $0x20] sm:$0x1] }
  0x13   :  { %v2426_v25 = vmax.f32 %v1882_v14, %v2204_v38  ;;  %v1628_v9 = vmax.f32 %v1432_v17, %v2953_v59  ;;  %v769_v24 = vmax.f32 %v3292_v40, %v554_v21  ;;  %v1177_v28 = vmax.f32 %v963_v11, %v554_v21  ;;  %v3416_v17 = vld [vmem:[%s5080_s1 + $0x30] sm:$0xff]  }
  0x14   :  { %v3022_v29 = vunpack.c.h.bf16 %v3331_v13  ;;  %v353_v30 = vunpack.c.l.bf16 %v26_v19  ;;  %v1883_v34 = vmax.f32 %v1627_v26, %v3018_v10  ;;  %v3356_v37 = vunpack.c.h.bf16 %v26_v19 }
  0x15   :  { %v2682_v33 = vmax.f32 %v2426_v25, %v3081_v18  ;;  %v1884_v35 = vmax.f32 %v1628_v9, %v1820_v45  ;;  %v1433_v38 = vmax.f32 %v1177_v28, %v1369_v48  ;;  %v2211_v39 = vsel %vm539_vm0, %v2208_v63, %v2210_v22  ;;  %v28_v18 = vld [vmem:[%s5079_s0 + $0x2c] sm:$0x1]  ;;  %v31_v9 = vld [vmem:[%s5079_s0 + $0x38] sm:$0x1] }
  0x16   :  { %v555_v40 = vrot.slane %v353_v30, 1  ;;  %v964_v41 = vmax.f32 %v768_v16, %v353_v30  ;;  %v2427_v5 = vmax.f32 %v1883_v34, %v2206_v58  ;;  %v556_v45 = vrot.slane %v3356_v37, 1 }
  0x17   :  { %v2746_v42 = vpack.c.bf16 %v2682_v33, %v2682_v33  ;;  %v2428_v10 = vmax.f32 %v1884_v35, %v2209_v20  ;;  %v1629_v46 = vmax.f32 %v1433_v38, %v2954_v7  ;;  %v3085_v47 = vunpack.c.l.bf16 %v3354_v36  ;;  %v3440_v33 = vld [vmem:[%s5082_s3 + $0x24] sm:$0xff]   ;;  %v198_v35 = vld [vmem:[%s5081_s2 + $0x2c] sm:$0x1] }
  0x18   :  { %v2212_v48 = vrot.slane %v3021_v27, 1  ;;  %v2213_v49 = vrot.slane %v3022_v29, 1  ;;  %v2683_v50 = vmax.f32 %v2427_v5, %v3082_v31  ;;  %v557_v52 = vsel %vm539_vm0, %v555_v40, %v556_v45  ;;  %v3452_v5 = vld [vmem:[%s5081_s2 + $0x30] sm:$0xff]  }
  0x19   :  { %2811 = vst.msk [vmem:[%s5083_s4] sm:$0xf] %vm2810_vm1, %v2746_v42  ;;  %v2684_v51 = vmax.f32 %v2428_v10, %v2620_v4  ;;  %v414_v54 = vunpack.c.l.bf16 %v28_v18  ;;  %v1885_v56 = vmax.f32 %v1629_v46, %v1821_v55  ;;  %v770_v57 = vmax.f32 %v353_v30, %v557_v52 }
  0x1a   :  { %v1178_v58 = vmax.f32 %v964_v41, %v557_v52  ;;  %v1372_v60 = vunpack.c.l.bf16 %v3365_v43  ;;  %v2747_v31 = vpack.c.bf16 %v2683_v50, %v2683_v50  ;;  %v965_v63 = vmax.f32 %v769_v24, %v3356_v37 }
  0x1b   :  { %v2748_v61 = vpack.c.bf16 %v2684_v51, %v2684_v51  ;;  %v558_v62 = vrot.slane %v414_v54, 1  ;;  %v2429_v0 = vmax.f32 %v1885_v56, %v2211_v39  ;;  %v2214_v32 = vsel %vm539_vm0, %v2212_v48, %v2213_v49  ;;  %v3469_v56 = vld [vmem:[%s5082_s3 + $0x30] sm:$0xff]  }
  0x1c   :  { %v1434_v1 = vmax.f32 %v1178_v58, %v2953_v59  ;;  %v2076_v55 = vunpack.c.l.bf16 %v195_v53  ;;  %2812 = vst.msk [vmem:[%s5083_s4 + $0x4] sm:$0xf] %vm2810_vm1, %v2747_v31  ;;  %v1373_v3 = vunpack.c.h.bf16 %v3365_v43  ;;  %v3399_v4 = vunpack.c.l.bf16 %v3144_v6  ;;  %v3406_v59 = vld [vmem:[%s5081_s2 + $0x24] sm:$0xff]  }
  0x1d   :  { %v559_v2 = vsel %vm539_vm0, %v556_v45, %v558_v62  ;;  %v3401_v8 = vunpack.c.h.bf16 %v3144_v6  ;;  %2813 = vst.msk [vmem:[%s5083_s4 + $0x8] sm:$0xf] %vm2810_vm1, %v2748_v61  ;;  %v2685_v11 = vmax.f32 %v2429_v0, %v2621_v23  ;;  %v1824_v26 = vunpack.c.l.bf16 %v3406_v59  ;;  %v34_v0 = vld [vmem:[%s5079_s0 + $0x44] sm:$0x1] }
  0x1e   :  { %v1630_v12 = vmax.f32 %v1434_v1, %v1372_v60  ;;  %v771_v14 = vmax.f32 %v3356_v37, %v559_v2  ;;  %v1179_v15 = vmax.f32 %v965_v63, %v559_v2  ;;  %v2215_v16 = vrot.slane %v2076_v55, 1  ;;  %v3487_v2 = vld [vmem:[%s5080_s1 + $0x3c] sm:$0xff]  }
  0x1f   :  { %v560_v19 = vrot.slane %v3399_v4, 1  ;;  %v561_v20 = vrot.slane %v3401_v8, 1  ;;  %v966_v21 = vmax.f32 %v770_v57, %v3399_v4  ;;  %v2749_v22 = vpack.c.bf16 %v2685_v11, %v2685_v11 }
  0x20   :  { %v1886_v25 = vmax.f32 %v1630_v12, %v3021_v27  ;;  %v1435_v23 = vmax.f32 %v1179_v15, %v2954_v7  ;;  %v3086_v24 = vunpack.c.h.bf16 %v3354_v36  ;;  %v1825_v30 = vunpack.c.h.bf16 %v3406_v59  ;;  %v201_v15 = vld [vmem:[%s5081_s2 + $0x38] sm:$0x1] }
  0x21   :  { %v562_v28 = vsel %vm539_vm0, %v560_v19, %v561_v20  ;;  %2814 = vst.msk [vmem:[%s5083_s4 + $0xc] sm:$0xf] %vm2810_vm1, %v2749_v22  ;;  %v2957_v7 = vunpack.c.l.bf16 %v3416_v17  ;;  %v2216_v36 = vsel %vm539_vm0, %v2213_v49, %v2215_v16  ;;  %v2217_v37 = vrot.slane %v1824_v26, 1  ;;  %v3145_v19 = vld [vmem:[%s5079_s0 + $0x48] sm:$0xff]  }
  0x22   :  { %v2430_v27 = vmax.f32 %v1886_v25, %v2214_v32  ;;  %v1631_v44 = vmax.f32 %v1435_v23, %v1373_v3  ;;  %v1180_v34 = vmax.f32 %v966_v21, %v562_v28  ;;  %v2218_v38 = vrot.slane %v1825_v30, 1 }
  0x23   :  { %v415_v39 = vunpack.c.l.bf16 %v31_v9  ;;  %v967_v42 = vmax.f32 %v771_v14, %v3401_v8  ;;  %v772_v10 = vmax.f32 %v3399_v4, %v562_v28  ;;  %v2624_v45 = vunpack.c.l.bf16 %v3440_v33  ;;  %v3512_v28 = vld [vmem:[%s5081_s2 + $0x3c] sm:$0xff]  }
  0x24   :  { %v2686_v40 = vmax.f32 %v2430_v27, %v3085_v47  ;;  %v1887_v41 = vmax.f32 %v1631_v44, %v3022_v29  ;;  %v1436_v18 = vmax.f32 %v1180_v34, %v1372_v60  ;;  %v2077_v48 = vunpack.c.l.bf16 %v198_v35  ;;  %v32_v47 = vld [vmem:[%s5079_s0 + $0x3c] sm:$0xff]  }
  0x25   :  { %v563_v46 = vrot.slane %v415_v39, 1  ;;  %v2958_v29 = vunpack.c.h.bf16 %v3416_v17  ;;  %v2219_v51 = vsel %vm539_vm0, %v2217_v37, %v2218_v38  ;;  %v2625_v53 = vunpack.c.h.bf16 %v3440_v33 }
  0x26   :  { %v2750_v49 = vpack.c.bf16 %v2686_v40, %v2686_v40  ;;  %v2431_v50 = vmax.f32 %v1887_v41, %v2216_v36  ;;  %v1632_v13 = vmax.f32 %v1436_v18, %v2957_v7  ;;  %v3025_v54 = vunpack.c.l.bf16 %v3452_v5 }
  0x27   :  { %v564_v52 = vsel %vm539_vm0, %v561_v20, %v563_v46  ;;  %v3026_v6 = vunpack.c.h.bf16 %v3452_v5  ;;  %v2220_v61 = vrot.slane %v2077_v48, 1  ;;  %v357_v62 = vunpack.c.l.bf16 %v32_v47  ;;  %v38_v5 = vld [vmem:[%s5079_s0 + $0x54] sm:$0xff]  }
  0x28   :  { %2815 = vst.msk [vmem:[%s5083_s4 + $0x10] sm:$0xf] %vm2810_vm1, %v2750_v49  ;;  %v2687_v57 = vmax.f32 %v2431_v50, %v3086_v24  ;;  %v1888_v58 = vmax.f32 %v1632_v13, %v1824_v26  ;;  %v1181_v60 = vmax.f32 %v967_v42, %v564_v52  ;;  %v773_v31 = vmax.f32 %v3401_v8, %v564_v52  ;;  %v37_v13 = vld [vmem:[%s5079_s0 + $0x50] sm:$0x1] }
  0x29   :  { %v3477_v63 = vunpack.c.h.bf16 %v32_v47  ;;  %v3089_v4 = vunpack.c.l.bf16 %v3469_v56  ;;  %v565_v8 = vrot.slane %v357_v62, 1  ;;  %v968_v11 = vmax.f32 %v772_v10, %v357_v62 }
  0x2a   :  { %v2751_v1 = vpack.c.bf16 %v2687_v57, %v2687_v57  ;;  %v2432_v32 = vmax.f32 %v1888_v58, %v2219_v51  ;;  %v1437_v55 = vmax.f32 %v1181_v60, %v1373_v3  ;;  %v2222_v12 = vrot.slane %v3025_v54, 1  ;;  %v204_v57 = vld [vmem:[%s5081_s2 + $0x44] sm:$0x1]  ;;  %v3552_v60 = vld [vmem:[%s5082_s3 + $0x3c] sm:$0xff]  }
  0x2b   :  { %v566_v59 = vrot.slane %v3477_v63, 1  ;;  %v2223_v3 = vrot.slane %v3026_v6, 1  ;;  %v416_v16 = vunpack.c.l.bf16 %v34_v0  ;;  %v2221_v20 = vsel %vm539_vm0, %v2218_v38, %v2220_v61 }
  0x2c   :  { %2816 = vst.msk [vmem:[%s5083_s4 + $0x14] sm:$0xf] %vm2810_vm1, %v2751_v1  ;;  %v2688_v14 = vmax.f32 %v2432_v32, %v2624_v45  ;;  %v1633_v43 = vmax.f32 %v1437_v55, %v2958_v29  ;;  %v1376_v22 = vunpack.c.l.bf16 %v3487_v2  ;;  %v969_v25 = vmax.f32 %v773_v31, %v3477_v63 }
  0x2d   :  { %v567_v21 = vsel %vm539_vm0, %v565_v8, %v566_v59  ;;  %v568_v27 = vrot.slane %v416_v16, 1  ;;  %v2078_v44 = vunpack.c.l.bf16 %v201_v15  ;;  %v3514_v33 = vunpack.c.l.bf16 %v3145_v19 }
  0x2e   :  { %v2752_v23 = vpack.c.bf16 %v2688_v14, %v2688_v14  ;;  %v1889_v26 = vmax.f32 %v1633_v43, %v1825_v30  ;;  %v774_v9 = vmax.f32 %v357_v62, %v567_v21  ;;  %v1182_v24 = vmax.f32 %v968_v11, %v567_v21 }
  0x2f   :  { %v3516_v34 = vunpack.c.h.bf16 %v3145_v19  ;;  %v2224_v36 = vsel %vm539_vm0, %v2222_v12, %v2223_v3  ;;  %v3090_v37 = vunpack.c.h.bf16 %v3469_v56  ;;  %v569_v38 = vsel %vm539_vm0, %v566_v59, %v568_v27  ;;  %v3571_v12 = vld [vmem:[%s5081_s2 + $0x48] sm:$0xff]  }
  0x30   :  { %2817 = vst.msk [vmem:[%s5083_s4 + $0x18] sm:$0xf] %vm2810_vm1, %v2752_v23  ;;  %v2433_v35 = vmax.f32 %v1889_v26, %v2221_v20  ;;  %v1438_v30 = vmax.f32 %v1182_v24, %v2957_v7  ;;  %v570_v39 = vrot.slane %v3514_v33, 1  ;;  %v1828_v41 = vunpack.c.l.bf16 %v3512_v28  ;;  %v3533_v7 = vld [vmem:[%s5080_s1 + $0x48] sm:$0xff]  }
  0x31   :  { %v571_v40 = vrot.slane %v3516_v34, 1  ;;  %v1183_v10 = vmax.f32 %v969_v25, %v569_v38  ;;  %v2225_v45 = vrot.slane %v2078_v44, 1  ;;  %v775_v46 = vmax.f32 %v3477_v63, %v569_v38  ;;  %v3585_v19 = vld [vmem:[%s5082_s3 + $0x48] sm:$0xff]  }
  0x32   :  { %v2689_v18 = vmax.f32 %v2433_v35, %v2625_v53  ;;  %v1634_v42 = vmax.f32 %v1438_v30, %v1376_v22  ;;  %v1377_v48 = vunpack.c.h.bf16 %v3487_v2  ;;  %v970_v49 = vmax.f32 %v774_v9, %v3514_v33  ;;  %v3600_v35 = vld [vmem:[%s5080_s1 + $0x54] sm:$0xff]  }
  0x33   :  { %v1829_v50 = vunpack.c.h.bf16 %v3512_v28  ;;  %v1439_v52 = vmax.f32 %v1183_v10, %v2958_v29  ;;  %v572_v53 = vsel %vm539_vm0, %v570_v39, %v571_v40  ;;  %v2961_v58 = vunpack.c.l.bf16 %v3533_v7  ;;  %v207_v10 = vld [vmem:[%s5081_s2 + $0x50] sm:$0x1] }
  0x34   :  { %v2753_v47 = vpack.c.bf16 %v2689_v18, %v2689_v18  ;;  %v1890_v51 = vmax.f32 %v1634_v42, %v3025_v54  ;;  %v1184_v31 = vmax.f32 %v970_v49, %v572_v53  ;;  %v2227_v61 = vrot.slane %v1828_v41, 1 }
  0x35   :  { %v2228_v54 = vrot.slane %v1829_v50, 1  ;;  %v1635_v29 = vmax.f32 %v1439_v52, %v1377_v48  ;;  %v2226_v62 = vsel %vm539_vm0, %v2223_v3, %v2225_v45  ;;  %v417_v63 = vunpack.c.l.bf16 %v37_v13  ;;  %v3146_v45 = vld [vmem:[%s5079_s0 + $0x60] sm:$0xff]  }
  0x36   :  { %2818 = vst.msk [vmem:[%s5083_s4 + $0x1c] sm:$0xf] %vm2810_vm1, %v2753_v47  ;;  %v2434_v17 = vmax.f32 %v1890_v51, %v2224_v36  ;;  %v776_v0 = vmax.f32 %v3514_v33, %v572_v53  ;;  %v1440_v1 = vmax.f32 %v1184_v31, %v1376_v22  ;;  %v971_v32 = vmax.f32 %v775_v46, %v3516_v34  ;;  %v40_v36 = vld [vmem:[%s5079_s0 + $0x5c] sm:$0x1] }
  0x37   :  { %v2079_v55 = vunpack.c.l.bf16 %v204_v57  ;;  %v1891_v8 = vmax.f32 %v1635_v29, %v3026_v6  ;;  %v2628_v59 = vunpack.c.l.bf16 %v3552_v60  ;;  %v573_v11 = vrot.slane %v417_v63, 1  ;;  %v3629_v57 = vld [vmem:[%s5081_s2 + $0x54] sm:$0xff]  }
  0x38   :  { %v2690_v2 = vmax.f32 %v2434_v17, %v3089_v4  ;;  %v1636_v14 = vmax.f32 %v1440_v1, %v2961_v58  ;;  %v2229_v43 = vsel %vm539_vm0, %v2227_v61, %v2228_v54  ;;  %v2962_v3 = vunpack.c.h.bf16 %v3533_v7 }
  0x39   :  { %v2230_v56 = vrot.slane %v2079_v55, 1  ;;  %v2435_v4 = vmax.f32 %v1891_v8, %v2226_v62  ;;  %v574_v15 = vsel %vm539_vm0, %v571_v40, %v573_v11  ;;  %v2629_v16 = vunpack.c.h.bf16 %v3552_v60 }
  0x3a   :  { %v2754_v6 = vpack.c.bf16 %v2690_v2, %v2690_v2  ;;  %v1892_v20 = vmax.f32 %v1636_v14, %v1828_v41  ;;  %v1185_v21 = vmax.f32 %v971_v32, %v574_v15  ;;  %v3029_v22 = vunpack.c.l.bf16 %v3571_v12 }
  0x3b   :  { %v3030_v25 = vunpack.c.h.bf16 %v3571_v12  ;;  %v2691_v23 = vmax.f32 %v2435_v4, %v3090_v37  ;;  %v777_v26 = vmax.f32 %v3516_v34, %v574_v15  ;;  %v361_v9 = vunpack.c.l.bf16 %v38_v5  ;;  %v44_v12 = vld [vmem:[%s5079_s0 + $0x6c] sm:$0xff]  }
  0x3c   :  { %2819 = vst.msk [vmem:[%s5083_s4 + $0x20] sm:$0xf] %vm2810_vm1, %v2754_v6  ;;  %v3594_v24 = vunpack.c.h.bf16 %v38_v5  ;;  %v2436_v27 = vmax.f32 %v1892_v20, %v2229_v43  ;;  %v1441_v44 = vmax.f32 %v1185_v21, %v1377_v48  ;;  %v2231_v33 = vsel %vm539_vm0, %v2228_v54, %v2230_v56  ;;  %v43_v56 = vld [vmem:[%s5079_s0 + $0x68] sm:$0x1]  ;;  %v3669_v21 = vld [vmem:[%s5082_s3 + $0x54] sm:$0xff]  }
  0x3d   :  { %v3093_v30 = vunpack.c.l.bf16 %v3585_v19  ;;  %v2755_v37 = vpack.c.bf16 %v2691_v23, %v2691_v23  ;;  %v575_v34 = vrot.slane %v361_v9, 1  ;;  %v972_v39 = vmax.f32 %v776_v0, %v361_v9 }
  0x3e   :  { %v576_v38 = vrot.slane %v3594_v24, 1  ;;  %v2692_v40 = vmax.f32 %v2436_v27, %v2628_v59  ;;  %v1637_v41 = vmax.f32 %v1441_v44, %v2962_v3  ;;  %v2232_v18 = vrot.slane %v3029_v22, 1 }
  0x3f   :  { %v2233_v42 = vrot.slane %v3030_v25, 1  ;;  %2820 = vst.msk [vmem:[%s5083_s4 + $0x24] sm:$0xf] %vm2810_vm1, %v2755_v37  ;;  %v1380_v48 = vunpack.c.l.bf16 %v3600_v35  ;;  %v418_v49 = vunpack.c.l.bf16 %v40_v36  ;;  %v973_v13 = vmax.f32 %v777_v26, %v3594_v24 }
  0x40   :  { %v577_v46 = vsel %vm539_vm0, %v575_v34, %v576_v38  ;;  %v2756_v47 = vpack.c.bf16 %v2692_v40, %v2692_v40  ;;  %v1893_v51 = vmax.f32 %v1637_v41, %v1829_v50  ;;  %v2080_v31 = vunpack.c.l.bf16 %v207_v10 }
  0x41   :  { %v778_v52 = vmax.f32 %v361_v9, %v577_v46  ;;  %v1186_v53 = vmax.f32 %v972_v39, %v577_v46  ;;  %v578_v60 = vrot.slane %v418_v49, 1  ;;  %v3631_v61 = vunpack.c.l.bf16 %v3146_v45  ;;  %v3688_v39 = vld [vmem:[%s5081_s2 + $0x60] sm:$0xff]  }
  0x42   :  { %v3633_v54 = vunpack.c.h.bf16 %v3146_v45  ;;  %2821 = vst.msk [vmem:[%s5083_s4 + $0x28] sm:$0xf] %vm2810_vm1, %v2756_v47  ;;  %v2437_v28 = vmax.f32 %v1893_v51, %v2231_v33  ;;  %v2234_v17 = vsel %vm539_vm0, %v2232_v18, %v2233_v42  ;;  %v3094_v29 = vunpack.c.h.bf16 %v3585_v19  ;;  %v3702_v45 = vld [vmem:[%s5082_s3 + $0x60] sm:$0xff]  }
  0x43   :  { %v1442_v50 = vmax.f32 %v1186_v53, %v2961_v58  ;;  %v579_v62 = vsel %vm539_vm0, %v576_v38, %v578_v60  ;;  %v580_v63 = vrot.slane %v3631_v61, 1  ;;  %v1832_v1 = vunpack.c.l.bf16 %v3629_v57  ;;  %v3650_v58 = vld [vmem:[%s5080_s1 + $0x60] sm:$0xff]  }
  0x44   :  { %v581_v0 = vrot.slane %v3633_v54, 1  ;;  %v2693_v32 = vmax.f32 %v2437_v28, %v2629_v16  ;;  %v1187_v2 = vmax.f32 %v973_v13, %v579_v62  ;;  %v2235_v8 = vrot.slane %v2080_v31, 1  ;;  %v210_v16 = vld [vmem:[%s5081_s2 + $0x5c] sm:$0x1]  ;;  %v3717_v28 = vld [vmem:[%s5080_s1 + $0x6c] sm:$0xff]  }
  0x45   :  { %v1638_v55 = vmax.f32 %v1442_v50, %v1380_v48  ;;  %v779_v59 = vmax.f32 %v3594_v24, %v579_v62  ;;  %v1381_v11 = vunpack.c.h.bf16 %v3600_v35  ;;  %v974_v14 = vmax.f32 %v778_v52, %v3631_v61 }
  0x46   :  { %v1833_v43 = vunpack.c.h.bf16 %v3629_v57  ;;  %v2757_v5 = vpack.c.bf16 %v2693_v32, %v2693_v32  ;;  %v1443_v4 = vmax.f32 %v1187_v2, %v2962_v3  ;;  %v582_v15 = vsel %vm539_vm0, %v580_v63, %v581_v0  ;;  %v213_v2 = vld [vmem:[%s5081_s2 + $0x68] sm:$0x1] }
  0x47   :  { %v1894_v6 = vmax.f32 %v1638_v55, %v3029_v22  ;;  %v2965_v20 = vunpack.c.l.bf16 %v3650_v58  ;;  %v1188_v23 = vmax.f32 %v974_v14, %v582_v15  ;;  %v2237_v26 = vrot.slane %v1832_v1, 1 }
  0x48   :  { %v2238_v22 = vrot.slane %v1833_v43, 1  ;;  %2822 = vst.msk [vmem:[%s5083_s4 + $0x2c] sm:$0xf] %vm2810_vm1, %v2757_v5  ;;  %v1639_v3 = vmax.f32 %v1443_v4, %v1381_v11  ;;  %v2236_v9 = vsel %vm539_vm0, %v2233_v42, %v2235_v8  ;;  %v419_v24 = vunpack.c.l.bf16 %v43_v56  ;;  %v3147_v8 = vld [vmem:[%s5079_s0 + $0x78] sm:$0xff]  }
  0x49   :  { %v2438_v7 = vmax.f32 %v1894_v6, %v2234_v17  ;;  %v780_v27 = vmax.f32 %v3631_v61, %v582_v15  ;;  %v1444_v44 = vmax.f32 %v1188_v23, %v1380_v48  ;;  %v975_v33 = vmax.f32 %v779_v59, %v3633_v54  ;;  %v46_v17 = vld [vmem:[%s5079_s0 + $0x74] sm:$0x1] }
  0x4a   :  { %v2081_v35 = vunpack.c.l.bf16 %v210_v16  ;;  %v1895_v37 = vmax.f32 %v1639_v3, %v3030_v25  ;;  %v2632_v34 = vunpack.c.l.bf16 %v3669_v21  ;;  %v583_v38 = vrot.slane %v419_v24, 1  ;;  %v3746_v16 = vld [vmem:[%s5081_s2 + $0x6c] sm:$0xff]  }
  0x4b   :  { %v2694_v36 = vmax.f32 %v2438_v7, %v3093_v30  ;;  %v1640_v40 = vmax.f32 %v1444_v44, %v2965_v20  ;;  %v2239_v41 = vsel %vm539_vm0, %v2237_v26, %v2238_v22  ;;  %v2966_v18 = vunpack.c.h.bf16 %v3650_v58 }
  0x4c   :  { %v2240_v19 = vrot.slane %v2081_v35, 1  ;;  %v2439_v30 = vmax.f32 %v1895_v37, %v2236_v9  ;;  %v584_v42 = vsel %vm539_vm0, %v581_v0, %v583_v38  ;;  %v2633_v10 = vunpack.c.h.bf16 %v3669_v21 }
  0x4d   :  { %v2758_v25 = vpack.c.bf16 %v2694_v36, %v2694_v36  ;;  %v1896_v46 = vmax.f32 %v1640_v40, %v1832_v1  ;;  %v1189_v48 = vmax.f32 %v975_v33, %v584_v42  ;;  %v3033_v49 = vunpack.c.l.bf16 %v3688_v39 }
  0x4e   :  { %v3034_v13 = vunpack.c.h.bf16 %v3688_v39  ;;  %v2695_v47 = vmax.f32 %v2439_v30, %v3094_v29  ;;  %v781_v51 = vmax.f32 %v3633_v54, %v584_v42  ;;  %v365_v52 = vunpack.c.l.bf16 %v44_v12  ;;  %v50_v39 = vld [vmem:[%s5079_s0 + $0x84] sm:$0xff]  }
  0x4f   :  { %2823 = vst.msk [vmem:[%s5083_s4 + $0x30] sm:$0xf] %vm2810_vm1, %v2758_v25  ;;  %v3711_v53 = vunpack.c.h.bf16 %v44_v12  ;;  %v2440_v60 = vmax.f32 %v1896_v46, %v2239_v41  ;;  %v1445_v31 = vmax.f32 %v1189_v48, %v1381_v11  ;;  %v2241_v61 = vsel %vm539_vm0, %v2238_v22, %v2240_v19  ;;  %v49_v19 = vld [vmem:[%s5079_s0 + $0x80] sm:$0x1]  ;;  %v3786_v48 = vld [vmem:[%s5082_s3 + $0x6c] sm:$0xff]  }
  0x50   :  { %v3097_v50 = vunpack.c.l.bf16 %v3702_v45  ;;  %v2759_v29 = vpack.c.bf16 %v2695_v47, %v2695_v47  ;;  %v585_v54 = vrot.slane %v365_v52, 1  ;;  %v976_v63 = vmax.f32 %v780_v27, %v365_v52 }
  0x51   :  { %v586_v62 = vrot.slane %v3711_v53, 1  ;;  %v2696_v0 = vmax.f32 %v2440_v60, %v2632_v34  ;;  %v1641_v1 = vmax.f32 %v1445_v31, %v2966_v18  ;;  %v2242_v32 = vrot.slane %v3033_v49, 1 }
  0x52   :  { %v2243_v55 = vrot.slane %v3034_v13, 1  ;;  %2824 = vst.msk [vmem:[%s5083_s4 + $0x34] sm:$0xf] %vm2810_vm1, %v2759_v29  ;;  %v1384_v11 = vunpack.c.l.bf16 %v3717_v28  ;;  %v420_v14 = vunpack.c.l.bf16 %v46_v17  ;;  %v977_v56 = vmax.f32 %v781_v51, %v3711_v53 }
  0x53   :  { %v587_v59 = vsel %vm539_vm0, %v585_v54, %v586_v62  ;;  %v2760_v5 = vpack.c.bf16 %v2696_v0, %v2696_v0  ;;  %v1897_v6 = vmax.f32 %v1641_v1, %v1833_v43  ;;  %v2082_v23 = vunpack.c.l.bf16 %v213_v2 }
  0x54   :  { %v782_v4 = vmax.f32 %v365_v52, %v587_v59  ;;  %v1190_v15 = vmax.f32 %v976_v63, %v587_v59  ;;  %v588_v21 = vrot.slane %v420_v14, 1  ;;  %v3748_v26 = vunpack.c.l.bf16 %v3147_v8  ;;  %v3805_v63 = vld [vmem:[%s5081_s2 + $0x78] sm:$0xff]  }
  0x55   :  { %v3750_v22 = vunpack.c.h.bf16 %v3147_v8  ;;  %2825 = vst.msk [vmem:[%s5083_s4 + $0x38] sm:$0xf] %vm2810_vm1, %v2760_v5  ;;  %v2441_v57 = vmax.f32 %v1897_v6, %v2241_v61  ;;  %v2244_v7 = vsel %vm539_vm0, %v2242_v32, %v2243_v55  ;;  %v3098_v3 = vunpack.c.h.bf16 %v3702_v45  ;;  %v3819_v8 = vld [vmem:[%s5082_s3 + $0x78] sm:$0xff]  }
  0x56   :  { %v1446_v43 = vmax.f32 %v1190_v15, %v2965_v20  ;;  %v589_v9 = vsel %vm539_vm0, %v586_v62, %v588_v21  ;;  %v590_v24 = vrot.slane %v3748_v26, 1  ;;  %v1836_v44 = vunpack.c.l.bf16 %v3746_v16  ;;  %v3767_v20 = vld [vmem:[%s5080_s1 + $0x78] sm:$0xff]  }
  0x57   :  { %v591_v27 = vrot.slane %v3750_v22, 1  ;;  %v2697_v33 = vmax.f32 %v2441_v57, %v2633_v10  ;;  %v1191_v36 = vmax.f32 %v977_v56, %v589_v9  ;;  %v2245_v37 = vrot.slane %v2082_v23, 1  ;;  %v216_v10 = vld [vmem:[%s5081_s2 + $0x74] sm:$0x1]  ;;  %v3834_v57 = vld [vmem:[%s5080_s1 + $0x84] sm:$0xff]  }
  0x58   :  { %v1642_v35 = vmax.f32 %v1446_v43, %v1384_v11  ;;  %v783_v34 = vmax.f32 %v3711_v53, %v589_v9  ;;  %v1385_v38 = vunpack.c.h.bf16 %v3717_v28  ;;  %v978_v40 = vmax.f32 %v782_v4, %v3748_v26 }
  0x59   :  { %v1837_v41 = vunpack.c.h.bf16 %v3746_v16  ;;  %v2761_v12 = vpack.c.bf16 %v2697_v33, %v2697_v33  ;;  %v1447_v30 = vmax.f32 %v1191_v36, %v2966_v18  ;;  %v592_v42 = vsel %vm539_vm0, %v590_v24, %v591_v27  ;;  %v219_v36 = vld [vmem:[%s5081_s2 + $0x80] sm:$0x1] }
  0x5a   :  { %v1898_v25 = vmax.f32 %v1642_v35, %v3033_v49  ;;  %v2969_v46 = vunpack.c.l.bf16 %v3767_v20  ;;  %v1192_v47 = vmax.f32 %v978_v40, %v592_v42  ;;  %v2247_v51 = vrot.slane %v1836_v44, 1 }
  0x5b   :  { %v2248_v49 = vrot.slane %v1837_v41, 1  ;;  %2826 = vst.msk [vmem:[%s5083_s4 + $0x3c] sm:$0xf] %vm2810_vm1, %v2761_v12  ;;  %v1643_v18 = vmax.f32 %v1447_v30, %v1385_v38  ;;  %v2246_v52 = vsel %vm539_vm0, %v2243_v55, %v2245_v37  ;;  %v421_v53 = vunpack.c.l.bf16 %v49_v19  ;;  %v3148_v37 = vld [vmem:[%s5079_s0 + $0x90] sm:$0xff]  }
  0x5c   :  { %v2442_v58 = vmax.f32 %v1898_v25, %v2244_v7  ;;  %v784_v60 = vmax.f32 %v3748_v26, %v592_v42  ;;  %v1448_v31 = vmax.f32 %v1192_v47, %v1384_v11  ;;  %v979_v61 = vmax.f32 %v783_v34, %v3750_v22  ;;  %v52_v7 = vld [vmem:[%s5079_s0 + $0x8c] sm:$0x1] }
  0x5d   :  { %v2083_v28 = vunpack.c.l.bf16 %v216_v10  ;;  %v1899_v29 = vmax.f32 %v1643_v18, %v3034_v13  ;;  %v2636_v54 = vunpack.c.l.bf16 %v3786_v48  ;;  %v593_v62 = vrot.slane %v421_v53, 1  ;;  %v3863_v10 = vld [vmem:[%s5081_s2 + $0x84] sm:$0xff]  }
  0x5e   :  { %v2698_v17 = vmax.f32 %v2442_v58, %v3097_v50  ;;  %v1644_v0 = vmax.f32 %v1448_v31, %v2969_v46  ;;  %v2249_v1 = vsel %vm539_vm0, %v2247_v51, %v2248_v49  ;;  %v2970_v32 = vunpack.c.h.bf16 %v3767_v20 }
  0x5f   :  { %v2250_v45 = vrot.slane %v2083_v28, 1  ;;  %v2443_v50 = vmax.f32 %v1899_v29, %v2246_v52  ;;  %v594_v55 = vsel %vm539_vm0, %v591_v27, %v593_v62  ;;  %v2637_v2 = vunpack.c.h.bf16 %v3786_v48 }
  0x60   :  { %v2762_v13 = vpack.c.bf16 %v2698_v17, %v2698_v17  ;;  %v1900_v59 = vmax.f32 %v1644_v0, %v1836_v44  ;;  %v1193_v11 = vmax.f32 %v979_v61, %v594_v55  ;;  %v3037_v14 = vunpack.c.l.bf16 %v3805_v63 }
  0x61   :  { %v3038_v56 = vunpack.c.h.bf16 %v3805_v63  ;;  %v2699_v5 = vmax.f32 %v2443_v50, %v3098_v3  ;;  %v785_v6 = vmax.f32 %v3750_v22, %v594_v55  ;;  %v369_v4 = vunpack.c.l.bf16 %v50_v39  ;;  %v56_v63 = vld [vmem:[%s5079_s0 + $0x9c] sm:$0xff]  }
  0x62   :  { %2827 = vst.msk [vmem:[%s5083_s4 + $0x40] sm:$0xf] %vm2810_vm1, %v2762_v13  ;;  %v3828_v15 = vunpack.c.h.bf16 %v50_v39  ;;  %v2444_v21 = vmax.f32 %v1900_v59, %v2249_v1  ;;  %v1449_v23 = vmax.f32 %v1193_v11, %v1385_v38  ;;  %v2251_v26 = vsel %vm539_vm0, %v2248_v49, %v2250_v45  ;;  %v55_v45 = vld [vmem:[%s5079_s0 + $0x98] sm:$0x1]  ;;  %v3903_v11 = vld [vmem:[%s5082_s3 + $0x84] sm:$0xff]  }
  0x63   :  { %v3101_v43 = vunpack.c.l.bf16 %v3819_v8  ;;  %v2763_v3 = vpack.c.bf16 %v2699_v5, %v2699_v5  ;;  %v595_v22 = vrot.slane %v369_v4, 1  ;;  %v980_v24 = vmax.f32 %v784_v60, %v369_v4 }
  0x64   :  { %v596_v9 = vrot.slane %v3828_v15, 1  ;;  %v2700_v27 = vmax.f32 %v2444_v21, %v2636_v54  ;;  %v1645_v44 = vmax.f32 %v1449_v23, %v2970_v32  ;;  %v2252_v33 = vrot.slane %v3037_v14, 1 }
  0x65   :  { %v2253_v35 = vrot.slane %v3038_v56, 1  ;;  %2828 = vst.msk [vmem:[%s5083_s4 + $0x44] sm:$0xf] %vm2810_vm1, %v2763_v3  ;;  %v1388_v38 = vunpack.c.l.bf16 %v3834_v57  ;;  %v422_v40 = vunpack.c.l.bf16 %v52_v7  ;;  %v981_v19 = vmax.f32 %v785_v6, %v3828_v15 }
  0x66   :  { %v597_v34 = vsel %vm539_vm0, %v595_v22, %v596_v9  ;;  %v2764_v12 = vpack.c.bf16 %v2700_v27, %v2700_v27  ;;  %v1901_v25 = vmax.f32 %v1645_v44, %v1837_v41  ;;  %v2084_v47 = vunpack.c.l.bf16 %v219_v36 }
  0x67   :  { %v786_v30 = vmax.f32 %v369_v4, %v597_v34  ;;  %v1194_v42 = vmax.f32 %v980_v24, %v597_v34  ;;  %v598_v48 = vrot.slane %v422_v40, 1  ;;  %v3865_v51 = vunpack.c.l.bf16 %v3148_v37  ;;  %v3922_v24 = vld [vmem:[%s5081_s2 + $0x90] sm:$0xff]  }
  0x68   :  { %v3867_v49 = vunpack.c.h.bf16 %v3148_v37  ;;  %2829 = vst.msk [vmem:[%s5083_s4 + $0x48] sm:$0xf] %vm2810_vm1, %v2764_v12  ;;  %v2445_v16 = vmax.f32 %v1901_v25, %v2251_v26  ;;  %v2254_v58 = vsel %vm539_vm0, %v2252_v33, %v2253_v35  ;;  %v3102_v18 = vunpack.c.h.bf16 %v3819_v8  ;;  %v3936_v37 = vld [vmem:[%s5082_s3 + $0x90] sm:$0xff]  }
  0x69   :  { %v1450_v41 = vmax.f32 %v1194_v42, %v2969_v46  ;;  %v599_v52 = vsel %vm539_vm0, %v596_v9, %v598_v48  ;;  %v600_v53 = vrot.slane %v3865_v51, 1  ;;  %v1840_v31 = vunpack.c.l.bf16 %v3863_v10  ;;  %v3884_v46 = vld [vmem:[%s5080_s1 + $0x90] sm:$0xff]  }
  0x6a   :  { %v601_v60 = vrot.slane %v3867_v49, 1  ;;  %v2701_v61 = vmax.f32 %v2445_v16, %v2637_v2  ;;  %v1195_v17 = vmax.f32 %v981_v19, %v599_v52  ;;  %v2255_v29 = vrot.slane %v2084_v47, 1  ;;  %v222_v2 = vld [vmem:[%s5081_s2 + $0x8c] sm:$0x1]  ;;  %v3951_v16 = vld [vmem:[%s5080_s1 + $0x9c] sm:$0xff]  }
  0x6b   :  { %v1646_v28 = vmax.f32 %v1450_v41, %v1388_v38  ;;  %v787_v54 = vmax.f32 %v3828_v15, %v599_v52  ;;  %v1389_v62 = vunpack.c.h.bf16 %v3834_v57  ;;  %v982_v0 = vmax.f32 %v786_v30, %v3865_v51 }
  0x6c   :  { %v1841_v1 = vunpack.c.h.bf16 %v3863_v10  ;;  %v2765_v39 = vpack.c.bf16 %v2701_v61, %v2701_v61  ;;  %v1451_v50 = vmax.f32 %v1195_v17, %v2970_v32  ;;  %v602_v55 = vsel %vm539_vm0, %v600_v53, %v601_v60  ;;  %v225_v17 = vld [vmem:[%s5081_s2 + $0x98] sm:$0x1] }
  0x6d   :  { %v1902_v13 = vmax.f32 %v1646_v28, %v3037_v14  ;;  %v2973_v59 = vunpack.c.l.bf16 %v3884_v46  ;;  %v1196_v5 = vmax.f32 %v982_v0, %v602_v55  ;;  %v2257_v6 = vrot.slane %v1840_v31, 1 }
  0x6e   :  { %v2258_v14 = vrot.slane %v1841_v1, 1  ;;  %2830 = vst.msk [vmem:[%s5083_s4 + $0x4c] sm:$0xf] %vm2810_vm1, %v2765_v39  ;;  %v1647_v32 = vmax.f32 %v1451_v50, %v1389_v62  ;;  %v2256_v4 = vsel %vm539_vm0, %v2253_v35, %v2255_v29  ;;  %v423_v15 = vunpack.c.l.bf16 %v55_v45  ;;  %v3149_v29 = vld [vmem:[%s5079_s0 + $0xa8] sm:$0xff]  }
  0x6f   :  { %v2446_v20 = vmax.f32 %v1902_v13, %v2254_v58  ;;  %v788_v21 = vmax.f32 %v3865_v51, %v602_v55  ;;  %v1452_v23 = vmax.f32 %v1196_v5, %v1388_v38  ;;  %v983_v26 = vmax.f32 %v787_v54, %v3867_v49  ;;  %v58_v58 = vld [vmem:[%s5079_s0 + $0xa4] sm:$0x1] }
  0x70   :  { %v2085_v57 = vunpack.c.l.bf16 %v222_v2  ;;  %v1903_v3 = vmax.f32 %v1647_v32, %v3038_v56  ;;  %v2640_v22 = vunpack.c.l.bf16 %v3903_v11  ;;  %v603_v9 = vrot.slane %v423_v15, 1  ;;  %v3980_v2 = vld [vmem:[%s5081_s2 + $0x9c] sm:$0xff]  }
  0x71   :  { %v2702_v7 = vmax.f32 %v2446_v20, %v3101_v43  ;;  %v1648_v27 = vmax.f32 %v1452_v23, %v2973_v59  ;;  %v2259_v44 = vsel %vm539_vm0, %v2257_v6, %v2258_v14  ;;  %v2974_v33 = vunpack.c.h.bf16 %v3884_v46 }
  0x72   :  { %v2260_v8 = vrot.slane %v2085_v57, 1  ;;  %v2447_v43 = vmax.f32 %v1903_v3, %v2256_v4  ;;  %v604_v35 = vsel %vm539_vm0, %v601_v60, %v603_v9  ;;  %v2641_v36 = vunpack.c.h.bf16 %v3903_v11 }
  0x73   :  { %v2766_v56 = vpack.c.bf16 %v2702_v7, %v2702_v7  ;;  %v1904_v34 = vmax.f32 %v1648_v27, %v1840_v31  ;;  %v1197_v38 = vmax.f32 %v983_v26, %v604_v35  ;;  %v3041_v40 = vunpack.c.l.bf16 %v3922_v24 }
  0x74   :  { %v3042_v19 = vunpack.c.h.bf16 %v3922_v24  ;;  %v2703_v12 = vmax.f32 %v2447_v43, %v3102_v18  ;;  %v789_v25 = vmax.f32 %v3867_v49, %v604_v35  ;;  %v373_v30 = vunpack.c.l.bf16 %v56_v63  ;;  %v62_v24 = vld [vmem:[%s5079_s0 + $0xb4] sm:$0xff]  }
  0x75   :  { %2831 = vst.msk [vmem:[%s5083_s4 + $0x50] sm:$0xf] %vm2810_vm1, %v2766_v56  ;;  %v3945_v42 = vunpack.c.h.bf16 %v56_v63  ;;  %v2448_v48 = vmax.f32 %v1904_v34, %v2259_v44  ;;  %v1453_v47 = vmax.f32 %v1197_v38, %v1389_v62  ;;  %v2261_v51 = vsel %vm539_vm0, %v2258_v14, %v2260_v8  ;;  %v61_v8 = vld [vmem:[%s5079_s0 + $0xb0] sm:$0x1]  ;;  %v4020_v38 = vld [vmem:[%s5082_s3 + $0x9c] sm:$0xff]  }
  0x76   :  { %v3105_v41 = vunpack.c.l.bf16 %v3936_v37  ;;  %v2767_v18 = vpack.c.bf16 %v2703_v12, %v2703_v12  ;;  %v605_v49 = vrot.slane %v373_v30, 1  ;;  %v984_v53 = vmax.f32 %v788_v21, %v373_v30 }
  0x77   :  { %v606_v52 = vrot.slane %v3945_v42, 1  ;;  %v2704_v60 = vmax.f32 %v2448_v48, %v2640_v22  ;;  %v1649_v31 = vmax.f32 %v1453_v47, %v2974_v33  ;;  %v2262_v61 = vrot.slane %v3041_v40, 1 }
  0x78   :  { %v2263_v28 = vrot.slane %v3042_v19, 1  ;;  %2832 = vst.msk [vmem:[%s5083_s4 + $0x54] sm:$0xf] %vm2810_vm1, %v2767_v18  ;;  %v1392_v62 = vunpack.c.l.bf16 %v3951_v16  ;;  %v424_v0 = vunpack.c.l.bf16 %v58_v58  ;;  %v985_v45 = vmax.f32 %v789_v25, %v3945_v42 }
  0x79   :  { %v607_v54 = vsel %vm539_vm0, %v605_v49, %v606_v52  ;;  %v2768_v39 = vpack.c.bf16 %v2704_v60, %v2704_v60  ;;  %v1905_v13 = vmax.f32 %v1649_v31, %v1841_v1  ;;  %v2086_v5 = vunpack.c.l.bf16 %v225_v17 }
  0x7a   :  { %v790_v50 = vmax.f32 %v373_v30, %v607_v54  ;;  %v1198_v55 = vmax.f32 %v984_v53, %v607_v54  ;;  %v608_v11 = vrot.slane %v424_v0, 1  ;;  %v3982_v6 = vunpack.c.l.bf16 %v3149_v29  ;;  %v4039_v53 = vld [vmem:[%s5081_s2 + $0xa8] sm:$0xff]  }
  0x7b   :  { %v3984_v14 = vunpack.c.h.bf16 %v3149_v29  ;;  %2833 = vst.msk [vmem:[%s5083_s4 + $0x58] sm:$0xf] %vm2810_vm1, %v2768_v39  ;;  %v2449_v10 = vmax.f32 %v1905_v13, %v2261_v51  ;;  %v2264_v20 = vsel %vm539_vm0, %v2262_v61, %v2263_v28  ;;  %v3106_v32 = vunpack.c.h.bf16 %v3936_v37  ;;  %v4053_v29 = vld [vmem:[%s5082_s3 + $0xa8] sm:$0xff]  }
  0x7c   :  { %v1454_v1 = vmax.f32 %v1198_v55, %v2973_v59  ;;  %v609_v4 = vsel %vm539_vm0, %v606_v52, %v608_v11  ;;  %v610_v15 = vrot.slane %v3982_v6, 1  ;;  %v1844_v23 = vunpack.c.l.bf16 %v3980_v2  ;;  %v4001_v59 = vld [vmem:[%s5080_s1 + $0xa8] sm:$0xff]  }
  0x7d   :  { %v611_v21 = vrot.slane %v3984_v14, 1  ;;  %v2705_v26 = vmax.f32 %v2449_v10, %v2641_v36  ;;  %v1199_v7 = vmax.f32 %v985_v45, %v609_v4  ;;  %v2265_v3 = vrot.slane %v2086_v5, 1  ;;  %v228_v36 = vld [vmem:[%s5081_s2 + $0xa4] sm:$0x1]  ;;  %v4068_v10 = vld [vmem:[%s5080_s1 + $0xb4] sm:$0xff]  }
  0x7e   :  { %v1650_v57 = vmax.f32 %v1454_v1, %v1392_v62  ;;  %v791_v22 = vmax.f32 %v3945_v42, %v609_v4  ;;  %v1393_v9 = vunpack.c.h.bf16 %v3951_v16  ;;  %v986_v27 = vmax.f32 %v790_v50, %v3982_v6 }
  0x7f   :  { %v1845_v44 = vunpack.c.h.bf16 %v3980_v2  ;;  %v2769_v63 = vpack.c.bf16 %v2705_v26, %v2705_v26  ;;  %v1455_v43 = vmax.f32 %v1199_v7, %v2974_v33  ;;  %v612_v35 = vsel %vm539_vm0, %v610_v15, %v611_v21  ;;  %v231_v7 = vld [vmem:[%s5081_s2 + $0xb0] sm:$0x1] }
  0x80   :  { %v1906_v56 = vmax.f32 %v1650_v57, %v3041_v40  ;;  %v2977_v34 = vunpack.c.l.bf16 %v4001_v59  ;;  %v1200_v12 = vmax.f32 %v986_v27, %v612_v35  ;;  %v2267_v25 = vrot.slane %v1844_v23, 1 }
  0x81   :  { %v2268_v40 = vrot.slane %v1845_v44, 1  ;;  %2834 = vst.msk [vmem:[%s5083_s4 + $0x5c] sm:$0xf] %vm2810_vm1, %v2769_v63  ;;  %v1651_v33 = vmax.f32 %v1455_v43, %v1393_v9  ;;  %v2266_v30 = vsel %vm539_vm0, %v2263_v28, %v2265_v3  ;;  %v425_v42 = vunpack.c.l.bf16 %v61_v8  ;;  %v3150_v3 = vld [vmem:[%s5079_s0 + $0xc0] sm:$0xff]  }
  0x82   :  { %v2450_v46 = vmax.f32 %v1906_v56, %v2264_v20  ;;  %v792_v48 = vmax.f32 %v3982_v6, %v612_v35  ;;  %v1456_v47 = vmax.f32 %v1200_v12, %v1392_v62  ;;  %v987_v51 = vmax.f32 %v791_v22, %v3984_v14  ;;  %v64_v20 = vld [vmem:[%s5079_s0 + $0xbc] sm:$0x1] }
  0x83   :  { %v2087_v16 = vunpack.c.l.bf16 %v228_v36  ;;  %v1907_v18 = vmax.f32 %v1651_v33, %v3042_v19  ;;  %v2644_v49 = vunpack.c.l.bf16 %v4020_v38  ;;  %v613_v52 = vrot.slane %v425_v42, 1  ;;  %v4097_v36 = vld [vmem:[%s5081_s2 + $0xb4] sm:$0xff]  }
  0x84   :  { %v2706_v58 = vmax.f32 %v2450_v46, %v3105_v41  ;;  %v1652_v60 = vmax.f32 %v1456_v47, %v2977_v34  ;;  %v2269_v31 = vsel %vm539_vm0, %v2267_v25, %v2268_v40  ;;  %v2978_v61 = vunpack.c.h.bf16 %v4001_v59 }
  0x85   :  { %v2270_v37 = vrot.slane %v2087_v16, 1  ;;  %v2451_v41 = vmax.f32 %v1907_v18, %v2266_v30  ;;  %v614_v28 = vsel %vm539_vm0, %v611_v21, %v613_v52  ;;  %v2645_v17 = vunpack.c.h.bf16 %v4020_v38 }
  0x86   :  { %v2770_v19 = vpack.c.bf16 %v2706_v58, %v2706_v58  ;;  %v1908_v54 = vmax.f32 %v1652_v60, %v1844_v23  ;;  %v1201_v62 = vmax.f32 %v987_v51, %v614_v28  ;;  %v3045_v0 = vunpack.c.l.bf16 %v4039_v53 }
  0x87   :  { %v3046_v45 = vunpack.c.h.bf16 %v4039_v53  ;;  %v2707_v39 = vmax.f32 %v2451_v41, %v3106_v32  ;;  %v793_v13 = vmax.f32 %v3984_v14, %v614_v28  ;;  %v377_v50 = vunpack.c.l.bf16 %v62_v24  ;;  %v4163_v53 = vld [vmem:[%s5081_s2 + $0xcc] sm:$0xff]  }
  0x88   :  { %2835 = vst.msk [vmem:[%s5083_s4 + $0x60] sm:$0xf] %vm2810_vm1, %v2770_v19  ;;  %v4062_v55 = vunpack.c.h.bf16 %v62_v24  ;;  %v2452_v11 = vmax.f32 %v1908_v54, %v2269_v31  ;;  %v1457_v5 = vmax.f32 %v1201_v62, %v1393_v9  ;;  %v2271_v6 = vsel %vm539_vm0, %v2268_v40, %v2270_v37  ;;  %v67_v37 = vld [vmem:[%s5079_s0 + $0xc8] sm:$0x1]  ;;  %v234_v54 = vld [vmem:[%s5081_s2 + $0xbc] sm:$0x1] }
  0x89   :  { %v3109_v1 = vunpack.c.l.bf16 %v4053_v29  ;;  %v2771_v32 = vpack.c.bf16 %v2707_v39, %v2707_v39  ;;  %v615_v14 = vrot.slane %v377_v50, 1  ;;  %v988_v15 = vmax.f32 %v792_v48, %v377_v50  ;;  %v4111_v48 = vld [vmem:[%s5080_s1 + $0xc0] sm:$0xff]   ;;  %v3151_v62 = vld [vmem:[%s5079_s0 + $0xd8] sm:$0xff]  }
  0x8a   :  { %v616_v4 = vrot.slane %v4062_v55, 1  ;;  %v2708_v21 = vmax.f32 %v2452_v11, %v2644_v49  ;;  %v1653_v23 = vmax.f32 %v1457_v5, %v2978_v61  ;;  %v2272_v26 = vrot.slane %v3045_v0, 1  ;;  %v4145_v5 = vld [vmem:[%s5079_s0 + $0xcc] sm:$0xff]  }
  0x8b   :  { %v2273_v57 = vrot.slane %v3046_v45, 1  ;;  %2836 = vst.msk [vmem:[%s5083_s4 + $0x64] sm:$0xf] %vm2810_vm1, %v2771_v32  ;;  %v1396_v9 = vunpack.c.l.bf16 %v4068_v10  ;;  %v426_v27 = vunpack.c.l.bf16 %v64_v20  ;;  %v989_v8 = vmax.f32 %v793_v13, %v4062_v55 }
  0x8c   :  { %v617_v22 = vsel %vm539_vm0, %v615_v14, %v616_v4  ;;  %v2772_v63 = vpack.c.bf16 %v2708_v21, %v2708_v21  ;;  %v1909_v56 = vmax.f32 %v1653_v23, %v1845_v44  ;;  %v2088_v12 = vunpack.c.l.bf16 %v231_v7 }
  0x8d   :  { %v794_v43 = vmax.f32 %v377_v50, %v617_v22  ;;  %v1202_v35 = vmax.f32 %v988_v15, %v617_v22  ;;  %v618_v38 = vrot.slane %v426_v27, 1  ;;  %v2913_v25 = vunpack.c.l.bf16 %v3150_v3 }
  0x8e   :  { %v2914_v40 = vunpack.c.h.bf16 %v3150_v3  ;;  %2837 = vst.msk [vmem:[%s5083_s4 + $0x68] sm:$0xf] %vm2810_vm1, %v2772_v63  ;;  %v2453_v46 = vmax.f32 %v1909_v56, %v2271_v6  ;;  %v2274_v44 = vsel %vm539_vm0, %v2272_v26, %v2273_v57  ;;  %v3110_v33 = vunpack.c.h.bf16 %v4053_v29 }
  0x8f   :  { %v1458_v2 = vmax.f32 %v1202_v35, %v2977_v34  ;;  %v619_v30 = vsel %vm539_vm0, %v616_v4, %v618_v38  ;;  %v2275_v42 = vrot.slane %v2088_v12, 1  ;;  %v1160_v47 = vrot.slane %v2913_v25, 1 }
  0x90   :  { %v1848_v51 = vunpack.c.l.bf16 %v4097_v36  ;;  %v2709_v16 = vmax.f32 %v2453_v46, %v2645_v17  ;;  %v1203_v18 = vmax.f32 %v989_v8, %v619_v30  ;;  %v990_v49 = vmax.f32 %v794_v43, %v2913_v25  ;;  %v4126_v17 = vld [vmem:[%s5082_s3 + $0xb4] sm:$0xff]  }
  0x91   :  { %v1654_v58 = vmax.f32 %v1458_v2, %v1396_v9  ;;  %v795_v34 = vmax.f32 %v4062_v55, %v619_v30  ;;  %v1397_v52 = vunpack.c.h.bf16 %v4068_v10  ;;  %v1161_v60 = vrot.slane %v2914_v40, 1  ;;  %v70_v30 = vld [vmem:[%s5079_s0 + $0xd4] sm:$0x1] }
  0x92   :  { %v1849_v31 = vunpack.c.h.bf16 %v4097_v36  ;;  %v2773_v24 = vpack.c.bf16 %v2709_v16, %v2709_v16  ;;  %v1459_v41 = vmax.f32 %v1203_v18, %v2978_v61  ;;  %v2981_v28 = vunpack.c.l.bf16 %v4111_v48  ;;  %v4217_v36 = vld [vmem:[%s5081_s2 + $0xd8] sm:$0xff]  }
  0x93   :  { %v1910_v19 = vmax.f32 %v1654_v58, %v3045_v0  ;;  %v2276_v0 = vsel %vm539_vm0, %v2273_v57, %v2275_v42  ;;  %v1162_v59 = vsel %vm539_vm0, %v1160_v47, %v1161_v60  ;;  %v2277_v61 = vrot.slane %v1848_v51, 1  ;;  %v73_v42 = vld [vmem:[%s5079_s0 + $0xe0] sm:$0x1] }
  0x94   :  { %v2278_v39 = vrot.slane %v1849_v31, 1  ;;  %2838 = vst.msk [vmem:[%s5083_s4 + $0x6c] sm:$0xf] %vm2810_vm1, %v2773_v24  ;;  %v1655_v50 = vmax.f32 %v1459_v41, %v1397_v52  ;;  %v1204_v55 = vmax.f32 %v990_v49, %v1162_v59  ;;  %v1152_v11 = vunpack.c.l.bf16 %v67_v37 }
  0x95   :  { %v2454_v13 = vmax.f32 %v1910_v19, %v2274_v44  ;;  %v2648_v6 = vunpack.c.l.bf16 %v4126_v17  ;;  %v991_v10 = vmax.f32 %v795_v34, %v2914_v40  ;;  %v2089_v20 = vunpack.c.l.bf16 %v234_v54  ;;  %v4177_v44 = vld [vmem:[%s5080_s1 + $0xd8] sm:$0xff]   ;;  %v4209_v19 = vld [vmem:[%s5082_s3 + $0xcc] sm:$0xff]  }
  0x96   :  { %v4148_v32 = vunpack.c.l.bf16 %v3151_v62  ;;  %v1911_v4 = vmax.f32 %v1655_v50, %v3046_v45  ;;  %v1460_v15 = vmax.f32 %v1204_v55, %v1396_v9  ;;  %v1163_v21 = vrot.slane %v1152_v11, 1 }
  0x97   :  { %v2710_v14 = vmax.f32 %v2454_v13, %v3109_v1  ;;  %v2279_v23 = vsel %vm539_vm0, %v2277_v61, %v2278_v39  ;;  %v2982_v26 = vunpack.c.h.bf16 %v4111_v48  ;;  %v4156_v57 = vunpack.c.h.bf16 %v3151_v62 }
  0x98   :  { %v379_v7 = vunpack.c.l.bf16 %v4145_v5  ;;  %v2455_v22 = vmax.f32 %v1911_v4, %v2276_v0  ;;  %v1656_v27 = vmax.f32 %v1460_v15, %v2981_v28  ;;  %v1164_v8 = vsel %vm539_vm0, %v1161_v60, %v1163_v21  ;;  %v237_v60 = vld [vmem:[%s5081_s2 + $0xd4] sm:$0x1] }
  0x99   :  { %v2774_v3 = vpack.c.bf16 %v2710_v14, %v2710_v14  ;;  %v1205_v29 = vmax.f32 %v991_v10, %v1164_v8  ;;  %v2280_v45 = vrot.slane %v2089_v20, 1  ;;  %v380_v1 = vunpack.c.h.bf16 %v4145_v5  ;;  %v74_v5 = vld [vmem:[%s5079_s0 + $0xe4] sm:$0xff]  }
  0x9a   :  { %v620_v9 = vrot.slane %v379_v7, 1  ;;  %v2711_v63 = vmax.f32 %v2455_v22, %v3110_v33  ;;  %v1912_v56 = vmax.f32 %v1656_v27, %v1848_v51  ;;  %v625_v43 = vrot.slane %v4148_v32, 1  ;;  %v4190_v51 = vld [vmem:[%s5080_s1 + $0xcc] sm:$0xff]  }
  0x9b   :  { %2839 = vst.msk [vmem:[%s5083_s4 + $0x70] sm:$0xf] %vm2810_vm1, %v2774_v3  ;;  %v626_v35 = vrot.slane %v4156_v57, 1  ;;  %v1461_v38 = vmax.f32 %v1205_v29, %v1397_v52  ;;  %v621_v12 = vrot.slane %v380_v1, 1  ;;  %v1850_v25 = vunpack.c.l.bf16 %v4163_v53  ;;  %v76_v27 = vld [vmem:[%s5079_s0 + $0xec] sm:$0x1] }
  0x9c   :  { %v2775_v40 = vpack.c.bf16 %v2711_v63, %v2711_v63  ;;  %v2456_v46 = vmax.f32 %v1912_v56, %v2279_v23  ;;  %v2649_v2 = vunpack.c.h.bf16 %v4126_v17  ;;  %v1851_v33 = vunpack.c.h.bf16 %v4163_v53  ;;  %v4236_v23 = vld [vmem:[%s5082_s3 + $0xd8] sm:$0xff]  }
  0x9d   :  { %v1657_v48 = vmax.f32 %v1461_v38, %v2982_v26  ;;  %v2281_v47 = vsel %vm539_vm0, %v2278_v39, %v2280_v45  ;;  %v622_v16 = vsel %vm539_vm0, %v620_v9, %v621_v12  ;;  %v627_v58 = vsel %vm539_vm0, %v625_v43, %v626_v35 }
  0x9e   :  { %2840 = vst.msk [vmem:[%s5083_s4 + $0x74] sm:$0xf] %vm2810_vm1, %v2775_v40  ;;  %v2712_v18 = vmax.f32 %v2456_v46, %v2648_v6  ;;  %v796_v49 = vmax.f32 %v379_v7, %v622_v16  ;;  %v2282_v34 = vrot.slane %v1850_v25, 1  ;;  %v2283_v52 = vrot.slane %v1851_v33, 1  ;;  %v3152_v46 = vld [vmem:[%s5079_s0 + $0xf0] sm:$0xff]  }
  0x9f   :  { %v1913_v37 = vmax.f32 %v1657_v48, %v1849_v31  ;;  %v2985_v24 = vunpack.c.l.bf16 %v4177_v44  ;;  %v427_v41 = vunpack.c.l.bf16 %v70_v30  ;;  %v428_v28 = vunpack.c.l.bf16 %v73_v42 }
  0xa0   :  { %v2776_v17 = vpack.c.bf16 %v2712_v18, %v2712_v18  ;;  %v798_v54 = vmax.f32 %v4148_v32, %v627_v58  ;;  %v992_v62 = vmax.f32 %v796_v49, %v4148_v32  ;;  %v1398_v0 = vunpack.c.l.bf16 %v4190_v51 }
  0xa1   :  { %v2457_v31 = vmax.f32 %v1913_v37, %v2281_v47  ;;  %v623_v59 = vrot.slane %v427_v41, 1  ;;  %v628_v61 = vrot.slane %v428_v28, 1  ;;  %v2090_v39 = vunpack.c.l.bf16 %v237_v60 }
  0xa2   :  { %2841 = vst.msk [vmem:[%s5083_s4 + $0x78] sm:$0xf] %vm2810_vm1, %v2776_v17  ;;  %v1206_v13 = vmax.f32 %v992_v62, %v627_v58  ;;  %v2284_v50 = vsel %vm539_vm0, %v2282_v34, %v2283_v52  ;;  %v2650_v55 = vunpack.c.l.bf16 %v4209_v19  ;;  %v2986_v11 = vunpack.c.h.bf16 %v4177_v44 }
  0xa3   :  { %v2713_v6 = vmax.f32 %v2457_v31, %v2649_v2  ;;  %v624_v10 = vsel %vm539_vm0, %v621_v12, %v623_v59  ;;  %v629_v20 = vsel %vm539_vm0, %v626_v35, %v628_v61  ;;  %v3049_v32 = vunpack.c.l.bf16 %v4217_v36  ;;  %v4265_v2 = vld [vmem:[%s5080_s1 + $0xe4] sm:$0xff]  }
  0xa4   :  { %v1462_v14 = vmax.f32 %v1206_v13, %v1398_v0  ;;  %v797_v4 = vmax.f32 %v380_v1, %v624_v10  ;;  %v2285_v15 = vrot.slane %v2090_v39, 1  ;;  %v3050_v21 = vunpack.c.h.bf16 %v4217_v36 }
  0xa5   :  { %v2777_v26 = vpack.c.bf16 %v2713_v6, %v2713_v6  ;;  %v799_v7 = vmax.f32 %v4156_v57, %v629_v20  ;;  %v383_v3 = vunpack.c.l.bf16 %v74_v5  ;;  %v4239_v22 = vunpack.c.h.bf16 %v74_v5 }
  0xa6   :  { %v1658_v8 = vmax.f32 %v1462_v14, %v2985_v24  ;;  %v993_v29 = vmax.f32 %v797_v4, %v4156_v57  ;;  %v1399_v45 = vunpack.c.h.bf16 %v4190_v51  ;;  %v2651_v1 = vunpack.c.h.bf16 %v4209_v19  ;;  %v240_v57 = vld [vmem:[%s5081_s2 + $0xe0] sm:$0x1] }
  0xa7   :  { %2842 = vst.msk [vmem:[%s5083_s4 + $0x7c] sm:$0xf] %vm2810_vm1, %v2777_v26  ;;  %v3113_v9 = vunpack.c.l.bf16 %v4236_v23  ;;  %v630_v63 = vrot.slane %v383_v3, 1  ;;  %v631_v56 = vrot.slane %v4239_v22, 1  ;;  %v994_v43 = vmax.f32 %v798_v54, %v383_v3  ;;  %v4285_v54 = vld [vmem:[%s5081_s2 + $0xe4] sm:$0xff]  }
  0xa8   :  { %v1914_v35 = vmax.f32 %v1658_v8, %v1850_v25  ;;  %v1207_v38 = vmax.f32 %v993_v29, %v629_v20  ;;  %v2286_v12 = vsel %vm539_vm0, %v2283_v52, %v2285_v15  ;;  %v429_v40 = vunpack.c.l.bf16 %v76_v27  ;;  %v79_v20 = vld [vmem:[%s5079_s0 + $0xf8] sm:$0x1] }
  0xa9   :  { %v632_v30 = vsel %vm539_vm0, %v630_v63, %v631_v56  ;;  %v2287_v25 = vrot.slane %v3049_v32, 1  ;;  %v2288_v42 = vrot.slane %v3050_v21, 1  ;;  %v995_v48 = vmax.f32 %v799_v7, %v4239_v22 }
  0xaa   :  { %v2458_v47 = vmax.f32 %v1914_v35, %v2284_v50  ;;  %v1463_v51 = vmax.f32 %v1207_v38, %v1399_v45  ;;  %v800_v16 = vmax.f32 %v383_v3, %v632_v30  ;;  %v1208_v58 = vmax.f32 %v994_v43, %v632_v30 }
  0xab   :  { %v633_v18 = vrot.slane %v429_v40, 1  ;;  %v2091_v49 = vunpack.c.l.bf16 %v240_v57  ;;  %v4271_v34 = vunpack.c.l.bf16 %v3152_v46  ;;  %v4273_v52 = vunpack.c.h.bf16 %v3152_v46  ;;  %v80_v46 = vld [vmem:[%s5079_s0 + $0xfc] sm:$0xff]  }
  0xac   :  { %v2714_v60 = vmax.f32 %v2458_v47, %v2650_v55  ;;  %v1659_v37 = vmax.f32 %v1463_v51, %v2986_v11  ;;  %v1402_v19 = vunpack.c.l.bf16 %v4265_v2  ;;  %v1464_v41 = vmax.f32 %v1208_v58, %v2985_v24  ;;  %v4294_v24 = vld [vmem:[%s5080_s1 + $0xf0] sm:$0xff]  }
  0xad   :  { %v2289_v28 = vsel %vm539_vm0, %v2287_v25, %v2288_v42  ;;  %v634_v17 = vsel %vm539_vm0, %v631_v56, %v633_v18  ;;  %v635_v62 = vrot.slane %v4271_v34, 1  ;;  %v636_v0 = vrot.slane %v4273_v52, 1  ;;  %v4319_v56 = vld [vmem:[%s5082_s3 + $0xe4] sm:$0xff]  }
  0xae   :  { %v2778_v31 = vpack.c.bf16 %v2714_v60, %v2714_v60  ;;  %v1915_v59 = vmax.f32 %v1659_v37, %v1851_v33  ;;  %v1660_v61 = vmax.f32 %v1464_v41, %v1402_v19  ;;  %v2290_v39 = vrot.slane %v2091_v49, 1 }
  0xaf   :  { %v801_v13 = vmax.f32 %v4239_v22, %v634_v17  ;;  %v1209_v50 = vmax.f32 %v995_v48, %v634_v17  ;;  %v1403_v55 = vunpack.c.h.bf16 %v4265_v2  ;;  %v996_v5 = vmax.f32 %v800_v16, %v4271_v34  ;;  %v82_v17 = vld [vmem:[%s5079_s0 + $0x104] sm:$0x1] }
  0xb0   :  { %2843 = vst.msk [vmem:[%s5083_s4 + $0x80] sm:$0xf] %vm2810_vm1, %v2778_v31  ;;  %v2459_v53 = vmax.f32 %v1915_v59, %v2286_v12  ;;  %v1916_v33 = vmax.f32 %v1660_v61, %v3049_v32  ;;  %v637_v6 = vsel %vm539_vm0, %v635_v62, %v636_v0  ;;  %v1854_v10 = vunpack.c.l.bf16 %v4285_v54  ;;  %v243_v32 = vld [vmem:[%s5081_s2 + $0xec] sm:$0x1] }
  0xb1   :  { %v1465_v14 = vmax.f32 %v1209_v50, %v2986_v11  ;;  %v2989_v4 = vunpack.c.l.bf16 %v4294_v24  ;;  %v1210_v15 = vmax.f32 %v996_v5, %v637_v6  ;;  %v1855_v26 = vunpack.c.h.bf16 %v4285_v54  ;;  %v3153_v50 = vld [vmem:[%s5079_s0 + $0x108] sm:$0xff]   ;;  %v4379_v5 = vld [vmem:[%s5080_s1 + $0xfc] sm:$0xff]  }
  0xb2   :  { %v2715_v7 = vmax.f32 %v2459_v53, %v2651_v1  ;;  %v2460_v3 = vmax.f32 %v1916_v33, %v2289_v28  ;;  %v2291_v22 = vsel %vm539_vm0, %v2288_v42, %v2290_v39  ;;  %v2292_v27 = vrot.slane %v1854_v10, 1  ;;  %v4358_v28 = vld [vmem:[%s5082_s3 + $0xf0] sm:$0xff]  }
  0xb3   :  { %v1661_v8 = vmax.f32 %v1465_v14, %v1403_v55  ;;  %v1466_v29 = vmax.f32 %v1210_v15, %v1402_v19  ;;  %v2293_v45 = vrot.slane %v1855_v26, 1  ;;  %v430_v63 = vunpack.c.l.bf16 %v79_v20 }
  0xb4   :  { %v2779_v44 = vpack.c.bf16 %v2715_v7, %v2715_v7  ;;  %v2716_v11 = vmax.f32 %v2460_v3, %v3113_v9  ;;  %v997_v43 = vmax.f32 %v801_v13, %v4273_v52  ;;  %v2092_v35 = vunpack.c.l.bf16 %v243_v32  ;;  %v4330_v9 = vld [vmem:[%s5081_s2 + $0xf0] sm:$0xff]   ;;  %v246_v13 = vld [vmem:[%s5081_s2 + $0xf8] sm:$0x1]  ;;  %v4387_v32 = vld [vmem:[%s5081_s2 + $0xfc] sm:$0xff]  }
  0xb5   :  { %v3114_v1 = vunpack.c.h.bf16 %v4236_v23  ;;  %v1917_v38 = vmax.f32 %v1661_v8, %v3050_v21  ;;  %v1662_v12 = vmax.f32 %v1466_v29, %v2989_v4  ;;  %v638_v57 = vrot.slane %v430_v63, 1 }
  0xb6   :  { %2844 = vst.msk [vmem:[%s5083_s4 + $0x84] sm:$0xf] %vm2810_vm1, %v2779_v44  ;;  %v2780_v40 = vpack.c.bf16 %v2716_v11, %v2716_v11  ;;  %v802_v23 = vmax.f32 %v4271_v34, %v637_v6  ;;  %v2294_v36 = vsel %vm539_vm0, %v2292_v27, %v2293_v45  ;;  %v2295_v21 = vrot.slane %v2092_v35, 1 }
  0xb7   :  { %v2461_v2 = vmax.f32 %v1917_v38, %v2291_v22  ;;  %v1918_v30 = vmax.f32 %v1662_v12, %v1854_v10  ;;  %v2654_v25 = vunpack.c.l.bf16 %v4319_v56  ;;  %v639_v42 = vsel %vm539_vm0, %v636_v0, %v638_v57 }
  0xb8   :  { %2845 = vst.msk [vmem:[%s5083_s4 + $0x88] sm:$0xf] %vm2810_vm1, %v2780_v40  ;;  %v2990_v48 = vunpack.c.h.bf16 %v4294_v24  ;;  %v1211_v47 = vmax.f32 %v997_v43, %v639_v42  ;;  %v3053_v51 = vunpack.c.l.bf16 %v4330_v9  ;;  %v3054_v16 = vunpack.c.h.bf16 %v4330_v9  ;;  %v4410_v24 = vld [vmem:[%s5080_s1 + $0x108] sm:$0xff]   ;;  %v86_v9 = vld [vmem:[%s5079_s0 + $0x114] sm:$0xff]  }
  0xb9   :  { %v2717_v58 = vmax.f32 %v2461_v2, %v3114_v1  ;;  %v2462_v18 = vmax.f32 %v1918_v30, %v2294_v36  ;;  %v387_v49 = vunpack.c.l.bf16 %v80_v46  ;;  %v4350_v34 = vunpack.c.h.bf16 %v80_v46  ;;  %v249_v30 = vld [vmem:[%s5081_s2 + $0x104] sm:$0x1] }
  0xba   :  { %v803_v60 = vmax.f32 %v4273_v52, %v639_v42  ;;  %v1467_v37 = vmax.f32 %v1211_v47, %v1403_v55  ;;  %v2296_v19 = vsel %vm539_vm0, %v2293_v45, %v2295_v21  ;;  %v2655_v41 = vunpack.c.h.bf16 %v4319_v56 }
  0xbb   :  { %v2781_v54 = vpack.c.bf16 %v2717_v58, %v2717_v58  ;;  %v2718_v62 = vmax.f32 %v2462_v18, %v2654_v25  ;;  %v640_v0 = vrot.slane %v387_v49, 1  ;;  %v641_v31 = vrot.slane %v4350_v34, 1 }
  0xbc   :  { %v1663_v52 = vmax.f32 %v1467_v37, %v2990_v48  ;;  %v998_v59 = vmax.f32 %v802_v23, %v387_v49  ;;  %v2297_v61 = vrot.slane %v3053_v51, 1  ;;  %v2298_v39 = vrot.slane %v3054_v16, 1  ;;  %v85_v23 = vld [vmem:[%s5079_s0 + $0x110] sm:$0x1] }
  0xbd   :  { %2846 = vst.msk [vmem:[%s5083_s4 + $0x8c] sm:$0xf] %vm2810_vm1, %v2781_v54  ;;  %v2782_v55 = vpack.c.bf16 %v2718_v62, %v2718_v62  ;;  %v3117_v53 = vunpack.c.l.bf16 %v4358_v28  ;;  %v642_v33 = vsel %vm539_vm0, %v640_v0, %v641_v31  ;;  %v431_v6 = vunpack.c.l.bf16 %v82_v17  ;;  %v4442_v0 = vld [vmem:[%s5081_s2 + $0x108] sm:$0xff]  }
  0xbe   :  { %v1919_v10 = vmax.f32 %v1663_v52, %v1855_v26  ;;  %v804_v20 = vmax.f32 %v387_v49, %v642_v33  ;;  %v1212_v14 = vmax.f32 %v998_v59, %v642_v33  ;;  %v999_v15 = vmax.f32 %v803_v60, %v4350_v34  ;;  %v4432_v49 = vld [vmem:[%s5082_s3 + $0xfc] sm:$0xff]  }
  0xbf   :  { %2847 = vst.msk [vmem:[%s5083_s4 + $0x90] sm:$0xf] %vm2810_vm1, %v2782_v55  ;;  %v643_v7 = vrot.slane %v431_v6, 1  ;;  %v2093_v3 = vunpack.c.l.bf16 %v246_v13  ;;  %v4393_v22 = vunpack.c.l.bf16 %v3153_v50  ;;  %v4395_v27 = vunpack.c.h.bf16 %v3153_v50  ;;  %v4456_v55 = vld [vmem:[%s5082_s3 + $0x108] sm:$0xff]  }
  0xc0   :  { %v2463_v26 = vmax.f32 %v1919_v10, %v2296_v19  ;;  %v1406_v8 = vunpack.c.l.bf16 %v4379_v5  ;;  %v1468_v29 = vmax.f32 %v1212_v14, %v2989_v4  ;;  %v2299_v45 = vsel %vm539_vm0, %v2297_v61, %v2298_v39 }
  0xc1   :  { %v644_v63 = vsel %vm539_vm0, %v641_v31, %v643_v7  ;;  %v645_v44 = vrot.slane %v4393_v22, 1  ;;  %v646_v11 = vrot.slane %v4395_v27, 1  ;;  %v1858_v56 = vunpack.c.l.bf16 %v4387_v32 }
  0xc2   :  { %v2719_v43 = vmax.f32 %v2463_v26, %v2655_v41  ;;  %v1664_v35 = vmax.f32 %v1468_v29, %v1406_v8  ;;  %v1213_v1 = vmax.f32 %v999_v15, %v644_v63  ;;  %v1407_v38 = vunpack.c.h.bf16 %v4379_v5 }
  0xc3   :  { %v805_v12 = vmax.f32 %v4350_v34, %v644_v63  ;;  %v2300_v57 = vrot.slane %v2093_v3, 1  ;;  %v1000_v4 = vmax.f32 %v804_v20, %v4393_v22  ;;  %v1859_v40 = vunpack.c.h.bf16 %v4387_v32 }
  0xc4   :  { %v2783_v36 = vpack.c.bf16 %v2719_v43, %v2719_v43  ;;  %v1920_v21 = vmax.f32 %v1664_v35, %v3053_v51  ;;  %v1469_v46 = vmax.f32 %v1213_v1, %v2990_v48  ;;  %v647_v2 = vsel %vm539_vm0, %v645_v44, %v646_v11  ;;  %v252_v35 = vld [vmem:[%s5081_s2 + $0x110] sm:$0x1]  ;;  %v3154_v1 = vld [vmem:[%s5079_s0 + $0x120] sm:$0xff]  }
  0xc5   :  { %v3118_v25 = vunpack.c.h.bf16 %v4358_v28  ;;  %v1214_v42 = vmax.f32 %v1000_v4, %v647_v2  ;;  %v2302_v47 = vrot.slane %v1858_v56, 1  ;;  %v2303_v58 = vrot.slane %v1859_v40, 1 }
  0xc6   :  { %2848 = vst.msk [vmem:[%s5083_s4 + $0x94] sm:$0xf] %vm2810_vm1, %v2783_v36  ;;  %v2464_v51 = vmax.f32 %v1920_v21, %v2299_v45  ;;  %v1665_v48 = vmax.f32 %v1469_v46, %v1407_v38  ;;  %v2993_v18 = vunpack.c.l.bf16 %v4410_v24  ;;  %v432_v34 = vunpack.c.l.bf16 %v85_v23 }
  0xc7   :  { %v2301_v60 = vsel %vm539_vm0, %v2298_v39, %v2300_v57  ;;  %v1470_v37 = vmax.f32 %v1214_v42, %v1406_v8  ;;  %v1001_v19 = vmax.f32 %v805_v12, %v4395_v27  ;;  %v2094_v41 = vunpack.c.l.bf16 %v249_v30  ;;  %v88_v8 = vld [vmem:[%s5079_s0 + $0x11c] sm:$0x1]  ;;  %v4491_v12 = vld [vmem:[%s5080_s1 + $0x114] sm:$0xff]  }
  0xc8   :  { %v2720_v28 = vmax.f32 %v2464_v51, %v3117_v53  ;;  %v1921_v17 = vmax.f32 %v1665_v48, %v3054_v16  ;;  %v806_v54 = vmax.f32 %v4393_v22, %v647_v2  ;;  %v648_v62 = vrot.slane %v432_v34, 1  ;;  %v4500_v30 = vld [vmem:[%s5081_s2 + $0x114] sm:$0xff]  }
  0xc9   :  { %v1666_v31 = vmax.f32 %v1470_v37, %v2993_v18  ;;  %v2304_v52 = vsel %vm539_vm0, %v2302_v47, %v2303_v58  ;;  %v2658_v59 = vunpack.c.l.bf16 %v4432_v49  ;;  %v2994_v61 = vunpack.c.h.bf16 %v4410_v24 }
  0xca   :  { %v2784_v16 = vpack.c.bf16 %v2720_v28, %v2720_v28  ;;  %v2465_v39 = vmax.f32 %v1921_v17, %v2301_v60  ;;  %v649_v13 = vsel %vm539_vm0, %v646_v11, %v648_v62  ;;  %v2305_v50 = vrot.slane %v2094_v41, 1 }
  0xcb   :  { %v1922_v5 = vmax.f32 %v1666_v31, %v1858_v56  ;;  %v1215_v53 = vmax.f32 %v1001_v19, %v649_v13  ;;  %v3057_v33 = vunpack.c.l.bf16 %v4442_v0  ;;  %v3058_v6 = vunpack.c.h.bf16 %v4442_v0  ;;  %v92_v0 = vld [vmem:[%s5079_s0 + $0x12c] sm:$0xff]  }
  0xcc   :  { %2849 = vst.msk [vmem:[%s5083_s4 + $0x98] sm:$0xf] %vm2810_vm1, %v2784_v16  ;;  %v2721_v10 = vmax.f32 %v2465_v39, %v3118_v25  ;;  %v807_v20 = vmax.f32 %v4395_v27, %v649_v13  ;;  %v391_v14 = vunpack.c.l.bf16 %v86_v9  ;;  %v4465_v15 = vunpack.c.h.bf16 %v86_v9 }
  0xcd   :  { %v2466_v7 = vmax.f32 %v1922_v5, %v2304_v52  ;;  %v1471_v3 = vmax.f32 %v1215_v53, %v1407_v38  ;;  %v2659_v22 = vunpack.c.h.bf16 %v4432_v49  ;;  %v3121_v26 = vunpack.c.l.bf16 %v4456_v55 }
  0xce   :  { %v2785_v29 = vpack.c.bf16 %v2721_v10, %v2721_v10  ;;  %v650_v45 = vrot.slane %v391_v14, 1  ;;  %v651_v63 = vrot.slane %v4465_v15, 1  ;;  %v1002_v44 = vmax.f32 %v806_v54, %v391_v14 }
  0xcf   :  { %v2722_v11 = vmax.f32 %v2466_v7, %v2658_v59  ;;  %v1667_v27 = vmax.f32 %v1471_v3, %v2994_v61  ;;  %v2307_v56 = vrot.slane %v3057_v33, 1  ;;  %v2308_v43 = vrot.slane %v3058_v6, 1  ;;  %v91_v59 = vld [vmem:[%s5079_s0 + $0x128] sm:$0x1] }
  0xd0   :  { %2850 = vst.msk [vmem:[%s5083_s4 + $0x9c] sm:$0xf] %vm2810_vm1, %v2785_v29  ;;  %v2306_v38 = vsel %vm539_vm0, %v2303_v58, %v2305_v50  ;;  %v652_v57 = vsel %vm539_vm0, %v650_v45, %v651_v63  ;;  %v433_v4 = vunpack.c.l.bf16 %v88_v8  ;;  %v1003_v23 = vmax.f32 %v807_v20, %v4465_v15  ;;  %v255_v50 = vld [vmem:[%s5081_s2 + $0x11c] sm:$0x1] }
  0xd1   :  { %v2786_v36 = vpack.c.bf16 %v2722_v11, %v2722_v11  ;;  %v1923_v21 = vmax.f32 %v1667_v27, %v1859_v40  ;;  %v808_v46 = vmax.f32 %v391_v14, %v652_v57  ;;  %v1216_v2 = vmax.f32 %v1002_v44, %v652_v57  ;;  %v4547_v14 = vld [vmem:[%s5082_s3 + $0x114] sm:$0xff]   ;;  %v4559_v11 = vld [vmem:[%s5081_s2 + $0x120] sm:$0xff]  }
  0xd2   :  { %v653_v25 = vrot.slane %v433_v4, 1  ;;  %v2095_v42 = vunpack.c.l.bf16 %v252_v35  ;;  %v4502_v47 = vunpack.c.l.bf16 %v3154_v1  ;;  %v4504_v58 = vunpack.c.h.bf16 %v3154_v1 }
  0xd3   :  { %2851 = vst.msk [vmem:[%s5083_s4 + $0xa0] sm:$0xf] %vm2810_vm1, %v2786_v36  ;;  %v2467_v32 = vmax.f32 %v1923_v21, %v2306_v38  ;;  %v1410_v40 = vunpack.c.l.bf16 %v4491_v12  ;;  %v1472_v51 = vmax.f32 %v1216_v2, %v2993_v18  ;;  %v2309_v48 = vsel %vm539_vm0, %v2307_v56, %v2308_v43  ;;  %v4523_v18 = vld [vmem:[%s5080_s1 + $0x120] sm:$0xff]  }
  0xd4   :  { %v654_v49 = vsel %vm539_vm0, %v651_v63, %v653_v25  ;;  %v655_v34 = vrot.slane %v4502_v47, 1  ;;  %v656_v60 = vrot.slane %v4504_v58, 1  ;;  %v1862_v37 = vunpack.c.l.bf16 %v4500_v30  ;;  %v4573_v38 = vld [vmem:[%s5082_s3 + $0x120] sm:$0xff]  }
  0xd5   :  { %v2723_v19 = vmax.f32 %v2467_v32, %v2659_v22  ;;  %v1668_v41 = vmax.f32 %v1472_v51, %v1410_v40  ;;  %v1217_v28 = vmax.f32 %v1003_v23, %v654_v49  ;;  %v1411_v17 = vunpack.c.h.bf16 %v4491_v12 }
  0xd6   :  { %v809_v54 = vmax.f32 %v4465_v15, %v654_v49  ;;  %v2310_v62 = vrot.slane %v2095_v42, 1  ;;  %v1004_v31 = vmax.f32 %v808_v46, %v4502_v47  ;;  %v1863_v52 = vunpack.c.h.bf16 %v4500_v30 }
  0xd7   :  { %v2787_v9 = vpack.c.bf16 %v2723_v19, %v2723_v19  ;;  %v1924_v16 = vmax.f32 %v1668_v41, %v3057_v33  ;;  %v1473_v39 = vmax.f32 %v1217_v28, %v2994_v61  ;;  %v657_v13 = vsel %vm539_vm0, %v655_v34, %v656_v60  ;;  %v258_v41 = vld [vmem:[%s5081_s2 + $0x128] sm:$0x1]  ;;  %v3155_v28 = vld [vmem:[%s5079_s0 + $0x138] sm:$0xff]  }
  0xd8   :  { %v3122_v5 = vunpack.c.h.bf16 %v4456_v55  ;;  %v1218_v53 = vmax.f32 %v1004_v31, %v657_v13  ;;  %v2312_v10 = vrot.slane %v1862_v37, 1  ;;  %v2313_v20 = vrot.slane %v1863_v52, 1 }
  0xd9   :  { %2852 = vst.msk [vmem:[%s5083_s4 + $0xa4] sm:$0xf] %vm2810_vm1, %v2787_v9  ;;  %v2468_v24 = vmax.f32 %v1924_v16, %v2309_v48  ;;  %v1669_v61 = vmax.f32 %v1473_v39, %v1411_v17  ;;  %v2997_v33 = vunpack.c.l.bf16 %v4523_v18  ;;  %v434_v15 = vunpack.c.l.bf16 %v91_v59 }
  0xda   :  { %v2311_v7 = vsel %vm539_vm0, %v2308_v43, %v2310_v62  ;;  %v1474_v3 = vmax.f32 %v1218_v53, %v1410_v40  ;;  %v1005_v22 = vmax.f32 %v809_v54, %v4504_v58  ;;  %v2096_v8 = vunpack.c.l.bf16 %v255_v50  ;;  %v94_v40 = vld [vmem:[%s5079_s0 + $0x134] sm:$0x1]  ;;  %v4608_v54 = vld [vmem:[%s5080_s1 + $0x12c] sm:$0xff]  }
  0xdb   :  { %v2724_v29 = vmax.f32 %v2468_v24, %v3121_v26  ;;  %v1925_v45 = vmax.f32 %v1669_v61, %v3058_v6  ;;  %v810_v63 = vmax.f32 %v4502_v47, %v657_v13  ;;  %v658_v44 = vrot.slane %v434_v15, 1  ;;  %v4617_v50 = vld [vmem:[%s5081_s2 + $0x12c] sm:$0xff]  }
  0xdc   :  { %v1670_v27 = vmax.f32 %v1474_v3, %v2997_v33  ;;  %v2314_v56 = vsel %vm539_vm0, %v2312_v10, %v2313_v20  ;;  %v2662_v43 = vunpack.c.l.bf16 %v4547_v14  ;;  %v2998_v55 = vunpack.c.h.bf16 %v4523_v18 }
  0xdd   :  { %v2788_v6 = vpack.c.bf16 %v2724_v29, %v2724_v29  ;;  %v2469_v26 = vmax.f32 %v1925_v45, %v2311_v7  ;;  %v659_v35 = vsel %vm539_vm0, %v656_v60, %v658_v44  ;;  %v2315_v1 = vrot.slane %v2096_v8, 1 }
  0xde   :  { %v1926_v12 = vmax.f32 %v1670_v27, %v1862_v37  ;;  %v1219_v57 = vmax.f32 %v1005_v22, %v659_v35  ;;  %v3061_v4 = vunpack.c.l.bf16 %v4559_v11  ;;  %v3062_v23 = vunpack.c.h.bf16 %v4559_v11  ;;  %v98_v11 = vld [vmem:[%s5079_s0 + $0x144] sm:$0xff]  }
  0xdf   :  { %2853 = vst.msk [vmem:[%s5083_s4 + $0xa8] sm:$0xf] %vm2810_vm1, %v2788_v6  ;;  %v2725_v36 = vmax.f32 %v2469_v26, %v3122_v5  ;;  %v811_v21 = vmax.f32 %v4504_v58, %v659_v35  ;;  %v395_v46 = vunpack.c.l.bf16 %v92_v0  ;;  %v4582_v2 = vunpack.c.h.bf16 %v92_v0 }
  0xe0   :  { %v2470_v25 = vmax.f32 %v1926_v12, %v2314_v56  ;;  %v1475_v42 = vmax.f32 %v1219_v57, %v1411_v17  ;;  %v2663_v47 = vunpack.c.h.bf16 %v4547_v14  ;;  %v3125_v32 = vunpack.c.l.bf16 %v4573_v38 }
  0xe1   :  { %v2789_v51 = vpack.c.bf16 %v2725_v36, %v2725_v36  ;;  %v660_v48 = vrot.slane %v395_v46, 1  ;;  %v661_v49 = vrot.slane %v4582_v2, 1  ;;  %v1006_v34 = vmax.f32 %v810_v63, %v395_v46 }
  0xe2   :  { %v2726_v60 = vmax.f32 %v2470_v25, %v2662_v43  ;;  %v1671_v58 = vmax.f32 %v1475_v42, %v2998_v55  ;;  %v2317_v37 = vrot.slane %v3061_v4, 1  ;;  %v2318_v19 = vrot.slane %v3062_v23, 1  ;;  %v97_v43 = vld [vmem:[%s5079_s0 + $0x140] sm:$0x1] }
  0xe3   :  { %2854 = vst.msk [vmem:[%s5083_s4 + $0xac] sm:$0xf] %vm2810_vm1, %v2789_v51  ;;  %v2316_v17 = vsel %vm539_vm0, %v2313_v20, %v2315_v1  ;;  %v662_v62 = vsel %vm539_vm0, %v660_v48, %v661_v49  ;;  %v435_v31 = vunpack.c.l.bf16 %v94_v40  ;;  %v1007_v59 = vmax.f32 %v811_v21, %v4582_v2  ;;  %v261_v1 = vld [vmem:[%s5081_s2 + $0x134] sm:$0x1] }
  0xe4   :  { %v2790_v9 = vpack.c.bf16 %v2726_v60, %v2726_v60  ;;  %v1927_v16 = vmax.f32 %v1671_v58, %v1863_v52  ;;  %v812_v39 = vmax.f32 %v395_v46, %v662_v62  ;;  %v1220_v13 = vmax.f32 %v1006_v34, %v662_v62  ;;  %v4664_v46 = vld [vmem:[%s5082_s3 + $0x12c] sm:$0xff]   ;;  %v4676_v60 = vld [vmem:[%s5081_s2 + $0x138] sm:$0xff]  }
  0xe5   :  { %v663_v5 = vrot.slane %v435_v31, 1  ;;  %v2097_v53 = vunpack.c.l.bf16 %v258_v41  ;;  %v4619_v10 = vunpack.c.l.bf16 %v3155_v28  ;;  %v4621_v20 = vunpack.c.h.bf16 %v3155_v28 }
  0xe6   :  { %2855 = vst.msk [vmem:[%s5083_s4 + $0xb0] sm:$0xf] %vm2810_vm1, %v2790_v9  ;;  %v2471_v30 = vmax.f32 %v1927_v16, %v2316_v17  ;;  %v1414_v52 = vunpack.c.l.bf16 %v4608_v54  ;;  %v1476_v24 = vmax.f32 %v1220_v13, %v2997_v33  ;;  %v2319_v61 = vsel %vm539_vm0, %v2317_v37, %v2318_v19  ;;  %v4640_v33 = vld [vmem:[%s5080_s1 + $0x138] sm:$0xff]  }
  0xe7   :  { %v664_v14 = vsel %vm539_vm0, %v661_v49, %v663_v5  ;;  %v665_v15 = vrot.slane %v4619_v10, 1  ;;  %v666_v7 = vrot.slane %v4621_v20, 1  ;;  %v1866_v3 = vunpack.c.l.bf16 %v4617_v50  ;;  %v4690_v17 = vld [vmem:[%s5082_s3 + $0x138] sm:$0xff]  }
  0xe8   :  { %v2727_v22 = vmax.f32 %v2471_v30, %v2663_v47  ;;  %v1672_v8 = vmax.f32 %v1476_v24, %v1414_v52  ;;  %v1221_v29 = vmax.f32 %v1007_v59, %v664_v14  ;;  %v1415_v45 = vunpack.c.h.bf16 %v4608_v54 }
  0xe9   :  { %v813_v63 = vmax.f32 %v4582_v2, %v664_v14  ;;  %v2320_v44 = vrot.slane %v2097_v53, 1  ;;  %v1008_v27 = vmax.f32 %v812_v39, %v4619_v10  ;;  %v1867_v56 = vunpack.c.h.bf16 %v4617_v50 }
  0xea   :  { %v2791_v0 = vpack.c.bf16 %v2727_v22, %v2727_v22  ;;  %v1928_v6 = vmax.f32 %v1672_v8, %v3061_v4  ;;  %v1477_v26 = vmax.f32 %v1221_v29, %v2998_v55  ;;  %v667_v35 = vsel %vm539_vm0, %v665_v15, %v666_v7  ;;  %v264_v8 = vld [vmem:[%s5081_s2 + $0x140] sm:$0x1]  ;;  %v3156_v29 = vld [vmem:[%s5079_s0 + $0x150] sm:$0xff]  }
  0xeb   :  { %v3126_v12 = vunpack.c.h.bf16 %v4573_v38  ;;  %v1222_v57 = vmax.f32 %v1008_v27, %v667_v35  ;;  %v2322_v36 = vrot.slane %v1866_v3, 1  ;;  %v2323_v21 = vrot.slane %v1867_v56, 1 }
  0xec   :  { %2856 = vst.msk [vmem:[%s5083_s4 + $0xb4] sm:$0xf] %vm2810_vm1, %v2791_v0  ;;  %v2472_v18 = vmax.f32 %v1928_v6, %v2319_v61  ;;  %v1673_v55 = vmax.f32 %v1477_v26, %v1415_v45  ;;  %v3001_v4 = vunpack.c.l.bf16 %v4640_v33  ;;  %v436_v2 = vunpack.c.l.bf16 %v97_v43 }
  0xed   :  { %v2321_v25 = vsel %vm539_vm0, %v2318_v19, %v2320_v44  ;;  %v1478_v42 = vmax.f32 %v1222_v57, %v1414_v52  ;;  %v1009_v47 = vmax.f32 %v813_v63, %v4621_v20  ;;  %v2098_v40 = vunpack.c.l.bf16 %v261_v1  ;;  %v100_v52 = vld [vmem:[%s5079_s0 + $0x14c] sm:$0x1]  ;;  %v4725_v63 = vld [vmem:[%s5080_s1 + $0x144] sm:$0xff]  }
  0xee   :  { %v2728_v51 = vmax.f32 %v2472_v18, %v3125_v32  ;;  %v1929_v48 = vmax.f32 %v1673_v55, %v3062_v23  ;;  %v814_v49 = vmax.f32 %v4619_v10, %v667_v35  ;;  %v668_v34 = vrot.slane %v436_v2, 1  ;;  %v4734_v1 = vld [vmem:[%s5081_s2 + $0x144] sm:$0xff]  }
  0xef   :  { %v1674_v58 = vmax.f32 %v1478_v42, %v3001_v4  ;;  %v2324_v37 = vsel %vm539_vm0, %v2322_v36, %v2323_v21  ;;  %v2666_v19 = vunpack.c.l.bf16 %v4664_v46  ;;  %v3002_v38 = vunpack.c.h.bf16 %v4640_v33 }
  0xf0   :  { %v2792_v23 = vpack.c.bf16 %v2728_v51, %v2728_v51  ;;  %v2473_v32 = vmax.f32 %v1929_v48, %v2321_v25  ;;  %v669_v41 = vsel %vm539_vm0, %v666_v7, %v668_v34  ;;  %v2325_v28 = vrot.slane %v2098_v40, 1 }
  0xf1   :  { %v1930_v54 = vmax.f32 %v1674_v58, %v1866_v3  ;;  %v1223_v62 = vmax.f32 %v1009_v47, %v669_v41  ;;  %v3065_v31 = vunpack.c.l.bf16 %v4676_v60  ;;  %v3066_v59 = vunpack.c.h.bf16 %v4676_v60  ;;  %v104_v60 = vld [vmem:[%s5079_s0 + $0x15c] sm:$0xff]  }
  0xf2   :  { %2857 = vst.msk [vmem:[%s5083_s4 + $0xb8] sm:$0xf] %vm2810_vm1, %v2792_v23  ;;  %v2729_v9 = vmax.f32 %v2473_v32, %v3126_v12  ;;  %v815_v16 = vmax.f32 %v4621_v20, %v669_v41  ;;  %v399_v39 = vunpack.c.l.bf16 %v98_v11  ;;  %v4699_v13 = vunpack.c.h.bf16 %v98_v11 }
  0xf3   :  { %v2474_v5 = vmax.f32 %v1930_v54, %v2324_v37  ;;  %v1479_v53 = vmax.f32 %v1223_v62, %v1415_v45  ;;  %v2667_v10 = vunpack.c.h.bf16 %v4664_v46  ;;  %v3129_v30 = vunpack.c.l.bf16 %v4690_v17 }
  0xf4   :  { %v2793_v24 = vpack.c.bf16 %v2729_v9, %v2729_v9  ;;  %v670_v61 = vrot.slane %v399_v39, 1  ;;  %v671_v14 = vrot.slane %v4699_v13, 1  ;;  %v1010_v15 = vmax.f32 %v814_v49, %v399_v39 }
  0xf5   :  { %v2730_v7 = vmax.f32 %v2474_v5, %v2666_v19  ;;  %v1675_v20 = vmax.f32 %v1479_v53, %v3002_v38  ;;  %v2327_v3 = vrot.slane %v3065_v31, 1  ;;  %v2328_v22 = vrot.slane %v3066_v59, 1  ;;  %v103_v19 = vld [vmem:[%s5079_s0 + $0x158] sm:$0x1] }
  0xf6   :  { %2858 = vst.msk [vmem:[%s5083_s4 + $0xbc] sm:$0xf] %vm2810_vm1, %v2793_v24  ;;  %v2326_v45 = vsel %vm539_vm0, %v2323_v21, %v2325_v28  ;;  %v672_v44 = vsel %vm539_vm0, %v670_v61, %v671_v14  ;;  %v437_v27 = vunpack.c.l.bf16 %v100_v52  ;;  %v1011_v43 = vmax.f32 %v815_v16, %v4699_v13  ;;  %v267_v28 = vld [vmem:[%s5081_s2 + $0x14c] sm:$0x1] }
  0xf7   :  { %v2794_v0 = vpack.c.bf16 %v2730_v7, %v2730_v7  ;;  %v1931_v6 = vmax.f32 %v1675_v20, %v1867_v56  ;;  %v816_v26 = vmax.f32 %v399_v39, %v672_v44  ;;  %v1224_v35 = vmax.f32 %v1010_v15, %v672_v44  ;;  %v4781_v39 = vld [vmem:[%s5082_s3 + $0x144] sm:$0xff]   ;;  %v4793_v7 = vld [vmem:[%s5081_s2 + $0x150] sm:$0xff]  }
  0xf8   :  { %v673_v12 = vrot.slane %v437_v27, 1  ;;  %v2099_v57 = vunpack.c.l.bf16 %v264_v8  ;;  %v4736_v36 = vunpack.c.l.bf16 %v3156_v29  ;;  %v4738_v21 = vunpack.c.h.bf16 %v3156_v29 }
  0xf9   :  { %2859 = vst.msk [vmem:[%s5083_s4 + $0xc0] sm:$0xf] %vm2810_vm1, %v2794_v0  ;;  %v2475_v50 = vmax.f32 %v1931_v6, %v2326_v45  ;;  %v1418_v56 = vunpack.c.l.bf16 %v4725_v63  ;;  %v1480_v18 = vmax.f32 %v1224_v35, %v3001_v4  ;;  %v2329_v55 = vsel %vm539_vm0, %v2327_v3, %v2328_v22  ;;  %v4757_v4 = vld [vmem:[%s5080_s1 + $0x150] sm:$0xff]  }
  0xfa   :  { %v674_v46 = vsel %vm539_vm0, %v671_v14, %v673_v12  ;;  %v675_v2 = vrot.slane %v4736_v36, 1  ;;  %v676_v25 = vrot.slane %v4738_v21, 1  ;;  %v1870_v42 = vunpack.c.l.bf16 %v4734_v1  ;;  %v4807_v45 = vld [vmem:[%s5082_s3 + $0x150] sm:$0xff]  }
  0xfb   :  { %v2731_v47 = vmax.f32 %v2475_v50, %v2667_v10  ;;  %v1676_v40 = vmax.f32 %v1480_v18, %v1418_v56  ;;  %v1225_v51 = vmax.f32 %v1011_v43, %v674_v46  ;;  %v1419_v48 = vunpack.c.h.bf16 %v4725_v63 }
  0xfc   :  { %v817_v49 = vmax.f32 %v4699_v13, %v674_v46  ;;  %v2330_v34 = vrot.slane %v2099_v57, 1  ;;  %v1012_v58 = vmax.f32 %v816_v26, %v4736_v36  ;;  %v1871_v37 = vunpack.c.h.bf16 %v4734_v1 }
  0xfd   :  { %v2795_v11 = vpack.c.bf16 %v2731_v47, %v2731_v47  ;;  %v1932_v23 = vmax.f32 %v1676_v40, %v3065_v31  ;;  %v1481_v32 = vmax.f32 %v1225_v51, %v3002_v38  ;;  %v677_v41 = vsel %vm539_vm0, %v675_v2, %v676_v25  ;;  %v270_v40 = vld [vmem:[%s5081_s2 + $0x158] sm:$0x1]  ;;  %v3157_v51 = vld [vmem:[%s5079_s0 + $0x168] sm:$0xff]  }
  0xfe   :  { %v3130_v54 = vunpack.c.h.bf16 %v4690_v17  ;;  %v1226_v62 = vmax.f32 %v1012_v58, %v677_v41  ;;  %v2332_v9 = vrot.slane %v1870_v42, 1  ;;  %v2333_v16 = vrot.slane %v1871_v37, 1 }
  0xff   :  { %2860 = vst.msk [vmem:[%s5083_s4 + $0xc4] sm:$0xf] %vm2810_vm1, %v2795_v11  ;;  %v2476_v33 = vmax.f32 %v1932_v23, %v2329_v55  ;;  %v1677_v38 = vmax.f32 %v1481_v32, %v1419_v48  ;;  %v3005_v31 = vunpack.c.l.bf16 %v4757_v4  ;;  %v438_v13 = vunpack.c.l.bf16 %v103_v19 }
 0x100   :  { %v2331_v5 = vsel %vm539_vm0, %v2328_v22, %v2330_v34  ;;  %v1482_v53 = vmax.f32 %v1226_v62, %v1418_v56  ;;  %v1013_v10 = vmax.f32 %v817_v49, %v4738_v21  ;;  %v2100_v52 = vunpack.c.l.bf16 %v267_v28  ;;  %v106_v56 = vld [vmem:[%s5079_s0 + $0x164] sm:$0x1]  ;;  %v4842_v49 = vld [vmem:[%s5080_s1 + $0x15c] sm:$0xff]  }
 0x101   :  { %v2732_v24 = vmax.f32 %v2476_v33, %v3129_v30  ;;  %v1933_v61 = vmax.f32 %v1677_v38, %v3066_v59  ;;  %v818_v14 = vmax.f32 %v4736_v36, %v677_v41  ;;  %v678_v15 = vrot.slane %v438_v13, 1  ;;  %v4851_v28 = vld [vmem:[%s5081_s2 + $0x15c] sm:$0xff]  }
 0x102   :  { %v1678_v20 = vmax.f32 %v1482_v53, %v3005_v31  ;;  %v2334_v3 = vsel %vm539_vm0, %v2332_v9, %v2333_v16  ;;  %v2670_v22 = vunpack.c.l.bf16 %v4781_v39  ;;  %v3006_v17 = vunpack.c.h.bf16 %v4757_v4 }
 0x103   :  { %v2796_v59 = vpack.c.bf16 %v2732_v24, %v2732_v24  ;;  %v2477_v30 = vmax.f32 %v1933_v61, %v2331_v5  ;;  %v679_v8 = vsel %vm539_vm0, %v676_v25, %v678_v15  ;;  %v2335_v29 = vrot.slane %v2100_v52, 1 }
 0x104   :  { %v1934_v63 = vmax.f32 %v1678_v20, %v1870_v42  ;;  %v1227_v44 = vmax.f32 %v1013_v10, %v679_v8  ;;  %v3069_v27 = vunpack.c.l.bf16 %v4793_v7  ;;  %v3070_v43 = vunpack.c.h.bf16 %v4793_v7  ;;  %v110_v7 = vld [vmem:[%s5079_s0 + $0x174] sm:$0xff]  }
 0x105   :  { %2861 = vst.msk [vmem:[%s5083_s4 + $0xc8] sm:$0xf] %vm2810_vm1, %v2796_v59  ;;  %v2733_v0 = vmax.f32 %v2477_v30, %v3130_v54  ;;  %v819_v6 = vmax.f32 %v4738_v21, %v679_v8  ;;  %v403_v26 = vunpack.c.l.bf16 %v104_v60  ;;  %v4816_v35 = vunpack.c.h.bf16 %v104_v60 }
 0x106   :  { %v2478_v12 = vmax.f32 %v1934_v63, %v2334_v3  ;;  %v1483_v57 = vmax.f32 %v1227_v44, %v1419_v48  ;;  %v2671_v36 = vunpack.c.h.bf16 %v4781_v39  ;;  %v3133_v50 = vunpack.c.l.bf16 %v4807_v45 }
 0x107   :  { %v2797_v18 = vpack.c.bf16 %v2733_v0, %v2733_v0  ;;  %v680_v55 = vrot.slane %v403_v26, 1  ;;  %v681_v46 = vrot.slane %v4816_v35, 1  ;;  %v1014_v2 = vmax.f32 %v818_v14, %v403_v26 }
 0x108   :  { %v2734_v25 = vmax.f32 %v2478_v12, %v2670_v22  ;;  %v1679_v21 = vmax.f32 %v1483_v57, %v3006_v17  ;;  %v2337_v42 = vrot.slane %v3069_v27, 1  ;;  %v2338_v47 = vrot.slane %v3070_v43, 1  ;;  %v109_v22 = vld [vmem:[%s5079_s0 + $0x170] sm:$0x1] }
 0x109   :  { %2862 = vst.msk [vmem:[%s5083_s4 + $0xcc] sm:$0xf] %vm2810_vm1, %v2797_v18  ;;  %v2336_v48 = vsel %vm539_vm0, %v2333_v16, %v2335_v29  ;;  %v682_v34 = vsel %vm539_vm0, %v680_v55, %v681_v46  ;;  %v439_v58 = vunpack.c.l.bf16 %v106_v56  ;;  %v1015_v19 = vmax.f32 %v819_v6, %v4816_v35  ;;  %v273_v29 = vld [vmem:[%s5081_s2 + $0x164] sm:$0x1] }
 0x10a   :  { %v2798_v11 = vpack.c.bf16 %v2734_v25, %v2734_v25  ;;  %v1935_v23 = vmax.f32 %v1679_v21, %v1871_v37  ;;  %v820_v32 = vmax.f32 %v403_v26, %v682_v34  ;;  %v1228_v41 = vmax.f32 %v1014_v2, %v682_v34  ;;  %v4898_v26 = vld [vmem:[%s5082_s3 + $0x15c] sm:$0xff]   ;;  %v4910_v25 = vld [vmem:[%s5081_s2 + $0x168] sm:$0xff]  }
 0x10b   :  { %v683_v54 = vrot.slane %v439_v58, 1  ;;  %v2101_v62 = vunpack.c.l.bf16 %v270_v40  ;;  %v4853_v9 = vunpack.c.l.bf16 %v3157_v51  ;;  %v4855_v16 = vunpack.c.h.bf16 %v3157_v51 }
 0x10c   :  { %2863 = vst.msk [vmem:[%s5083_s4 + $0xd0] sm:$0xf] %vm2810_vm1, %v2798_v11  ;;  %v2479_v1 = vmax.f32 %v1935_v23, %v2336_v48  ;;  %v1422_v37 = vunpack.c.l.bf16 %v4842_v49  ;;  %v1484_v33 = vmax.f32 %v1228_v41, %v3005_v31  ;;  %v2339_v38 = vsel %vm539_vm0, %v2337_v42, %v2338_v47  ;;  %v4874_v31 = vld [vmem:[%s5080_s1 + $0x168] sm:$0xff]  }
 0x10d   :  { %v684_v39 = vsel %vm539_vm0, %v681_v46, %v683_v54  ;;  %v685_v13 = vrot.slane %v4853_v9, 1  ;;  %v686_v5 = vrot.slane %v4855_v16, 1  ;;  %v1874_v53 = vunpack.c.l.bf16 %v4851_v28  ;;  %v4924_v48 = vld [vmem:[%s5082_s3 + $0x168] sm:$0xff]  }
 0x10e   :  { %v2735_v10 = vmax.f32 %v2479_v1, %v2671_v36  ;;  %v1680_v52 = vmax.f32 %v1484_v33, %v1422_v37  ;;  %v1229_v24 = vmax.f32 %v1015_v19, %v684_v39  ;;  %v1423_v61 = vunpack.c.h.bf16 %v4842_v49 }
 0x10f   :  { %v821_v14 = vmax.f32 %v4816_v35, %v684_v39  ;;  %v2340_v15 = vrot.slane %v2101_v62, 1  ;;  %v1016_v20 = vmax.f32 %v820_v32, %v4853_v9  ;;  %v1875_v3 = vunpack.c.h.bf16 %v4851_v28 }
 0x110   :  { %v2799_v60 = vpack.c.bf16 %v2735_v10, %v2735_v10  ;;  %v1936_v59 = vmax.f32 %v1680_v52, %v3069_v27  ;;  %v1485_v30 = vmax.f32 %v1229_v24, %v3006_v17  ;;  %v687_v8 = vsel %vm539_vm0, %v685_v13, %v686_v5  ;;  %v276_v52 = vld [vmem:[%s5081_s2 + $0x170] sm:$0x1]  ;;  %v3158_v24 = vld [vmem:[%s5079_s0 + $0x180] sm:$0xff]  }
 0x111   :  { %v3134_v63 = vunpack.c.h.bf16 %v4807_v45  ;;  %v1230_v44 = vmax.f32 %v1016_v20, %v687_v8  ;;  %v2342_v0 = vrot.slane %v1874_v53, 1  ;;  %v2343_v6 = vrot.slane %v1875_v3, 1 }
 0x112   :  { %2864 = vst.msk [vmem:[%s5083_s4 + $0xd4] sm:$0xf] %vm2810_vm1, %v2799_v60  ;;  %v2480_v4 = vmax.f32 %v1936_v59, %v2339_v38  ;;  %v1681_v17 = vmax.f32 %v1485_v30, %v1423_v61  ;;  %v3009_v27 = vunpack.c.l.bf16 %v4874_v31  ;;  %v440_v35 = vunpack.c.l.bf16 %v109_v22 }
 0x113   :  { %v2341_v12 = vsel %vm539_vm0, %v2338_v47, %v2340_v15  ;;  %v1486_v57 = vmax.f32 %v1230_v44, %v1422_v37  ;;  %v1017_v36 = vmax.f32 %v821_v14, %v4855_v16  ;;  %v2102_v56 = vunpack.c.l.bf16 %v273_v29  ;;  %v112_v37 = vld [vmem:[%s5079_s0 + $0x17c] sm:$0x1]  ;;  %v4959_v14 = vld [vmem:[%s5080_s1 + $0x174] sm:$0xff]  }
 0x114   :  { %v2736_v18 = vmax.f32 %v2480_v4, %v3133_v50  ;;  %v1937_v55 = vmax.f32 %v1681_v17, %v3070_v43  ;;  %v822_v46 = vmax.f32 %v4853_v9, %v687_v8  ;;  %v688_v2 = vrot.slane %v440_v35, 1  ;;  %v4968_v29 = vld [vmem:[%s5081_s2 + $0x174] sm:$0xff]  }
 0x115   :  { %v1682_v21 = vmax.f32 %v1486_v57, %v3009_v27  ;;  %v2344_v42 = vsel %vm539_vm0, %v2342_v0, %v2343_v6  ;;  %v2674_v47 = vunpack.c.l.bf16 %v4898_v26  ;;  %v3010_v45 = vunpack.c.h.bf16 %v4874_v31  ;;  %v343_v31 = vld [vmem:[%s5082_s3 + $0x174] sm:$0xff]  }
 0x116   :  { %v2800_v43 = vpack.c.bf16 %v2736_v18, %v2736_v18  ;;  %v2481_v50 = vmax.f32 %v1937_v55, %v2341_v12  ;;  %v689_v40 = vsel %vm539_vm0, %v686_v5, %v688_v2  ;;  %v2345_v51 = vrot.slane %v2102_v56, 1 }
 0x117   :  { %v1938_v49 = vmax.f32 %v1682_v21, %v1874_v53  ;;  %v1231_v34 = vmax.f32 %v1017_v36, %v689_v40  ;;  %v3073_v58 = vunpack.c.l.bf16 %v4910_v25  ;;  %v3074_v19 = vunpack.c.h.bf16 %v4910_v25 }
 0x118   :  { %2865 = vst.msk [vmem:[%s5083_s4 + $0xd8] sm:$0xf] %vm2810_vm1, %v2800_v43  ;;  %v2737_v11 = vmax.f32 %v2481_v50, %v3134_v63  ;;  %v823_v23 = vmax.f32 %v4855_v16, %v689_v40  ;;  %v407_v32 = vunpack.c.l.bf16 %v110_v7  ;;  %v4933_v41 = vunpack.c.h.bf16 %v110_v7 }
 0x119   :  { %v2482_v54 = vmax.f32 %v1938_v49, %v2344_v42  ;;  %v1487_v62 = vmax.f32 %v1231_v34, %v1423_v61  ;;  %v2675_v9 = vunpack.c.h.bf16 %v4898_v26  ;;  %v3137_v1 = vunpack.c.l.bf16 %v4924_v48 }
 0x11a   :  { %v2801_v33 = vpack.c.bf16 %v2737_v11, %v2737_v11  ;;  %v690_v38 = vrot.slane %v407_v32, 1  ;;  %v691_v39 = vrot.slane %v4933_v41, 1  ;;  %v1018_v13 = vmax.f32 %v822_v46, %v407_v32  ;;  %v4990_v46 = vld [vmem:[%s5080_s1 + $0x180] sm:$0xff]  }
 0x11b   :  { %v2738_v5 = vmax.f32 %v2482_v54, %v2674_v47  ;;  %v1683_v16 = vmax.f32 %v1487_v62, %v3010_v45  ;;  %v2347_v53 = vrot.slane %v3073_v58, 1  ;;  %v2348_v10 = vrot.slane %v3074_v19, 1  ;;  %v115_v47 = vld [vmem:[%s5079_s0 + $0x188] sm:$0x1] }
 0x11c   :  { %2866 = vst.msk [vmem:[%s5083_s4 + $0xdc] sm:$0xf] %vm2810_vm1, %v2801_v33  ;;  %v2346_v61 = vsel %vm539_vm0, %v2343_v6, %v2345_v51  ;;  %v692_v15 = vsel %vm539_vm0, %v690_v38, %v691_v39  ;;  %v441_v20 = vunpack.c.l.bf16 %v112_v37  ;;  %v1019_v22 = vmax.f32 %v823_v23, %v4933_v41  ;;  %v279_v51 = vld [vmem:[%s5081_s2 + $0x17c] sm:$0x1] }
 0x11d   :  { %v2802_v60 = vpack.c.bf16 %v2738_v5, %v2738_v5  ;;  %v1939_v59 = vmax.f32 %v1683_v16, %v1875_v3  ;;  %v824_v30 = vmax.f32 %v407_v32, %v692_v15  ;;  %v1232_v8 = vmax.f32 %v1018_v13, %v692_v15 }
 0x11e   :  { %v693_v63 = vrot.slane %v441_v20, 1  ;;  %v2103_v44 = vunpack.c.l.bf16 %v276_v52  ;;  %v4970_v0 = vunpack.c.l.bf16 %v3158_v24  ;;  %v4972_v6 = vunpack.c.h.bf16 %v3158_v24 }
 0x11f   :  { %2867 = vst.msk [vmem:[%s5083_s4 + $0xe0] sm:$0xf] %vm2810_vm1, %v2802_v60  ;;  %v2483_v28 = vmax.f32 %v1939_v59, %v2346_v61  ;;  %v1426_v3 = vunpack.c.l.bf16 %v4959_v14  ;;  %v1488_v4 = vmax.f32 %v1232_v8, %v3009_v27  ;;  %v2349_v17 = vsel %vm539_vm0, %v2347_v53, %v2348_v10  ;;  %v116_v53 = vld [vmem:[%s5079_s0 + $0x18c] sm:$0xff]  }
 0x120   :  { %v694_v26 = vsel %vm539_vm0, %v691_v39, %v693_v63  ;;  %v695_v35 = vrot.slane %v4970_v0, 1  ;;  %v696_v12 = vrot.slane %v4972_v6, 1  ;;  %v1878_v57 = vunpack.c.l.bf16 %v4968_v29 }
 0x121   :  { %v2739_v36 = vmax.f32 %v2483_v28, %v2675_v9  ;;  %v1684_v56 = vmax.f32 %v1488_v4, %v1426_v3  ;;  %v1233_v18 = vmax.f32 %v1019_v22, %v694_v26  ;;  %v1427_v55 = vunpack.c.h.bf16 %v4959_v14 }
 0x122   :  { %v825_v27 = vmax.f32 %v4933_v41, %v694_v26  ;;  %v2350_v2 = vrot.slane %v2103_v44, 1  ;;  %v1020_v21 = vmax.f32 %v824_v30, %v4970_v0  ;;  %v1879_v42 = vunpack.c.h.bf16 %v4968_v29  ;;  %v185_v29 = vld [vmem:[%s5080_s1 + $0x18c] sm:$0xff]   ;;  %v118_v44 = vld [vmem:[%s5079_s0 + $0x194] sm:$0x1] }
 0x123   :  { %v2803_v7 = vpack.c.bf16 %v2739_v36, %v2739_v36  ;;  %v1940_v43 = vmax.f32 %v1684_v56, %v3073_v58  ;;  %v1489_v50 = vmax.f32 %v1233_v18, %v3010_v45  ;;  %v697_v40 = vsel %vm539_vm0, %v695_v35, %v696_v12 }
 0x124   :  { %v3013_v49 = vunpack.c.l.bf16 %v4990_v46  ;;  %v1234_v34 = vmax.f32 %v1020_v21, %v697_v40  ;;  %v2352_v11 = vrot.slane %v1878_v57, 1  ;;  %v2353_v45 = vrot.slane %v1879_v42, 1 }
 0x125   :  { %2868 = vst.msk [vmem:[%s5083_s4 + $0xe4] sm:$0xf] %vm2810_vm1, %v2803_v7  ;;  %v2484_v23 = vmax.f32 %v1940_v43, %v2349_v17  ;;  %v1685_v58 = vmax.f32 %v1489_v50, %v1427_v55  ;;  %v442_v32 = vunpack.c.l.bf16 %v115_v47  ;;  %v2351_v41 = vsel %vm539_vm0, %v2348_v10, %v2350_v2 }
 0x126   :  { %v1490_v54 = vmax.f32 %v1234_v34, %v1426_v3  ;;  %v1021_v62 = vmax.f32 %v825_v27, %v4972_v6  ;;  %v2104_v9 = vunpack.c.l.bf16 %v279_v51  ;;  %v3138_v33 = vunpack.c.h.bf16 %v4924_v48  ;;  %v3204_v51 = vld [vmem:[%s5082_s3 + $0x180] sm:$0xff]  }
 0x127   :  { %v2740_v37 = vmax.f32 %v2484_v23, %v3137_v1  ;;  %v1941_v38 = vmax.f32 %v1685_v58, %v3074_v19  ;;  %v698_v39 = vrot.slane %v442_v32, 1  ;;  %v826_v13 = vmax.f32 %v4970_v0, %v697_v40  ;;  %v5028_v1 = vld [vmem:[%s5081_s2 + $0x180] sm:$0xff]  }
 0x128   :  { %v1686_v5 = vmax.f32 %v1490_v54, %v3013_v49  ;;  %v2678_v16 = vunpack.c.l.bf16 %v343_v31  ;;  %v2354_v25 = vsel %vm539_vm0, %v2352_v11, %v2353_v45  ;;  %v3014_v24 = vunpack.c.h.bf16 %v4990_v46 }
 0x129   :  { %v2804_v48 = vpack.c.bf16 %v2740_v37, %v2740_v37  ;;  %v2485_v10 = vmax.f32 %v1941_v38, %v2351_v41  ;;  %v699_v19 = vsel %vm539_vm0, %v696_v12, %v698_v39  ;;  %v2355_v14 = vrot.slane %v2104_v9, 1 }
 0x12a   :  { %v1942_v52 = vmax.f32 %v1686_v5, %v1878_v57  ;;  %v1235_v61 = vmax.f32 %v1021_v62, %v699_v19  ;;  %v3077_v20 = vunpack.c.l.bf16 %v5028_v1  ;;  %v958_v22 = vunpack.c.l.bf16 %v116_v53 }
 0x12b   :  { %2869 = vst.msk [vmem:[%s5083_s4 + $0xe8] sm:$0xf] %vm2810_vm1, %v2804_v48  ;;  %v2741_v15 = vmax.f32 %v2485_v10, %v3138_v33  ;;  %v959_v60 = vunpack.c.h.bf16 %v116_v53  ;;  %v827_v30 = vmax.f32 %v4972_v6, %v699_v19  ;;  %v3078_v63 = vunpack.c.h.bf16 %v5028_v1  ;;  %v282_v6 = vld [vmem:[%s5081_s2 + $0x188] sm:$0x1] }
 0x12c   :  { %v2486_v59 = vmax.f32 %v1942_v52, %v2354_v25  ;;  %v1491_v8 = vmax.f32 %v1235_v61, %v1427_v55  ;;  %v1022_v28 = vmax.f32 %v826_v13, %v958_v22  ;;  %v1165_v3 = vrot.slane %v958_v22, 1 }
 0x12d   :  { %v2805_v0 = vpack.c.bf16 %v2741_v15, %v2741_v15  ;;  %v1166_v4 = vrot.slane %v959_v60, 1  ;;  %v2679_v35 = vunpack.c.h.bf16 %v343_v31  ;;  %v2356_v12 = vsel %vm539_vm0, %v2353_v45, %v2355_v14 }
 0x12e   :  { %v2742_v17 = vmax.f32 %v2486_v59, %v2678_v16  ;;  %v1687_v26 = vmax.f32 %v1491_v8, %v3014_v24  ;;  %v1624_v36 = vunpack.c.l.bf16 %v185_v29  ;;  %v1153_v56 = vunpack.c.l.bf16 %v118_v44 }
 0x12f   :  { %2870 = vst.msk [vmem:[%s5083_s4 + $0xec] sm:$0xf] %vm2810_vm1, %v2805_v0  ;;  %v1167_v57 = vsel %vm539_vm0, %v1165_v3, %v1166_v4  ;;  %v1023_v2 = vmax.f32 %v827_v30, %v959_v60  ;;  %v2357_v21 = vrot.slane %v3077_v20, 1  ;;  %v2358_v47 = vrot.slane %v3078_v63, 1 }
 0x130   :  { %v2806_v18 = vpack.c.bf16 %v2742_v17, %v2742_v17  ;;  %v1943_v55 = vmax.f32 %v1687_v26, %v1879_v42  ;;  %v1236_v27 = vmax.f32 %v1022_v28, %v1167_v57  ;;  %v1168_v7 = vrot.slane %v1153_v56, 1 }
 0x131   :  { %v2105_v43 = vunpack.c.l.bf16 %v282_v6  ;;  %v1625_v58 = vunpack.c.h.bf16 %v185_v29  ;;  %v2359_v31 = vsel %vm539_vm0, %v2357_v21, %v2358_v47  ;;  %v3141_v41 = vunpack.c.l.bf16 %v3204_v51 }
 0x132   :  { %2871 = vst.msk [vmem:[%s5083_s4 + $0xf0] sm:$0xf] %vm2810_vm1, %v2806_v18  ;;  %v2487_v50 = vmax.f32 %v1943_v55, %v2356_v12  ;;  %v1492_v40 = vmax.f32 %v1236_v27, %v3013_v49  ;;  %v1169_v42 = vsel %vm539_vm0, %v1166_v4, %v1168_v7  ;;  %v3142_v33 = vunpack.c.h.bf16 %v3204_v51 }
 0x133   :  { %v1237_v23 = vmax.f32 %v1023_v2, %v1169_v42  ;;  %v2360_v45 = vrot.slane %v2105_v43, 1 }
 0x134   :  { %v2743_v34 = vmax.f32 %v2487_v50, %v2679_v35  ;;  %v1688_v11 = vmax.f32 %v1492_v40, %v1624_v36 }
 0x135   :  { %v1493_v62 = vmax.f32 %v1237_v23, %v3014_v24  ;;  %v2361_v9 = vsel %vm539_vm0, %v2358_v47, %v2360_v45 }
 0x136   :  { %v2807_v32 = vpack.c.bf16 %v2743_v34, %v2743_v34  ;;  %v1944_v54 = vmax.f32 %v1688_v11, %v3077_v20 }
 0x137   :  { %v1689_v49 = vmax.f32 %v1493_v62, %v1625_v58 }
 0x138   :  { %2872 = vst.msk [vmem:[%s5083_s4 + $0xf4] sm:$0xf] %vm2810_vm1, %v2807_v32  ;;  %v2488_v46 = vmax.f32 %v1944_v54, %v2359_v31 }
 0x139   :  { %v1945_v38 = vmax.f32 %v1689_v49, %v3078_v63 }
 0x13a   :  { %v2744_v37 = vmax.f32 %v2488_v46, %v3141_v41 }
 0x13b   :  { %v2489_v13 = vmax.f32 %v1945_v38, %v2361_v9 }
 0x13c   :  { %v2808_v39 = vpack.c.bf16 %v2744_v37, %v2744_v37 }
 0x13d   :  { %v2745_v5 = vmax.f32 %v2489_v13, %v3142_v33 }
 0x13e   :  { %2873 = vst.msk [vmem:[%s5083_s4 + $0xf8] sm:$0xf] %vm2810_vm1, %v2808_v39 }
 0x13f   :  { %v2809_v16 = vpack.c.bf16 %v2745_v5, %v2745_v5 }
 0x141   :  { %2874 = vst.msk [vmem:[%s5083_s4 + $0xfc] sm:$0xf] %vm2810_vm1, %v2809_v16 }

// kernel: custom_resnet_forward.24
= control target key start
LH: loop header
LB: loop body
LE: loop exit
PB: predicated region body
PF: predicated region fallthrough
CT: control target
= control target key end

     0   :  { %vm443_vm0 = vcmask 130048   ;;  %vm1006_vm1 = vcmask 125952   ;;  %s2356_s1 = inlined_call_operand.vmem [shape: bf16[144,16], index: 1, kind: input, shape index: {}]   ;;  %s2357_s0 = inlined_call_operand.vmem [shape: bf16[512,144], index: 0, kind: input, shape index: {}]   ;;  %s2358_s2 = inlined_call_operand.vmem [shape: f32[1,16], index: 2, kind: input, shape index: {}]   ;;  %s2359_s3 = inlined_call_operand.vmem [shape: bf16[512,16], index: 3, kind: output, shape index: {}]  }
   0x1   :  { %v1470_v0 = vld [vmem:[%s2356_s1 + $0x38] sm:$0xff]  ;;  %v1471_v1 = vld [vmem:[%s2356_s1 + $0x40] sm:$0xff]  ;;  %v1079_v3 = vld [vmem:[%s2357_s0 + $0x8] sm:$0xf0] }
   0x2   :  { %v1399_v2 = vld [vmem:[%s2357_s0 + $0x4] sm:$0xf]  ;;  %540 = vmatpush.bf16.msra.mxu0 %v1470_v0  ;;  %1472 = vmatpush.bf16.msra.mxu2 %v1470_v0  ;;  %v1469_v5 = vld [vmem:[%s2356_s1 + $0x30] sm:$0xff]  ;;  %v1468_v6 = vld [vmem:[%s2356_s1 + $0x28] sm:$0xff] }
   0x3   :  { %v1082_v4 = vor.u32 %v1399_v2, %v1079_v3  ;;  %716 = vmatpush.bf16.msra.mxu1 %v1471_v1  ;;  %1480 = vmatpush.bf16.msra.mxu3 %v1471_v1  ;;  %v1433_v7 = vld [vmem:[%s2357_s0 + $0x114] sm:$0xf]  ;;  %v1215_v8 = vld [vmem:[%s2357_s0 + $0x118] sm:$0xf0]  ;;  %v1467_v10 = vld [vmem:[%s2356_s1 + $0x20] sm:$0xff] }
   0x4   :  { %v1218_v9 = vor.u32 %v1433_v7, %v1215_v8  ;;  %v1466_v11 = vld [vmem:[%s2356_s1 + $0x18] sm:$0xff]  ;;  %v1401_v12 = vld [vmem:[%s2357_s0 + $0x14] sm:$0xf]  ;;  %v1464_v16 = vld [vmem:[%s2356_s1 + $0x8] sm:$0xff] }
   0x5   :  { %v1087_v13 = vld [vmem:[%s2357_s0 + $0x18] sm:$0xf0]  ;;  %v1465_v15 = vld [vmem:[%s2356_s1 + $0x10] sm:$0xff]  ;;  %v1435_v17 = vld [vmem:[%s2357_s0 + $0x124] sm:$0xf] }
   0x6   :  { %1367 = vmatmul.msk.bf16.vlgmr.msra.gmra.mxu1 %vm443_vm0, %v1082_v4  ;;  %541 = vmatpush.bf16.msra.mxu0 %v1469_v5  ;;  %v1090_v14 = vor.u32 %v1401_v12, %v1087_v13  ;;  %v1223_v18 = vld [vmem:[%s2357_s0 + $0x128] sm:$0xf0]  ;;  %v1463_v20 = vld [vmem:[%s2356_s1] sm:$0xff]  ;;  %v1400_v22 = vld [vmem:[%s2357_s0 + $0x4] sm:$0xf0] }
   0x7   :  { %1473 = vmatpush.bf16.msra.mxu2 %v1469_v5  ;;  %1384 = vmatmul.msk.bf16.vlgmr.msra.gmra.mxu3 %vm443_vm0, %v1218_v9  ;;  %v1226_v19 = vor.u32 %v1435_v17, %v1223_v18  ;;  %v1077_v21 = vld [vmem:[%s2357_s0] sm:$0xf]  ;;  %v1432_v24 = vld [vmem:[%s2357_s0 + $0x104] sm:$0xf0]  ;;  %v1403_v27 = vld [vmem:[%s2357_s0 + $0x24] sm:$0xf] }
   0x8   :  { %v1205_v23 = vld [vmem:[%s2357_s0 + $0x100] sm:$0xf]  ;;  %v1078_v25 = vor.u32 %v1400_v22, %v1077_v21  ;;  %v1095_v28 = vld [vmem:[%s2357_s0 + $0x28] sm:$0xf0]  ;;  %v1437_v30 = vld [vmem:[%s2357_s0 + $0x134] sm:$0xf] }
   0x9   :  { %v1206_v26 = vor.u32 %v1432_v24, %v1205_v23  ;;  %v1098_v29 = vor.u32 %v1403_v27, %v1095_v28  ;;  %v1231_v31 = vld [vmem:[%s2357_s0 + $0x138] sm:$0xf0]  ;;  %v1085_v33 = vld [vmem:[%s2357_s0 + $0x10] sm:$0xf]  ;;  %v1402_v34 = vld [vmem:[%s2357_s0 + $0x14] sm:$0xf0] }
   0xa   :  { %542 = vmatpush.bf16.msra.mxu0 %v1468_v6  ;;  %v1234_v32 = vor.u32 %v1437_v30, %v1231_v31  ;;  %v1213_v35 = vld [vmem:[%s2357_s0 + $0x110] sm:$0xf]  ;;  %v1434_v36 = vld [vmem:[%s2357_s0 + $0x114] sm:$0xf0]  ;;  %v1086_v37 = vor.u32 %v1402_v34, %v1085_v33  ;;  %v1405_v39 = vld [vmem:[%s2357_s0 + $0x34] sm:$0xf] }
   0xb   :  { %1474 = vmatpush.bf16.msra.mxu2 %v1468_v6  ;;  %v1214_v38 = vor.u32 %v1434_v36, %v1213_v35  ;;  %v1103_v40 = vld [vmem:[%s2357_s0 + $0x38] sm:$0xf0]  ;;  %v1439_v42 = vld [vmem:[%s2357_s0 + $0x144] sm:$0xf]  ;;  %v1239_v43 = vld [vmem:[%s2357_s0 + $0x148] sm:$0xf0] }
   0xc   :  { %v1106_v41 = vor.u32 %v1405_v39, %v1103_v40  ;;  %v1242_v44 = vor.u32 %v1439_v42, %v1239_v43  ;;  %v1093_v45 = vld [vmem:[%s2357_s0 + $0x20] sm:$0xf]  ;;  %v1404_v46 = vld [vmem:[%s2357_s0 + $0x24] sm:$0xf0]  ;;  %v1407_v51 = vld [vmem:[%s2357_s0 + $0x44] sm:$0xf] }
   0xd   :  { %v1221_v47 = vld [vmem:[%s2357_s0 + $0x120] sm:$0xf]  ;;  %v1436_v48 = vld [vmem:[%s2357_s0 + $0x124] sm:$0xf0]  ;;  %v1094_v49 = vor.u32 %v1404_v46, %v1093_v45  ;;  %v1111_v52 = vld [vmem:[%s2357_s0 + $0x48] sm:$0xf0] }
   0xe   :  { %543 = vmatpush.bf16.msra.mxu0 %v1467_v10  ;;  %v1222_v50 = vor.u32 %v1436_v48, %v1221_v47  ;;  %v1114_v53 = vor.u32 %v1407_v51, %v1111_v52  ;;  %v1441_v54 = vld [vmem:[%s2357_s0 + $0x154] sm:$0xf]  ;;  %v1247_v55 = vld [vmem:[%s2357_s0 + $0x158] sm:$0xf0]  ;;  %v1101_v57 = vld [vmem:[%s2357_s0 + $0x30] sm:$0xf] }
   0xf   :  { %1475 = vmatpush.bf16.msra.mxu2 %v1467_v10  ;;  %v1250_v56 = vor.u32 %v1441_v54, %v1247_v55  ;;  %v1406_v58 = vld [vmem:[%s2357_s0 + $0x34] sm:$0xf0]  ;;  %v1229_v59 = vld [vmem:[%s2357_s0 + $0x130] sm:$0xf]  ;;  %v1409_v63 = vld [vmem:[%s2357_s0 + $0x54] sm:$0xf] }
  0x10   :  { %v1438_v60 = vld [vmem:[%s2357_s0 + $0x134] sm:$0xf0]  ;;  %v1102_v61 = vor.u32 %v1406_v58, %v1101_v57  ;;  %v1119_v0 = vld [vmem:[%s2357_s0 + $0x58] sm:$0xf0]  ;;  %v1443_v2 = vld [vmem:[%s2357_s0 + $0x164] sm:$0xf] }
  0x11   :  { %v1230_v62 = vor.u32 %v1438_v60, %v1229_v59  ;;  %v1122_v1 = vor.u32 %v1409_v63, %v1119_v0  ;;  %v1255_v3 = vld [vmem:[%s2357_s0 + $0x168] sm:$0xf0]  ;;  %v1109_v5 = vld [vmem:[%s2357_s0 + $0x40] sm:$0xf]  ;;  %v1408_v6 = vld [vmem:[%s2357_s0 + $0x44] sm:$0xf0] }
  0x12   :  { %544 = vmatpush.bf16.msra.mxu0 %v1466_v11  ;;  %v1258_v4 = vor.u32 %v1443_v2, %v1255_v3  ;;  %v1237_v7 = vld [vmem:[%s2357_s0 + $0x140] sm:$0xf]  ;;  %v1440_v8 = vld [vmem:[%s2357_s0 + $0x144] sm:$0xf0]  ;;  %v1110_v9 = vor.u32 %v1408_v6, %v1109_v5  ;;  %v1127_v12 = vld [vmem:[%s2357_s0 + $0x68] sm:$0xf0] }
  0x13   :  { %1476 = vmatpush.bf16.msra.mxu2 %v1466_v11  ;;  %v1238_v10 = vor.u32 %v1440_v8, %v1237_v7  ;;  %v1411_v11 = vld [vmem:[%s2357_s0 + $0x64] sm:$0xf]  ;;  %v1410_v17 = vld [vmem:[%s2357_s0 + $0x54] sm:$0xf0]  ;;  %v1413_v23 = vld [vmem:[%s2357_s0 + $0x74] sm:$0xf] }
  0x14   :  { %v1130_v13 = vor.u32 %v1411_v11, %v1127_v12  ;;  %v1135_v24 = vld [vmem:[%s2357_s0 + $0x78] sm:$0xf0]  ;;  %v1271_v27 = vld [vmem:[%s2357_s0 + $0x188] sm:$0xf0]  ;;  %v1125_v28 = vld [vmem:[%s2357_s0 + $0x60] sm:$0xf] }
  0x15   :  { %v1253_v31 = vld [vmem:[%s2357_s0 + $0x160] sm:$0xf]  ;;  %v1415_v35 = vld [vmem:[%s2357_s0 + $0x84] sm:$0xf]  ;;  %v1143_v36 = vld [vmem:[%s2357_s0 + $0x88] sm:$0xf0] }
  0x16   :  { %1368 = vmatmul.msk.bf16.gmra.mxu1 %vm443_vm0, %v1090_v14  ;;  %545 = vmatpush.bf16.msra.mxu0 %v1465_v15  ;;  %v1445_v14 = vld [vmem:[%s2357_s0 + $0x174] sm:$0xf]  ;;  %v1279_v40 = vld [vmem:[%s2357_s0 + $0x198] sm:$0xf0]  ;;  %v1414_v42 = vld [vmem:[%s2357_s0 + $0x74] sm:$0xf0] }
  0x17   :  { %1477 = vmatpush.bf16.msra.mxu2 %v1465_v15  ;;  %1385 = vmatmul.msk.bf16.gmra.mxu3 %vm443_vm0, %v1226_v19  ;;  %v1263_v15 = vld [vmem:[%s2357_s0 + $0x178] sm:$0xf0]  ;;  %v1245_v19 = vld [vmem:[%s2357_s0 + $0x150] sm:$0xf]  ;;  %v1449_v39 = vld [vmem:[%s2357_s0 + $0x194] sm:$0xf] }
  0x18   :  { %v1266_v18 = vor.u32 %v1445_v14, %v1263_v15  ;;  %v1282_v43 = vor.u32 %v1449_v39, %v1279_v40  ;;  %v1261_v45 = vld [vmem:[%s2357_s0 + $0x170] sm:$0xf]  ;;  %v1446_v46 = vld [vmem:[%s2357_s0 + $0x174] sm:$0xf0]  ;;  %v1451_v55 = vld [vmem:[%s2357_s0 + $0x1a4] sm:$0xf] }
  0x19   :  { %v1262_v48 = vor.u32 %v1446_v46, %v1261_v45  ;;  %v1141_v57 = vld [vmem:[%s2357_s0 + $0x80] sm:$0xf]  ;;  %v1416_v58 = vld [vmem:[%s2357_s0 + $0x84] sm:$0xf0]  ;;  %v1159_v5 = vld [vmem:[%s2357_s0 + $0xa8] sm:$0xf0] }
  0x1a   :  { %546 = vmatpush.bf16.msra.mxu0 %v1464_v16  ;;  %v1448_v63 = vld [vmem:[%s2357_s0 + $0x184] sm:$0xf0]  ;;  %v1142_v0 = vor.u32 %v1416_v58, %v1141_v57 }
  0x1b   :  { %1478 = vmatpush.bf16.msra.mxu2 %v1464_v16  ;;  %v1117_v16 = vld [vmem:[%s2357_s0 + $0x50] sm:$0xf]  ;;  %v1452_v57 = vld [vmem:[%s2357_s0 + $0x1a4] sm:$0xf0] }
  0x1c   :  { %v1118_v21 = vor.u32 %v1410_v17, %v1117_v16  ;;  %v1453_v17 = vld [vmem:[%s2357_s0 + $0x1b4] sm:$0xf] }
  0x1e   :  { %547 = vmatpush.bf16.msra.mxu0 %v1463_v20 }
  0x1f   :  { %1479 = vmatpush.bf16.msra.mxu2 %v1463_v20  ;;  %v1442_v20 = vld [vmem:[%s2357_s0 + $0x154] sm:$0xf0] }
  0x20   :  { %v1246_v22 = vor.u32 %v1442_v20, %v1245_v19  ;;  %v1149_v19 = vld [vmem:[%s2357_s0 + $0x90] sm:$0xf]  ;;  %v1418_v20 = vld [vmem:[%s2357_s0 + $0x94] sm:$0xf0] }
  0x21   :  { %548 = vmatmul.bf16.vlgmr.msra.gmra.mxu0 %v1078_v25  ;;  %v1138_v25 = vor.u32 %v1413_v23, %v1135_v24  ;;  %v1277_v24 = vld [vmem:[%s2357_s0 + $0x190] sm:$0xf] }
  0x22   :  { %628 = vmatmul.bf16.vlgmr.msra.gmra.mxu2 %v1206_v26  ;;  %v1447_v26 = vld [vmem:[%s2357_s0 + $0x184] sm:$0xf] }
  0x23   :  { %v1274_v30 = vor.u32 %v1447_v26, %v1271_v27 }
  0x26   :  { %1369 = vmatmul.msk.bf16.gmra.mxu1 %vm443_vm0, %v1098_v29  ;;  %v1412_v29 = vld [vmem:[%s2357_s0 + $0x64] sm:$0xf0] }
  0x27   :  { %1386 = vmatmul.msk.bf16.gmra.mxu3 %vm443_vm0, %v1234_v32  ;;  %v1444_v32 = vld [vmem:[%s2357_s0 + $0x164] sm:$0xf0]  ;;  %v1126_v33 = vor.u32 %v1412_v29, %v1125_v28  ;;  %v1150_v28 = vor.u32 %v1418_v20, %v1149_v19 }
  0x28   :  { %v1254_v34 = vor.u32 %v1444_v32, %v1253_v31  ;;  %v1421_v32 = vld [vmem:[%s2357_s0 + $0xb4] sm:$0xf] }
  0x31   :  { %553 = vmatmul.bf16.gmra.mxu0 %v1086_v37  ;;  %v1146_v37 = vor.u32 %v1415_v35, %v1143_v36 }
  0x32   :  { %633 = vmatmul.bf16.gmra.mxu2 %v1214_v38 }
  0x36   :  { %1370 = vmatmul.msk.bf16.gmra.mxu1 %vm443_vm0, %v1106_v41  ;;  %v1133_v41 = vld [vmem:[%s2357_s0 + $0x70] sm:$0xf] }
  0x37   :  { %1387 = vmatmul.msk.bf16.gmra.mxu3 %vm443_vm0, %v1242_v44  ;;  %v1134_v47 = vor.u32 %v1414_v42, %v1133_v41 }
  0x41   :  { %558 = vmatmul.bf16.gmra.mxu0 %v1094_v49  ;;  %v1417_v49 = vld [vmem:[%s2357_s0 + $0x94] sm:$0xf] }
  0x42   :  { %638 = vmatmul.bf16.gmra.mxu2 %v1222_v50  ;;  %v1151_v50 = vld [vmem:[%s2357_s0 + $0x98] sm:$0xf0] }
  0x43   :  { %v1154_v52 = vor.u32 %v1417_v49, %v1151_v50  ;;  %v1157_v50 = vld [vmem:[%s2357_s0 + $0xa0] sm:$0xf] }
  0x46   :  { %1371 = vmatmul.msk.bf16.gmra.mxu1 %vm443_vm0, %v1114_v53 }
  0x47   :  { %1388 = vmatmul.msk.bf16.gmra.mxu3 %vm443_vm0, %v1250_v56  ;;  %v1287_v56 = vld [vmem:[%s2357_s0 + $0x1a8] sm:$0xf0] }
  0x48   :  { %v1290_v59 = vor.u32 %v1451_v55, %v1287_v56  ;;  %v1285_v56 = vld [vmem:[%s2357_s0 + $0x1a0] sm:$0xf] }
  0x51   :  { %563 = vmatmul.bf16.gmra.mxu0 %v1102_v61  ;;  %v1780_v61 = vld [vmem:[%s2358_s2] ss:$0 sm:$0xff] }
  0x52   :  { %643 = vmatmul.bf16.gmra.mxu2 %v1230_v62  ;;  %v1269_v62 = vld [vmem:[%s2357_s0 + $0x180] sm:$0xf] }
  0x53   :  { %v1270_v2 = vor.u32 %v1448_v63, %v1269_v62 }
  0x56   :  { %1372 = vmatmul.msk.bf16.gmra.mxu1 %vm443_vm0, %v1122_v1 }
  0x57   :  { %1389 = vmatmul.msk.bf16.gmra.mxu3 %vm443_vm0, %v1258_v4  ;;  %v1419_v4 = vld [vmem:[%s2357_s0 + $0xa4] sm:$0xf] }
  0x58   :  { %v1162_v8 = vor.u32 %v1419_v4, %v1159_v5  ;;  %v1175_v4 = vld [vmem:[%s2357_s0 + $0xc8] sm:$0xf0] }
  0x61   :  { %568 = vmatmul.bf16.gmra.mxu0 %v1110_v9 }
  0x62   :  { %648 = vmatmul.bf16.gmra.mxu2 %v1238_v10 }
  0x66   :  { %1373 = vmatmul.msk.bf16.gmra.mxu1 %vm443_vm0, %v1130_v13 }
  0x67   :  { %1390 = vmatmul.msk.bf16.gmra.mxu3 %vm443_vm0, %v1266_v18  ;;  %v1295_v18 = vld [vmem:[%s2357_s0 + $0x1b8] sm:$0xf0] }
  0x71   :  { %573 = vmatmul.bf16.gmra.mxu0 %v1118_v21  ;;  %v1298_v21 = vor.u32 %v1453_v17, %v1295_v18 }
  0x72   :  { %653 = vmatmul.bf16.gmra.mxu2 %v1246_v22 }
  0x76   :  { %1374 = vmatmul.msk.bf16.gmra.mxu1 %vm443_vm0, %v1138_v25  ;;  %v1450_v25 = vld [vmem:[%s2357_s0 + $0x194] sm:$0xf0] }
  0x77   :  { %1391 = vmatmul.msk.bf16.gmra.mxu3 %vm443_vm0, %v1274_v30  ;;  %v1278_v30 = vor.u32 %v1450_v25, %v1277_v24  ;;  %v1457_v24 = vld [vmem:[%s2357_s0 + $0x1d4] sm:$0xf]  ;;  %v1311_v25 = vld [vmem:[%s2357_s0 + $0x1d8] sm:$0xf0] }
  0x81   :  { %578 = vmatmul.bf16.gmra.mxu0 %v1126_v33  ;;  %v1167_v33 = vld [vmem:[%s2357_s0 + $0xb8] sm:$0xf0] }
  0x82   :  { %658 = vmatmul.bf16.gmra.mxu2 %v1254_v34  ;;  %v1170_v36 = vor.u32 %v1421_v32, %v1167_v33  ;;  %v1454_v32 = vld [vmem:[%s2357_s0 + $0x1b4] sm:$0xf0] }
  0x83   :  { %v718_v38 = vpop.f32.mrf.mxu1 }
  0x86   :  { %1375 = vmatmul.msk.bf16.gmra.mxu1 %vm443_vm0, %v1146_v37 }
  0x87   :  { %1392 = vmatmul.msk.bf16.gmra.mxu3 %vm443_vm0, %v1282_v43 }
  0x8a   :  { %v1758_v51 = vpop.f32.mrf.mxu3 }
  0x8b   :  { %v720_v44 = vpop.f32.mrf.mxu1 }
  0x91   :  { %583 = vmatmul.bf16.gmra.mxu0 %v1134_v47  ;;  %v1455_v47 = vld [vmem:[%s2357_s0 + $0x1c4] sm:$0xf] }
  0x92   :  { %663 = vmatmul.bf16.gmra.mxu2 %v1262_v48  ;;  %v1761_v54 = vpop.f32.mrf.mxu3  ;;  %v1303_v48 = vld [vmem:[%s2357_s0 + $0x1c8] sm:$0xf0] }
  0x93   :  { %v723_v53 = vpop.f32.mrf.mxu1 }
  0x96   :  { %1376 = vmatmul.msk.bf16.gmra.mxu1 %vm443_vm0, %v1154_v52  ;;  %v1420_v52 = vld [vmem:[%s2357_s0 + $0xa4] sm:$0xf0] }
  0x97   :  { %1393 = vmatmul.msk.bf16.gmra.mxu3 %vm443_vm0, %v1290_v59  ;;  %v1158_v62 = vor.u32 %v1420_v52, %v1157_v50 }
  0x9a   :  { %v1796_v6 = vpop.f32.mrf.mxu3 }
  0x9b   :  { %v1775_v60 = vpop.f32.mrf.mxu1 }
  0x9e   :  { %v549_v1 = vpop.f32.mrf.mxu0 }
  0x9f   :  { %v550_v3 = vadd.f32 %v1780_v61, %v549_v1  ;;  %v1286_v1 = vor.u32 %v1452_v57, %v1285_v56 }
  0xa1   :  { %v719_v7 = vadd.f32 %v718_v38, %v550_v3  ;;  %588 = vmatmul.bf16.gmra.mxu0 %v1142_v0  ;;  %v1423_v3 = vld [vmem:[%s2357_s0 + $0xc4] sm:$0xf] }
  0xa2   :  { %668 = vmatmul.bf16.gmra.mxu2 %v1270_v2  ;;  %v1808_v15 = vpop.f32.mrf.mxu3 }
  0xa3   :  { %v878_v9 = vmax.f32 %v719_v7, 0.0  ;;  %v1798_v10 = vpop.f32.mrf.mxu1 }
  0xa5   :  { %v942_v11 = vpack.c.bf16 %v878_v9, %v878_v9  ;;  %v1800_v12 = vpop.f32.mrf.mxu2 }
  0xa6   :  { %1377 = vmatmul.msk.bf16.gmra.mxu1 %vm443_vm0, %v1162_v8  ;;  %v551_v13 = vpop.f32.mrf.mxu0 }
  0xa7   :  { %1007 = vst.msk [vmem:[%s2359_s3] sm:$0xf] %vm1006_vm1, %v942_v11  ;;  %v552_v14 = vadd.f32 %v1780_v61, %v551_v13  ;;  %1394 = vmatmul.msk.bf16.gmra.mxu3 %vm443_vm0, %v1298_v21  ;;  %v1178_v11 = vor.u32 %v1423_v3, %v1175_v4  ;;  %v1424_v3 = vld [vmem:[%s2357_s0 + $0xc4] sm:$0xf0] }
  0xa9   :  { %v721_v16 = vadd.f32 %v720_v44, %v552_v14 }
  0xaa   :  { %v1844_v34 = vpop.f32.mrf.mxu3 }
  0xab   :  { %v879_v22 = vmax.f32 %v721_v16, 0.0  ;;  %v1822_v23 = vpop.f32.mrf.mxu1 }
  0xad   :  { %v943_v26 = vpack.c.bf16 %v879_v22, %v879_v22  ;;  %v1831_v27 = vpop.f32.mrf.mxu2 }
  0xae   :  { %v554_v29 = vpop.f32.mrf.mxu0 }
  0xaf   :  { %1008 = vst.msk [vmem:[%s2359_s3 + $0x4] sm:$0xf] %vm1006_vm1, %v943_v26  ;;  %v555_v31 = vadd.f32 %v1780_v61, %v554_v29  ;;  %v1422_v29 = vld [vmem:[%s2357_s0 + $0xb4] sm:$0xf0] }
  0xb1   :  { %v724_v35 = vadd.f32 %v723_v53, %v555_v31  ;;  %593 = vmatmul.bf16.gmra.mxu0 %v1150_v28  ;;  %v1165_v28 = vld [vmem:[%s2357_s0 + $0xb0] sm:$0xf] }
  0xb2   :  { %673 = vmatmul.bf16.gmra.mxu2 %v1278_v30  ;;  %v1855_v44 = vpop.f32.mrf.mxu3  ;;  %v1293_v31 = vld [vmem:[%s2357_s0 + $0x1b0] sm:$0xf] }
  0xb3   :  { %v880_v37 = vmax.f32 %v724_v35, 0.0  ;;  %v1846_v38 = vpop.f32.mrf.mxu1 }
  0xb5   :  { %v944_v39 = vpack.c.bf16 %v880_v37, %v880_v37  ;;  %v634_v40 = vpop.f32.mrf.mxu2  ;;  %v1166_v37 = vor.u32 %v1422_v29, %v1165_v28 }
  0xb6   :  { %v635_v41 = vadd.f32 %v1780_v61, %v634_v40  ;;  %1378 = vmatmul.msk.bf16.gmra.mxu1 %vm443_vm0, %v1170_v36  ;;  %v556_v42 = vpop.f32.mrf.mxu0 }
  0xb7   :  { %1009 = vst.msk [vmem:[%s2359_s3 + $0x8] sm:$0xf] %vm1006_vm1, %v944_v39  ;;  %v557_v43 = vadd.f32 %v1780_v61, %v556_v42 }
  0xb8   :  { %v804_v45 = vadd.f32 %v1758_v51, %v635_v41  ;;  %v1306_v51 = vor.u32 %v1455_v47, %v1303_v48  ;;  %v1294_v41 = vor.u32 %v1454_v32, %v1293_v31 }
  0xb9   :  { %v726_v46 = vadd.f32 %v1775_v60, %v557_v43  ;;  %v1425_v43 = vld [vmem:[%s2357_s0 + $0xd4] sm:$0xf] }
  0xba   :  { %v912_v49 = vmax.f32 %v804_v45, 0.0  ;;  %1395 = vmatmul.msk.bf16.gmra.mxu3 %vm443_vm0, %v1306_v51  ;;  %v1896_v5 = vpop.f32.mrf.mxu3  ;;  %v1183_v45 = vld [vmem:[%s2357_s0 + $0xd8] sm:$0xf0] }
  0xbb   :  { %v881_v53 = vmax.f32 %v726_v46, 0.0  ;;  %v1871_v55 = vpop.f32.mrf.mxu1  ;;  %v1186_v50 = vor.u32 %v1425_v43, %v1183_v45  ;;  %v1309_v45 = vld [vmem:[%s2357_s0 + $0x1d0] sm:$0xf] }
  0xbc   :  { %v976_v58 = vpack.c.bf16 %v912_v49, %v912_v49 }
  0xbd   :  { %v945_v59 = vpack.c.bf16 %v881_v53, %v881_v53  ;;  %v636_v60 = vpop.f32.mrf.mxu2 }
  0xbe   :  { %1041 = vst.msk [vmem:[%s2359_s3 + $0x88] sm:$0xf] %vm1006_vm1, %v976_v58  ;;  %v637_v63 = vadd.f32 %v1780_v61, %v636_v60  ;;  %v559_v0 = vpop.f32.mrf.mxu0 }
  0xbf   :  { %1010 = vst.msk [vmem:[%s2359_s3 + $0xc] sm:$0xf] %vm1006_vm1, %v945_v59  ;;  %v560_v2 = vadd.f32 %v1780_v61, %v559_v0  ;;  %v1319_v0 = vld [vmem:[%s2357_s0 + $0x1e8] sm:$0xf0] }
  0xc0   :  { %v806_v7 = vadd.f32 %v1761_v54, %v637_v63  ;;  %v1459_v63 = vld [vmem:[%s2357_s0 + $0x1e4] sm:$0xf] }
  0xc1   :  { %v729_v8 = vadd.f32 %v1798_v10, %v560_v2  ;;  %598 = vmatmul.bf16.gmra.mxu0 %v1158_v62  ;;  %v1173_v2 = vld [vmem:[%s2357_s0 + $0xc0] sm:$0xf] }
  0xc2   :  { %v913_v9 = vmax.f32 %v806_v7, 0.0  ;;  %678 = vmatmul.bf16.gmra.mxu2 %v1286_v1  ;;  %v1913_v20 = vpop.f32.mrf.mxu3  ;;  %v1301_v7 = vld [vmem:[%s2357_s0 + $0x1c0] sm:$0xf] }
  0xc3   :  { %v882_v13 = vmax.f32 %v729_v8, 0.0  ;;  %v1900_v14 = vpop.f32.mrf.mxu1  ;;  %v1456_v8 = vld [vmem:[%s2357_s0 + $0x1c4] sm:$0xf0] }
  0xc4   :  { %v977_v16 = vpack.c.bf16 %v913_v9, %v913_v9 }
  0xc5   :  { %v946_v17 = vpack.c.bf16 %v882_v13, %v882_v13  ;;  %v639_v18 = vpop.f32.mrf.mxu2 }
  0xc6   :  { %1042 = vst.msk [vmem:[%s2359_s3 + $0x8c] sm:$0xf] %vm1006_vm1, %v977_v16  ;;  %v640_v19 = vadd.f32 %v1780_v61, %v639_v18  ;;  %1379 = vmatmul.msk.bf16.gmra.mxu1 %vm443_vm0, %v1178_v11  ;;  %v561_v54 = vpop.f32.mrf.mxu0  ;;  %v1174_v16 = vor.u32 %v1424_v3, %v1173_v2 }
  0xc7   :  { %1011 = vst.msk [vmem:[%s2359_s3 + $0x10] sm:$0xf] %vm1006_vm1, %v946_v17  ;;  %v562_v10 = vadd.f32 %v1780_v61, %v561_v54 }
  0xc8   :  { %v809_v21 = vadd.f32 %v1796_v6, %v640_v19  ;;  %v1314_v6 = vor.u32 %v1457_v24, %v1311_v25  ;;  %v1302_v19 = vor.u32 %v1456_v8, %v1301_v7 }
  0xc9   :  { %v731_v22 = vadd.f32 %v1822_v23, %v562_v10  ;;  %v1427_v10 = vld [vmem:[%s2357_s0 + $0xe4] sm:$0xf] }
  0xca   :  { %v914_v26 = vmax.f32 %v809_v21, 0.0  ;;  %1396 = vmatmul.msk.bf16.gmra.mxu3 %vm443_vm0, %v1314_v6  ;;  %v1954_v46 = vpop.f32.mrf.mxu3  ;;  %v1191_v21 = vld [vmem:[%s2357_s0 + $0xe8] sm:$0xf0] }
  0xcb   :  { %v883_v30 = vmax.f32 %v731_v22, 0.0  ;;  %v1929_v23 = vpop.f32.mrf.mxu1  ;;  %v1194_v28 = vor.u32 %v1427_v10, %v1191_v21  ;;  %v1317_v10 = vld [vmem:[%s2357_s0 + $0x1e0] sm:$0xf] }
  0xcc   :  { %v978_v33 = vpack.c.bf16 %v914_v26, %v914_v26 }
  0xcd   :  { %v947_v35 = vpack.c.bf16 %v883_v30, %v883_v30  ;;  %v641_v36 = vpop.f32.mrf.mxu2 }
  0xce   :  { %1043 = vst.msk [vmem:[%s2359_s3 + $0x90] sm:$0xf] %vm1006_vm1, %v978_v33  ;;  %v642_v39 = vadd.f32 %v1780_v61, %v641_v36  ;;  %v564_v40 = vpop.f32.mrf.mxu0 }
  0xcf   :  { %1012 = vst.msk [vmem:[%s2359_s3 + $0x14] sm:$0xf] %vm1006_vm1, %v947_v35  ;;  %v565_v42 = vadd.f32 %v1780_v61, %v564_v40 }
  0xd0   :  { %v811_v47 = vadd.f32 %v1808_v15, %v642_v39  ;;  %v1327_v39 = vld [vmem:[%s2357_s0 + $0x1f8] sm:$0xf0] }
  0xd1   :  { %v734_v48 = vadd.f32 %v1846_v38, %v565_v42  ;;  %603 = vmatmul.bf16.gmra.mxu0 %v1166_v37  ;;  %v1461_v37 = vld [vmem:[%s2357_s0 + $0x1f4] sm:$0xf]  ;;  %v1426_v42 = vld [vmem:[%s2357_s0 + $0xd4] sm:$0xf0] }
  0xd2   :  { %v915_v49 = vmax.f32 %v811_v47, 0.0  ;;  %683 = vmatmul.bf16.gmra.mxu2 %v1294_v41  ;;  %v1971_v59 = vpop.f32.mrf.mxu3  ;;  %v1181_v41 = vld [vmem:[%s2357_s0 + $0xd0] sm:$0xf]  ;;  %v1458_v47 = vld [vmem:[%s2357_s0 + $0x1d4] sm:$0xf0] }
  0xd3   :  { %v884_v52 = vmax.f32 %v734_v48, 0.0  ;;  %v1958_v51 = vpop.f32.mrf.mxu1 }
  0xd4   :  { %v979_v53 = vpack.c.bf16 %v915_v49, %v915_v49 }
  0xd5   :  { %v948_v56 = vpack.c.bf16 %v884_v52, %v884_v52  ;;  %v644_v57 = vpop.f32.mrf.mxu2 }
  0xd6   :  { %1044 = vst.msk [vmem:[%s2359_s3 + $0x94] sm:$0xf] %vm1006_vm1, %v979_v53  ;;  %v645_v58 = vadd.f32 %v1780_v61, %v644_v57  ;;  %1380 = vmatmul.msk.bf16.gmra.mxu1 %vm443_vm0, %v1186_v50  ;;  %v566_v15 = vpop.f32.mrf.mxu0  ;;  %v1182_v53 = vor.u32 %v1426_v42, %v1181_v41 }
  0xd7   :  { %1013 = vst.msk [vmem:[%s2359_s3 + $0x18] sm:$0xf] %vm1006_vm1, %v948_v56  ;;  %v567_v38 = vadd.f32 %v1780_v61, %v566_v15 }
  0xd8   :  { %v814_v60 = vadd.f32 %v1844_v34, %v645_v58  ;;  %v1322_v34 = vor.u32 %v1459_v63, %v1319_v0  ;;  %v1310_v58 = vor.u32 %v1458_v47, %v1309_v45 }
  0xd9   :  { %v736_v62 = vadd.f32 %v1871_v55, %v567_v38  ;;  %v1429_v38 = vld [vmem:[%s2357_s0 + $0xf4] sm:$0xf] }
  0xda   :  { %v916_v1 = vmax.f32 %v814_v60, 0.0  ;;  %1397 = vmatmul.msk.bf16.gmra.mxu3 %vm443_vm0, %v1322_v34  ;;  %v2014_v25 = vpop.f32.mrf.mxu3  ;;  %v1199_v60 = vld [vmem:[%s2357_s0 + $0xf8] sm:$0xf0] }
  0xdb   :  { %v885_v4 = vmax.f32 %v736_v62, 0.0  ;;  %v1987_v55 = vpop.f32.mrf.mxu1 }
  0xdc   :  { %v980_v9 = vpack.c.bf16 %v916_v1, %v916_v1  ;;  %v1202_v1 = vor.u32 %v1429_v38, %v1199_v60 }
  0xdd   :  { %v949_v11 = vpack.c.bf16 %v885_v4, %v885_v4  ;;  %v646_v13 = vpop.f32.mrf.mxu2 }
  0xde   :  { %1045 = vst.msk [vmem:[%s2359_s3 + $0x98] sm:$0xf] %vm1006_vm1, %v980_v9  ;;  %v647_v17 = vadd.f32 %v1780_v61, %v646_v13  ;;  %v569_v18 = vpop.f32.mrf.mxu0 }
  0xdf   :  { %1014 = vst.msk [vmem:[%s2359_s3 + $0x1c] sm:$0xf] %vm1006_vm1, %v949_v11  ;;  %v570_v54 = vadd.f32 %v1780_v61, %v569_v18  ;;  %v1428_v18 = vld [vmem:[%s2357_s0 + $0xe4] sm:$0xf0] }
  0xe0   :  { %v816_v22 = vadd.f32 %v1855_v44, %v647_v17  ;;  %v1189_v17 = vld [vmem:[%s2357_s0 + $0xe0] sm:$0xf] }
  0xe1   :  { %v739_v24 = vadd.f32 %v1900_v14, %v570_v54  ;;  %608 = vmatmul.bf16.gmra.mxu0 %v1174_v16 }
  0xe2   :  { %v917_v26 = vmax.f32 %v816_v22, 0.0  ;;  %688 = vmatmul.bf16.gmra.mxu2 %v1302_v19  ;;  %v2051_v48 = vpop.f32.mrf.mxu3 }
  0xe3   :  { %v886_v29 = vmax.f32 %v739_v24, 0.0  ;;  %v2016_v6 = vpop.f32.mrf.mxu1  ;;  %v1190_v24 = vor.u32 %v1428_v18, %v1189_v17 }
  0xe4   :  { %v981_v30 = vpack.c.bf16 %v917_v26, %v917_v26 }
  0xe5   :  { %v950_v31 = vpack.c.bf16 %v886_v29, %v886_v29  ;;  %v649_v32 = vpop.f32.mrf.mxu2 }
  0xe6   :  { %1046 = vst.msk [vmem:[%s2359_s3 + $0x9c] sm:$0xf] %vm1006_vm1, %v981_v30  ;;  %v650_v44 = vadd.f32 %v1780_v61, %v649_v32  ;;  %1381 = vmatmul.msk.bf16.gmra.mxu1 %vm443_vm0, %v1194_v28  ;;  %v571_v14 = vpop.f32.mrf.mxu0  ;;  %v1207_v32 = vld [vmem:[%s2357_s0 + $0x108] sm:$0xf0] }
  0xe7   :  { %1015 = vst.msk [vmem:[%s2359_s3 + $0x20] sm:$0xf] %vm1006_vm1, %v950_v31  ;;  %v572_v33 = vadd.f32 %v1780_v61, %v571_v14  ;;  %v1431_v31 = vld [vmem:[%s2357_s0 + $0x104] sm:$0xf] }
  0xe8   :  { %v819_v35 = vadd.f32 %v1896_v5, %v650_v44  ;;  %v1330_v5 = vor.u32 %v1461_v37, %v1327_v39 }
  0xe9   :  { %v741_v36 = vadd.f32 %v1929_v23, %v572_v33 }
  0xea   :  { %v918_v40 = vmax.f32 %v819_v35, 0.0  ;;  %1398 = vmatmul.msk.bf16.gmra.mxu3 %vm443_vm0, %v1330_v5  ;;  %v2074_v8 = vpop.f32.mrf.mxu3 }
  0xeb   :  { %v887_v43 = vmax.f32 %v741_v36, 0.0  ;;  %v2043_v23 = vpop.f32.mrf.mxu1  ;;  %v1210_v36 = vor.u32 %v1431_v31, %v1207_v32 }
  0xec   :  { %v982_v49 = vpack.c.bf16 %v918_v40, %v918_v40 }
  0xed   :  { %v951_v50 = vpack.c.bf16 %v887_v43, %v887_v43  ;;  %v651_v52 = vpop.f32.mrf.mxu2 }
  0xee   :  { %1047 = vst.msk [vmem:[%s2359_s3 + $0xa0] sm:$0xf] %vm1006_vm1, %v982_v49  ;;  %v652_v56 = vadd.f32 %v1780_v61, %v651_v52  ;;  %v574_v57 = vpop.f32.mrf.mxu0  ;;  %v1430_v52 = vld [vmem:[%s2357_s0 + $0xf4] sm:$0xf0] }
  0xef   :  { %1016 = vst.msk [vmem:[%s2359_s3 + $0x24] sm:$0xf] %vm1006_vm1, %v951_v50  ;;  %v575_v15 = vadd.f32 %v1780_v61, %v574_v57  ;;  %v1197_v50 = vld [vmem:[%s2357_s0 + $0xf0] sm:$0xf] }
  0xf0   :  { %v821_v62 = vadd.f32 %v1913_v20, %v652_v56  ;;  %v1325_v57 = vld [vmem:[%s2357_s0 + $0x1f0] sm:$0xf]  ;;  %v1198_v38 = vor.u32 %v1430_v52, %v1197_v50 }
  0xf1   :  { %v744_v63 = vadd.f32 %v1958_v51, %v575_v15  ;;  %613 = vmatmul.bf16.gmra.mxu0 %v1182_v53 }
  0xf2   :  { %v919_v0 = vmax.f32 %v821_v62, 0.0  ;;  %693 = vmatmul.bf16.gmra.mxu2 %v1310_v58  ;;  %v2119_v44 = vpop.f32.mrf.mxu3 }
  0xf3   :  { %v888_v2 = vmax.f32 %v744_v63, 0.0  ;;  %v2072_v3 = vpop.f32.mrf.mxu1 }
  0xf4   :  { %v983_v34 = vpack.c.bf16 %v919_v0, %v919_v0 }
  0xf5   :  { %v952_v4 = vpack.c.bf16 %v888_v2, %v888_v2  ;;  %v654_v7 = vpop.f32.mrf.mxu2 }
  0xf6   :  { %1048 = vst.msk [vmem:[%s2359_s3 + $0xa4] sm:$0xf] %vm1006_vm1, %v983_v34  ;;  %v655_v20 = vadd.f32 %v1780_v61, %v654_v7  ;;  %1382 = vmatmul.msk.bf16.gmra.mxu1 %vm443_vm0, %v1202_v1  ;;  %v576_v51 = vpop.f32.mrf.mxu0 }
  0xf7   :  { %1017 = vst.msk [vmem:[%s2359_s3 + $0x28] sm:$0xf] %vm1006_vm1, %v952_v4  ;;  %v577_v9 = vadd.f32 %v1780_v61, %v576_v51 }
  0xf8   :  { %v824_v11 = vadd.f32 %v1954_v46, %v655_v20  ;;  %v1460_v46 = vld [vmem:[%s2357_s0 + $0x1e4] sm:$0xf0] }
  0xf9   :  { %v746_v13 = vadd.f32 %v1987_v55, %v577_v9  ;;  %v1318_v29 = vor.u32 %v1460_v46, %v1317_v10 }
  0xfa   :  { %v920_v16 = vmax.f32 %v824_v11, 0.0  ;;  %v838_v47 = vpop.f32.mrf.mxu3 }
  0xfb   :  { %v889_v19 = vmax.f32 %v746_v13, 0.0  ;;  %v2095_v54 = vpop.f32.mrf.mxu1 }
  0xfc   :  { %v984_v55 = vpack.c.bf16 %v920_v16, %v920_v16 }
  0xfd   :  { %v953_v21 = vpack.c.bf16 %v889_v19, %v889_v19  ;;  %v656_v22 = vpop.f32.mrf.mxu2 }
  0xfe   :  { %1049 = vst.msk [vmem:[%s2359_s3 + $0xa8] sm:$0xf] %vm1006_vm1, %v984_v55  ;;  %v657_v26 = vadd.f32 %v1780_v61, %v656_v22  ;;  %v579_v28 = vpop.f32.mrf.mxu0 }
  0xff   :  { %1018 = vst.msk [vmem:[%s2359_s3 + $0x2c] sm:$0xf] %vm1006_vm1, %v953_v21  ;;  %v580_v30 = vadd.f32 %v1780_v61, %v579_v28 }
 0x100   :  { %v826_v14 = vadd.f32 %v1971_v59, %v657_v26 }
 0x101   :  { %v749_v33 = vadd.f32 %v2016_v6, %v580_v30  ;;  %618 = vmatmul.bf16.gmra.mxu0 %v1190_v24 }
 0x102   :  { %v921_v35 = vmax.f32 %v826_v14, 0.0  ;;  %698 = vmatmul.bf16.gmra.mxu2 %v1318_v29  ;;  %v840_v20 = vpop.f32.mrf.mxu3 }
 0x103   :  { %v890_v37 = vmax.f32 %v749_v33, 0.0  ;;  %v758_v39 = vpop.f32.mrf.mxu1 }
 0x104   :  { %v985_v40 = vpack.c.bf16 %v921_v35, %v921_v35 }
 0x105   :  { %v954_v41 = vpack.c.bf16 %v890_v37, %v890_v37  ;;  %v659_v42 = vpop.f32.mrf.mxu2 }
 0x106   :  { %1050 = vst.msk [vmem:[%s2359_s3 + $0xac] sm:$0xf] %vm1006_vm1, %v985_v40  ;;  %v660_v5 = vadd.f32 %v1780_v61, %v659_v42  ;;  %1383 = vmatmul.msk.bf16.gmra.mxu1 %vm443_vm0, %v1210_v36  ;;  %v581_v59 = vpop.f32.mrf.mxu0 }
 0x107   :  { %1019 = vst.msk [vmem:[%s2359_s3 + $0x30] sm:$0xf] %vm1006_vm1, %v954_v41  ;;  %v582_v6 = vadd.f32 %v1780_v61, %v581_v59 }
 0x108   :  { %v829_v43 = vadd.f32 %v2014_v25, %v660_v5  ;;  %v1462_v25 = vld [vmem:[%s2357_s0 + $0x1f4] sm:$0xf0] }
 0x109   :  { %v751_v45 = vadd.f32 %v2043_v23, %v582_v6  ;;  %v1326_v63 = vor.u32 %v1462_v25, %v1325_v57 }
 0x10a   :  { %v922_v49 = vmax.f32 %v829_v43, 0.0  ;;  %v843_v22 = vpop.f32.mrf.mxu3 }
 0x10b   :  { %v891_v53 = vmax.f32 %v751_v45, 0.0  ;;  %v760_v56 = vpop.f32.mrf.mxu1 }
 0x10c   :  { %v986_v23 = vpack.c.bf16 %v922_v49, %v922_v49 }
 0x10d   :  { %v955_v58 = vpack.c.bf16 %v891_v53, %v891_v53  ;;  %v661_v15 = vpop.f32.mrf.mxu2 }
 0x10e   :  { %1051 = vst.msk [vmem:[%s2359_s3 + $0xb0] sm:$0xf] %vm1006_vm1, %v986_v23  ;;  %v662_v60 = vadd.f32 %v1780_v61, %v661_v15  ;;  %v584_v62 = vpop.f32.mrf.mxu0 }
 0x10f   :  { %1020 = vst.msk [vmem:[%s2359_s3 + $0x34] sm:$0xf] %vm1006_vm1, %v955_v58  ;;  %v585_v0 = vadd.f32 %v1780_v61, %v584_v62 }
 0x110   :  { %v831_v1 = vadd.f32 %v2051_v48, %v662_v60 }
 0x111   :  { %v754_v2 = vadd.f32 %v2072_v3, %v585_v0  ;;  %623 = vmatmul.bf16.gmra.mxu0 %v1198_v38 }
 0x112   :  { %v923_v34 = vmax.f32 %v831_v1, 0.0  ;;  %703 = vmatmul.bf16.gmra.mxu2 %v1326_v63  ;;  %v845_v37 = vpop.f32.mrf.mxu3 }
 0x113   :  { %v892_v4 = vmax.f32 %v754_v2, 0.0  ;;  %v763_v7 = vpop.f32.mrf.mxu1 }
 0x114   :  { %v987_v51 = vpack.c.bf16 %v923_v34, %v923_v34 }
 0x115   :  { %v956_v9 = vpack.c.bf16 %v892_v4, %v892_v4  ;;  %v664_v11 = vpop.f32.mrf.mxu2 }
 0x116   :  { %1052 = vst.msk [vmem:[%s2359_s3 + $0xb4] sm:$0xf] %vm1006_vm1, %v987_v51  ;;  %v665_v13 = vadd.f32 %v1780_v61, %v664_v11  ;;  %v586_v16 = vpop.f32.mrf.mxu0 }
 0x117   :  { %1021 = vst.msk [vmem:[%s2359_s3 + $0x38] sm:$0xf] %vm1006_vm1, %v956_v9  ;;  %v587_v48 = vadd.f32 %v1780_v61, %v586_v16 }
 0x118   :  { %v834_v3 = vadd.f32 %v2074_v8, %v665_v13 }
 0x119   :  { %v756_v17 = vadd.f32 %v2095_v54, %v587_v48 }
 0x11a   :  { %v924_v18 = vmax.f32 %v834_v3, 0.0  ;;  %v848_v53 = vpop.f32.mrf.mxu3 }
 0x11b   :  { %v893_v19 = vmax.f32 %v756_v17, 0.0  ;;  %v765_v10 = vpop.f32.mrf.mxu1 }
 0x11c   :  { %v988_v46 = vpack.c.bf16 %v924_v18, %v924_v18 }
 0x11d   :  { %v957_v55 = vpack.c.bf16 %v893_v19, %v893_v19  ;;  %v666_v21 = vpop.f32.mrf.mxu2 }
 0x11e   :  { %1053 = vst.msk [vmem:[%s2359_s3 + $0xb8] sm:$0xf] %vm1006_vm1, %v988_v46  ;;  %v667_v24 = vadd.f32 %v1780_v61, %v666_v21  ;;  %v589_v26 = vpop.f32.mrf.mxu0 }
 0x11f   :  { %1022 = vst.msk [vmem:[%s2359_s3 + $0x3c] sm:$0xf] %vm1006_vm1, %v957_v55  ;;  %v590_v8 = vadd.f32 %v1780_v61, %v589_v26 }
 0x120   :  { %v836_v54 = vadd.f32 %v2119_v44, %v667_v24 }
 0x121   :  { %v759_v28 = vadd.f32 %v758_v39, %v590_v8 }
 0x122   :  { %v925_v29 = vmax.f32 %v836_v54, 0.0  ;;  %v850_v4 = vpop.f32.mrf.mxu3 }
 0x123   :  { %v894_v30 = vmax.f32 %v759_v28, 0.0  ;;  %v768_v31 = vpop.f32.mrf.mxu1 }
 0x124   :  { %v989_v32 = vpack.c.bf16 %v925_v29, %v925_v29 }
 0x125   :  { %v958_v14 = vpack.c.bf16 %v894_v30, %v894_v30  ;;  %v669_v33 = vpop.f32.mrf.mxu2 }
 0x126   :  { %1054 = vst.msk [vmem:[%s2359_s3 + $0xbc] sm:$0xf] %vm1006_vm1, %v989_v32  ;;  %v670_v35 = vadd.f32 %v1780_v61, %v669_v33  ;;  %v591_v36 = vpop.f32.mrf.mxu0 }
 0x127   :  { %1023 = vst.msk [vmem:[%s2359_s3 + $0x40] sm:$0xf] %vm1006_vm1, %v958_v14  ;;  %v592_v44 = vadd.f32 %v1780_v61, %v591_v36 }
 0x128   :  { %v839_v39 = vadd.f32 %v838_v47, %v670_v35 }
 0x129   :  { %v761_v40 = vadd.f32 %v760_v56, %v592_v44 }
 0x12a   :  { %v926_v41 = vmax.f32 %v839_v39, 0.0  ;;  %v853_v55 = vpop.f32.mrf.mxu3 }
 0x12b   :  { %v895_v42 = vmax.f32 %v761_v40, 0.0  ;;  %v770_v5 = vpop.f32.mrf.mxu1 }
 0x12c   :  { %v990_v59 = vpack.c.bf16 %v926_v41, %v926_v41 }
 0x12d   :  { %v959_v6 = vpack.c.bf16 %v895_v42, %v895_v42  ;;  %v671_v43 = vpop.f32.mrf.mxu2 }
 0x12e   :  { %1055 = vst.msk [vmem:[%s2359_s3 + $0xc0] sm:$0xf] %vm1006_vm1, %v990_v59  ;;  %v672_v45 = vadd.f32 %v1780_v61, %v671_v43  ;;  %v594_v49 = vpop.f32.mrf.mxu0 }
 0x12f   :  { %1024 = vst.msk [vmem:[%s2359_s3 + $0x44] sm:$0xf] %vm1006_vm1, %v959_v6  ;;  %v595_v47 = vadd.f32 %v1780_v61, %v594_v49 }
 0x130   :  { %v841_v50 = vadd.f32 %v840_v20, %v672_v45 }
 0x131   :  { %v764_v52 = vadd.f32 %v763_v7, %v595_v47 }
 0x132   :  { %v927_v56 = vmax.f32 %v841_v50, 0.0  ;;  %v855_v36 = vpop.f32.mrf.mxu3 }
 0x133   :  { %v896_v57 = vmax.f32 %v764_v52, 0.0  ;;  %v773_v25 = vpop.f32.mrf.mxu1 }
 0x134   :  { %v991_v23 = vpack.c.bf16 %v927_v56, %v927_v56 }
 0x135   :  { %v960_v58 = vpack.c.bf16 %v896_v57, %v896_v57  ;;  %v674_v15 = vpop.f32.mrf.mxu2 }
 0x136   :  { %1056 = vst.msk [vmem:[%s2359_s3 + $0xc4] sm:$0xf] %vm1006_vm1, %v991_v23  ;;  %v675_v38 = vadd.f32 %v1780_v61, %v674_v15  ;;  %v596_v60 = vpop.f32.mrf.mxu0 }
 0x137   :  { %1025 = vst.msk [vmem:[%s2359_s3 + $0x48] sm:$0xf] %vm1006_vm1, %v960_v58  ;;  %v597_v62 = vadd.f32 %v1780_v61, %v596_v60 }
 0x138   :  { %v844_v63 = vadd.f32 %v843_v22, %v675_v38 }
 0x139   :  { %v766_v0 = vadd.f32 %v765_v10, %v597_v62 }
 0x13a   :  { %v928_v1 = vmax.f32 %v844_v63, 0.0 }
 0x13b   :  { %v897_v2 = vmax.f32 %v766_v0, 0.0  ;;  %v775_v34 = vpop.f32.mrf.mxu1 }
 0x13c   :  { %v992_v7 = vpack.c.bf16 %v928_v1, %v928_v1 }
 0x13d   :  { %v961_v20 = vpack.c.bf16 %v897_v2, %v897_v2  ;;  %v676_v51 = vpop.f32.mrf.mxu2  ;;  %v858_v50 = vpop.f32.mrf.mxu3 }
 0x13e   :  { %1057 = vst.msk [vmem:[%s2359_s3 + $0xc8] sm:$0xf] %vm1006_vm1, %v992_v7  ;;  %v677_v9 = vadd.f32 %v1780_v61, %v676_v51  ;;  %v599_v11 = vpop.f32.mrf.mxu0 }
 0x13f   :  { %1026 = vst.msk [vmem:[%s2359_s3 + $0x4c] sm:$0xf] %vm1006_vm1, %v961_v20  ;;  %v600_v13 = vadd.f32 %v1780_v61, %v599_v11 }
 0x140   :  { %v846_v16 = vadd.f32 %v845_v37, %v677_v9 }
 0x141   :  { %v769_v48 = vadd.f32 %v768_v31, %v600_v13 }
 0x142   :  { %v929_v3 = vmax.f32 %v846_v16, 0.0 }
 0x143   :  { %v898_v17 = vmax.f32 %v769_v48, 0.0  ;;  %v778_v18 = vpop.f32.mrf.mxu1 }
 0x144   :  { %v993_v19 = vpack.c.bf16 %v929_v3, %v929_v3 }
 0x145   :  { %v962_v10 = vpack.c.bf16 %v898_v17, %v898_v17  ;;  %v679_v46 = vpop.f32.mrf.mxu2  ;;  %v860_v2 = vpop.f32.mrf.mxu3 }
 0x146   :  { %1058 = vst.msk [vmem:[%s2359_s3 + $0xcc] sm:$0xf] %vm1006_vm1, %v993_v19  ;;  %v680_v21 = vadd.f32 %v1780_v61, %v679_v46  ;;  %v601_v22 = vpop.f32.mrf.mxu0 }
 0x147   :  { %1027 = vst.msk [vmem:[%s2359_s3 + $0x50] sm:$0xf] %vm1006_vm1, %v962_v10  ;;  %v602_v24 = vadd.f32 %v1780_v61, %v601_v22 }
 0x148   :  { %v849_v26 = vadd.f32 %v848_v53, %v680_v21 }
 0x149   :  { %v771_v8 = vadd.f32 %v770_v5, %v602_v24 }
 0x14a   :  { %v930_v54 = vmax.f32 %v849_v26, 0.0 }
 0x14b   :  { %v899_v28 = vmax.f32 %v771_v8, 0.0  ;;  %v780_v29 = vpop.f32.mrf.mxu1 }
 0x14c   :  { %v994_v30 = vpack.c.bf16 %v930_v54, %v930_v54 }
 0x14d   :  { %v963_v31 = vpack.c.bf16 %v899_v28, %v899_v28  ;;  %v681_v32 = vpop.f32.mrf.mxu2  ;;  %v863_v10 = vpop.f32.mrf.mxu3 }
 0x14e   :  { %1059 = vst.msk [vmem:[%s2359_s3 + $0xd0] sm:$0xf] %vm1006_vm1, %v994_v30  ;;  %v682_v14 = vadd.f32 %v1780_v61, %v681_v32  ;;  %v604_v33 = vpop.f32.mrf.mxu0 }
 0x14f   :  { %1028 = vst.msk [vmem:[%s2359_s3 + $0x54] sm:$0xf] %vm1006_vm1, %v963_v31  ;;  %v605_v35 = vadd.f32 %v1780_v61, %v604_v33 }
 0x150   :  { %v851_v44 = vadd.f32 %v850_v4, %v682_v14 }
 0x151   :  { %v774_v37 = vadd.f32 %v773_v25, %v605_v35 }
 0x152   :  { %v931_v39 = vmax.f32 %v851_v44, 0.0 }
 0x153   :  { %v900_v40 = vmax.f32 %v774_v37, 0.0  ;;  %v783_v41 = vpop.f32.mrf.mxu1 }
 0x154   :  { %v995_v42 = vpack.c.bf16 %v931_v39, %v931_v39 }
 0x155   :  { %v964_v5 = vpack.c.bf16 %v900_v40, %v900_v40  ;;  %v684_v59 = vpop.f32.mrf.mxu2  ;;  %v865_v33 = vpop.f32.mrf.mxu3 }
 0x156   :  { %1060 = vst.msk [vmem:[%s2359_s3 + $0xd4] sm:$0xf] %vm1006_vm1, %v995_v42  ;;  %v685_v6 = vadd.f32 %v1780_v61, %v684_v59  ;;  %v606_v43 = vpop.f32.mrf.mxu0 }
 0x157   :  { %1029 = vst.msk [vmem:[%s2359_s3 + $0x58] sm:$0xf] %vm1006_vm1, %v964_v5  ;;  %v607_v45 = vadd.f32 %v1780_v61, %v606_v43 }
 0x158   :  { %v854_v49 = vadd.f32 %v853_v55, %v685_v6 }
 0x159   :  { %v776_v47 = vadd.f32 %v775_v34, %v607_v45 }
 0x15a   :  { %v932_v52 = vmax.f32 %v854_v49, 0.0 }
 0x15b   :  { %v901_v53 = vmax.f32 %v776_v47, 0.0  ;;  %v785_v56 = vpop.f32.mrf.mxu1  ;;  %v630_v47 = vadd.f32 %v1780_v61, %v1800_v12 }
 0x15c   :  { %v996_v57 = vpack.c.bf16 %v932_v52, %v932_v52 }
 0x15d   :  { %v965_v25 = vpack.c.bf16 %v901_v53, %v901_v53  ;;  %v686_v23 = vpop.f32.mrf.mxu2  ;;  %v868_v49 = vpop.f32.mrf.mxu3 }
 0x15e   :  { %1061 = vst.msk [vmem:[%s2359_s3 + $0xd8] sm:$0xf] %vm1006_vm1, %v996_v57  ;;  %v687_v58 = vadd.f32 %v1780_v61, %v686_v23  ;;  %v609_v15 = vpop.f32.mrf.mxu0 }
 0x15f   :  { %1030 = vst.msk [vmem:[%s2359_s3 + $0x5c] sm:$0xf] %vm1006_vm1, %v965_v25  ;;  %v610_v38 = vadd.f32 %v1780_v61, %v609_v15 }
 0x160   :  { %v856_v60 = vadd.f32 %v855_v36, %v687_v58 }
 0x161   :  { %v779_v62 = vadd.f32 %v778_v18, %v610_v38 }
 0x162   :  { %v933_v63 = vmax.f32 %v856_v60, 0.0 }
 0x163   :  { %v902_v0 = vmax.f32 %v779_v62, 0.0  ;;  %v788_v1 = vpop.f32.mrf.mxu1 }
 0x164   :  { %v997_v34 = vpack.c.bf16 %v933_v63, %v933_v63 }
 0x165   :  { %v966_v4 = vpack.c.bf16 %v902_v0, %v902_v0  ;;  %v689_v7 = vpop.f32.mrf.mxu2  ;;  %v632_v0 = vadd.f32 %v1780_v61, %v1831_v27 }
 0x166   :  { %1062 = vst.msk [vmem:[%s2359_s3 + $0xdc] sm:$0xf] %vm1006_vm1, %v997_v34  ;;  %v690_v20 = vadd.f32 %v1780_v61, %v689_v7  ;;  %v611_v51 = vpop.f32.mrf.mxu0  ;;  %v870_v34 = vpop.f32.mrf.mxu3 }
 0x167   :  { %1031 = vst.msk [vmem:[%s2359_s3 + $0x60] sm:$0xf] %vm1006_vm1, %v966_v4  ;;  %v612_v9 = vadd.f32 %v1780_v61, %v611_v51 }
 0x168   :  { %v859_v11 = vadd.f32 %v858_v50, %v690_v20 }
 0x169   :  { %v781_v13 = vadd.f32 %v780_v29, %v612_v9 }
 0x16a   :  { %v934_v16 = vmax.f32 %v859_v11, 0.0 }
 0x16b   :  { %v903_v48 = vmax.f32 %v781_v13, 0.0  ;;  %v790_v3 = vpop.f32.mrf.mxu1 }
 0x16c   :  { %v998_v17 = vpack.c.bf16 %v934_v16, %v934_v16 }
 0x16d   :  { %v967_v18 = vpack.c.bf16 %v903_v48, %v903_v48  ;;  %v691_v19 = vpop.f32.mrf.mxu2 }
 0x16e   :  { %1063 = vst.msk [vmem:[%s2359_s3 + $0xe0] sm:$0xf] %vm1006_vm1, %v998_v17  ;;  %v692_v46 = vadd.f32 %v1780_v61, %v691_v19  ;;  %v614_v55 = vpop.f32.mrf.mxu0 }
 0x16f   :  { %1032 = vst.msk [vmem:[%s2359_s3 + $0x64] sm:$0xf] %vm1006_vm1, %v967_v18  ;;  %v615_v21 = vadd.f32 %v1780_v61, %v614_v55  ;;  %v873_v55 = vpop.f32.mrf.mxu3 }
 0x170   :  { %v861_v22 = vadd.f32 %v860_v2, %v692_v46 }
 0x171   :  { %v784_v24 = vadd.f32 %v783_v41, %v615_v21 }
 0x172   :  { %v935_v26 = vmax.f32 %v861_v22, 0.0 }
 0x173   :  { %v904_v8 = vmax.f32 %v784_v24, 0.0  ;;  %v793_v54 = vpop.f32.mrf.mxu1 }
 0x174   :  { %v999_v28 = vpack.c.bf16 %v935_v26, %v935_v26 }
 0x175   :  { %v968_v29 = vpack.c.bf16 %v904_v8, %v904_v8  ;;  %v694_v30 = vpop.f32.mrf.mxu2 }
 0x176   :  { %1064 = vst.msk [vmem:[%s2359_s3 + $0xe4] sm:$0xf] %vm1006_vm1, %v999_v28  ;;  %v695_v31 = vadd.f32 %v1780_v61, %v694_v30  ;;  %v616_v32 = vpop.f32.mrf.mxu0 }
 0x177   :  { %1033 = vst.msk [vmem:[%s2359_s3 + $0x68] sm:$0xf] %vm1006_vm1, %v968_v29  ;;  %v617_v14 = vadd.f32 %v1780_v61, %v616_v32 }
 0x178   :  { %v864_v35 = vadd.f32 %v863_v10, %v695_v31 }
 0x179   :  { %v786_v36 = vadd.f32 %v785_v56, %v617_v14 }
 0x17a   :  { %v936_v44 = vmax.f32 %v864_v35, 0.0 }
 0x17b   :  { %v905_v37 = vmax.f32 %v786_v36, 0.0  ;;  %v795_v39 = vpop.f32.mrf.mxu1 }
 0x17c   :  { %v1000_v40 = vpack.c.bf16 %v936_v44, %v936_v44 }
 0x17d   :  { %v969_v41 = vpack.c.bf16 %v905_v37, %v905_v37  ;;  %v696_v42 = vpop.f32.mrf.mxu2 }
 0x17e   :  { %1065 = vst.msk [vmem:[%s2359_s3 + $0xe8] sm:$0xf] %vm1006_vm1, %v1000_v40  ;;  %v697_v5 = vadd.f32 %v1780_v61, %v696_v42  ;;  %v619_v59 = vpop.f32.mrf.mxu0 }
 0x17f   :  { %1034 = vst.msk [vmem:[%s2359_s3 + $0x6c] sm:$0xf] %vm1006_vm1, %v969_v41  ;;  %v620_v6 = vadd.f32 %v1780_v61, %v619_v59 }
 0x180   :  { %v866_v43 = vadd.f32 %v865_v33, %v697_v5  ;;  %v875_v33 = vpop.f32.mrf.mxu3 }
 0x181   :  { %v789_v45 = vadd.f32 %v788_v1, %v620_v6 }
 0x182   :  { %v937_v50 = vmax.f32 %v866_v43, 0.0 }
 0x183   :  { %v906_v52 = vmax.f32 %v789_v45, 0.0  ;;  %v798_v53 = vpop.f32.mrf.mxu1 }
 0x184   :  { %v1001_v56 = vpack.c.bf16 %v937_v50, %v937_v50  ;;  %v799_v57 = vadd.f32 %v798_v53, %v630_v47 }
 0x185   :  { %v970_v25 = vpack.c.bf16 %v906_v52, %v906_v52  ;;  %v699_v23 = vpop.f32.mrf.mxu2 }
 0x186   :  { %1066 = vst.msk [vmem:[%s2359_s3 + $0xec] sm:$0xf] %vm1006_vm1, %v1001_v56  ;;  %v910_v58 = vmax.f32 %v799_v57, 0.0  ;;  %v700_v15 = vadd.f32 %v1780_v61, %v699_v23  ;;  %v621_v38 = vpop.f32.mrf.mxu0 }
 0x187   :  { %1035 = vst.msk [vmem:[%s2359_s3 + $0x70] sm:$0xf] %vm1006_vm1, %v970_v25  ;;  %v622_v12 = vadd.f32 %v1780_v61, %v621_v38  ;;  %v1482_v61 = vld [vmem:[%s2358_s2] ss:$0 sm:$0xff] }
 0x188   :  { %v974_v60 = vpack.c.bf16 %v910_v58, %v910_v58  ;;  %v869_v62 = vadd.f32 %v868_v49, %v700_v15 }
 0x189   :  { %v791_v63 = vadd.f32 %v790_v3, %v622_v12 }
 0x18a   :  { %1039 = vst.msk [vmem:[%s2359_s3 + $0x80] sm:$0xf] %vm1006_vm1, %v974_v60  ;;  %v938_v1 = vmax.f32 %v869_v62, 0.0 }
 0x18b   :  { %v907_v2 = vmax.f32 %v791_v63, 0.0  ;;  %v800_v4 = vpop.f32.mrf.mxu1 }
 0x18c   :  { %v1002_v7 = vpack.c.bf16 %v938_v1, %v938_v1  ;;  %v801_v20 = vadd.f32 %v800_v4, %v632_v0 }
 0x18d   :  { %v971_v51 = vpack.c.bf16 %v907_v2, %v907_v2  ;;  %v701_v9 = vpop.f32.mrf.mxu2 }
 0x18e   :  { %1067 = vst.msk [vmem:[%s2359_s3 + $0xf0] sm:$0xf] %vm1006_vm1, %v1002_v7  ;;  %v911_v11 = vmax.f32 %v801_v20, 0.0  ;;  %v702_v27 = vadd.f32 %v1482_v61, %v701_v9  ;;  %v624_v13 = vpop.f32.mrf.mxu0 }
 0x18f   :  { %1036 = vst.msk [vmem:[%s2359_s3 + $0x74] sm:$0xf] %vm1006_vm1, %v971_v51  ;;  %v625_v16 = vadd.f32 %v1482_v61, %v624_v13 }
 0x190   :  { %v975_v48 = vpack.c.bf16 %v911_v11, %v911_v11  ;;  %v871_v3 = vadd.f32 %v870_v34, %v702_v27 }
 0x191   :  { %v794_v17 = vadd.f32 %v793_v54, %v625_v16 }
 0x192   :  { %1040 = vst.msk [vmem:[%s2359_s3 + $0x84] sm:$0xf] %vm1006_vm1, %v975_v48  ;;  %v939_v18 = vmax.f32 %v871_v3, 0.0 }
 0x193   :  { %v908_v19 = vmax.f32 %v794_v17, 0.0 }
 0x194   :  { %v1003_v10 = vpack.c.bf16 %v939_v18, %v939_v18 }
 0x195   :  { %v972_v46 = vpack.c.bf16 %v908_v19, %v908_v19  ;;  %v704_v21 = vpop.f32.mrf.mxu2 }
 0x196   :  { %1068 = vst.msk [vmem:[%s2359_s3 + $0xf4] sm:$0xf] %vm1006_vm1, %v1003_v10  ;;  %v705_v22 = vadd.f32 %v1482_v61, %v704_v21  ;;  %v626_v24 = vpop.f32.mrf.mxu0 }
 0x197   :  { %1037 = vst.msk [vmem:[%s2359_s3 + $0x78] sm:$0xf] %vm1006_vm1, %v972_v46  ;;  %v627_v26 = vadd.f32 %v1482_v61, %v626_v24 }
 0x198   :  { %v874_v8 = vadd.f32 %v873_v55, %v705_v22 }
 0x199   :  { %v796_v54 = vadd.f32 %v795_v39, %v627_v26 }
 0x19a   :  { %v940_v28 = vmax.f32 %v874_v8, 0.0 }
 0x19b   :  { %v909_v29 = vmax.f32 %v796_v54, 0.0 }
 0x19c   :  { %v1004_v30 = vpack.c.bf16 %v940_v28, %v940_v28 }
 0x19d   :  { %v973_v31 = vpack.c.bf16 %v909_v29, %v909_v29  ;;  %v706_v32 = vpop.f32.mrf.mxu2 }
 0x19e   :  { %1069 = vst.msk [vmem:[%s2359_s3 + $0xf8] sm:$0xf] %vm1006_vm1, %v1004_v30  ;;  %v707_v14 = vadd.f32 %v1482_v61, %v706_v32 }
 0x19f   :  { %1038 = vst.msk [vmem:[%s2359_s3 + $0x7c] sm:$0xf] %vm1006_vm1, %v973_v31 }
 0x1a0   :  { %v876_v35 = vadd.f32 %v875_v33, %v707_v14 }
 0x1a2   :  { %v941_v36 = vmax.f32 %v876_v35, 0.0 }
 0x1a4   :  { %v1005_v44 = vpack.c.bf16 %v941_v36, %v941_v36 }
 0x1a6   :  { %1070 = vst.msk [vmem:[%s2359_s3 + $0xfc] sm:$0xf] %vm1006_vm1, %v1005_v44 }

// kernel: custom_resnet_forward.25
= control target key start
LH: loop header
LB: loop body
LE: loop exit
PB: predicated region body
PF: predicated region fallthrough
CT: control target
= control target key end

     0   :  { %vm446_vm0 = vcmask 130048   ;;  %vm1201_vm1 = vcmask 125952   ;;  %s2878_s1 = inlined_call_operand.vmem [shape: bf16[144,16], index: 1, kind: input, shape index: {}]   ;;  %s2879_s0 = inlined_call_operand.vmem [shape: bf16[512,144], index: 0, kind: input, shape index: {}]   ;;  %s2880_s2 = inlined_call_operand.vmem [shape: f32[1,16], index: 2, kind: input, shape index: {}]   ;;  %s2881_s3 = inlined_call_operand.vmem [shape: bf16[512,16], index: 3, kind: input, shape index: {}]   ;;  %s2882_s4 = inlined_call_operand.vmem [shape: bf16[512,16], index: 4, kind: output, shape index: {}]  }
   0x1   :  { %v1665_v0 = vld [vmem:[%s2878_s1 + $0x38] sm:$0xff]  ;;  %v1666_v1 = vld [vmem:[%s2878_s1 + $0x40] sm:$0xff]  ;;  %v1274_v3 = vld [vmem:[%s2879_s0 + $0x8] sm:$0xf0] }
   0x2   :  { %v1594_v2 = vld [vmem:[%s2879_s0 + $0x4] sm:$0xf]  ;;  %543 = vmatpush.bf16.msra.mxu0 %v1665_v0  ;;  %1826 = vmatpush.bf16.msra.mxu2 %v1665_v0  ;;  %v1664_v5 = vld [vmem:[%s2878_s1 + $0x30] sm:$0xff]  ;;  %v1663_v6 = vld [vmem:[%s2878_s1 + $0x28] sm:$0xff] }
   0x3   :  { %v1277_v4 = vor.u32 %v1594_v2, %v1274_v3  ;;  %719 = vmatpush.bf16.msra.mxu1 %v1666_v1  ;;  %1834 = vmatpush.bf16.msra.mxu3 %v1666_v1  ;;  %v1628_v7 = vld [vmem:[%s2879_s0 + $0x114] sm:$0xf]  ;;  %v1410_v8 = vld [vmem:[%s2879_s0 + $0x118] sm:$0xf0]  ;;  %v1662_v10 = vld [vmem:[%s2878_s1 + $0x20] sm:$0xff] }
   0x4   :  { %v1413_v9 = vor.u32 %v1628_v7, %v1410_v8  ;;  %v1661_v11 = vld [vmem:[%s2878_s1 + $0x18] sm:$0xff]  ;;  %v1596_v12 = vld [vmem:[%s2879_s0 + $0x14] sm:$0xf]  ;;  %v1659_v16 = vld [vmem:[%s2878_s1 + $0x8] sm:$0xff] }
   0x5   :  { %v1282_v13 = vld [vmem:[%s2879_s0 + $0x18] sm:$0xf0]  ;;  %v1660_v15 = vld [vmem:[%s2878_s1 + $0x10] sm:$0xff]  ;;  %v1630_v17 = vld [vmem:[%s2879_s0 + $0x124] sm:$0xf] }
   0x6   :  { %1562 = vmatmul.msk.bf16.vlgmr.msra.gmra.mxu1 %vm446_vm0, %v1277_v4  ;;  %544 = vmatpush.bf16.msra.mxu0 %v1664_v5  ;;  %v1285_v14 = vor.u32 %v1596_v12, %v1282_v13  ;;  %v1418_v18 = vld [vmem:[%s2879_s0 + $0x128] sm:$0xf0]  ;;  %v1658_v20 = vld [vmem:[%s2878_s1] sm:$0xff]  ;;  %v1595_v22 = vld [vmem:[%s2879_s0 + $0x4] sm:$0xf0] }
   0x7   :  { %1827 = vmatpush.bf16.msra.mxu2 %v1664_v5  ;;  %1579 = vmatmul.msk.bf16.vlgmr.msra.gmra.mxu3 %vm446_vm0, %v1413_v9  ;;  %v1421_v19 = vor.u32 %v1630_v17, %v1418_v18  ;;  %v1272_v21 = vld [vmem:[%s2879_s0] sm:$0xf]  ;;  %v1627_v24 = vld [vmem:[%s2879_s0 + $0x104] sm:$0xf0]  ;;  %v1598_v27 = vld [vmem:[%s2879_s0 + $0x24] sm:$0xf] }
   0x8   :  { %v1400_v23 = vld [vmem:[%s2879_s0 + $0x100] sm:$0xf]  ;;  %v1273_v25 = vor.u32 %v1595_v22, %v1272_v21  ;;  %v1290_v28 = vld [vmem:[%s2879_s0 + $0x28] sm:$0xf0]  ;;  %v1632_v30 = vld [vmem:[%s2879_s0 + $0x134] sm:$0xf] }
   0x9   :  { %v1401_v26 = vor.u32 %v1627_v24, %v1400_v23  ;;  %v1293_v29 = vor.u32 %v1598_v27, %v1290_v28  ;;  %v1426_v31 = vld [vmem:[%s2879_s0 + $0x138] sm:$0xf0]  ;;  %v1280_v33 = vld [vmem:[%s2879_s0 + $0x10] sm:$0xf]  ;;  %v1597_v34 = vld [vmem:[%s2879_s0 + $0x14] sm:$0xf0] }
   0xa   :  { %545 = vmatpush.bf16.msra.mxu0 %v1663_v6  ;;  %v1429_v32 = vor.u32 %v1632_v30, %v1426_v31  ;;  %v1408_v35 = vld [vmem:[%s2879_s0 + $0x110] sm:$0xf]  ;;  %v1629_v36 = vld [vmem:[%s2879_s0 + $0x114] sm:$0xf0]  ;;  %v1281_v37 = vor.u32 %v1597_v34, %v1280_v33  ;;  %v1600_v39 = vld [vmem:[%s2879_s0 + $0x34] sm:$0xf] }
   0xb   :  { %1828 = vmatpush.bf16.msra.mxu2 %v1663_v6  ;;  %v1409_v38 = vor.u32 %v1629_v36, %v1408_v35  ;;  %v1298_v40 = vld [vmem:[%s2879_s0 + $0x38] sm:$0xf0]  ;;  %v1634_v42 = vld [vmem:[%s2879_s0 + $0x144] sm:$0xf]  ;;  %v1434_v43 = vld [vmem:[%s2879_s0 + $0x148] sm:$0xf0] }
   0xc   :  { %v1301_v41 = vor.u32 %v1600_v39, %v1298_v40  ;;  %v1437_v44 = vor.u32 %v1634_v42, %v1434_v43  ;;  %v1288_v45 = vld [vmem:[%s2879_s0 + $0x20] sm:$0xf]  ;;  %v1599_v46 = vld [vmem:[%s2879_s0 + $0x24] sm:$0xf0]  ;;  %v1602_v51 = vld [vmem:[%s2879_s0 + $0x44] sm:$0xf] }
   0xd   :  { %v1416_v47 = vld [vmem:[%s2879_s0 + $0x120] sm:$0xf]  ;;  %v1631_v48 = vld [vmem:[%s2879_s0 + $0x124] sm:$0xf0]  ;;  %v1289_v49 = vor.u32 %v1599_v46, %v1288_v45  ;;  %v1306_v52 = vld [vmem:[%s2879_s0 + $0x48] sm:$0xf0] }
   0xe   :  { %546 = vmatpush.bf16.msra.mxu0 %v1662_v10  ;;  %v1417_v50 = vor.u32 %v1631_v48, %v1416_v47  ;;  %v1309_v53 = vor.u32 %v1602_v51, %v1306_v52  ;;  %v1636_v54 = vld [vmem:[%s2879_s0 + $0x154] sm:$0xf]  ;;  %v1442_v55 = vld [vmem:[%s2879_s0 + $0x158] sm:$0xf0]  ;;  %v1296_v57 = vld [vmem:[%s2879_s0 + $0x30] sm:$0xf] }
   0xf   :  { %1829 = vmatpush.bf16.msra.mxu2 %v1662_v10  ;;  %v1445_v56 = vor.u32 %v1636_v54, %v1442_v55  ;;  %v1601_v58 = vld [vmem:[%s2879_s0 + $0x34] sm:$0xf0]  ;;  %v1424_v59 = vld [vmem:[%s2879_s0 + $0x130] sm:$0xf]  ;;  %v1604_v63 = vld [vmem:[%s2879_s0 + $0x54] sm:$0xf] }
  0x10   :  { %v1633_v60 = vld [vmem:[%s2879_s0 + $0x134] sm:$0xf0]  ;;  %v1297_v61 = vor.u32 %v1601_v58, %v1296_v57  ;;  %v1314_v0 = vld [vmem:[%s2879_s0 + $0x58] sm:$0xf0]  ;;  %v1638_v2 = vld [vmem:[%s2879_s0 + $0x164] sm:$0xf] }
  0x11   :  { %v1425_v62 = vor.u32 %v1633_v60, %v1424_v59  ;;  %v1317_v1 = vor.u32 %v1604_v63, %v1314_v0  ;;  %v1450_v3 = vld [vmem:[%s2879_s0 + $0x168] sm:$0xf0]  ;;  %v1304_v5 = vld [vmem:[%s2879_s0 + $0x40] sm:$0xf]  ;;  %v1603_v6 = vld [vmem:[%s2879_s0 + $0x44] sm:$0xf0] }
  0x12   :  { %547 = vmatpush.bf16.msra.mxu0 %v1661_v11  ;;  %v1453_v4 = vor.u32 %v1638_v2, %v1450_v3  ;;  %v1432_v7 = vld [vmem:[%s2879_s0 + $0x140] sm:$0xf]  ;;  %v1635_v8 = vld [vmem:[%s2879_s0 + $0x144] sm:$0xf0]  ;;  %v1305_v9 = vor.u32 %v1603_v6, %v1304_v5  ;;  %v1322_v12 = vld [vmem:[%s2879_s0 + $0x68] sm:$0xf0] }
  0x13   :  { %1830 = vmatpush.bf16.msra.mxu2 %v1661_v11  ;;  %v1433_v10 = vor.u32 %v1635_v8, %v1432_v7  ;;  %v1606_v11 = vld [vmem:[%s2879_s0 + $0x64] sm:$0xf]  ;;  %v1605_v17 = vld [vmem:[%s2879_s0 + $0x54] sm:$0xf0]  ;;  %v1608_v23 = vld [vmem:[%s2879_s0 + $0x74] sm:$0xf] }
  0x14   :  { %v1325_v13 = vor.u32 %v1606_v11, %v1322_v12  ;;  %v1330_v24 = vld [vmem:[%s2879_s0 + $0x78] sm:$0xf0]  ;;  %v1466_v27 = vld [vmem:[%s2879_s0 + $0x188] sm:$0xf0]  ;;  %v1320_v28 = vld [vmem:[%s2879_s0 + $0x60] sm:$0xf] }
  0x15   :  { %v1448_v31 = vld [vmem:[%s2879_s0 + $0x160] sm:$0xf]  ;;  %v1610_v35 = vld [vmem:[%s2879_s0 + $0x84] sm:$0xf]  ;;  %v1338_v36 = vld [vmem:[%s2879_s0 + $0x88] sm:$0xf0] }
  0x16   :  { %1563 = vmatmul.msk.bf16.gmra.mxu1 %vm446_vm0, %v1285_v14  ;;  %548 = vmatpush.bf16.msra.mxu0 %v1660_v15  ;;  %v1640_v14 = vld [vmem:[%s2879_s0 + $0x174] sm:$0xf]  ;;  %v1474_v40 = vld [vmem:[%s2879_s0 + $0x198] sm:$0xf0]  ;;  %v1609_v42 = vld [vmem:[%s2879_s0 + $0x74] sm:$0xf0] }
  0x17   :  { %1831 = vmatpush.bf16.msra.mxu2 %v1660_v15  ;;  %1580 = vmatmul.msk.bf16.gmra.mxu3 %vm446_vm0, %v1421_v19  ;;  %v1458_v15 = vld [vmem:[%s2879_s0 + $0x178] sm:$0xf0]  ;;  %v1440_v19 = vld [vmem:[%s2879_s0 + $0x150] sm:$0xf]  ;;  %v1644_v39 = vld [vmem:[%s2879_s0 + $0x194] sm:$0xf] }
  0x18   :  { %v1461_v18 = vor.u32 %v1640_v14, %v1458_v15  ;;  %v1477_v43 = vor.u32 %v1644_v39, %v1474_v40  ;;  %v1456_v45 = vld [vmem:[%s2879_s0 + $0x170] sm:$0xf]  ;;  %v1641_v46 = vld [vmem:[%s2879_s0 + $0x174] sm:$0xf0]  ;;  %v1646_v55 = vld [vmem:[%s2879_s0 + $0x1a4] sm:$0xf] }
  0x19   :  { %v1457_v48 = vor.u32 %v1641_v46, %v1456_v45  ;;  %v1336_v57 = vld [vmem:[%s2879_s0 + $0x80] sm:$0xf]  ;;  %v1611_v58 = vld [vmem:[%s2879_s0 + $0x84] sm:$0xf0]  ;;  %v1614_v6 = vld [vmem:[%s2879_s0 + $0xa4] sm:$0xf] }
  0x1a   :  { %549 = vmatpush.bf16.msra.mxu0 %v1659_v16  ;;  %v1643_v63 = vld [vmem:[%s2879_s0 + $0x184] sm:$0xf0]  ;;  %v1668_v0 = vld [vmem:[%s2881_s3] sm:$0xff]   ;;  %v1354_v7 = vld [vmem:[%s2879_s0 + $0xa8] sm:$0xf0] }
  0x1b   :  { %1832 = vmatpush.bf16.msra.mxu2 %v1659_v16  ;;  %v1312_v16 = vld [vmem:[%s2879_s0 + $0x50] sm:$0xf]  ;;  %v1669_v5 = vunpack.c.l.bf16 %v1668_v0  ;;  %v1616_v39 = vld [vmem:[%s2879_s0 + $0xb4] sm:$0xf]  ;;  %v1362_v40 = vld [vmem:[%s2879_s0 + $0xb8] sm:$0xf0] }
  0x1c   :  { %v1313_v21 = vor.u32 %v1605_v17, %v1312_v16  ;;  %v1811_v46 = vld [vmem:[%s2881_s3 + $0x88] sm:$0xff]  }
  0x1e   :  { %550 = vmatpush.bf16.msra.mxu0 %v1658_v20 }
  0x1f   :  { %1833 = vmatpush.bf16.msra.mxu2 %v1658_v20  ;;  %v1637_v20 = vld [vmem:[%s2879_s0 + $0x154] sm:$0xf0] }
  0x20   :  { %v1441_v22 = vor.u32 %v1637_v20, %v1440_v19 }
  0x21   :  { %551 = vmatmul.bf16.vlgmr.msra.gmra.mxu0 %v1273_v25  ;;  %v1333_v25 = vor.u32 %v1608_v23, %v1330_v24  ;;  %v1344_v23 = vld [vmem:[%s2879_s0 + $0x90] sm:$0xf]  ;;  %v1613_v24 = vld [vmem:[%s2879_s0 + $0x94] sm:$0xf0] }
  0x22   :  { %631 = vmatmul.bf16.vlgmr.msra.gmra.mxu2 %v1401_v26  ;;  %v1642_v26 = vld [vmem:[%s2879_s0 + $0x184] sm:$0xf] }
  0x23   :  { %v1469_v30 = vor.u32 %v1642_v26, %v1466_v27 }
  0x26   :  { %1564 = vmatmul.msk.bf16.gmra.mxu1 %vm446_vm0, %v1293_v29  ;;  %v1607_v29 = vld [vmem:[%s2879_s0 + $0x64] sm:$0xf0] }
  0x27   :  { %1581 = vmatmul.msk.bf16.gmra.mxu3 %vm446_vm0, %v1429_v32  ;;  %v1639_v32 = vld [vmem:[%s2879_s0 + $0x164] sm:$0xf0]  ;;  %v1321_v33 = vor.u32 %v1607_v29, %v1320_v28  ;;  %v1472_v28 = vld [vmem:[%s2879_s0 + $0x190] sm:$0xf]  ;;  %v1645_v29 = vld [vmem:[%s2879_s0 + $0x194] sm:$0xf0] }
  0x28   :  { %v1449_v34 = vor.u32 %v1639_v32, %v1448_v31 }
  0x31   :  { %556 = vmatmul.bf16.gmra.mxu0 %v1281_v37  ;;  %v1341_v37 = vor.u32 %v1610_v35, %v1338_v36  ;;  %v1473_v35 = vor.u32 %v1645_v29, %v1472_v28 }
  0x32   :  { %636 = vmatmul.bf16.gmra.mxu2 %v1409_v38 }
  0x36   :  { %1565 = vmatmul.msk.bf16.gmra.mxu1 %vm446_vm0, %v1301_v41  ;;  %v1328_v41 = vld [vmem:[%s2879_s0 + $0x70] sm:$0xf] }
  0x37   :  { %1582 = vmatmul.msk.bf16.gmra.mxu3 %vm446_vm0, %v1437_v44  ;;  %v1329_v47 = vor.u32 %v1609_v42, %v1328_v41 }
  0x41   :  { %561 = vmatmul.bf16.gmra.mxu0 %v1289_v49  ;;  %v1612_v49 = vld [vmem:[%s2879_s0 + $0x94] sm:$0xf] }
  0x42   :  { %641 = vmatmul.bf16.gmra.mxu2 %v1417_v50  ;;  %v1346_v50 = vld [vmem:[%s2879_s0 + $0x98] sm:$0xf0] }
  0x43   :  { %v1349_v52 = vor.u32 %v1612_v49, %v1346_v50  ;;  %v1737_v50 = vunpack.c.l.bf16 %v1811_v46 }
  0x46   :  { %1566 = vmatmul.msk.bf16.gmra.mxu1 %vm446_vm0, %v1309_v53 }
  0x47   :  { %1583 = vmatmul.msk.bf16.gmra.mxu3 %vm446_vm0, %v1445_v56  ;;  %v1482_v56 = vld [vmem:[%s2879_s0 + $0x1a8] sm:$0xf0] }
  0x48   :  { %v1485_v59 = vor.u32 %v1646_v55, %v1482_v56 }
  0x51   :  { %566 = vmatmul.bf16.gmra.mxu0 %v1297_v61  ;;  %v2141_v61 = vld [vmem:[%s2880_s2] ss:$0 sm:$0xff] }
  0x52   :  { %646 = vmatmul.bf16.gmra.mxu2 %v1425_v62  ;;  %v1464_v62 = vld [vmem:[%s2879_s0 + $0x180] sm:$0xf] }
  0x53   :  { %v1465_v3 = vor.u32 %v1643_v63, %v1464_v62  ;;  %v1650_v62 = vld [vmem:[%s2879_s0 + $0x1c4] sm:$0xf]  ;;  %v1498_v63 = vld [vmem:[%s2879_s0 + $0x1c8] sm:$0xf0] }
  0x56   :  { %1567 = vmatmul.msk.bf16.gmra.mxu1 %vm446_vm0, %v1317_v1  ;;  %v1337_v1 = vor.u32 %v1611_v58, %v1336_v57 }
  0x57   :  { %1584 = vmatmul.msk.bf16.gmra.mxu3 %vm446_vm0, %v1453_v4 }
  0x61   :  { %571 = vmatmul.bf16.gmra.mxu0 %v1305_v9 }
  0x62   :  { %651 = vmatmul.bf16.gmra.mxu2 %v1433_v10  ;;  %v1357_v10 = vor.u32 %v1614_v6, %v1354_v7  ;;  %v1796_v7 = vld [vmem:[%s2881_s3 + $0x10] sm:$0xff]  }
  0x66   :  { %1568 = vmatmul.msk.bf16.gmra.mxu1 %vm446_vm0, %v1325_v13 }
  0x67   :  { %1585 = vmatmul.msk.bf16.gmra.mxu3 %vm446_vm0, %v1461_v18  ;;  %v1670_v18 = vunpack.c.h.bf16 %v1668_v0 }
  0x71   :  { %576 = vmatmul.bf16.gmra.mxu0 %v1313_v21  ;;  %v1648_v21 = vld [vmem:[%s2879_s0 + $0x1b4] sm:$0xf] }
  0x72   :  { %656 = vmatmul.bf16.gmra.mxu2 %v1441_v22  ;;  %v1490_v22 = vld [vmem:[%s2879_s0 + $0x1b8] sm:$0xf0] }
  0x76   :  { %1569 = vmatmul.msk.bf16.gmra.mxu1 %vm446_vm0, %v1333_v25  ;;  %v1493_v25 = vor.u32 %v1648_v21, %v1490_v22  ;;  %v1677_v22 = vunpack.c.l.bf16 %v1796_v7 }
  0x77   :  { %1586 = vmatmul.msk.bf16.gmra.mxu3 %vm446_vm0, %v1469_v30  ;;  %v1795_v30 = vld [vmem:[%s2881_s3 + $0x8] sm:$0xff]  }
  0x78   :  { %v1674_v56 = vunpack.c.h.bf16 %v1795_v30 }
  0x81   :  { %581 = vmatmul.bf16.gmra.mxu0 %v1321_v33  ;;  %v1345_v33 = vor.u32 %v1613_v24, %v1344_v23  ;;  %v1618_v23 = vld [vmem:[%s2879_s0 + $0xc4] sm:$0xf]  ;;  %v1370_v24 = vld [vmem:[%s2879_s0 + $0xc8] sm:$0xf0] }
  0x82   :  { %661 = vmatmul.bf16.gmra.mxu2 %v1449_v34 }
  0x83   :  { %v721_v38 = vpop.f32.mrf.mxu1 }
  0x86   :  { %1570 = vmatmul.msk.bf16.gmra.mxu1 %vm446_vm0, %v1341_v37 }
  0x87   :  { %1587 = vmatmul.msk.bf16.gmra.mxu3 %vm446_vm0, %v1477_v43  ;;  %v1365_v43 = vor.u32 %v1616_v39, %v1362_v40 }
  0x8a   :  { %v2117_v51 = vpop.f32.mrf.mxu3 }
  0x8b   :  { %v723_v44 = vpop.f32.mrf.mxu1 }
  0x91   :  { %586 = vmatmul.bf16.gmra.mxu0 %v1329_v47 }
  0x92   :  { %666 = vmatmul.bf16.gmra.mxu2 %v1457_v48  ;;  %v2122_v54 = vpop.f32.mrf.mxu3 }
  0x93   :  { %v2119_v53 = vpop.f32.mrf.mxu1 }
  0x96   :  { %1571 = vmatmul.msk.bf16.gmra.mxu1 %vm446_vm0, %v1349_v52 }
  0x97   :  { %1588 = vmatmul.msk.bf16.gmra.mxu3 %vm446_vm0, %v1485_v59 }
  0x9a   :  { %v2160_v8 = vpop.f32.mrf.mxu3 }
  0x9b   :  { %v2136_v60 = vpop.f32.mrf.mxu1 }
  0x9e   :  { %v552_v2 = vpop.f32.mrf.mxu0 }
  0x9f   :  { %v553_v4 = vadd.f32 %v2141_v61, %v552_v2  ;;  %v1501_v2 = vor.u32 %v1650_v62, %v1498_v63  ;;  %v1797_v62 = vld [vmem:[%s2881_s3 + $0x18] sm:$0xff]  }
  0xa1   :  { %v722_v9 = vadd.f32 %v721_v38, %v553_v4  ;;  %591 = vmatmul.bf16.gmra.mxu0 %v1337_v1  ;;  %v1673_v38 = vunpack.c.l.bf16 %v1795_v30  ;;  %v1615_v1 = vld [vmem:[%s2879_s0 + $0xa4] sm:$0xf0]  ;;  %v1480_v4 = vld [vmem:[%s2879_s0 + $0x1a0] sm:$0xf]  ;;  %v1373_v30 = vor.u32 %v1618_v23, %v1370_v24 }
  0xa2   :  { %671 = vmatmul.bf16.gmra.mxu2 %v1465_v3  ;;  %v2168_v19 = vpop.f32.mrf.mxu3 }
  0xa3   :  { %v1009_v11 = vadd.f32 %v1669_v5, %v722_v9  ;;  %v2162_v12 = vpop.f32.mrf.mxu1  ;;  %v1647_v5 = vld [vmem:[%s2879_s0 + $0x1a4] sm:$0xf0] }
  0xa5   :  { %v1073_v13 = vmax.f32 %v1009_v11, 0.0  ;;  %v2164_v14 = vpop.f32.mrf.mxu2 }
  0xa6   :  { %1572 = vmatmul.msk.bf16.gmra.mxu1 %vm446_vm0, %v1357_v10  ;;  %v554_v15 = vpop.f32.mrf.mxu0 }
  0xa7   :  { %v1137_v16 = vpack.c.bf16 %v1073_v13, %v1073_v13  ;;  %v555_v17 = vadd.f32 %v2141_v61, %v554_v15  ;;  %1589 = vmatmul.msk.bf16.gmra.mxu3 %vm446_vm0, %v1493_v25 }
  0xa9   :  { %1202 = vst.msk [vmem:[%s2882_s4] sm:$0xf] %vm1201_vm1, %v1137_v16  ;;  %v724_v20 = vadd.f32 %v723_v44, %v555_v17  ;;  %v1738_v16 = vunpack.c.h.bf16 %v1811_v46 }
  0xaa   :  { %v2207_v41 = vpop.f32.mrf.mxu3 }
  0xab   :  { %v1010_v26 = vadd.f32 %v1670_v18, %v724_v20  ;;  %v2186_v27 = vpop.f32.mrf.mxu1  ;;  %v1481_v18 = vor.u32 %v1647_v5, %v1480_v4 }
  0xad   :  { %v1074_v31 = vmax.f32 %v1010_v26, 0.0  ;;  %v2198_v32 = vpop.f32.mrf.mxu2 }
  0xae   :  { %v557_v34 = vpop.f32.mrf.mxu0 }
  0xaf   :  { %v1138_v36 = vpack.c.bf16 %v1074_v31, %v1074_v31  ;;  %v558_v37 = vadd.f32 %v2141_v61, %v557_v34  ;;  %v1812_v34 = vld [vmem:[%s2881_s3 + $0x90] sm:$0xff]  }
  0xb0   :  { %v1741_v39 = vunpack.c.l.bf16 %v1812_v34 }
  0xb1   :  { %1203 = vst.msk [vmem:[%s2882_s4 + $0x4] sm:$0xf] %vm1201_vm1, %v1138_v36  ;;  %v727_v42 = vadd.f32 %v2119_v53, %v558_v37  ;;  %596 = vmatmul.bf16.gmra.mxu0 %v1345_v33 }
  0xb2   :  { %676 = vmatmul.bf16.gmra.mxu2 %v1473_v35  ;;  %v2222_v57 = vpop.f32.mrf.mxu3 }
  0xb3   :  { %v1011_v44 = vadd.f32 %v1673_v38, %v727_v42  ;;  %v2214_v45 = vpop.f32.mrf.mxu1 }
  0xb5   :  { %v1075_v47 = vmax.f32 %v1011_v44, 0.0  ;;  %v637_v48 = vpop.f32.mrf.mxu2 }
  0xb6   :  { %v638_v49 = vadd.f32 %v2141_v61, %v637_v48  ;;  %1573 = vmatmul.msk.bf16.gmra.mxu1 %vm446_vm0, %v1365_v43  ;;  %v559_v52 = vpop.f32.mrf.mxu0  ;;  %v1678_v43 = vunpack.c.h.bf16 %v1796_v7  ;;  %v1652_v48 = vld [vmem:[%s2879_s0 + $0x1d4] sm:$0xf] }
  0xb7   :  { %v1139_v55 = vpack.c.bf16 %v1075_v47, %v1075_v47  ;;  %v560_v53 = vadd.f32 %v2141_v61, %v559_v52  ;;  %1590 = vmatmul.msk.bf16.gmra.mxu3 %vm446_vm0, %v1501_v2  ;;  %v1617_v52 = vld [vmem:[%s2879_s0 + $0xb4] sm:$0xf0] }
  0xb8   :  { %v807_v58 = vadd.f32 %v2117_v51, %v638_v49  ;;  %v1352_v51 = vld [vmem:[%s2879_s0 + $0xa0] sm:$0xf]  ;;  %v1506_v49 = vld [vmem:[%s2879_s0 + $0x1d8] sm:$0xf0] }
  0xb9   :  { %1204 = vst.msk [vmem:[%s2882_s4 + $0x8] sm:$0xf] %vm1201_vm1, %v1139_v55  ;;  %v729_v59 = vadd.f32 %v2136_v60, %v560_v53  ;;  %v1353_v11 = vor.u32 %v1615_v1, %v1352_v51  ;;  %v1509_v55 = vor.u32 %v1652_v48, %v1506_v49  ;;  %v1798_v48 = vld [vmem:[%s2881_s3 + $0x20] sm:$0xff]  }
  0xba   :  { %v1043_v0 = vadd.f32 %v1737_v50, %v807_v58  ;;  %v2262_v25 = vpop.f32.mrf.mxu3  ;;  %v1649_v58 = vld [vmem:[%s2879_s0 + $0x1b4] sm:$0xf0] }
  0xbb   :  { %v1012_v3 = vadd.f32 %v1674_v56, %v729_v59  ;;  %v2242_v60 = vpop.f32.mrf.mxu1  ;;  %v1488_v56 = vld [vmem:[%s2879_s0 + $0x1b0] sm:$0xf] }
  0xbc   :  { %v1107_v6 = vmax.f32 %v1043_v0, 0.0  ;;  %v1489_v5 = vor.u32 %v1649_v58, %v1488_v56 }
  0xbd   :  { %v1076_v9 = vmax.f32 %v1012_v3, 0.0  ;;  %v639_v10 = vpop.f32.mrf.mxu2  ;;  %v1742_v3 = vunpack.c.h.bf16 %v1812_v34  ;;  %v1682_v34 = vunpack.c.h.bf16 %v1797_v62 }
  0xbe   :  { %v1171_v13 = vpack.c.bf16 %v1107_v6, %v1107_v6  ;;  %v640_v15 = vadd.f32 %v2141_v61, %v639_v10  ;;  %v562_v17 = vpop.f32.mrf.mxu0  ;;  %v1620_v10 = vld [vmem:[%s2879_s0 + $0xd4] sm:$0xf] }
  0xbf   :  { %v1140_v20 = vpack.c.bf16 %v1076_v9, %v1076_v9  ;;  %v563_v21 = vadd.f32 %v2141_v61, %v562_v17  ;;  %v1681_v9 = vunpack.c.l.bf16 %v1797_v62 }
  0xc0   :  { %1236 = vst.msk [vmem:[%s2882_s4 + $0x88] sm:$0xf] %vm1201_vm1, %v1171_v13  ;;  %v809_v26 = vadd.f32 %v2122_v54, %v640_v15 }
  0xc1   :  { %1205 = vst.msk [vmem:[%s2882_s4 + $0xc] sm:$0xf] %vm1201_vm1, %v1140_v20  ;;  %v732_v28 = vadd.f32 %v2162_v12, %v563_v21  ;;  %601 = vmatmul.bf16.gmra.mxu0 %v1353_v11  ;;  %v1378_v11 = vld [vmem:[%s2879_s0 + $0xd8] sm:$0xf0] }
  0xc2   :  { %v1044_v29 = vadd.f32 %v1738_v16, %v809_v26  ;;  %681 = vmatmul.bf16.gmra.mxu2 %v1481_v18  ;;  %v2282_v44 = vpop.f32.mrf.mxu3  ;;  %v1381_v18 = vor.u32 %v1620_v10, %v1378_v11 }
  0xc3   :  { %v1013_v31 = vadd.f32 %v1677_v22, %v732_v28  ;;  %v2274_v33 = vpop.f32.mrf.mxu1  ;;  %v1813_v22 = vld [vmem:[%s2881_s3 + $0x98] sm:$0xff]  }
  0xc4   :  { %v1108_v35 = vmax.f32 %v1044_v29, 0.0  ;;  %v1745_v29 = vunpack.c.l.bf16 %v1813_v22 }
  0xc5   :  { %v1077_v54 = vmax.f32 %v1013_v31, 0.0  ;;  %v642_v36 = vpop.f32.mrf.mxu2 }
  0xc6   :  { %v1172_v37 = vpack.c.bf16 %v1108_v35, %v1108_v35  ;;  %v643_v38 = vadd.f32 %v2141_v61, %v642_v36  ;;  %1574 = vmatmul.msk.bf16.gmra.mxu1 %vm446_vm0, %v1373_v30  ;;  %v564_v12 = vpop.f32.mrf.mxu0 }
  0xc7   :  { %v1141_v40 = vpack.c.bf16 %v1077_v54, %v1077_v54  ;;  %v565_v42 = vadd.f32 %v2141_v61, %v564_v12  ;;  %1591 = vmatmul.msk.bf16.gmra.mxu3 %vm446_vm0, %v1509_v55  ;;  %v1619_v12 = vld [vmem:[%s2879_s0 + $0xc4] sm:$0xf0] }
  0xc8   :  { %1237 = vst.msk [vmem:[%s2882_s4 + $0x8c] sm:$0xf] %vm1201_vm1, %v1172_v37  ;;  %v812_v46 = vadd.f32 %v2160_v8, %v643_v38  ;;  %v1360_v8 = vld [vmem:[%s2879_s0 + $0xb0] sm:$0xf]  ;;  %v1654_v37 = vld [vmem:[%s2879_s0 + $0x1e4] sm:$0xf] }
  0xc9   :  { %1206 = vst.msk [vmem:[%s2882_s4 + $0x10] sm:$0xf] %vm1201_vm1, %v1141_v40  ;;  %v734_v47 = vadd.f32 %v2186_v27, %v565_v42  ;;  %v1361_v51 = vor.u32 %v1617_v52, %v1360_v8  ;;  %v1514_v38 = vld [vmem:[%s2879_s0 + $0x1e8] sm:$0xf0] }
  0xca   :  { %v1045_v50 = vadd.f32 %v1741_v39, %v812_v46  ;;  %v2326_v13 = vpop.f32.mrf.mxu3  ;;  %v1517_v40 = vor.u32 %v1654_v37, %v1514_v38  ;;  %v1651_v46 = vld [vmem:[%s2879_s0 + $0x1c4] sm:$0xf0] }
  0xcb   :  { %v1014_v53 = vadd.f32 %v1678_v43, %v734_v47  ;;  %v2306_v27 = vpop.f32.mrf.mxu1  ;;  %v1496_v43 = vld [vmem:[%s2879_s0 + $0x1c0] sm:$0xf]  ;;  %v1799_v37 = vld [vmem:[%s2881_s3 + $0x28] sm:$0xff]  }
  0xcc   :  { %v1109_v59 = vmax.f32 %v1045_v50, 0.0  ;;  %v1497_v58 = vor.u32 %v1651_v46, %v1496_v43 }
  0xcd   :  { %v1078_v63 = vmax.f32 %v1014_v53, 0.0  ;;  %v644_v0 = vpop.f32.mrf.mxu2  ;;  %v1746_v53 = vunpack.c.h.bf16 %v1813_v22  ;;  %v1686_v22 = vunpack.c.h.bf16 %v1798_v48 }
  0xce   :  { %v1173_v1 = vpack.c.bf16 %v1109_v59, %v1109_v59  ;;  %v645_v2 = vadd.f32 %v2141_v61, %v644_v0  ;;  %v567_v4 = vpop.f32.mrf.mxu0  ;;  %v1622_v0 = vld [vmem:[%s2879_s0 + $0xe4] sm:$0xf] }
  0xcf   :  { %v1142_v6 = vpack.c.bf16 %v1078_v63, %v1078_v63  ;;  %v568_v7 = vadd.f32 %v2141_v61, %v567_v4  ;;  %v1685_v63 = vunpack.c.l.bf16 %v1798_v48 }
  0xd0   :  { %1238 = vst.msk [vmem:[%s2882_s4 + $0x90] sm:$0xf] %vm1201_vm1, %v1173_v1  ;;  %v814_v15 = vadd.f32 %v2168_v19, %v645_v2 }
  0xd1   :  { %1207 = vst.msk [vmem:[%s2882_s4 + $0x14] sm:$0xf] %vm1201_vm1, %v1142_v6  ;;  %v737_v16 = vadd.f32 %v2214_v45, %v568_v7  ;;  %606 = vmatmul.bf16.gmra.mxu0 %v1361_v51  ;;  %v1386_v51 = vld [vmem:[%s2879_s0 + $0xe8] sm:$0xf0] }
  0xd2   :  { %v1046_v17 = vadd.f32 %v1742_v3, %v814_v15  ;;  %686 = vmatmul.bf16.gmra.mxu2 %v1489_v5  ;;  %v2346_v35 = vpop.f32.mrf.mxu3  ;;  %v1389_v5 = vor.u32 %v1622_v0, %v1386_v51 }
  0xd3   :  { %v1015_v20 = vadd.f32 %v1681_v9, %v737_v16  ;;  %v2338_v21 = vpop.f32.mrf.mxu1 }
  0xd4   :  { %v1110_v23 = vmax.f32 %v1046_v17, 0.0 }
  0xd5   :  { %v1079_v19 = vmax.f32 %v1015_v20, 0.0  ;;  %v647_v24 = vpop.f32.mrf.mxu2 }
  0xd6   :  { %v1174_v26 = vpack.c.bf16 %v1110_v23, %v1110_v23  ;;  %v648_v28 = vadd.f32 %v2141_v61, %v647_v24  ;;  %1575 = vmatmul.msk.bf16.gmra.mxu1 %vm446_vm0, %v1381_v18  ;;  %v569_v45 = vpop.f32.mrf.mxu0  ;;  %v1656_v24 = vld [vmem:[%s2879_s0 + $0x1f4] sm:$0xf] }
  0xd7   :  { %v1143_v30 = vpack.c.bf16 %v1079_v19, %v1079_v19  ;;  %v570_v31 = vadd.f32 %v2141_v61, %v569_v45  ;;  %1592 = vmatmul.msk.bf16.gmra.mxu3 %vm446_vm0, %v1517_v40 }
  0xd8   :  { %1239 = vst.msk [vmem:[%s2882_s4 + $0x94] sm:$0xf] %vm1201_vm1, %v1174_v26  ;;  %v817_v54 = vadd.f32 %v2207_v41, %v648_v28  ;;  %v1368_v41 = vld [vmem:[%s2879_s0 + $0xc0] sm:$0xf]  ;;  %v1522_v26 = vld [vmem:[%s2879_s0 + $0x1f8] sm:$0xf0] }
  0xd9   :  { %1208 = vst.msk [vmem:[%s2882_s4 + $0x18] sm:$0xf] %vm1201_vm1, %v1143_v30  ;;  %v739_v36 = vadd.f32 %v2242_v60, %v570_v31  ;;  %v1369_v8 = vor.u32 %v1619_v12, %v1368_v41  ;;  %v1525_v45 = vor.u32 %v1656_v24, %v1522_v26  ;;  %v1504_v31 = vld [vmem:[%s2879_s0 + $0x1d0] sm:$0xf] }
  0xda   :  { %v1047_v39 = vadd.f32 %v1745_v29, %v817_v54  ;;  %v2400_v3 = vpop.f32.mrf.mxu3  ;;  %v1621_v29 = vld [vmem:[%s2879_s0 + $0xd4] sm:$0xf0] }
  0xdb   :  { %v1016_v42 = vadd.f32 %v1682_v34, %v739_v36  ;;  %v2370_v60 = vpop.f32.mrf.mxu1  ;;  %v1653_v34 = vld [vmem:[%s2879_s0 + $0x1d4] sm:$0xf0] }
  0xdc   :  { %v1111_v47 = vmax.f32 %v1047_v39, 0.0  ;;  %v1505_v46 = vor.u32 %v1653_v34, %v1504_v31  ;;  %v1626_v34 = vld [vmem:[%s2879_s0 + $0x104] sm:$0xf] }
  0xdd   :  { %v1080_v49 = vmax.f32 %v1016_v42, 0.0  ;;  %v649_v50 = vpop.f32.mrf.mxu2 }
  0xde   :  { %v1175_v52 = vpack.c.bf16 %v1111_v47, %v1111_v47  ;;  %v650_v55 = vadd.f32 %v2141_v61, %v649_v50  ;;  %v572_v56 = vpop.f32.mrf.mxu0  ;;  %v1624_v50 = vld [vmem:[%s2879_s0 + $0xf4] sm:$0xf] }
  0xdf   :  { %v1144_v59 = vpack.c.bf16 %v1080_v49, %v1080_v49  ;;  %v573_v62 = vadd.f32 %v2141_v61, %v572_v56  ;;  %v1689_v49 = vunpack.c.l.bf16 %v1799_v37 }
  0xe0   :  { %1240 = vst.msk [vmem:[%s2882_s4 + $0x98] sm:$0xf] %vm1201_vm1, %v1175_v52  ;;  %v819_v1 = vadd.f32 %v2222_v57, %v650_v55  ;;  %v1814_v57 = vld [vmem:[%s2881_s3 + $0xa0] sm:$0xff]  }
  0xe1   :  { %1209 = vst.msk [vmem:[%s2882_s4 + $0x1c] sm:$0xf] %vm1201_vm1, %v1144_v59  ;;  %v742_v2 = vadd.f32 %v2274_v33, %v573_v62  ;;  %611 = vmatmul.bf16.gmra.mxu0 %v1369_v8  ;;  %v1749_v33 = vunpack.c.l.bf16 %v1814_v57  ;;  %v1750_v42 = vunpack.c.h.bf16 %v1814_v57  ;;  %v1394_v8 = vld [vmem:[%s2879_s0 + $0xf8] sm:$0xf0]  ;;  %v1815_v62 = vld [vmem:[%s2881_s3 + $0xa8] sm:$0xff]   ;;  %v1690_v57 = vunpack.c.h.bf16 %v1799_v37 }
  0xe2   :  { %v1048_v4 = vadd.f32 %v1746_v53, %v819_v1  ;;  %691 = vmatmul.bf16.gmra.mxu2 %v1497_v58  ;;  %v2440_v54 = vpop.f32.mrf.mxu3  ;;  %v1397_v56 = vor.u32 %v1624_v50, %v1394_v8 }
  0xe3   :  { %v1017_v6 = vadd.f32 %v1685_v63, %v742_v2  ;;  %v2402_v7 = vpop.f32.mrf.mxu1 }
  0xe4   :  { %v1112_v9 = vmax.f32 %v1048_v4, 0.0 }
  0xe5   :  { %v1081_v10 = vmax.f32 %v1017_v6, 0.0  ;;  %v652_v11 = vpop.f32.mrf.mxu2 }
  0xe6   :  { %v1176_v15 = vpack.c.bf16 %v1112_v9, %v1112_v9  ;;  %v653_v16 = vadd.f32 %v2141_v61, %v652_v11  ;;  %1576 = vmatmul.msk.bf16.gmra.mxu1 %vm446_vm0, %v1389_v5  ;;  %v574_v17 = vpop.f32.mrf.mxu0 }
  0xe7   :  { %v1145_v18 = vpack.c.bf16 %v1081_v10, %v1081_v10  ;;  %v575_v20 = vadd.f32 %v2141_v61, %v574_v17  ;;  %1593 = vmatmul.msk.bf16.gmra.mxu3 %vm446_vm0, %v1525_v45 }
  0xe8   :  { %1241 = vst.msk [vmem:[%s2882_s4 + $0x9c] sm:$0xf] %vm1201_vm1, %v1176_v15  ;;  %v822_v23 = vadd.f32 %v2262_v25, %v653_v16  ;;  %v1376_v25 = vld [vmem:[%s2879_s0 + $0xd0] sm:$0xf]  ;;  %v1384_v15 = vld [vmem:[%s2879_s0 + $0xe0] sm:$0xf] }
  0xe9   :  { %1210 = vst.msk [vmem:[%s2882_s4 + $0x20] sm:$0xf] %vm1201_vm1, %v1145_v18  ;;  %v744_v19 = vadd.f32 %v2306_v27, %v575_v20  ;;  %v1377_v41 = vor.u32 %v1621_v29, %v1376_v25  ;;  %v1623_v16 = vld [vmem:[%s2879_s0 + $0xe4] sm:$0xf0]  ;;  %v1800_v20 = vld [vmem:[%s2881_s3 + $0x30] sm:$0xff]  }
  0xea   :  { %v1049_v28 = vadd.f32 %v1749_v33, %v822_v23  ;;  %v2469_v51 = vpop.f32.mrf.mxu3  ;;  %v1693_v31 = vunpack.c.l.bf16 %v1800_v20 }
  0xeb   :  { %v1018_v30 = vadd.f32 %v1686_v22, %v744_v19  ;;  %v2432_v27 = vpop.f32.mrf.mxu1  ;;  %v1385_v19 = vor.u32 %v1623_v16, %v1384_v15 }
  0xec   :  { %v1113_v36 = vmax.f32 %v1049_v28, 0.0  ;;  %v1754_v28 = vunpack.c.h.bf16 %v1815_v62 }
  0xed   :  { %v1082_v38 = vmax.f32 %v1018_v30, 0.0  ;;  %v654_v39 = vpop.f32.mrf.mxu2 }
  0xee   :  { %v1177_v12 = vpack.c.bf16 %v1113_v36, %v1113_v36  ;;  %v655_v40 = vadd.f32 %v2141_v61, %v654_v39  ;;  %v577_v43 = vpop.f32.mrf.mxu0  ;;  %v1402_v36 = vld [vmem:[%s2879_s0 + $0x108] sm:$0xf0] }
  0xef   :  { %v1146_v47 = vpack.c.bf16 %v1082_v38, %v1082_v38  ;;  %v578_v48 = vadd.f32 %v2141_v61, %v577_v43  ;;  %v1816_v43 = vld [vmem:[%s2881_s3 + $0xb0] sm:$0xff]  }
  0xf0   :  { %1242 = vst.msk [vmem:[%s2882_s4 + $0xa0] sm:$0xf] %vm1201_vm1, %v1177_v12  ;;  %v824_v52 = vadd.f32 %v2282_v44, %v655_v40  ;;  %v1405_v12 = vor.u32 %v1626_v34, %v1402_v36  ;;  %v1757_v50 = vunpack.c.l.bf16 %v1816_v43 }
  0xf1   :  { %1211 = vst.msk [vmem:[%s2882_s4 + $0x24] sm:$0xf] %vm1201_vm1, %v1146_v47  ;;  %v747_v55 = vadd.f32 %v2338_v21, %v578_v48  ;;  %616 = vmatmul.bf16.gmra.mxu0 %v1377_v41  ;;  %v1753_v21 = vunpack.c.l.bf16 %v1815_v62 }
  0xf2   :  { %v1050_v53 = vadd.f32 %v1750_v42, %v824_v52  ;;  %696 = vmatmul.bf16.gmra.mxu2 %v1505_v46  ;;  %v2509_v37 = vpop.f32.mrf.mxu3 }
  0xf3   :  { %v1019_v58 = vadd.f32 %v1689_v49, %v747_v55  ;;  %v2464_v59 = vpop.f32.mrf.mxu1  ;;  %v1694_v55 = vunpack.c.h.bf16 %v1800_v20 }
  0xf4   :  { %v1114_v63 = vmax.f32 %v1050_v53, 0.0 }
  0xf5   :  { %v1083_v44 = vmax.f32 %v1019_v58, 0.0  ;;  %v657_v0 = vpop.f32.mrf.mxu2 }
  0xf6   :  { %v1178_v1 = vpack.c.bf16 %v1114_v63, %v1114_v63  ;;  %v658_v2 = vadd.f32 %v2141_v61, %v657_v0  ;;  %1577 = vmatmul.msk.bf16.gmra.mxu1 %vm446_vm0, %v1397_v56  ;;  %v579_v4 = vpop.f32.mrf.mxu0  ;;  %v1392_v63 = vld [vmem:[%s2879_s0 + $0xf0] sm:$0xf] }
  0xf7   :  { %v1147_v5 = vpack.c.bf16 %v1083_v44, %v1083_v44  ;;  %v580_v6 = vadd.f32 %v2141_v61, %v579_v4  ;;  %v1625_v44 = vld [vmem:[%s2879_s0 + $0xf4] sm:$0xf0] }
  0xf8   :  { %1243 = vst.msk [vmem:[%s2882_s4 + $0xa4] sm:$0xf] %vm1201_vm1, %v1178_v1  ;;  %v827_v9 = vadd.f32 %v2326_v13, %v658_v2  ;;  %v1512_v13 = vld [vmem:[%s2879_s0 + $0x1e0] sm:$0xf]  ;;  %v1520_v1 = vld [vmem:[%s2879_s0 + $0x1f0] sm:$0xf] }
  0xf9   :  { %1212 = vst.msk [vmem:[%s2882_s4 + $0x28] sm:$0xf] %vm1201_vm1, %v1147_v5  ;;  %v749_v10 = vadd.f32 %v2370_v60, %v580_v6  ;;  %v1655_v60 = vld [vmem:[%s2879_s0 + $0x1e4] sm:$0xf0]  ;;  %v1393_v6 = vor.u32 %v1625_v44, %v1392_v63  ;;  %v1818_v63 = vld [vmem:[%s2881_s3 + $0xc0] sm:$0xff]  }
  0xfa   :  { %v1051_v11 = vadd.f32 %v1753_v21, %v827_v9  ;;  %v1513_v29 = vor.u32 %v1655_v60, %v1512_v13  ;;  %v2539_v58 = vpop.f32.mrf.mxu3  ;;  %v1801_v21 = vld [vmem:[%s2881_s3 + $0x38] sm:$0xff]  }
  0xfb   :  { %v1020_v33 = vadd.f32 %v1690_v57, %v749_v10  ;;  %v2490_v17 = vpop.f32.mrf.mxu1  ;;  %v1758_v10 = vunpack.c.h.bf16 %v1816_v43  ;;  %v1697_v13 = vunpack.c.l.bf16 %v1801_v21  ;;  %v1698_v34 = vunpack.c.h.bf16 %v1801_v21  ;;  %v1802_v43 = vld [vmem:[%s2881_s3 + $0x40] sm:$0xff]  }
  0xfc   :  { %v1115_v18 = vmax.f32 %v1051_v11, 0.0 }
  0xfd   :  { %v1084_v22 = vmax.f32 %v1020_v33, 0.0  ;;  %v659_v23 = vpop.f32.mrf.mxu2 }
  0xfe   :  { %v1179_v24 = vpack.c.bf16 %v1115_v18, %v1115_v18  ;;  %v660_v26 = vadd.f32 %v2141_v61, %v659_v23  ;;  %v582_v25 = vpop.f32.mrf.mxu0 }
  0xff   :  { %v1148_v45 = vpack.c.bf16 %v1084_v22, %v1084_v22  ;;  %v583_v30 = vadd.f32 %v2141_v61, %v582_v25 }
 0x100   :  { %1244 = vst.msk [vmem:[%s2882_s4 + $0xa8] sm:$0xf] %vm1201_vm1, %v1179_v24  ;;  %v829_v38 = vadd.f32 %v2346_v35, %v660_v26 }
 0x101   :  { %1213 = vst.msk [vmem:[%s2882_s4 + $0x2c] sm:$0xf] %vm1201_vm1, %v1148_v45  ;;  %v752_v39 = vadd.f32 %v2402_v7, %v583_v30  ;;  %621 = vmatmul.bf16.gmra.mxu0 %v1385_v19  ;;  %v1817_v19 = vld [vmem:[%s2881_s3 + $0xb8] sm:$0xff]  }
 0x102   :  { %v1052_v41 = vadd.f32 %v1754_v28, %v829_v38  ;;  %701 = vmatmul.bf16.gmra.mxu2 %v1513_v29  ;;  %v2575_v24 = vpop.f32.mrf.mxu3  ;;  %v1761_v45 = vunpack.c.l.bf16 %v1817_v19 }
 0x103   :  { %v1021_v40 = vadd.f32 %v1693_v31, %v752_v39  ;;  %v2521_v42 = vpop.f32.mrf.mxu1 }
 0x104   :  { %v1116_v46 = vmax.f32 %v1052_v41, 0.0 }
 0x105   :  { %v1085_v35 = vmax.f32 %v1021_v40, 0.0  ;;  %v662_v47 = vpop.f32.mrf.mxu2 }
 0x106   :  { %v1180_v48 = vpack.c.bf16 %v1116_v46, %v1116_v46  ;;  %v663_v49 = vadd.f32 %v2141_v61, %v662_v47  ;;  %1578 = vmatmul.msk.bf16.gmra.mxu1 %vm446_vm0, %v1405_v12  ;;  %v584_v7 = vpop.f32.mrf.mxu0 }
 0x107   :  { %v1149_v8 = vpack.c.bf16 %v1085_v35, %v1085_v35  ;;  %v585_v52 = vadd.f32 %v2141_v61, %v584_v7 }
 0x108   :  { %1245 = vst.msk [vmem:[%s2882_s4 + $0xac] sm:$0xf] %vm1201_vm1, %v1180_v48  ;;  %v832_v53 = vadd.f32 %v2400_v3, %v663_v49  ;;  %v1762_v49 = vunpack.c.h.bf16 %v1817_v19 }
 0x109   :  { %1214 = vst.msk [vmem:[%s2882_s4 + $0x30] sm:$0xf] %vm1201_vm1, %v1149_v8  ;;  %v754_v56 = vadd.f32 %v2432_v27, %v585_v52  ;;  %v1657_v27 = vld [vmem:[%s2879_s0 + $0x1f4] sm:$0xf0]  ;;  %v1701_v8 = vunpack.c.l.bf16 %v1802_v43 }
 0x10a   :  { %v1053_v62 = vadd.f32 %v1757_v50, %v832_v53  ;;  %v1521_v15 = vor.u32 %v1657_v27, %v1520_v1  ;;  %v2594_v47 = vpop.f32.mrf.mxu3 }
 0x10b   :  { %v1022_v0 = vadd.f32 %v1694_v55, %v754_v56  ;;  %v2547_v3 = vpop.f32.mrf.mxu1 }
 0x10c   :  { %v1117_v2 = vmax.f32 %v1053_v62, 0.0 }
 0x10d   :  { %v1086_v4 = vmax.f32 %v1022_v0, 0.0  ;;  %v664_v5 = vpop.f32.mrf.mxu2 }
 0x10e   :  { %v1181_v57 = vpack.c.bf16 %v1117_v2, %v1117_v2  ;;  %v665_v9 = vadd.f32 %v2141_v61, %v664_v5  ;;  %v587_v11 = vpop.f32.mrf.mxu0  ;;  %v1765_v2 = vunpack.c.l.bf16 %v1818_v63 }
 0x10f   :  { %v1150_v16 = vpack.c.bf16 %v1086_v4, %v1086_v4  ;;  %v588_v33 = vadd.f32 %v2141_v61, %v587_v11 }
 0x110   :  { %1246 = vst.msk [vmem:[%s2882_s4 + $0xb0] sm:$0xf] %vm1201_vm1, %v1181_v57  ;;  %v834_v60 = vadd.f32 %v2440_v54, %v665_v9 }
 0x111   :  { %1215 = vst.msk [vmem:[%s2882_s4 + $0x34] sm:$0xf] %vm1201_vm1, %v1150_v16  ;;  %v757_v18 = vadd.f32 %v2464_v59, %v588_v33  ;;  %626 = vmatmul.bf16.gmra.mxu0 %v1393_v6  ;;  %v1803_v33 = vld [vmem:[%s2881_s3 + $0x48] sm:$0xff]  }
 0x112   :  { %v1054_v20 = vadd.f32 %v1758_v10, %v834_v60  ;;  %706 = vmatmul.bf16.gmra.mxu2 %v1521_v15  ;;  %v848_v6 = vpop.f32.mrf.mxu3 }
 0x113   :  { %v1023_v22 = vadd.f32 %v1697_v13, %v757_v18  ;;  %v2570_v23 = vpop.f32.mrf.mxu1 }
 0x114   :  { %v1118_v54 = vmax.f32 %v1054_v20, 0.0  ;;  %v1766_v20 = vunpack.c.h.bf16 %v1818_v63 }
 0x115   :  { %v1087_v26 = vmax.f32 %v1023_v22, 0.0  ;;  %v667_v28 = vpop.f32.mrf.mxu2 }
 0x116   :  { %v1182_v25 = vpack.c.bf16 %v1118_v54, %v1118_v54  ;;  %v668_v29 = vadd.f32 %v2141_v61, %v667_v28  ;;  %v589_v59 = vpop.f32.mrf.mxu0 }
 0x117   :  { %v1151_v30 = vpack.c.bf16 %v1087_v26, %v1087_v26  ;;  %v590_v31 = vadd.f32 %v2141_v61, %v589_v59 }
 0x118   :  { %1247 = vst.msk [vmem:[%s2882_s4 + $0xb4] sm:$0xf] %vm1201_vm1, %v1182_v25  ;;  %v837_v36 = vadd.f32 %v2469_v51, %v668_v29 }
 0x119   :  { %1216 = vst.msk [vmem:[%s2882_s4 + $0x38] sm:$0xf] %vm1201_vm1, %v1151_v30  ;;  %v759_v38 = vadd.f32 %v2490_v17, %v590_v31  ;;  %v1819_v30 = vld [vmem:[%s2881_s3 + $0xc8] sm:$0xff]  }
 0x11a   :  { %v1055_v39 = vadd.f32 %v1761_v45, %v837_v36  ;;  %v851_v25 = vpop.f32.mrf.mxu3 }
 0x11b   :  { %v1024_v41 = vadd.f32 %v1698_v34, %v759_v38  ;;  %v2589_v12 = vpop.f32.mrf.mxu1 }
 0x11c   :  { %v1119_v40 = vmax.f32 %v1055_v39, 0.0  ;;  %v1769_v39 = vunpack.c.l.bf16 %v1819_v30 }
 0x11d   :  { %v1088_v46 = vmax.f32 %v1024_v41, 0.0  ;;  %v669_v35 = vpop.f32.mrf.mxu2 }
 0x11e   :  { %v1183_v51 = vpack.c.bf16 %v1119_v40, %v1119_v40  ;;  %v670_v48 = vadd.f32 %v2141_v61, %v669_v35  ;;  %v592_v50 = vpop.f32.mrf.mxu0 }
 0x11f   :  { %v1152_v7 = vpack.c.bf16 %v1088_v46, %v1088_v46  ;;  %v593_v17 = vadd.f32 %v2141_v61, %v592_v50 }
 0x120   :  { %1248 = vst.msk [vmem:[%s2882_s4 + $0xb8] sm:$0xf] %vm1201_vm1, %v1183_v51  ;;  %v839_v52 = vadd.f32 %v2509_v37, %v670_v48 }
 0x121   :  { %1217 = vst.msk [vmem:[%s2882_s4 + $0x3c] sm:$0xf] %vm1201_vm1, %v1152_v7  ;;  %v762_v55 = vadd.f32 %v2521_v42, %v593_v17  ;;  %v1702_v42 = vunpack.c.h.bf16 %v1802_v43  ;;  %v1706_v43 = vunpack.c.h.bf16 %v1803_v33  ;;  %v1804_v17 = vld [vmem:[%s2881_s3 + $0x50] sm:$0xff]  }
 0x122   :  { %v1056_v53 = vadd.f32 %v1762_v49, %v839_v52  ;;  %v853_v50 = vpop.f32.mrf.mxu3 }
 0x123   :  { %v1025_v56 = vadd.f32 %v1701_v8, %v762_v55  ;;  %v2608_v62 = vpop.f32.mrf.mxu1 }
 0x124   :  { %v1120_v44 = vmax.f32 %v1056_v53, 0.0  ;;  %v1770_v53 = vunpack.c.h.bf16 %v1819_v30 }
 0x125   :  { %v1089_v0 = vmax.f32 %v1025_v56, 0.0  ;;  %v672_v1 = vpop.f32.mrf.mxu2 }
 0x126   :  { %v1184_v27 = vpack.c.bf16 %v1120_v44, %v1120_v44  ;;  %v673_v37 = vadd.f32 %v2141_v61, %v672_v1  ;;  %v594_v21 = vpop.f32.mrf.mxu0  ;;  %v1709_v44 = vunpack.c.l.bf16 %v1804_v17 }
 0x127   :  { %v1153_v4 = vpack.c.bf16 %v1089_v0, %v1089_v0  ;;  %v595_v5 = vadd.f32 %v2141_v61, %v594_v21  ;;  %v1820_v21 = vld [vmem:[%s2881_s3 + $0xd0] sm:$0xff]  }
 0x128   :  { %1249 = vst.msk [vmem:[%s2882_s4 + $0xbc] sm:$0xf] %vm1201_vm1, %v1184_v27  ;;  %v842_v57 = vadd.f32 %v2539_v58, %v673_v37 }
 0x129   :  { %1218 = vst.msk [vmem:[%s2882_s4 + $0x40] sm:$0xf] %vm1201_vm1, %v1153_v4  ;;  %v764_v9 = vadd.f32 %v2547_v3, %v595_v5  ;;  %v1705_v3 = vunpack.c.l.bf16 %v1803_v33  ;;  %v1710_v33 = vunpack.c.h.bf16 %v1804_v17 }
 0x12a   :  { %v1057_v10 = vadd.f32 %v1765_v2, %v842_v57  ;;  %v856_v57 = vpop.f32.mrf.mxu3 }
 0x12b   :  { %v1026_v11 = vadd.f32 %v1702_v42, %v764_v9  ;;  %v2625_v15 = vpop.f32.mrf.mxu1 }
 0x12c   :  { %v1121_v16 = vmax.f32 %v1057_v10, 0.0  ;;  %v1773_v10 = vunpack.c.l.bf16 %v1820_v21 }
 0x12d   :  { %v1090_v13 = vmax.f32 %v1026_v11, 0.0  ;;  %v674_v60 = vpop.f32.mrf.mxu2 }
 0x12e   :  { %v1185_v18 = vpack.c.bf16 %v1121_v16, %v1121_v16  ;;  %v675_v58 = vadd.f32 %v2141_v61, %v674_v60  ;;  %v597_v22 = vpop.f32.mrf.mxu0 }
 0x12f   :  { %v1154_v19 = vpack.c.bf16 %v1090_v13, %v1090_v13  ;;  %v598_v54 = vadd.f32 %v2141_v61, %v597_v22 }
 0x130   :  { %1250 = vst.msk [vmem:[%s2882_s4 + $0xc0] sm:$0xf] %vm1201_vm1, %v1185_v18  ;;  %v844_v26 = vadd.f32 %v2575_v24, %v675_v58 }
 0x131   :  { %1219 = vst.msk [vmem:[%s2882_s4 + $0x44] sm:$0xf] %vm1201_vm1, %v1154_v19  ;;  %v767_v28 = vadd.f32 %v2570_v23, %v598_v54  ;;  %v1805_v19 = vld [vmem:[%s2881_s3 + $0x58] sm:$0xff]  }
 0x132   :  { %v1058_v29 = vadd.f32 %v1766_v20, %v844_v26 }
 0x133   :  { %v1027_v45 = vadd.f32 %v1705_v3, %v767_v28  ;;  %v2642_v59 = vpop.f32.mrf.mxu1 }
 0x134   :  { %v1122_v31 = vmax.f32 %v1058_v29, 0.0 }
 0x135   :  { %v1091_v34 = vmax.f32 %v1027_v45, 0.0  ;;  %v677_v36 = vpop.f32.mrf.mxu2 }
 0x136   :  { %v1186_v24 = vpack.c.bf16 %v1122_v31, %v1122_v31  ;;  %v678_v38 = vadd.f32 %v2141_v61, %v677_v36  ;;  %v599_v41 = vpop.f32.mrf.mxu0  ;;  %v858_v31 = vpop.f32.mrf.mxu3 }
 0x137   :  { %v1155_v40 = vpack.c.bf16 %v1091_v34, %v1091_v34  ;;  %v600_v23 = vadd.f32 %v2141_v61, %v599_v41 }
 0x138   :  { %1251 = vst.msk [vmem:[%s2882_s4 + $0xc4] sm:$0xf] %vm1201_vm1, %v1186_v24  ;;  %v847_v46 = vadd.f32 %v2594_v47, %v678_v38 }
 0x139   :  { %1220 = vst.msk [vmem:[%s2882_s4 + $0x48] sm:$0xf] %vm1201_vm1, %v1155_v40  ;;  %v769_v35 = vadd.f32 %v2589_v12, %v600_v23 }
 0x13a   :  { %v1059_v51 = vadd.f32 %v1769_v39, %v847_v46  ;;  %v2715_v46 = vld [vmem:[%s2880_s2] ss:$0 sm:$0xff] }
 0x13b   :  { %v1028_v48 = vadd.f32 %v1706_v43, %v769_v35  ;;  %v2659_v49 = vpop.f32.mrf.mxu1 }
 0x13c   :  { %v1123_v7 = vmax.f32 %v1059_v51, 0.0 }
 0x13d   :  { %v1092_v8 = vmax.f32 %v1028_v48, 0.0  ;;  %v679_v52 = vpop.f32.mrf.mxu2 }
 0x13e   :  { %v1187_v47 = vpack.c.bf16 %v1123_v7, %v1123_v7  ;;  %v680_v55 = vadd.f32 %v2141_v61, %v679_v52  ;;  %v602_v56 = vpop.f32.mrf.mxu0  ;;  %v1714_v7 = vunpack.c.h.bf16 %v1805_v19  ;;  %v861_v52 = vpop.f32.mrf.mxu3 }
 0x13f   :  { %v1156_v63 = vpack.c.bf16 %v1092_v8, %v1092_v8  ;;  %v603_v12 = vadd.f32 %v2141_v61, %v602_v56 }
 0x140   :  { %1252 = vst.msk [vmem:[%s2882_s4 + $0xc8] sm:$0xf] %vm1201_vm1, %v1187_v47  ;;  %v849_v0 = vadd.f32 %v848_v6, %v680_v55 }
 0x141   :  { %1221 = vst.msk [vmem:[%s2882_s4 + $0x4c] sm:$0xf] %vm1201_vm1, %v1156_v63  ;;  %v772_v1 = vadd.f32 %v2608_v62, %v603_v12  ;;  %v1806_v63 = vld [vmem:[%s2881_s3 + $0x60] sm:$0xff]  }
 0x142   :  { %v1060_v27 = vadd.f32 %v1770_v53, %v849_v0 }
 0x143   :  { %v1029_v37 = vadd.f32 %v1709_v44, %v772_v1  ;;  %v2675_v2 = vpop.f32.mrf.mxu1 }
 0x144   :  { %v1124_v4 = vmax.f32 %v1060_v27, 0.0 }
 0x145   :  { %v1093_v5 = vmax.f32 %v1029_v37, 0.0  ;;  %v682_v42 = vpop.f32.mrf.mxu2 }
 0x146   :  { %v1188_v6 = vpack.c.bf16 %v1124_v4, %v1124_v4  ;;  %v683_v9 = vadd.f32 %v2141_v61, %v682_v42  ;;  %v604_v11 = vpop.f32.mrf.mxu0  ;;  %v1717_v4 = vunpack.c.l.bf16 %v1806_v63 }
 0x147   :  { %v1157_v16 = vpack.c.bf16 %v1093_v5, %v1093_v5  ;;  %v605_v62 = vadd.f32 %v2141_v61, %v604_v11  ;;  %v863_v11 = vpop.f32.mrf.mxu3 }
 0x148   :  { %1253 = vst.msk [vmem:[%s2882_s4 + $0xcc] sm:$0xf] %vm1201_vm1, %v1188_v6  ;;  %v852_v13 = vadd.f32 %v851_v25, %v683_v9  ;;  %v1774_v25 = vunpack.c.h.bf16 %v1820_v21 }
 0x149   :  { %1222 = vst.msk [vmem:[%s2882_s4 + $0x50] sm:$0xf] %vm1201_vm1, %v1157_v16  ;;  %v774_v60 = vadd.f32 %v2625_v15, %v605_v62  ;;  %v1713_v15 = vunpack.c.l.bf16 %v1805_v19  ;;  %v1718_v19 = vunpack.c.h.bf16 %v1806_v63 }
 0x14a   :  { %v1061_v18 = vadd.f32 %v1773_v10, %v852_v13  ;;  %v1822_v10 = vld [vmem:[%s2881_s3 + $0xe0] sm:$0xff]  }
 0x14b   :  { %v1030_v58 = vadd.f32 %v1710_v33, %v774_v60  ;;  %v2691_v20 = vpop.f32.mrf.mxu1 }
 0x14c   :  { %v1125_v22 = vmax.f32 %v1061_v18, 0.0  ;;  %v1781_v18 = vunpack.c.l.bf16 %v1822_v10 }
 0x14d   :  { %v1094_v54 = vmax.f32 %v1030_v58, 0.0  ;;  %v684_v3 = vpop.f32.mrf.mxu2 }
 0x14e   :  { %v1189_v26 = vpack.c.bf16 %v1125_v22, %v1125_v22  ;;  %v685_v28 = vadd.f32 %v2141_v61, %v684_v3  ;;  %v607_v29 = vpop.f32.mrf.mxu0 }
 0x14f   :  { %v1158_v45 = vpack.c.bf16 %v1094_v54, %v1094_v54  ;;  %v608_v30 = vadd.f32 %v2141_v61, %v607_v29  ;;  %v1821_v61 = vld [vmem:[%s2881_s3 + $0xd8] sm:$0xff]  }
 0x150   :  { %1254 = vst.msk [vmem:[%s2882_s4 + $0xd0] sm:$0xf] %vm1201_vm1, %v1189_v26  ;;  %v854_v34 = vadd.f32 %v853_v50, %v685_v28  ;;  %v1778_v27 = vunpack.c.h.bf16 %v1821_v61 }
 0x151   :  { %1223 = vst.msk [vmem:[%s2882_s4 + $0x54] sm:$0xf] %vm1201_vm1, %v1158_v45  ;;  %v777_v36 = vadd.f32 %v2642_v59, %v608_v30  ;;  %v1777_v59 = vunpack.c.l.bf16 %v1821_v61  ;;  %v1807_v45 = vld [vmem:[%s2881_s3 + $0x68] sm:$0xff]  }
 0x152   :  { %v1062_v24 = vadd.f32 %v1774_v25, %v854_v34 }
 0x153   :  { %v1031_v38 = vadd.f32 %v1713_v15, %v777_v36  ;;  %v2707_v39 = vpop.f32.mrf.mxu1 }
 0x154   :  { %v1126_v41 = vmax.f32 %v1062_v24, 0.0  ;;  %v1782_v24 = vunpack.c.h.bf16 %v1822_v10 }
 0x155   :  { %v1095_v40 = vmax.f32 %v1031_v38, 0.0  ;;  %v687_v23 = vpop.f32.mrf.mxu2 }
 0x156   :  { %v1190_v43 = vpack.c.bf16 %v1126_v41, %v1126_v41  ;;  %v688_v35 = vadd.f32 %v2715_v46, %v687_v23  ;;  %v609_v51 = vpop.f32.mrf.mxu0  ;;  %v1721_v41 = vunpack.c.l.bf16 %v1807_v45 }
 0x157   :  { %v1159_v48 = vpack.c.bf16 %v1095_v40, %v1095_v40  ;;  %v610_v50 = vadd.f32 %v2715_v46, %v609_v51  ;;  %v1823_v51 = vld [vmem:[%s2881_s3 + $0xe8] sm:$0xff]  }
 0x158   :  { %1255 = vst.msk [vmem:[%s2882_s4 + $0xd4] sm:$0xf] %vm1201_vm1, %v1190_v43  ;;  %v857_v17 = vadd.f32 %v856_v57, %v688_v35 }
 0x159   :  { %1224 = vst.msk [vmem:[%s2882_s4 + $0x58] sm:$0xf] %vm1201_vm1, %v1159_v48  ;;  %v779_v8 = vadd.f32 %v2659_v49, %v610_v50 }
 0x15a   :  { %v1063_v47 = vadd.f32 %v1777_v59, %v857_v17 }
 0x15b   :  { %v1032_v55 = vadd.f32 %v1714_v7, %v779_v8  ;;  %v2728_v53 = vpop.f32.mrf.mxu1 }
 0x15c   :  { %v1127_v56 = vmax.f32 %v1063_v47, 0.0 }
 0x15d   :  { %v1096_v12 = vmax.f32 %v1032_v55, 0.0  ;;  %v689_v44 = vpop.f32.mrf.mxu2 }
 0x15e   :  { %v1191_v0 = vpack.c.bf16 %v1127_v56, %v1127_v56  ;;  %v690_v1 = vadd.f32 %v2715_v46, %v689_v44  ;;  %v612_v37 = vpop.f32.mrf.mxu0 }
 0x15f   :  { %v1160_v21 = vpack.c.bf16 %v1096_v12, %v1096_v12  ;;  %v613_v49 = vadd.f32 %v2715_v46, %v612_v37 }
 0x160   :  { %1256 = vst.msk [vmem:[%s2882_s4 + $0xd8] sm:$0xf] %vm1201_vm1, %v1191_v0  ;;  %v859_v5 = vadd.f32 %v858_v31, %v690_v1  ;;  %v866_v31 = vpop.f32.mrf.mxu3 }
 0x161   :  { %1225 = vst.msk [vmem:[%s2882_s4 + $0x5c] sm:$0xf] %vm1201_vm1, %v1160_v21  ;;  %v782_v42 = vadd.f32 %v2675_v2, %v613_v49  ;;  %v1808_v21 = vld [vmem:[%s2881_s3 + $0x70] sm:$0xff]  }
 0x162   :  { %v1064_v57 = vadd.f32 %v1778_v27, %v859_v5 }
 0x163   :  { %v1033_v6 = vadd.f32 %v1717_v4, %v782_v42  ;;  %v2744_v9 = vpop.f32.mrf.mxu1 }
 0x164   :  { %v1128_v16 = vmax.f32 %v1064_v57, 0.0  ;;  %v1786_v57 = vunpack.c.h.bf16 %v1823_v51 }
 0x165   :  { %v1097_v62 = vmax.f32 %v1033_v6, 0.0  ;;  %v692_v33 = vpop.f32.mrf.mxu2 }
 0x166   :  { %v1192_v13 = vpack.c.bf16 %v1128_v16, %v1128_v16  ;;  %v693_v60 = vadd.f32 %v2715_v46, %v692_v33  ;;  %v614_v58 = vpop.f32.mrf.mxu0  ;;  %v1810_v16 = vld [vmem:[%s2881_s3 + $0x80] sm:$0xff]  }
 0x167   :  { %v1161_v22 = vpack.c.bf16 %v1097_v62, %v1097_v62  ;;  %v615_v2 = vadd.f32 %v2715_v46, %v614_v58  ;;  %v1733_v58 = vunpack.c.l.bf16 %v1810_v16 }
 0x168   :  { %1257 = vst.msk [vmem:[%s2882_s4 + $0xdc] sm:$0xf] %vm1201_vm1, %v1192_v13  ;;  %v862_v54 = vadd.f32 %v861_v52, %v693_v60  ;;  %v1785_v52 = vunpack.c.l.bf16 %v1823_v51  ;;  %v868_v63 = vpop.f32.mrf.mxu3  ;;  %v633_v60 = vadd.f32 %v2715_v46, %v2164_v14 }
 0x169   :  { %1226 = vst.msk [vmem:[%s2882_s4 + $0x60] sm:$0xf] %vm1201_vm1, %v1161_v22  ;;  %v784_v3 = vadd.f32 %v2691_v20, %v615_v2 }
 0x16a   :  { %v1065_v26 = vadd.f32 %v1781_v18, %v862_v54 }
 0x16b   :  { %v1034_v28 = vadd.f32 %v1718_v19, %v784_v3  ;;  %v2760_v25 = vpop.f32.mrf.mxu1  ;;  %v1824_v19 = vld [vmem:[%s2881_s3 + $0xf0] sm:$0xff]  }
 0x16c   :  { %v1129_v29 = vmax.f32 %v1065_v26, 0.0 }
 0x16d   :  { %v1098_v30 = vmax.f32 %v1034_v28, 0.0  ;;  %v694_v15 = vpop.f32.mrf.mxu2 }
 0x16e   :  { %v1193_v34 = vpack.c.bf16 %v1129_v29, %v1129_v29  ;;  %v695_v36 = vadd.f32 %v2715_v46, %v694_v15  ;;  %v617_v38 = vpop.f32.mrf.mxu0 }
 0x16f   :  { %v1162_v61 = vpack.c.bf16 %v1098_v30, %v1098_v30  ;;  %v618_v20 = vadd.f32 %v2715_v46, %v617_v38  ;;  %v1789_v30 = vunpack.c.l.bf16 %v1824_v19 }
 0x170   :  { %1258 = vst.msk [vmem:[%s2882_s4 + $0xe0] sm:$0xf] %vm1201_vm1, %v1193_v34  ;;  %v864_v40 = vadd.f32 %v863_v11, %v695_v36  ;;  %v871_v13 = vpop.f32.mrf.mxu3  ;;  %v1726_v34 = vunpack.c.h.bf16 %v1808_v21 }
 0x171   :  { %1227 = vst.msk [vmem:[%s2882_s4 + $0x64] sm:$0xf] %vm1201_vm1, %v1162_v61  ;;  %v787_v23 = vadd.f32 %v2707_v39, %v618_v20  ;;  %v1722_v39 = vunpack.c.h.bf16 %v1807_v45  ;;  %v635_v61 = vadd.f32 %v2715_v46, %v2198_v32 }
 0x172   :  { %v1066_v43 = vadd.f32 %v1782_v24, %v864_v40  ;;  %v1734_v40 = vunpack.c.h.bf16 %v1810_v16 }
 0x173   :  { %v1035_v35 = vadd.f32 %v1721_v41, %v787_v23  ;;  %v2776_v59 = vpop.f32.mrf.mxu1 }
 0x174   :  { %v1130_v48 = vmax.f32 %v1066_v43, 0.0 }
 0x175   :  { %v1099_v50 = vmax.f32 %v1035_v35, 0.0  ;;  %v697_v7 = vpop.f32.mrf.mxu2 }
 0x176   :  { %v1194_v17 = vpack.c.bf16 %v1130_v48, %v1130_v48  ;;  %v698_v8 = vadd.f32 %v2715_v46, %v697_v7  ;;  %v619_v47 = vpop.f32.mrf.mxu0 }
 0x177   :  { %v1163_v55 = vpack.c.bf16 %v1099_v50, %v1099_v50  ;;  %v620_v56 = vadd.f32 %v2715_v46, %v619_v47 }
 0x178   :  { %1259 = vst.msk [vmem:[%s2882_s4 + $0xe4] sm:$0xf] %vm1201_vm1, %v1194_v17  ;;  %v867_v12 = vadd.f32 %v866_v31, %v698_v8  ;;  %v873_v43 = vpop.f32.mrf.mxu3 }
 0x179   :  { %1228 = vst.msk [vmem:[%s2882_s4 + $0x68] sm:$0xf] %vm1201_vm1, %v1163_v55  ;;  %v789_v44 = vadd.f32 %v2728_v53, %v620_v56  ;;  %v1725_v53 = vunpack.c.l.bf16 %v1808_v21  ;;  %v1825_v21 = vld [vmem:[%s2881_s3 + $0xf8] sm:$0xff]  }
 0x17a   :  { %v1067_v0 = vadd.f32 %v1785_v52, %v867_v12  ;;  %v1790_v52 = vunpack.c.h.bf16 %v1824_v19 }
 0x17b   :  { %v1036_v1 = vadd.f32 %v1722_v39, %v789_v44  ;;  %v2792_v27 = vpop.f32.mrf.mxu1 }
 0x17c   :  { %v1131_v37 = vmax.f32 %v1067_v0, 0.0 }
 0x17d   :  { %v1100_v49 = vmax.f32 %v1036_v1, 0.0  ;;  %v699_v4 = vpop.f32.mrf.mxu2 }
 0x17e   :  { %v1195_v5 = vpack.c.bf16 %v1131_v37, %v1131_v37  ;;  %v700_v42 = vadd.f32 %v2715_v46, %v699_v4  ;;  %v622_v6 = vpop.f32.mrf.mxu0 }
 0x17f   :  { %v1164_v10 = vpack.c.bf16 %v1100_v49, %v1100_v49  ;;  %v623_v11 = vadd.f32 %v2715_v46, %v622_v6 }
 0x180   :  { %1260 = vst.msk [vmem:[%s2882_s4 + $0xe8] sm:$0xf] %vm1201_vm1, %v1195_v5  ;;  %v869_v62 = vadd.f32 %v868_v63, %v700_v42  ;;  %v876_v5 = vpop.f32.mrf.mxu3 }
 0x181   :  { %1229 = vst.msk [vmem:[%s2882_s4 + $0x6c] sm:$0xf] %vm1201_vm1, %v1164_v10  ;;  %v792_v33 = vadd.f32 %v2744_v9, %v623_v11 }
 0x182   :  { %v1068_v18 = vadd.f32 %v1786_v57, %v869_v62 }
 0x183   :  { %v1037_v22 = vadd.f32 %v1725_v53, %v792_v33  ;;  %v801_v2 = vpop.f32.mrf.mxu1 }
 0x184   :  { %v1132_v54 = vmax.f32 %v1068_v18, 0.0  ;;  %v802_v3 = vadd.f32 %v801_v2, %v633_v60 }
 0x185   :  { %v1101_v26 = vmax.f32 %v1037_v22, 0.0  ;;  %v702_v28 = vpop.f32.mrf.mxu2 }
 0x186   :  { %v1196_v29 = vpack.c.bf16 %v1132_v54, %v1132_v54  ;;  %v1041_v45 = vadd.f32 %v1733_v58, %v802_v3  ;;  %v703_v9 = vadd.f32 %v2715_v46, %v702_v28  ;;  %v624_v15 = vpop.f32.mrf.mxu0  ;;  %v1794_v54 = vunpack.c.h.bf16 %v1825_v21 }
 0x187   :  { %v1165_v31 = vpack.c.bf16 %v1101_v26, %v1101_v26  ;;  %v625_v14 = vadd.f32 %v2715_v46, %v624_v15 }
 0x188   :  { %1261 = vst.msk [vmem:[%s2882_s4 + $0xec] sm:$0xf] %vm1201_vm1, %v1196_v29  ;;  %v1105_v36 = vmax.f32 %v1041_v45, 0.0  ;;  %v872_v24 = vadd.f32 %v871_v13, %v703_v9  ;;  %v878_v26 = vpop.f32.mrf.mxu3 }
 0x189   :  { %1230 = vst.msk [vmem:[%s2882_s4 + $0x70] sm:$0xf] %vm1201_vm1, %v1165_v31  ;;  %v794_v38 = vadd.f32 %v2760_v25, %v625_v14  ;;  %v1809_v25 = vld [vmem:[%s2881_s3 + $0x78] sm:$0xff]  }
 0x18a   :  { %v1169_v20 = vpack.c.bf16 %v1105_v36, %v1105_v36  ;;  %v1069_v41 = vadd.f32 %v1789_v30, %v872_v24  ;;  %v1729_v39 = vunpack.c.l.bf16 %v1809_v25  ;;  %v1730_v16 = vunpack.c.h.bf16 %v1809_v25 }
 0x18b   :  { %v1038_v23 = vadd.f32 %v1726_v34, %v794_v38  ;;  %v803_v35 = vpop.f32.mrf.mxu1 }
 0x18c   :  { %1234 = vst.msk [vmem:[%s2882_s4 + $0x80] sm:$0xf] %vm1201_vm1, %v1169_v20  ;;  %v1133_v51 = vmax.f32 %v1069_v41, 0.0  ;;  %v804_v48 = vadd.f32 %v803_v35, %v635_v61 }
 0x18d   :  { %v1102_v50 = vmax.f32 %v1038_v23, 0.0  ;;  %v704_v7 = vpop.f32.mrf.mxu2 }
 0x18e   :  { %v1197_v32 = vpack.c.bf16 %v1133_v51, %v1133_v51  ;;  %v1042_v17 = vadd.f32 %v1734_v40, %v804_v48  ;;  %v705_v8 = vadd.f32 %v2715_v46, %v704_v7  ;;  %v627_v47 = vpop.f32.mrf.mxu0 }
 0x18f   :  { %v1166_v55 = vpack.c.bf16 %v1102_v50, %v1102_v50  ;;  %v628_v56 = vadd.f32 %v2715_v46, %v627_v47 }
 0x190   :  { %1262 = vst.msk [vmem:[%s2882_s4 + $0xf0] sm:$0xf] %vm1201_vm1, %v1197_v32  ;;  %v1106_v63 = vmax.f32 %v1042_v17, 0.0  ;;  %v874_v12 = vadd.f32 %v873_v43, %v705_v8 }
 0x191   :  { %1231 = vst.msk [vmem:[%s2882_s4 + $0x74] sm:$0xf] %vm1201_vm1, %v1166_v55  ;;  %v797_v44 = vadd.f32 %v2776_v59, %v628_v56  ;;  %v1793_v59 = vunpack.c.l.bf16 %v1825_v21 }
 0x192   :  { %v1170_v0 = vpack.c.bf16 %v1106_v63, %v1106_v63  ;;  %v1070_v1 = vadd.f32 %v1790_v52, %v874_v12 }
 0x193   :  { %v1039_v37 = vadd.f32 %v1729_v39, %v797_v44 }
 0x194   :  { %1235 = vst.msk [vmem:[%s2882_s4 + $0x84] sm:$0xf] %vm1201_vm1, %v1170_v0  ;;  %v1134_v49 = vmax.f32 %v1070_v1, 0.0 }
 0x195   :  { %v1103_v4 = vmax.f32 %v1039_v37, 0.0  ;;  %v707_v42 = vpop.f32.mrf.mxu2 }
 0x196   :  { %v1198_v57 = vpack.c.bf16 %v1134_v49, %v1134_v49  ;;  %v708_v6 = vadd.f32 %v2715_v46, %v707_v42  ;;  %v629_v10 = vpop.f32.mrf.mxu0 }
 0x197   :  { %v1167_v11 = vpack.c.bf16 %v1103_v4, %v1103_v4  ;;  %v630_v53 = vadd.f32 %v2715_v46, %v629_v10 }
 0x198   :  { %1263 = vst.msk [vmem:[%s2882_s4 + $0xf4] sm:$0xf] %vm1201_vm1, %v1198_v57  ;;  %v877_v62 = vadd.f32 %v876_v5, %v708_v6 }
 0x199   :  { %1232 = vst.msk [vmem:[%s2882_s4 + $0x78] sm:$0xf] %vm1201_vm1, %v1167_v11  ;;  %v799_v33 = vadd.f32 %v2792_v27, %v630_v53 }
 0x19a   :  { %v1071_v13 = vadd.f32 %v1793_v59, %v877_v62 }
 0x19b   :  { %v1040_v60 = vadd.f32 %v1730_v16, %v799_v33 }
 0x19c   :  { %v1135_v18 = vmax.f32 %v1071_v13, 0.0 }
 0x19d   :  { %v1104_v58 = vmax.f32 %v1040_v60, 0.0  ;;  %v709_v22 = vpop.f32.mrf.mxu2 }
 0x19e   :  { %v1199_v2 = vpack.c.bf16 %v1135_v18, %v1135_v18  ;;  %v710_v19 = vadd.f32 %v2715_v46, %v709_v22 }
 0x19f   :  { %v1168_v3 = vpack.c.bf16 %v1104_v58, %v1104_v58 }
 0x1a0   :  { %1264 = vst.msk [vmem:[%s2882_s4 + $0xf8] sm:$0xf] %vm1201_vm1, %v1199_v2  ;;  %v879_v28 = vadd.f32 %v878_v26, %v710_v19 }
 0x1a1   :  { %1233 = vst.msk [vmem:[%s2882_s4 + $0x7c] sm:$0xf] %vm1201_vm1, %v1168_v3 }
 0x1a2   :  { %v1072_v27 = vadd.f32 %v1794_v54, %v879_v28 }
 0x1a4   :  { %v1136_v29 = vmax.f32 %v1072_v27, 0.0 }
 0x1a6   :  { %v1200_v45 = vpack.c.bf16 %v1136_v29, %v1136_v29 }
 0x1a8   :  { %1265 = vst.msk [vmem:[%s2882_s4 + $0xfc] sm:$0xf] %vm1201_vm1, %v1200_v45 }

// kernel: custom_resnet_forward.28
= control target key start
LH: loop header
LB: loop body
LE: loop exit
PB: predicated region body
PF: predicated region fallthrough
CT: control target
= control target key end

     0   :  { %vm179_vm0 = vcmask 130048   ;;  %vm334_vm1 = vcmask 257024   ;;  %s734_s1 = inlined_call_operand.vmem [shape: bf16[144,32], index: 1, kind: input, shape index: {}]   ;;  %s735_s0 = inlined_call_operand.vmem [shape: bf16[128,144], index: 0, kind: input, shape index: {}]   ;;  %s736_s2 = inlined_call_operand.vmem [shape: f32[1,32], index: 2, kind: input, shape index: {}]   ;;  %s737_s3 = inlined_call_operand.vmem [shape: bf16[128,32], index: 3, kind: output, shape index: {}]  }
   0x1   :  { %v486_v0 = vld [vmem:[%s734_s1 + $0x38] sm:$0xff]  ;;  %v487_v1 = vld [vmem:[%s734_s1 + $0x40] sm:$0xff]  ;;  %v359_v3 = vld [vmem:[%s735_s0 + $0x8] sm:$0xf0] }
   0x2   :  { %v463_v2 = vld [vmem:[%s735_s0 + $0x4] sm:$0xf]  ;;  %204 = vmatpush.bf16.msra.mxu0 %v486_v0  ;;  %488 = vmatpush.bf16.msra.mxu2 %v486_v0  ;;  %v485_v5 = vld [vmem:[%s734_s1 + $0x30] sm:$0xff]  ;;  %v484_v6 = vld [vmem:[%s734_s1 + $0x28] sm:$0xff] }
   0x3   :  { %v362_v4 = vor.u32 %v463_v2, %v359_v3  ;;  %260 = vmatpush.bf16.msra.mxu1 %v487_v1  ;;  %496 = vmatpush.bf16.msra.mxu3 %v487_v1  ;;  %v473_v7 = vld [vmem:[%s735_s0 + $0x54] sm:$0xf]  ;;  %v399_v8 = vld [vmem:[%s735_s0 + $0x58] sm:$0xf0]  ;;  %v483_v10 = vld [vmem:[%s734_s1 + $0x20] sm:$0xff] }
   0x4   :  { %v402_v9 = vor.u32 %v473_v7, %v399_v8  ;;  %v482_v11 = vld [vmem:[%s734_s1 + $0x18] sm:$0xff]  ;;  %v465_v12 = vld [vmem:[%s735_s0 + $0x14] sm:$0xf]  ;;  %v480_v16 = vld [vmem:[%s734_s1 + $0x8] sm:$0xff] }
   0x5   :  { %v367_v13 = vld [vmem:[%s735_s0 + $0x18] sm:$0xf0]  ;;  %v481_v15 = vld [vmem:[%s734_s1 + $0x10] sm:$0xff]  ;;  %v475_v17 = vld [vmem:[%s735_s0 + $0x64] sm:$0xf] }
   0x6   :  { %455 = vmatmul.msk.bf16.vlgmr.msra.gmra.mxu1 %vm179_vm0, %v362_v4  ;;  %205 = vmatpush.bf16.msra.mxu0 %v485_v5  ;;  %v370_v14 = vor.u32 %v465_v12, %v367_v13  ;;  %v407_v18 = vld [vmem:[%s735_s0 + $0x68] sm:$0xf0]  ;;  %v479_v20 = vld [vmem:[%s734_s1] sm:$0xff]  ;;  %v464_v22 = vld [vmem:[%s735_s0 + $0x4] sm:$0xf0] }
   0x7   :  { %489 = vmatpush.bf16.msra.mxu2 %v485_v5  ;;  %460 = vmatmul.msk.bf16.vlgmr.msra.gmra.mxu3 %vm179_vm0, %v402_v9  ;;  %v410_v19 = vor.u32 %v475_v17, %v407_v18  ;;  %v357_v21 = vld [vmem:[%s735_s0] sm:$0xf]  ;;  %v472_v24 = vld [vmem:[%s735_s0 + $0x44] sm:$0xf0]  ;;  %v467_v27 = vld [vmem:[%s735_s0 + $0x24] sm:$0xf] }
   0x8   :  { %v389_v23 = vld [vmem:[%s735_s0 + $0x40] sm:$0xf]  ;;  %v358_v25 = vor.u32 %v464_v22, %v357_v21  ;;  %v375_v28 = vld [vmem:[%s735_s0 + $0x28] sm:$0xf0]  ;;  %v477_v30 = vld [vmem:[%s735_s0 + $0x74] sm:$0xf] }
   0x9   :  { %v390_v26 = vor.u32 %v472_v24, %v389_v23  ;;  %v378_v29 = vor.u32 %v467_v27, %v375_v28  ;;  %v415_v31 = vld [vmem:[%s735_s0 + $0x78] sm:$0xf0]  ;;  %v365_v33 = vld [vmem:[%s735_s0 + $0x10] sm:$0xf]  ;;  %v466_v34 = vld [vmem:[%s735_s0 + $0x14] sm:$0xf0] }
   0xa   :  { %206 = vmatpush.bf16.msra.mxu0 %v484_v6  ;;  %v418_v32 = vor.u32 %v477_v30, %v415_v31  ;;  %v397_v35 = vld [vmem:[%s735_s0 + $0x50] sm:$0xf]  ;;  %v474_v36 = vld [vmem:[%s735_s0 + $0x54] sm:$0xf0]  ;;  %v366_v37 = vor.u32 %v466_v34, %v365_v33  ;;  %v469_v39 = vld [vmem:[%s735_s0 + $0x34] sm:$0xf] }
   0xb   :  { %490 = vmatpush.bf16.msra.mxu2 %v484_v6  ;;  %v398_v38 = vor.u32 %v474_v36, %v397_v35  ;;  %v383_v40 = vld [vmem:[%s735_s0 + $0x38] sm:$0xf0]  ;;  %v373_v42 = vld [vmem:[%s735_s0 + $0x20] sm:$0xf]  ;;  %v468_v43 = vld [vmem:[%s735_s0 + $0x24] sm:$0xf0] }
   0xc   :  { %v386_v41 = vor.u32 %v469_v39, %v383_v40  ;;  %v405_v44 = vld [vmem:[%s735_s0 + $0x60] sm:$0xf]  ;;  %v476_v45 = vld [vmem:[%s735_s0 + $0x64] sm:$0xf0]  ;;  %v374_v46 = vor.u32 %v468_v43, %v373_v42  ;;  %v471_v48 = vld [vmem:[%s735_s0 + $0x44] sm:$0xf] }
   0xd   :  { %v406_v47 = vor.u32 %v476_v45, %v405_v44  ;;  %v391_v49 = vld [vmem:[%s735_s0 + $0x48] sm:$0xf0]  ;;  %v381_v51 = vld [vmem:[%s735_s0 + $0x30] sm:$0xf]  ;;  %v470_v52 = vld [vmem:[%s735_s0 + $0x34] sm:$0xf0] }
   0xe   :  { %207 = vmatpush.bf16.msra.mxu0 %v483_v10  ;;  %v394_v50 = vor.u32 %v471_v48, %v391_v49  ;;  %v413_v53 = vld [vmem:[%s735_s0 + $0x70] sm:$0xf]  ;;  %v478_v54 = vld [vmem:[%s735_s0 + $0x74] sm:$0xf0]  ;;  %v382_v55 = vor.u32 %v470_v52, %v381_v51  ;;  %v652_v61 = vld [vmem:[%s736_s2] ss:$0 sm:$0xff] }
   0xf   :  { %491 = vmatpush.bf16.msra.mxu2 %v483_v10  ;;  %v414_v56 = vor.u32 %v478_v54, %v413_v53 }
  0x12   :  { %208 = vmatpush.bf16.msra.mxu0 %v482_v11 }
  0x13   :  { %492 = vmatpush.bf16.msra.mxu2 %v482_v11 }
  0x16   :  { %456 = vmatmul.msk.bf16.gmra.mxu1 %vm179_vm0, %v370_v14  ;;  %209 = vmatpush.bf16.msra.mxu0 %v481_v15 }
  0x17   :  { %493 = vmatpush.bf16.msra.mxu2 %v481_v15  ;;  %461 = vmatmul.msk.bf16.gmra.mxu3 %vm179_vm0, %v410_v19 }
  0x1a   :  { %210 = vmatpush.bf16.msra.mxu0 %v480_v16 }
  0x1b   :  { %494 = vmatpush.bf16.msra.mxu2 %v480_v16 }
  0x1e   :  { %211 = vmatpush.bf16.msra.mxu0 %v479_v20 }
  0x1f   :  { %495 = vmatpush.bf16.msra.mxu2 %v479_v20 }
  0x21   :  { %212 = vmatmul.bf16.vlgmr.msra.gmra.mxu0 %v358_v25 }
  0x22   :  { %232 = vmatmul.bf16.vlgmr.msra.gmra.mxu2 %v390_v26 }
  0x26   :  { %457 = vmatmul.msk.bf16.gmra.mxu1 %vm179_vm0, %v378_v29 }
  0x27   :  { %462 = vmatmul.msk.bf16.gmra.mxu3 %vm179_vm0, %v418_v32 }
  0x31   :  { %217 = vmatmul.bf16.gmra.mxu0 %v366_v37 }
  0x32   :  { %237 = vmatmul.bf16.gmra.mxu2 %v398_v38 }
  0x36   :  { %458 = vmatmul.msk.bf16.gmra.mxu1 %vm179_vm0, %v386_v41 }
  0x41   :  { %222 = vmatmul.bf16.gmra.mxu0 %v374_v46 }
  0x42   :  { %242 = vmatmul.bf16.gmra.mxu2 %v406_v47 }
  0x46   :  { %459 = vmatmul.msk.bf16.gmra.mxu1 %vm179_vm0, %v394_v50 }
  0x51   :  { %227 = vmatmul.bf16.gmra.mxu0 %v382_v55 }
  0x52   :  { %247 = vmatmul.bf16.gmra.mxu2 %v414_v56 }
  0x83   :  { %v262_v57 = vpop.f32.mrf.mxu1 }
  0x8a   :  { %v287_v12 = vpop.f32.mrf.mxu3 }
  0x8b   :  { %v264_v58 = vpop.f32.mrf.mxu1 }
  0x92   :  { %v289_v23 = vpop.f32.mrf.mxu3 }
  0x93   :  { %v267_v59 = vpop.f32.mrf.mxu1 }
  0x9a   :  { %v292_v37 = vpop.f32.mrf.mxu3 }
  0x9b   :  { %v269_v60 = vpop.f32.mrf.mxu1 }
  0x9e   :  { %v213_v62 = vpop.f32.mrf.mxu0 }
  0x9f   :  { %v214_v63 = vadd.f32 %v652_v61, %v213_v62 }
  0xa1   :  { %v263_v0 = vadd.f32 %v262_v57, %v214_v63 }
  0xa2   :  { %v294_v56 = vpop.f32.mrf.mxu3 }
  0xa3   :  { %v302_v1 = vmax.f32 %v263_v0, 0.0  ;;  %v272_v2 = vpop.f32.mrf.mxu1 }
  0xa5   :  { %v318_v3 = vpack.c.bf16 %v302_v1, %v302_v1  ;;  %v233_v4 = vpop.f32.mrf.mxu2 }
  0xa6   :  { %v215_v5 = vpop.f32.mrf.mxu0  ;;  %v234_v38 = vadd.f32 %v652_v61, %v233_v4 }
  0xa7   :  { %335 = vst.msk [vmem:[%s737_s3] sm:$0xf] %vm334_vm1, %v318_v3  ;;  %v216_v6 = vadd.f32 %v652_v61, %v215_v5 }
  0xa9   :  { %v265_v7 = vadd.f32 %v264_v58, %v216_v6 }
  0xab   :  { %v303_v8 = vmax.f32 %v265_v7, 0.0  ;;  %v274_v9 = vpop.f32.mrf.mxu1 }
  0xad   :  { %v319_v10 = vpack.c.bf16 %v303_v8, %v303_v8  ;;  %v235_v11 = vpop.f32.mrf.mxu2 }
  0xae   :  { %v218_v13 = vpop.f32.mrf.mxu0  ;;  %v236_v53 = vadd.f32 %v652_v61, %v235_v11 }
  0xaf   :  { %336 = vst.msk [vmem:[%s737_s3 + $0x4] sm:$0xf] %vm334_vm1, %v319_v10  ;;  %v219_v14 = vadd.f32 %v652_v61, %v218_v13  ;;  %v297_v10 = vpop.f32.mrf.mxu3 }
  0xb1   :  { %v268_v15 = vadd.f32 %v267_v59, %v219_v14 }
  0xb3   :  { %v304_v16 = vmax.f32 %v268_v15, 0.0  ;;  %v277_v17 = vpop.f32.mrf.mxu1 }
  0xb5   :  { %v320_v18 = vpack.c.bf16 %v304_v16, %v304_v16  ;;  %v238_v19 = vpop.f32.mrf.mxu2 }
  0xb6   :  { %v239_v20 = vadd.f32 %v652_v61, %v238_v19  ;;  %v220_v21 = vpop.f32.mrf.mxu0 }
  0xb7   :  { %337 = vst.msk [vmem:[%s737_s3 + $0x8] sm:$0xf] %vm334_vm1, %v320_v18  ;;  %v221_v22 = vadd.f32 %v652_v61, %v220_v21 }
  0xb8   :  { %v288_v24 = vadd.f32 %v287_v12, %v239_v20 }
  0xb9   :  { %v270_v25 = vadd.f32 %v269_v60, %v221_v22 }
  0xba   :  { %v312_v26 = vmax.f32 %v288_v24, 0.0 }
  0xbb   :  { %v305_v27 = vmax.f32 %v270_v25, 0.0  ;;  %v279_v28 = vpop.f32.mrf.mxu1 }
  0xbc   :  { %v328_v29 = vpack.c.bf16 %v312_v26, %v312_v26 }
  0xbd   :  { %v321_v30 = vpack.c.bf16 %v305_v27, %v305_v27  ;;  %v240_v31 = vpop.f32.mrf.mxu2 }
  0xbe   :  { %345 = vst.msk [vmem:[%s737_s3 + $0x28] sm:$0xf] %vm334_vm1, %v328_v29  ;;  %v241_v32 = vadd.f32 %v652_v61, %v240_v31  ;;  %v223_v33 = vpop.f32.mrf.mxu0 }
  0xbf   :  { %338 = vst.msk [vmem:[%s737_s3 + $0xc] sm:$0xf] %vm334_vm1, %v321_v30  ;;  %v224_v34 = vadd.f32 %v652_v61, %v223_v33 }
  0xc0   :  { %v290_v35 = vadd.f32 %v289_v23, %v241_v32  ;;  %v299_v23 = vpop.f32.mrf.mxu3 }
  0xc1   :  { %v273_v36 = vadd.f32 %v272_v2, %v224_v34 }
  0xc2   :  { %v313_v39 = vmax.f32 %v290_v35, 0.0 }
  0xc3   :  { %v306_v40 = vmax.f32 %v273_v36, 0.0  ;;  %v282_v41 = vpop.f32.mrf.mxu1 }
  0xc4   :  { %v329_v42 = vpack.c.bf16 %v313_v39, %v313_v39  ;;  %v283_v43 = vadd.f32 %v282_v41, %v234_v38 }
  0xc5   :  { %v322_v44 = vpack.c.bf16 %v306_v40, %v306_v40  ;;  %v243_v45 = vpop.f32.mrf.mxu2 }
  0xc6   :  { %346 = vst.msk [vmem:[%s737_s3 + $0x2c] sm:$0xf] %vm334_vm1, %v329_v42  ;;  %v310_v46 = vmax.f32 %v283_v43, 0.0  ;;  %v244_v47 = vadd.f32 %v652_v61, %v243_v45  ;;  %v225_v48 = vpop.f32.mrf.mxu0 }
  0xc7   :  { %339 = vst.msk [vmem:[%s737_s3 + $0x10] sm:$0xf] %vm334_vm1, %v322_v44  ;;  %v226_v49 = vadd.f32 %v652_v61, %v225_v48 }
  0xc8   :  { %v326_v50 = vpack.c.bf16 %v310_v46, %v310_v46  ;;  %v293_v51 = vadd.f32 %v292_v37, %v244_v47 }
  0xc9   :  { %v275_v52 = vadd.f32 %v274_v9, %v226_v49 }
  0xca   :  { %343 = vst.msk [vmem:[%s737_s3 + $0x20] sm:$0xf] %vm334_vm1, %v326_v50  ;;  %v314_v54 = vmax.f32 %v293_v51, 0.0 }
  0xcb   :  { %v307_v55 = vmax.f32 %v275_v52, 0.0  ;;  %v284_v57 = vpop.f32.mrf.mxu1 }
  0xcc   :  { %v330_v58 = vpack.c.bf16 %v314_v54, %v314_v54  ;;  %v285_v59 = vadd.f32 %v284_v57, %v236_v53 }
  0xcd   :  { %v323_v60 = vpack.c.bf16 %v307_v55, %v307_v55  ;;  %v245_v62 = vpop.f32.mrf.mxu2 }
  0xce   :  { %347 = vst.msk [vmem:[%s737_s3 + $0x30] sm:$0xf] %vm334_vm1, %v330_v58  ;;  %v311_v63 = vmax.f32 %v285_v59, 0.0  ;;  %v246_v0 = vadd.f32 %v652_v61, %v245_v62  ;;  %v228_v1 = vpop.f32.mrf.mxu0 }
  0xcf   :  { %340 = vst.msk [vmem:[%s737_s3 + $0x14] sm:$0xf] %vm334_vm1, %v323_v60  ;;  %v229_v2 = vadd.f32 %v652_v61, %v228_v1 }
  0xd0   :  { %v327_v3 = vpack.c.bf16 %v311_v63, %v311_v63  ;;  %v295_v4 = vadd.f32 %v294_v56, %v246_v0 }
  0xd1   :  { %v278_v5 = vadd.f32 %v277_v17, %v229_v2 }
  0xd2   :  { %344 = vst.msk [vmem:[%s737_s3 + $0x24] sm:$0xf] %vm334_vm1, %v327_v3  ;;  %v315_v6 = vmax.f32 %v295_v4, 0.0 }
  0xd3   :  { %v308_v7 = vmax.f32 %v278_v5, 0.0 }
  0xd4   :  { %v331_v8 = vpack.c.bf16 %v315_v6, %v315_v6 }
  0xd5   :  { %v324_v9 = vpack.c.bf16 %v308_v7, %v308_v7  ;;  %v248_v11 = vpop.f32.mrf.mxu2 }
  0xd6   :  { %348 = vst.msk [vmem:[%s737_s3 + $0x34] sm:$0xf] %vm334_vm1, %v331_v8  ;;  %v249_v12 = vadd.f32 %v652_v61, %v248_v11  ;;  %v230_v13 = vpop.f32.mrf.mxu0 }
  0xd7   :  { %341 = vst.msk [vmem:[%s737_s3 + $0x18] sm:$0xf] %vm334_vm1, %v324_v9  ;;  %v231_v14 = vadd.f32 %v652_v61, %v230_v13 }
  0xd8   :  { %v298_v15 = vadd.f32 %v297_v10, %v249_v12 }
  0xd9   :  { %v280_v16 = vadd.f32 %v279_v28, %v231_v14 }
  0xda   :  { %v316_v17 = vmax.f32 %v298_v15, 0.0 }
  0xdb   :  { %v309_v18 = vmax.f32 %v280_v16, 0.0 }
  0xdc   :  { %v332_v19 = vpack.c.bf16 %v316_v17, %v316_v17 }
  0xdd   :  { %v325_v20 = vpack.c.bf16 %v309_v18, %v309_v18  ;;  %v250_v21 = vpop.f32.mrf.mxu2 }
  0xde   :  { %349 = vst.msk [vmem:[%s737_s3 + $0x38] sm:$0xf] %vm334_vm1, %v332_v19  ;;  %v251_v22 = vadd.f32 %v652_v61, %v250_v21 }
  0xdf   :  { %342 = vst.msk [vmem:[%s737_s3 + $0x1c] sm:$0xf] %vm334_vm1, %v325_v20 }
  0xe0   :  { %v300_v24 = vadd.f32 %v299_v23, %v251_v22 }
  0xe2   :  { %v317_v25 = vmax.f32 %v300_v24, 0.0 }
  0xe4   :  { %v333_v26 = vpack.c.bf16 %v317_v25, %v317_v25 }
  0xe6   :  { %350 = vst.msk [vmem:[%s737_s3 + $0x3c] sm:$0xf] %vm334_vm1, %v333_v26 }

// kernel: custom_resnet_forward.29
= control target key start
LH: loop header
LB: loop body
LE: loop exit
PB: predicated region body
PF: predicated region fallthrough
CT: control target
= control target key end

     0   :  { %vm83_vm0 = vcmask 130048   ;;  %vm173_vm1 = vcmask 257024   ;;  %s373_s1 = inlined_call_operand.vmem [shape: bf16[16,32], index: 1, kind: input, shape index: {}]   ;;  %s374_s0 = inlined_call_operand.vmem [shape: bf16[128,16], index: 0, kind: input, shape index: {}]   ;;  %s375_s2 = inlined_call_operand.vmem [shape: f32[1,32], index: 2, kind: input, shape index: {}]   ;;  %s376_s3 = inlined_call_operand.vmem [shape: bf16[128,32], index: 3, kind: output, shape index: {}]  }
   0x1   :  { %v246_v0 = vld [vmem:[%s373_s1] sm:$0xff]  ;;  %v240_v2 = vld [vmem:[%s374_s0 + $0x10] sm:$0xff]  ;;  %v239_v5 = vld [vmem:[%s374_s0 + $0x8] sm:$0xff] }
   0x2   :  { %v238_v1 = vld [vmem:[%s374_s0] sm:$0xff]  ;;  %115 = vmatpush.bf16.msra.mxu0 %v246_v0  ;;  %247 = vmatpush.bf16.msra.mxu1 %v246_v0  ;;  %v244_v4 = vld [vmem:[%s374_s0 + $0x30] sm:$0xff]  ;;  %v241_v6 = vld [vmem:[%s374_s0 + $0x18] sm:$0xff] }
   0x3   :  { %v242_v3 = vld [vmem:[%s374_s0 + $0x20] sm:$0xff]  ;;  %248 = vmatpush.bf16.msra.mxu2 %v246_v0  ;;  %249 = vmatpush.bf16.msra.mxu3 %v246_v0  ;;  %v243_v7 = vld [vmem:[%s374_s0 + $0x28] sm:$0xff]  ;;  %v245_v8 = vld [vmem:[%s374_s0 + $0x38] sm:$0xff] }
   0x4   :  { %v250_v9 = vld [vmem:[%s375_s2] ss:$0 sm:$0xff] }
   0x5   :  { %230 = vmatmul.msk.bf16.vlgmr.msra.gmra.mxu0 %vm83_vm0, %v238_v1  ;;  %232 = vmatmul.msk.bf16.vlgmr.msra.gmra.mxu1 %vm83_vm0, %v240_v2 }
   0x6   :  { %234 = vmatmul.msk.bf16.vlgmr.msra.gmra.mxu2 %vm83_vm0, %v242_v3  ;;  %236 = vmatmul.msk.bf16.vlgmr.msra.gmra.mxu3 %vm83_vm0, %v244_v4 }
  0x15   :  { %231 = vmatmul.msk.bf16.gmra.mxu0 %vm83_vm0, %v239_v5  ;;  %233 = vmatmul.msk.bf16.gmra.mxu1 %vm83_vm0, %v241_v6 }
  0x16   :  { %235 = vmatmul.msk.bf16.gmra.mxu2 %vm83_vm0, %v243_v7  ;;  %237 = vmatmul.msk.bf16.gmra.mxu3 %vm83_vm0, %v245_v8 }
  0x82   :  { %v117_v10 = vpop.f32.mrf.mxu0  ;;  %v127_v11 = vpop.f32.mrf.mxu1 }
  0x83   :  { %v118_v12 = vadd.f32 %v250_v9, %v117_v10  ;;  %v128_v13 = vadd.f32 %v250_v9, %v127_v11 }
  0x85   :  { %v157_v14 = vpack.c.bf16 %v118_v12, %v118_v12  ;;  %v161_v15 = vpack.c.bf16 %v128_v13, %v128_v13 }
  0x87   :  { %174 = vst.msk [vmem:[%s376_s3] sm:$0xf] %vm173_vm1, %v157_v14 }
  0x88   :  { %178 = vst.msk [vmem:[%s376_s3 + $0x10] sm:$0xf] %vm173_vm1, %v161_v15 }
  0x89   :  { %v137_v16 = vpop.f32.mrf.mxu2  ;;  %v147_v17 = vpop.f32.mrf.mxu3 }
  0x8a   :  { %v138_v18 = vadd.f32 %v250_v9, %v137_v16  ;;  %v148_v19 = vadd.f32 %v250_v9, %v147_v17  ;;  %v119_v20 = vpop.f32.mrf.mxu0  ;;  %v129_v21 = vpop.f32.mrf.mxu1 }
  0x8b   :  { %v120_v22 = vadd.f32 %v250_v9, %v119_v20  ;;  %v130_v23 = vadd.f32 %v250_v9, %v129_v21 }
  0x8c   :  { %v165_v24 = vpack.c.bf16 %v138_v18, %v138_v18  ;;  %v169_v25 = vpack.c.bf16 %v148_v19, %v148_v19 }
  0x8d   :  { %v158_v26 = vpack.c.bf16 %v120_v22, %v120_v22  ;;  %v162_v27 = vpack.c.bf16 %v130_v23, %v130_v23 }
  0x8e   :  { %182 = vst.msk [vmem:[%s376_s3 + $0x20] sm:$0xf] %vm173_vm1, %v165_v24 }
  0x8f   :  { %186 = vst.msk [vmem:[%s376_s3 + $0x30] sm:$0xf] %vm173_vm1, %v169_v25 }
  0x90   :  { %175 = vst.msk [vmem:[%s376_s3 + $0x4] sm:$0xf] %vm173_vm1, %v158_v26 }
  0x91   :  { %179 = vst.msk [vmem:[%s376_s3 + $0x14] sm:$0xf] %vm173_vm1, %v162_v27  ;;  %v139_v28 = vpop.f32.mrf.mxu2  ;;  %v149_v29 = vpop.f32.mrf.mxu3 }
  0x92   :  { %v140_v30 = vadd.f32 %v250_v9, %v139_v28  ;;  %v150_v31 = vadd.f32 %v250_v9, %v149_v29  ;;  %v122_v32 = vpop.f32.mrf.mxu0  ;;  %v132_v33 = vpop.f32.mrf.mxu1 }
  0x93   :  { %v123_v34 = vadd.f32 %v250_v9, %v122_v32  ;;  %v133_v35 = vadd.f32 %v250_v9, %v132_v33 }
  0x94   :  { %v166_v36 = vpack.c.bf16 %v140_v30, %v140_v30  ;;  %v170_v37 = vpack.c.bf16 %v150_v31, %v150_v31 }
  0x95   :  { %v159_v38 = vpack.c.bf16 %v123_v34, %v123_v34  ;;  %v163_v39 = vpack.c.bf16 %v133_v35, %v133_v35 }
  0x96   :  { %183 = vst.msk [vmem:[%s376_s3 + $0x24] sm:$0xf] %vm173_vm1, %v166_v36 }
  0x97   :  { %187 = vst.msk [vmem:[%s376_s3 + $0x34] sm:$0xf] %vm173_vm1, %v170_v37 }
  0x98   :  { %176 = vst.msk [vmem:[%s376_s3 + $0x8] sm:$0xf] %vm173_vm1, %v159_v38 }
  0x99   :  { %180 = vst.msk [vmem:[%s376_s3 + $0x18] sm:$0xf] %vm173_vm1, %v163_v39  ;;  %v142_v40 = vpop.f32.mrf.mxu2  ;;  %v152_v41 = vpop.f32.mrf.mxu3 }
  0x9a   :  { %v143_v42 = vadd.f32 %v250_v9, %v142_v40  ;;  %v153_v43 = vadd.f32 %v250_v9, %v152_v41  ;;  %v124_v44 = vpop.f32.mrf.mxu0  ;;  %v134_v45 = vpop.f32.mrf.mxu1 }
  0x9b   :  { %v125_v46 = vadd.f32 %v250_v9, %v124_v44  ;;  %v135_v47 = vadd.f32 %v250_v9, %v134_v45 }
  0x9c   :  { %v167_v48 = vpack.c.bf16 %v143_v42, %v143_v42  ;;  %v171_v49 = vpack.c.bf16 %v153_v43, %v153_v43 }
  0x9d   :  { %v160_v50 = vpack.c.bf16 %v125_v46, %v125_v46  ;;  %v164_v51 = vpack.c.bf16 %v135_v47, %v135_v47 }
  0x9e   :  { %184 = vst.msk [vmem:[%s376_s3 + $0x28] sm:$0xf] %vm173_vm1, %v167_v48 }
  0x9f   :  { %188 = vst.msk [vmem:[%s376_s3 + $0x38] sm:$0xf] %vm173_vm1, %v171_v49 }
  0xa0   :  { %177 = vst.msk [vmem:[%s376_s3 + $0xc] sm:$0xf] %vm173_vm1, %v160_v50 }
  0xa1   :  { %181 = vst.msk [vmem:[%s376_s3 + $0x1c] sm:$0xf] %vm173_vm1, %v164_v51  ;;  %v144_v52 = vpop.f32.mrf.mxu2  ;;  %v154_v53 = vpop.f32.mrf.mxu3 }
  0xa2   :  { %v145_v54 = vadd.f32 %v250_v9, %v144_v52  ;;  %v155_v55 = vadd.f32 %v250_v9, %v154_v53 }
  0xa4   :  { %v168_v56 = vpack.c.bf16 %v145_v54, %v145_v54  ;;  %v172_v57 = vpack.c.bf16 %v155_v55, %v155_v55 }
  0xa6   :  { %185 = vst.msk [vmem:[%s376_s3 + $0x2c] sm:$0xf] %vm173_vm1, %v168_v56 }
  0xa7   :  { %189 = vst.msk [vmem:[%s376_s3 + $0x3c] sm:$0xf] %vm173_vm1, %v172_v57 }

// kernel: custom_resnet_forward.30
= control target key start
LH: loop header
LB: loop body
LE: loop exit
PB: predicated region body
PF: predicated region fallthrough
CT: control target
= control target key end

     0   :  { %vm318_vm0 = vcmask 261120   ;;  %vm570_vm1 = vcmask 257024   ;;  %s1217_s1 = inlined_call_operand.vmem [shape: bf16[288,32], index: 1, kind: input, shape index: {}]   ;;  %s1218_s0 = inlined_call_operand.vmem [shape: bf16[128,288], index: 0, kind: input, shape index: {}]   ;;  %s1219_s2 = inlined_call_operand.vmem [shape: f32[1,32], index: 2, kind: input, shape index: {}]   ;;  %s1220_s3 = inlined_call_operand.vmem [shape: bf16[128,32], index: 3, kind: input, shape index: {}]   ;;  %s1221_s4 = inlined_call_operand.vmem [shape: bf16[128,32], index: 4, kind: output, shape index: {}]  }
   0x1   :  { %v798_v0 = vld [vmem:[%s1217_s1 + $0x38] sm:$0xff]  ;;  %v808_v1 = vld [vmem:[%s1217_s1 + $0x88] sm:$0xff]  ;;  %v797_v3 = vld [vmem:[%s1217_s1 + $0x30] sm:$0xff] }
   0x2   :  { %v806_v2 = vld [vmem:[%s1217_s1 + $0x78] sm:$0xff]  ;;  %343 = vmatpush.bf16.msra.mxu0 %v798_v0  ;;  %848 = vmatpush.bf16.msra.mxu3 %v798_v0  ;;  %v807_v4 = vld [vmem:[%s1217_s1 + $0x80] sm:$0xff]  ;;  %v805_v5 = vld [vmem:[%s1217_s1 + $0x70] sm:$0xff] }
   0x3   :  { %447 = vmatpush.bf16.msra.mxu2 %v808_v1  ;;  %392 = vmatpush.bf16.msra.mxu1 %v806_v2  ;;  %v601_v6 = vld [vmem:[%s1218_s0 + $0x8] sm:$0xf]  ;;  %v769_v7 = vld [vmem:[%s1218_s0 + $0x10] sm:$0xf0]  ;;  %v795_v11 = vld [vmem:[%s1217_s1 + $0x20] sm:$0xff] }
   0x4   :  { %v602_v8 = vor.u32 %v769_v7, %v601_v6  ;;  %v796_v9 = vld [vmem:[%s1217_s1 + $0x28] sm:$0xff]  ;;  %v803_v12 = vld [vmem:[%s1217_s1 + $0x60] sm:$0xff]  ;;  %v794_v13 = vld [vmem:[%s1217_s1 + $0x18] sm:$0xff] }
   0x5   :  { %v804_v10 = vld [vmem:[%s1217_s1 + $0x68] sm:$0xff]  ;;  %v802_v14 = vld [vmem:[%s1217_s1 + $0x58] sm:$0xff]  ;;  %v793_v15 = vld [vmem:[%s1217_s1 + $0x10] sm:$0xff] }
   0x6   :  { %344 = vmatpush.bf16.msra.mxu0 %v797_v3  ;;  %849 = vmatpush.bf16.msra.mxu3 %v797_v3  ;;  %v801_v16 = vld [vmem:[%s1217_s1 + $0x50] sm:$0xff]  ;;  %v613_v17 = vld [vmem:[%s1218_s0 + $0x20] sm:$0xf]  ;;  %v772_v18 = vld [vmem:[%s1218_s0 + $0x28] sm:$0xf0] }
   0x7   :  { %448 = vmatpush.bf16.msra.mxu2 %v807_v4  ;;  %393 = vmatpush.bf16.msra.mxu1 %v805_v5  ;;  %v614_v19 = vor.u32 %v772_v18, %v613_v17  ;;  %v792_v20 = vld [vmem:[%s1217_s1 + $0x8] sm:$0xff]  ;;  %v791_v22 = vld [vmem:[%s1217_s1] sm:$0xff]  ;;  %v665_v26 = vld [vmem:[%s1218_s0 + $0x90] sm:$0xf] }
   0x8   :  { %v800_v21 = vld [vmem:[%s1217_s1 + $0x48] sm:$0xff]  ;;  %v799_v23 = vld [vmem:[%s1217_s1 + $0x40] sm:$0xff]  ;;  %v786_v27 = vld [vmem:[%s1218_s0 + $0x98] sm:$0xf0] }
   0x9   :  { %v593_v24 = vld [vmem:[%s1218_s0] sm:$0xf]  ;;  %v768_v25 = vld [vmem:[%s1218_s0 + $0x8] sm:$0xf0]  ;;  %v767_v28 = vld [vmem:[%s1218_s0 + $0x4] sm:$0xf]  ;;  %v666_v31 = vor.u32 %v786_v27, %v665_v26 }
   0xa   :  { %759 = vmatmul.msk.bf16.vlgmr.msra.gmra.mxu2 %vm318_vm0, %v602_v8  ;;  %345 = vmatpush.bf16.msra.mxu0 %v796_v9  ;;  %v595_v29 = vld [vmem:[%s1218_s0 + $0xc] sm:$0xf0]  ;;  %v594_v30 = vor.u32 %v768_v25, %v593_v24  ;;  %v625_v33 = vld [vmem:[%s1218_s0 + $0x38] sm:$0xf]  ;;  %v775_v34 = vld [vmem:[%s1218_s0 + $0x40] sm:$0xf0] }
   0xb   :  { %850 = vmatpush.bf16.msra.mxu3 %v796_v9  ;;  %394 = vmatpush.bf16.msra.mxu1 %v804_v10  ;;  %v598_v32 = vor.u32 %v767_v28, %v595_v29  ;;  %v626_v35 = vor.u32 %v775_v34, %v625_v33  ;;  %v605_v36 = vld [vmem:[%s1218_s0 + $0x18] sm:$0xf]  ;;  %v771_v37 = vld [vmem:[%s1218_s0 + $0x20] sm:$0xf0]  ;;  %v677_v38 = vld [vmem:[%s1218_s0 + $0xa8] sm:$0xf] }
   0xc   :  { %v789_v39 = vld [vmem:[%s1218_s0 + $0xb0] sm:$0xf0]  ;;  %v770_v40 = vld [vmem:[%s1218_s0 + $0x1c] sm:$0xf]  ;;  %v607_v41 = vld [vmem:[%s1218_s0 + $0x24] sm:$0xf0]  ;;  %v606_v42 = vor.u32 %v771_v37, %v605_v36 }
   0xd   :  { %v678_v43 = vor.u32 %v789_v39, %v677_v38  ;;  %v610_v44 = vor.u32 %v770_v40, %v607_v41  ;;  %v637_v45 = vld [vmem:[%s1218_s0 + $0x50] sm:$0xf]  ;;  %v778_v46 = vld [vmem:[%s1218_s0 + $0x58] sm:$0xf0]  ;;  %v785_v50 = vld [vmem:[%s1218_s0 + $0x94] sm:$0xf] }
   0xe   :  { %346 = vmatpush.bf16.msra.mxu0 %v795_v11  ;;  %v638_v47 = vor.u32 %v778_v46, %v637_v45  ;;  %v617_v48 = vld [vmem:[%s1218_s0 + $0x30] sm:$0xf]  ;;  %v774_v49 = vld [vmem:[%s1218_s0 + $0x38] sm:$0xf0]  ;;  %v667_v51 = vld [vmem:[%s1218_s0 + $0x9c] sm:$0xf0] }
   0xf   :  { %851 = vmatpush.bf16.msra.mxu3 %v795_v11  ;;  %395 = vmatpush.bf16.msra.mxu1 %v803_v12  ;;  %v773_v52 = vld [vmem:[%s1218_s0 + $0x34] sm:$0xf]  ;;  %v619_v53 = vld [vmem:[%s1218_s0 + $0x3c] sm:$0xf0]  ;;  %v618_v54 = vor.u32 %v774_v49, %v617_v48  ;;  %v670_v55 = vor.u32 %v785_v50, %v667_v51  ;;  %v649_v57 = vld [vmem:[%s1218_s0 + $0x68] sm:$0xf] }
  0x10   :  { %v622_v56 = vor.u32 %v773_v52, %v619_v53  ;;  %v781_v58 = vld [vmem:[%s1218_s0 + $0x70] sm:$0xf0]  ;;  %v629_v60 = vld [vmem:[%s1218_s0 + $0x48] sm:$0xf]  ;;  %v788_v62 = vld [vmem:[%s1218_s0 + $0xac] sm:$0xf] }
  0x11   :  { %v650_v59 = vor.u32 %v781_v58, %v649_v57  ;;  %v777_v61 = vld [vmem:[%s1218_s0 + $0x50] sm:$0xf0]  ;;  %v679_v63 = vld [vmem:[%s1218_s0 + $0xb4] sm:$0xf0]  ;;  %v776_v0 = vld [vmem:[%s1218_s0 + $0x4c] sm:$0xf] }
  0x12   :  { %347 = vmatpush.bf16.msra.mxu0 %v794_v13  ;;  %v631_v1 = vld [vmem:[%s1218_s0 + $0x54] sm:$0xf0]  ;;  %v682_v3 = vor.u32 %v788_v62, %v679_v63  ;;  %v784_v6 = vld [vmem:[%s1218_s0 + $0x88] sm:$0xf0]  ;;  %v641_v8 = vld [vmem:[%s1218_s0 + $0x60] sm:$0xf] }
  0x13   :  { %852 = vmatpush.bf16.msra.mxu3 %v794_v13  ;;  %396 = vmatpush.bf16.msra.mxu1 %v802_v14  ;;  %v634_v4 = vor.u32 %v776_v0, %v631_v1  ;;  %v780_v9 = vld [vmem:[%s1218_s0 + $0x68] sm:$0xf0]  ;;  %v643_v11 = vld [vmem:[%s1218_s0 + $0x6c] sm:$0xf0]  ;;  %v653_v17 = vld [vmem:[%s1218_s0 + $0x78] sm:$0xf] }
  0x14   :  { %v783_v18 = vld [vmem:[%s1218_s0 + $0x80] sm:$0xf0]  ;;  %v790_v24 = vld [vmem:[%s1218_s0 + $0xb8] sm:$0xf0]  ;;  %v1099_v28 = vld [vmem:[%s1219_s2] ss:$0 sm:$0xff] }
  0x15   :  { %v841_v50 = vld [vmem:[%s1220_s3 + $0x8] sm:$0xff]  }
  0x16   :  { %348 = vmatpush.bf16.msra.mxu0 %v793_v15 }
  0x17   :  { %853 = vmatpush.bf16.msra.mxu3 %v793_v15  ;;  %397 = vmatpush.bf16.msra.mxu1 %v801_v16  ;;  %v787_v15 = vld [vmem:[%s1218_s0 + $0xa0] sm:$0xf0] }
  0x1a   :  { %760 = vmatmul.msk.bf16.gmra.mxu2 %vm318_vm0, %v614_v19  ;;  %349 = vmatpush.bf16.msra.mxu0 %v792_v20  ;;  %v782_v19 = vld [vmem:[%s1218_s0 + $0x7c] sm:$0xf] }
  0x1b   :  { %854 = vmatpush.bf16.msra.mxu3 %v792_v20  ;;  %398 = vmatpush.bf16.msra.mxu1 %v800_v21  ;;  %v655_v20 = vld [vmem:[%s1218_s0 + $0x84] sm:$0xf0] }
  0x1e   :  { %350 = vmatpush.bf16.msra.mxu0 %v791_v22 }
  0x1f   :  { %855 = vmatpush.bf16.msra.mxu3 %v791_v22  ;;  %399 = vmatpush.bf16.msra.mxu1 %v799_v23  ;;  %v658_v22 = vor.u32 %v782_v19, %v655_v20 }
  0x21   :  { %351 = vmatmul.bf16.vlgmr.msra.gmra.mxu0 %v594_v30 }
  0x22   :  { %381 = vmatmul.bf16.vlgmr.msra.gmra.mxu3 %v666_v31  ;;  %400 = vmatmul.bf16.vlgmr.msra.gmra.mxu1 %v598_v32  ;;  %v810_v31 = vld [vmem:[%s1220_s3] sm:$0xff]  }
  0x23   :  { %856 = vmatpush.bf16.msrb.mxu3 %v806_v2  ;;  %v630_v2 = vor.u32 %v777_v61, %v629_v60  ;;  %v812_v45 = vunpack.c.h.bf16 %v810_v31 }
  0x27   :  { %857 = vmatpush.bf16.msrb.mxu3 %v805_v5  ;;  %v661_v5 = vld [vmem:[%s1218_s0 + $0x80] sm:$0xf] }
  0x28   :  { %v662_v7 = vor.u32 %v784_v6, %v661_v5 }
  0x2a   :  { %761 = vmatmul.msk.bf16.gmra.mxu2 %vm318_vm0, %v626_v35  ;;  %v811_v35 = vunpack.c.l.bf16 %v810_v31  ;;  %v843_v31 = vld [vmem:[%s1220_s3 + $0x18] sm:$0xff]  }
  0x2b   :  { %858 = vmatpush.bf16.msrb.mxu3 %v804_v10  ;;  %v779_v10 = vld [vmem:[%s1218_s0 + $0x64] sm:$0xf] }
  0x2c   :  { %v646_v13 = vor.u32 %v779_v10, %v643_v11 }
  0x2f   :  { %859 = vmatpush.bf16.msrb.mxu3 %v803_v12  ;;  %v642_v12 = vor.u32 %v780_v9, %v641_v8  ;;  %v842_v8 = vld [vmem:[%s1220_s3 + $0x10] sm:$0xff]  }
  0x31   :  { %356 = vmatmul.bf16.gmra.mxu0 %v606_v42 }
  0x32   :  { %386 = vmatmul.bf16.gmra.mxu3 %v678_v43  ;;  %405 = vmatmul.bf16.gmra.mxu1 %v610_v44 }
  0x33   :  { %860 = vmatpush.bf16.msrb.mxu3 %v802_v14  ;;  %v673_v14 = vld [vmem:[%s1218_s0 + $0x98] sm:$0xf] }
  0x37   :  { %861 = vmatpush.bf16.msrb.mxu3 %v801_v16  ;;  %v674_v16 = vor.u32 %v787_v15, %v673_v14  ;;  %v819_v14 = vunpack.c.l.bf16 %v842_v8 }
  0x3a   :  { %762 = vmatmul.msk.bf16.gmra.mxu2 %vm318_vm0, %v638_v47 }
  0x3b   :  { %862 = vmatpush.bf16.msrb.mxu3 %v800_v21  ;;  %v654_v21 = vor.u32 %v783_v18, %v653_v17 }
  0x3f   :  { %863 = vmatpush.bf16.msrb.mxu3 %v799_v23  ;;  %v685_v23 = vld [vmem:[%s1218_s0 + $0xb0] sm:$0xf] }
  0x40   :  { %v686_v25 = vor.u32 %v790_v24, %v685_v23 }
  0x41   :  { %361 = vmatmul.bf16.gmra.mxu0 %v618_v54 }
  0x42   :  { %430 = vmatmul.bf16.vlgmr.msrb.gmra.mxu3 %v670_v55  ;;  %410 = vmatmul.bf16.gmra.mxu1 %v622_v56  ;;  %v815_v56 = vunpack.c.l.bf16 %v841_v50 }
  0x4a   :  { %763 = vmatmul.msk.bf16.gmra.mxu2 %vm318_vm0, %v650_v59 }
  0x51   :  { %366 = vmatmul.bf16.gmra.mxu0 %v630_v2  ;;  %v816_v2 = vunpack.c.h.bf16 %v841_v50 }
  0x52   :  { %435 = vmatmul.bf16.gmra.mxu3 %v682_v3  ;;  %415 = vmatmul.bf16.gmra.mxu1 %v634_v4 }
  0x5a   :  { %764 = vmatmul.msk.bf16.gmra.mxu2 %vm318_vm0, %v662_v7 }
  0x61   :  { %371 = vmatmul.bf16.gmra.mxu0 %v642_v12 }
  0x62   :  { %420 = vmatmul.bf16.gmra.mxu1 %v646_v13 }
  0x6a   :  { %765 = vmatmul.msk.bf16.gmra.mxu2 %vm318_vm0, %v674_v16 }
  0x71   :  { %376 = vmatmul.bf16.gmra.mxu0 %v654_v21 }
  0x72   :  { %425 = vmatmul.bf16.gmra.mxu1 %v658_v22 }
  0x7a   :  { %766 = vmatmul.msk.bf16.gmra.mxu2 %vm318_vm0, %v686_v25  ;;  %v820_v25 = vunpack.c.h.bf16 %v842_v8 }
  0x8d   :  { %v450_v26 = vpop.f32.mrf.mxu2 }
  0x95   :  { %v452_v27 = vpop.f32.mrf.mxu2 }
  0x9d   :  { %v455_v29 = vpop.f32.mrf.mxu2 }
  0x9e   :  { %v352_v30 = vpop.f32.mrf.mxu0 }
  0x9f   :  { %v353_v32 = vadd.f32 %v1099_v28, %v352_v30  ;;  %v401_v33 = vpop.f32.mrf.mxu1 }
  0xa1   :  { %v402_v34 = vadd.f32 %v401_v33, %v353_v32 }
  0xa3   :  { %v451_v36 = vadd.f32 %v450_v26, %v402_v34 }
  0xa5   :  { %v522_v37 = vadd.f32 %v811_v35, %v451_v36  ;;  %v457_v38 = vpop.f32.mrf.mxu2  ;;  %v1119_v3 = vpop.f32.mrf.mxu3 }
  0xa6   :  { %v354_v39 = vpop.f32.mrf.mxu0 }
  0xa7   :  { %v538_v40 = vmax.f32 %v522_v37, 0.0  ;;  %v355_v41 = vadd.f32 %v1099_v28, %v354_v39  ;;  %v403_v42 = vpop.f32.mrf.mxu1 }
  0xa9   :  { %v554_v43 = vpack.c.bf16 %v538_v40, %v538_v40  ;;  %v404_v44 = vadd.f32 %v403_v42, %v355_v41 }
  0xab   :  { %571 = vst.msk [vmem:[%s1221_s4] sm:$0xf] %vm570_vm1, %v554_v43  ;;  %v453_v46 = vadd.f32 %v452_v27, %v404_v44 }
  0xad   :  { %v523_v47 = vadd.f32 %v812_v45, %v453_v46  ;;  %v460_v48 = vpop.f32.mrf.mxu2  ;;  %v1133_v16 = vpop.f32.mrf.mxu3 }
  0xae   :  { %v357_v49 = vpop.f32.mrf.mxu0 }
  0xaf   :  { %v539_v51 = vmax.f32 %v523_v47, 0.0  ;;  %v358_v52 = vadd.f32 %v1099_v28, %v357_v49  ;;  %v406_v53 = vpop.f32.mrf.mxu1  ;;  %v824_v49 = vunpack.c.h.bf16 %v843_v31 }
  0xb1   :  { %v555_v54 = vpack.c.bf16 %v539_v51, %v539_v51  ;;  %v407_v55 = vadd.f32 %v406_v53, %v358_v52 }
  0xb3   :  { %572 = vst.msk [vmem:[%s1221_s4 + $0x4] sm:$0xf] %vm570_vm1, %v555_v54  ;;  %v456_v57 = vadd.f32 %v455_v29, %v407_v55  ;;  %v844_v54 = vld [vmem:[%s1220_s3 + $0x20] sm:$0xff]  }
  0xb5   :  { %v524_v58 = vadd.f32 %v815_v56, %v456_v57  ;;  %v462_v59 = vpop.f32.mrf.mxu2  ;;  %v1143_v32 = vpop.f32.mrf.mxu3 }
  0xb6   :  { %v359_v60 = vpop.f32.mrf.mxu0 }
  0xb7   :  { %v540_v61 = vmax.f32 %v524_v58, 0.0  ;;  %v360_v62 = vadd.f32 %v1099_v28, %v359_v60  ;;  %v408_v63 = vpop.f32.mrf.mxu1  ;;  %v827_v60 = vunpack.c.l.bf16 %v844_v54 }
  0xb9   :  { %v556_v0 = vpack.c.bf16 %v540_v61, %v540_v61  ;;  %v409_v1 = vadd.f32 %v408_v63, %v360_v62 }
  0xbb   :  { %573 = vst.msk [vmem:[%s1221_s4 + $0x8] sm:$0xf] %vm570_vm1, %v556_v0  ;;  %v458_v4 = vadd.f32 %v457_v38, %v409_v1  ;;  %v823_v38 = vunpack.c.l.bf16 %v843_v31 }
  0xbd   :  { %v525_v5 = vadd.f32 %v816_v2, %v458_v4  ;;  %v465_v6 = vpop.f32.mrf.mxu2  ;;  %v1151_v46 = vpop.f32.mrf.mxu3 }
  0xbe   :  { %v362_v7 = vpop.f32.mrf.mxu0 }
  0xbf   :  { %v541_v9 = vmax.f32 %v525_v5, 0.0  ;;  %v363_v10 = vadd.f32 %v1099_v28, %v362_v7  ;;  %v411_v11 = vpop.f32.mrf.mxu1 }
  0xc1   :  { %v557_v12 = vpack.c.bf16 %v541_v9, %v541_v9  ;;  %v412_v13 = vadd.f32 %v411_v11, %v363_v10  ;;  %v828_v9 = vunpack.c.h.bf16 %v844_v54  ;;  %v846_v10 = vld [vmem:[%s1220_s3 + $0x30] sm:$0xff]  }
  0xc3   :  { %574 = vst.msk [vmem:[%s1221_s4 + $0xc] sm:$0xf] %vm570_vm1, %v557_v12  ;;  %v461_v15 = vadd.f32 %v460_v48, %v412_v13  ;;  %v835_v13 = vunpack.c.l.bf16 %v846_v10 }
  0xc5   :  { %v526_v17 = vadd.f32 %v819_v14, %v461_v15  ;;  %v467_v18 = vpop.f32.mrf.mxu2  ;;  %v431_v61 = vpop.f32.mrf.mxu3 }
  0xc6   :  { %v364_v19 = vpop.f32.mrf.mxu0 }
  0xc7   :  { %v542_v20 = vmax.f32 %v526_v17, 0.0  ;;  %v365_v21 = vadd.f32 %v1099_v28, %v364_v19  ;;  %v413_v22 = vpop.f32.mrf.mxu1  ;;  %v845_v19 = vld [vmem:[%s1220_s3 + $0x28] sm:$0xff]  }
  0xc9   :  { %v558_v23 = vpack.c.bf16 %v542_v20, %v542_v20  ;;  %v414_v24 = vadd.f32 %v413_v22, %v365_v21 }
  0xcb   :  { %575 = vst.msk [vmem:[%s1221_s4 + $0x10] sm:$0xf] %vm570_vm1, %v558_v23  ;;  %v463_v26 = vadd.f32 %v462_v59, %v414_v24  ;;  %v385_v23 = vadd.f32 %v1099_v28, %v1133_v16 }
  0xcd   :  { %v527_v27 = vadd.f32 %v820_v25, %v463_v26  ;;  %v470_v29 = vpop.f32.mrf.mxu2  ;;  %v433_v14 = vpop.f32.mrf.mxu3 }
  0xce   :  { %v367_v30 = vpop.f32.mrf.mxu0  ;;  %v434_v31 = vadd.f32 %v433_v14, %v385_v23 }
  0xcf   :  { %v543_v33 = vmax.f32 %v527_v27, 0.0  ;;  %v368_v34 = vadd.f32 %v1099_v28, %v367_v30  ;;  %v416_v35 = vpop.f32.mrf.mxu1  ;;  %v831_v27 = vunpack.c.l.bf16 %v845_v19 }
  0xd1   :  { %v559_v36 = vpack.c.bf16 %v543_v33, %v543_v33  ;;  %v417_v37 = vadd.f32 %v416_v35, %v368_v34  ;;  %v836_v34 = vunpack.c.h.bf16 %v846_v10 }
  0xd3   :  { %576 = vst.msk [vmem:[%s1221_s4 + $0x14] sm:$0xf] %vm570_vm1, %v559_v36  ;;  %v466_v39 = vadd.f32 %v465_v6, %v417_v37  ;;  %v383_v6 = vadd.f32 %v1099_v28, %v1119_v3 }
  0xd5   :  { %v528_v40 = vadd.f32 %v823_v38, %v466_v39  ;;  %v472_v41 = vpop.f32.mrf.mxu2  ;;  %v432_v12 = vadd.f32 %v431_v61, %v383_v6  ;;  %v436_v38 = vpop.f32.mrf.mxu3 }
  0xd6   :  { %v369_v42 = vpop.f32.mrf.mxu0 }
  0xd7   :  { %v544_v43 = vmax.f32 %v528_v40, 0.0  ;;  %v370_v44 = vadd.f32 %v1099_v28, %v369_v42  ;;  %v418_v45 = vpop.f32.mrf.mxu1  ;;  %v388_v42 = vadd.f32 %v1099_v28, %v1143_v32 }
  0xd9   :  { %v560_v47 = vpack.c.bf16 %v544_v43, %v544_v43  ;;  %v419_v48 = vadd.f32 %v418_v45, %v370_v44 }
  0xdb   :  { %577 = vst.msk [vmem:[%s1221_s4 + $0x18] sm:$0xf] %vm570_vm1, %v560_v47  ;;  %v468_v50 = vadd.f32 %v467_v18, %v419_v48  ;;  %v832_v47 = vunpack.c.h.bf16 %v845_v19  ;;  %v847_v48 = vld [vmem:[%s1220_s3 + $0x38] sm:$0xff]  }
  0xdd   :  { %v529_v51 = vadd.f32 %v824_v49, %v468_v50  ;;  %v475_v52 = vpop.f32.mrf.mxu2 }
  0xde   :  { %v372_v53 = vpop.f32.mrf.mxu0 }
  0xdf   :  { %v545_v55 = vmax.f32 %v529_v51, 0.0  ;;  %v373_v56 = vadd.f32 %v1099_v28, %v372_v53  ;;  %v421_v57 = vpop.f32.mrf.mxu1  ;;  %v437_v51 = vadd.f32 %v436_v38, %v388_v42  ;;  %v839_v53 = vunpack.c.l.bf16 %v847_v48 }
  0xe1   :  { %v561_v58 = vpack.c.bf16 %v545_v55, %v545_v55  ;;  %v422_v59 = vadd.f32 %v421_v57, %v373_v56  ;;  %v390_v57 = vadd.f32 %v1099_v28, %v1151_v46 }
  0xe3   :  { %578 = vst.msk [vmem:[%s1221_s4 + $0x1c] sm:$0xf] %vm570_vm1, %v561_v58  ;;  %v471_v62 = vadd.f32 %v470_v29, %v422_v59  ;;  %v438_v59 = vpop.f32.mrf.mxu3 }
  0xe5   :  { %v530_v63 = vadd.f32 %v827_v60, %v471_v62  ;;  %v477_v0 = vpop.f32.mrf.mxu2  ;;  %v439_v62 = vadd.f32 %v438_v59, %v390_v57 }
  0xe6   :  { %v374_v1 = vpop.f32.mrf.mxu0 }
  0xe7   :  { %v546_v2 = vmax.f32 %v530_v63, 0.0  ;;  %v375_v4 = vadd.f32 %v1099_v28, %v374_v1  ;;  %v423_v5 = vpop.f32.mrf.mxu1 }
  0xe9   :  { %v562_v7 = vpack.c.bf16 %v546_v2, %v546_v2  ;;  %v424_v8 = vadd.f32 %v423_v5, %v375_v4 }
  0xeb   :  { %579 = vst.msk [vmem:[%s1221_s4 + $0x20] sm:$0xf] %vm570_vm1, %v562_v7  ;;  %v473_v11 = vadd.f32 %v472_v41, %v424_v8 }
  0xed   :  { %v531_v15 = vadd.f32 %v828_v9, %v473_v11  ;;  %v480_v17 = vpop.f32.mrf.mxu2 }
  0xee   :  { %v481_v18 = vadd.f32 %v480_v17, %v432_v12  ;;  %v377_v3 = vpop.f32.mrf.mxu0 }
  0xef   :  { %v547_v20 = vmax.f32 %v531_v15, 0.0  ;;  %v378_v21 = vadd.f32 %v1099_v28, %v377_v3  ;;  %v426_v22 = vpop.f32.mrf.mxu1 }
  0xf0   :  { %v534_v24 = vadd.f32 %v835_v13, %v481_v18 }
  0xf1   :  { %v563_v25 = vpack.c.bf16 %v547_v20, %v547_v20  ;;  %v427_v26 = vadd.f32 %v426_v22, %v378_v21 }
  0xf2   :  { %v550_v29 = vmax.f32 %v534_v24, 0.0 }
  0xf3   :  { %580 = vst.msk [vmem:[%s1221_s4 + $0x24] sm:$0xf] %vm570_vm1, %v563_v25  ;;  %v476_v30 = vadd.f32 %v475_v52, %v427_v26 }
  0xf4   :  { %v566_v33 = vpack.c.bf16 %v550_v29, %v550_v29 }
  0xf5   :  { %v532_v35 = vadd.f32 %v831_v27, %v476_v30  ;;  %v482_v36 = vpop.f32.mrf.mxu2 }
  0xf6   :  { %583 = vst.msk [vmem:[%s1221_s4 + $0x30] sm:$0xf] %vm570_vm1, %v566_v33  ;;  %v483_v16 = vadd.f32 %v482_v36, %v434_v31  ;;  %v379_v37 = vpop.f32.mrf.mxu0 }
  0xf7   :  { %v548_v39 = vmax.f32 %v532_v35, 0.0  ;;  %v380_v40 = vadd.f32 %v1099_v28, %v379_v37  ;;  %v428_v41 = vpop.f32.mrf.mxu1 }
  0xf8   :  { %v535_v43 = vadd.f32 %v836_v34, %v483_v16 }
  0xf9   :  { %v564_v44 = vpack.c.bf16 %v548_v39, %v548_v39  ;;  %v429_v45 = vadd.f32 %v428_v41, %v380_v40 }
  0xfa   :  { %v551_v49 = vmax.f32 %v535_v43, 0.0 }
  0xfb   :  { %581 = vst.msk [vmem:[%s1221_s4 + $0x28] sm:$0xf] %vm570_vm1, %v564_v44  ;;  %v478_v50 = vadd.f32 %v477_v0, %v429_v45  ;;  %v840_v0 = vunpack.c.h.bf16 %v847_v48 }
  0xfc   :  { %v567_v52 = vpack.c.bf16 %v551_v49, %v551_v49 }
  0xfd   :  { %v533_v54 = vadd.f32 %v832_v47, %v478_v50  ;;  %v485_v32 = vpop.f32.mrf.mxu2 }
  0xfe   :  { %584 = vst.msk [vmem:[%s1221_s4 + $0x34] sm:$0xf] %vm570_vm1, %v567_v52  ;;  %v486_v55 = vadd.f32 %v485_v32, %v437_v51 }
  0xff   :  { %v549_v56 = vmax.f32 %v533_v54, 0.0 }
 0x100   :  { %v536_v58 = vadd.f32 %v839_v53, %v486_v55 }
 0x101   :  { %v565_v60 = vpack.c.bf16 %v549_v56, %v549_v56 }
 0x102   :  { %v552_v61 = vmax.f32 %v536_v58, 0.0 }
 0x103   :  { %582 = vst.msk [vmem:[%s1221_s4 + $0x2c] sm:$0xf] %vm570_vm1, %v565_v60 }
 0x104   :  { %v568_v63 = vpack.c.bf16 %v552_v61, %v552_v61 }
 0x105   :  { %v487_v1 = vpop.f32.mrf.mxu2 }
 0x106   :  { %585 = vst.msk [vmem:[%s1221_s4 + $0x38] sm:$0xf] %vm570_vm1, %v568_v63  ;;  %v488_v2 = vadd.f32 %v487_v1, %v439_v62 }
 0x108   :  { %v537_v28 = vadd.f32 %v840_v0, %v488_v2 }
 0x10a   :  { %v553_v46 = vmax.f32 %v537_v28, 0.0 }
 0x10c   :  { %v569_v4 = vpack.c.bf16 %v553_v46, %v553_v46 }
 0x10e   :  { %586 = vst.msk [vmem:[%s1221_s4 + $0x3c] sm:$0xf] %vm570_vm1, %v569_v4 }

// kernel: custom_resnet_forward.31
= control target key start
LH: loop header
LB: loop body
LE: loop exit
PB: predicated region body
PF: predicated region fallthrough
CT: control target
= control target key end

     0   :  { %vm315_vm0 = vcmask 261120   ;;  %vm519_vm1 = vcmask 257024   ;;  %s1086_s1 = inlined_call_operand.vmem [shape: bf16[288,32], index: 1, kind: input, shape index: {}]   ;;  %s1087_s0 = inlined_call_operand.vmem [shape: bf16[128,288], index: 0, kind: input, shape index: {}]   ;;  %s1088_s2 = inlined_call_operand.vmem [shape: f32[1,32], index: 2, kind: input, shape index: {}]   ;;  %s1089_s3 = inlined_call_operand.vmem [shape: bf16[128,32], index: 3, kind: output, shape index: {}]  }
   0x1   :  { %v747_v0 = vld [vmem:[%s1086_s1 + $0x38] sm:$0xff]  ;;  %v757_v1 = vld [vmem:[%s1086_s1 + $0x88] sm:$0xff]  ;;  %v746_v3 = vld [vmem:[%s1086_s1 + $0x30] sm:$0xff] }
   0x2   :  { %v755_v2 = vld [vmem:[%s1086_s1 + $0x78] sm:$0xff]  ;;  %340 = vmatpush.bf16.msra.mxu0 %v747_v0  ;;  %758 = vmatpush.bf16.msra.mxu3 %v747_v0  ;;  %v756_v4 = vld [vmem:[%s1086_s1 + $0x80] sm:$0xff]  ;;  %v754_v5 = vld [vmem:[%s1086_s1 + $0x70] sm:$0xff] }
   0x3   :  { %444 = vmatpush.bf16.msra.mxu2 %v757_v1  ;;  %389 = vmatpush.bf16.msra.mxu1 %v755_v2  ;;  %v550_v6 = vld [vmem:[%s1087_s0 + $0x8] sm:$0xf]  ;;  %v718_v7 = vld [vmem:[%s1087_s0 + $0x10] sm:$0xf0]  ;;  %v744_v11 = vld [vmem:[%s1086_s1 + $0x20] sm:$0xff] }
   0x4   :  { %v551_v8 = vor.u32 %v718_v7, %v550_v6  ;;  %v745_v9 = vld [vmem:[%s1086_s1 + $0x28] sm:$0xff]  ;;  %v752_v12 = vld [vmem:[%s1086_s1 + $0x60] sm:$0xff]  ;;  %v743_v13 = vld [vmem:[%s1086_s1 + $0x18] sm:$0xff] }
   0x5   :  { %v753_v10 = vld [vmem:[%s1086_s1 + $0x68] sm:$0xff]  ;;  %v751_v14 = vld [vmem:[%s1086_s1 + $0x58] sm:$0xff]  ;;  %v742_v15 = vld [vmem:[%s1086_s1 + $0x10] sm:$0xff] }
   0x6   :  { %341 = vmatpush.bf16.msra.mxu0 %v746_v3  ;;  %759 = vmatpush.bf16.msra.mxu3 %v746_v3  ;;  %v750_v16 = vld [vmem:[%s1086_s1 + $0x50] sm:$0xff]  ;;  %v562_v17 = vld [vmem:[%s1087_s0 + $0x20] sm:$0xf]  ;;  %v721_v18 = vld [vmem:[%s1087_s0 + $0x28] sm:$0xf0] }
   0x7   :  { %445 = vmatpush.bf16.msra.mxu2 %v756_v4  ;;  %390 = vmatpush.bf16.msra.mxu1 %v754_v5  ;;  %v563_v19 = vor.u32 %v721_v18, %v562_v17  ;;  %v741_v20 = vld [vmem:[%s1086_s1 + $0x8] sm:$0xff]  ;;  %v740_v22 = vld [vmem:[%s1086_s1] sm:$0xff]  ;;  %v614_v26 = vld [vmem:[%s1087_s0 + $0x90] sm:$0xf] }
   0x8   :  { %v749_v21 = vld [vmem:[%s1086_s1 + $0x48] sm:$0xff]  ;;  %v748_v23 = vld [vmem:[%s1086_s1 + $0x40] sm:$0xff]  ;;  %v735_v27 = vld [vmem:[%s1087_s0 + $0x98] sm:$0xf0] }
   0x9   :  { %v542_v24 = vld [vmem:[%s1087_s0] sm:$0xf]  ;;  %v717_v25 = vld [vmem:[%s1087_s0 + $0x8] sm:$0xf0]  ;;  %v716_v28 = vld [vmem:[%s1087_s0 + $0x4] sm:$0xf]  ;;  %v615_v31 = vor.u32 %v735_v27, %v614_v26 }
   0xa   :  { %708 = vmatmul.msk.bf16.vlgmr.msra.gmra.mxu2 %vm315_vm0, %v551_v8  ;;  %342 = vmatpush.bf16.msra.mxu0 %v745_v9  ;;  %v544_v29 = vld [vmem:[%s1087_s0 + $0xc] sm:$0xf0]  ;;  %v543_v30 = vor.u32 %v717_v25, %v542_v24  ;;  %v574_v33 = vld [vmem:[%s1087_s0 + $0x38] sm:$0xf]  ;;  %v724_v34 = vld [vmem:[%s1087_s0 + $0x40] sm:$0xf0] }
   0xb   :  { %760 = vmatpush.bf16.msra.mxu3 %v745_v9  ;;  %391 = vmatpush.bf16.msra.mxu1 %v753_v10  ;;  %v547_v32 = vor.u32 %v716_v28, %v544_v29  ;;  %v575_v35 = vor.u32 %v724_v34, %v574_v33  ;;  %v554_v36 = vld [vmem:[%s1087_s0 + $0x18] sm:$0xf]  ;;  %v720_v37 = vld [vmem:[%s1087_s0 + $0x20] sm:$0xf0]  ;;  %v626_v38 = vld [vmem:[%s1087_s0 + $0xa8] sm:$0xf] }
   0xc   :  { %v738_v39 = vld [vmem:[%s1087_s0 + $0xb0] sm:$0xf0]  ;;  %v719_v40 = vld [vmem:[%s1087_s0 + $0x1c] sm:$0xf]  ;;  %v556_v41 = vld [vmem:[%s1087_s0 + $0x24] sm:$0xf0]  ;;  %v555_v42 = vor.u32 %v720_v37, %v554_v36 }
   0xd   :  { %v627_v43 = vor.u32 %v738_v39, %v626_v38  ;;  %v559_v44 = vor.u32 %v719_v40, %v556_v41  ;;  %v586_v45 = vld [vmem:[%s1087_s0 + $0x50] sm:$0xf]  ;;  %v727_v46 = vld [vmem:[%s1087_s0 + $0x58] sm:$0xf0]  ;;  %v734_v50 = vld [vmem:[%s1087_s0 + $0x94] sm:$0xf] }
   0xe   :  { %343 = vmatpush.bf16.msra.mxu0 %v744_v11  ;;  %v587_v47 = vor.u32 %v727_v46, %v586_v45  ;;  %v566_v48 = vld [vmem:[%s1087_s0 + $0x30] sm:$0xf]  ;;  %v723_v49 = vld [vmem:[%s1087_s0 + $0x38] sm:$0xf0]  ;;  %v616_v51 = vld [vmem:[%s1087_s0 + $0x9c] sm:$0xf0] }
   0xf   :  { %761 = vmatpush.bf16.msra.mxu3 %v744_v11  ;;  %392 = vmatpush.bf16.msra.mxu1 %v752_v12  ;;  %v722_v52 = vld [vmem:[%s1087_s0 + $0x34] sm:$0xf]  ;;  %v568_v53 = vld [vmem:[%s1087_s0 + $0x3c] sm:$0xf0]  ;;  %v567_v54 = vor.u32 %v723_v49, %v566_v48  ;;  %v619_v55 = vor.u32 %v734_v50, %v616_v51  ;;  %v598_v57 = vld [vmem:[%s1087_s0 + $0x68] sm:$0xf] }
  0x10   :  { %v571_v56 = vor.u32 %v722_v52, %v568_v53  ;;  %v730_v58 = vld [vmem:[%s1087_s0 + $0x70] sm:$0xf0]  ;;  %v578_v60 = vld [vmem:[%s1087_s0 + $0x48] sm:$0xf]  ;;  %v737_v62 = vld [vmem:[%s1087_s0 + $0xac] sm:$0xf] }
  0x11   :  { %v599_v59 = vor.u32 %v730_v58, %v598_v57  ;;  %v726_v61 = vld [vmem:[%s1087_s0 + $0x50] sm:$0xf0]  ;;  %v628_v63 = vld [vmem:[%s1087_s0 + $0xb4] sm:$0xf0]  ;;  %v725_v0 = vld [vmem:[%s1087_s0 + $0x4c] sm:$0xf] }
  0x12   :  { %344 = vmatpush.bf16.msra.mxu0 %v743_v13  ;;  %v580_v1 = vld [vmem:[%s1087_s0 + $0x54] sm:$0xf0]  ;;  %v631_v3 = vor.u32 %v737_v62, %v628_v63  ;;  %v733_v6 = vld [vmem:[%s1087_s0 + $0x88] sm:$0xf0]  ;;  %v590_v8 = vld [vmem:[%s1087_s0 + $0x60] sm:$0xf] }
  0x13   :  { %762 = vmatpush.bf16.msra.mxu3 %v743_v13  ;;  %393 = vmatpush.bf16.msra.mxu1 %v751_v14  ;;  %v583_v4 = vor.u32 %v725_v0, %v580_v1  ;;  %v729_v9 = vld [vmem:[%s1087_s0 + $0x68] sm:$0xf0]  ;;  %v592_v11 = vld [vmem:[%s1087_s0 + $0x6c] sm:$0xf0]  ;;  %v602_v17 = vld [vmem:[%s1087_s0 + $0x78] sm:$0xf] }
  0x14   :  { %v732_v18 = vld [vmem:[%s1087_s0 + $0x80] sm:$0xf0]  ;;  %v739_v24 = vld [vmem:[%s1087_s0 + $0xb8] sm:$0xf0]  ;;  %v1004_v28 = vld [vmem:[%s1088_s2] ss:$0 sm:$0xff] }
  0x16   :  { %345 = vmatpush.bf16.msra.mxu0 %v742_v15 }
  0x17   :  { %763 = vmatpush.bf16.msra.mxu3 %v742_v15  ;;  %394 = vmatpush.bf16.msra.mxu1 %v750_v16  ;;  %v736_v15 = vld [vmem:[%s1087_s0 + $0xa0] sm:$0xf0] }
  0x1a   :  { %709 = vmatmul.msk.bf16.gmra.mxu2 %vm315_vm0, %v563_v19  ;;  %346 = vmatpush.bf16.msra.mxu0 %v741_v20  ;;  %v731_v19 = vld [vmem:[%s1087_s0 + $0x7c] sm:$0xf] }
  0x1b   :  { %764 = vmatpush.bf16.msra.mxu3 %v741_v20  ;;  %395 = vmatpush.bf16.msra.mxu1 %v749_v21  ;;  %v604_v20 = vld [vmem:[%s1087_s0 + $0x84] sm:$0xf0] }
  0x1e   :  { %347 = vmatpush.bf16.msra.mxu0 %v740_v22 }
  0x1f   :  { %765 = vmatpush.bf16.msra.mxu3 %v740_v22  ;;  %396 = vmatpush.bf16.msra.mxu1 %v748_v23  ;;  %v607_v22 = vor.u32 %v731_v19, %v604_v20 }
  0x21   :  { %348 = vmatmul.bf16.vlgmr.msra.gmra.mxu0 %v543_v30 }
  0x22   :  { %378 = vmatmul.bf16.vlgmr.msra.gmra.mxu3 %v615_v31  ;;  %397 = vmatmul.bf16.vlgmr.msra.gmra.mxu1 %v547_v32 }
  0x23   :  { %766 = vmatpush.bf16.msrb.mxu3 %v755_v2  ;;  %v579_v2 = vor.u32 %v726_v61, %v578_v60 }
  0x27   :  { %767 = vmatpush.bf16.msrb.mxu3 %v754_v5  ;;  %v610_v5 = vld [vmem:[%s1087_s0 + $0x80] sm:$0xf] }
  0x28   :  { %v611_v7 = vor.u32 %v733_v6, %v610_v5 }
  0x2a   :  { %710 = vmatmul.msk.bf16.gmra.mxu2 %vm315_vm0, %v575_v35 }
  0x2b   :  { %768 = vmatpush.bf16.msrb.mxu3 %v753_v10  ;;  %v728_v10 = vld [vmem:[%s1087_s0 + $0x64] sm:$0xf] }
  0x2c   :  { %v595_v13 = vor.u32 %v728_v10, %v592_v11 }
  0x2f   :  { %769 = vmatpush.bf16.msrb.mxu3 %v752_v12  ;;  %v591_v12 = vor.u32 %v729_v9, %v590_v8 }
  0x31   :  { %353 = vmatmul.bf16.gmra.mxu0 %v555_v42 }
  0x32   :  { %383 = vmatmul.bf16.gmra.mxu3 %v627_v43  ;;  %402 = vmatmul.bf16.gmra.mxu1 %v559_v44 }
  0x33   :  { %770 = vmatpush.bf16.msrb.mxu3 %v751_v14  ;;  %v622_v14 = vld [vmem:[%s1087_s0 + $0x98] sm:$0xf] }
  0x37   :  { %771 = vmatpush.bf16.msrb.mxu3 %v750_v16  ;;  %v623_v16 = vor.u32 %v736_v15, %v622_v14 }
  0x3a   :  { %711 = vmatmul.msk.bf16.gmra.mxu2 %vm315_vm0, %v587_v47 }
  0x3b   :  { %772 = vmatpush.bf16.msrb.mxu3 %v749_v21  ;;  %v603_v21 = vor.u32 %v732_v18, %v602_v17 }
  0x3f   :  { %773 = vmatpush.bf16.msrb.mxu3 %v748_v23  ;;  %v634_v23 = vld [vmem:[%s1087_s0 + $0xb0] sm:$0xf] }
  0x40   :  { %v635_v25 = vor.u32 %v739_v24, %v634_v23 }
  0x41   :  { %358 = vmatmul.bf16.gmra.mxu0 %v567_v54 }
  0x42   :  { %427 = vmatmul.bf16.vlgmr.msrb.gmra.mxu3 %v619_v55  ;;  %407 = vmatmul.bf16.gmra.mxu1 %v571_v56 }
  0x4a   :  { %712 = vmatmul.msk.bf16.gmra.mxu2 %vm315_vm0, %v599_v59 }
  0x51   :  { %363 = vmatmul.bf16.gmra.mxu0 %v579_v2 }
  0x52   :  { %432 = vmatmul.bf16.gmra.mxu3 %v631_v3  ;;  %412 = vmatmul.bf16.gmra.mxu1 %v583_v4 }
  0x5a   :  { %713 = vmatmul.msk.bf16.gmra.mxu2 %vm315_vm0, %v611_v7 }
  0x61   :  { %368 = vmatmul.bf16.gmra.mxu0 %v591_v12 }
  0x62   :  { %417 = vmatmul.bf16.gmra.mxu1 %v595_v13 }
  0x6a   :  { %714 = vmatmul.msk.bf16.gmra.mxu2 %vm315_vm0, %v623_v16 }
  0x71   :  { %373 = vmatmul.bf16.gmra.mxu0 %v603_v21 }
  0x72   :  { %422 = vmatmul.bf16.gmra.mxu1 %v607_v22 }
  0x7a   :  { %715 = vmatmul.msk.bf16.gmra.mxu2 %vm315_vm0, %v635_v25 }
  0x8d   :  { %v447_v26 = vpop.f32.mrf.mxu2 }
  0x95   :  { %v449_v27 = vpop.f32.mrf.mxu2 }
  0x9d   :  { %v452_v29 = vpop.f32.mrf.mxu2 }
  0x9e   :  { %v349_v30 = vpop.f32.mrf.mxu0 }
  0x9f   :  { %v350_v31 = vadd.f32 %v1004_v28, %v349_v30  ;;  %v398_v32 = vpop.f32.mrf.mxu1 }
  0xa1   :  { %v399_v33 = vadd.f32 %v398_v32, %v350_v31 }
  0xa3   :  { %v448_v34 = vadd.f32 %v447_v26, %v399_v33 }
  0xa5   :  { %v487_v35 = vmax.f32 %v448_v34, 0.0  ;;  %v454_v36 = vpop.f32.mrf.mxu2  ;;  %v379_v58 = vpop.f32.mrf.mxu3 }
  0xa6   :  { %v351_v37 = vpop.f32.mrf.mxu0 }
  0xa7   :  { %v503_v38 = vpack.c.bf16 %v487_v35, %v487_v35  ;;  %v352_v39 = vadd.f32 %v1004_v28, %v351_v37  ;;  %v400_v40 = vpop.f32.mrf.mxu1 }
  0xa9   :  { %520 = vst.msk [vmem:[%s1089_s3] sm:$0xf] %vm519_vm1, %v503_v38  ;;  %v401_v41 = vadd.f32 %v400_v40, %v352_v39 }
  0xab   :  { %v450_v42 = vadd.f32 %v449_v27, %v401_v41 }
  0xad   :  { %v488_v43 = vmax.f32 %v450_v42, 0.0  ;;  %v457_v44 = vpop.f32.mrf.mxu2  ;;  %v381_v4 = vpop.f32.mrf.mxu3 }
  0xae   :  { %v354_v45 = vpop.f32.mrf.mxu0 }
  0xaf   :  { %v504_v46 = vpack.c.bf16 %v488_v43, %v488_v43  ;;  %v355_v47 = vadd.f32 %v1004_v28, %v354_v45  ;;  %v403_v48 = vpop.f32.mrf.mxu1 }
  0xb1   :  { %521 = vst.msk [vmem:[%s1089_s3 + $0x4] sm:$0xf] %vm519_vm1, %v504_v46  ;;  %v404_v49 = vadd.f32 %v403_v48, %v355_v47  ;;  %v380_v47 = vadd.f32 %v1004_v28, %v379_v58 }
  0xb3   :  { %v453_v50 = vadd.f32 %v452_v29, %v404_v49 }
  0xb5   :  { %v489_v51 = vmax.f32 %v453_v50, 0.0  ;;  %v459_v52 = vpop.f32.mrf.mxu2  ;;  %v384_v16 = vpop.f32.mrf.mxu3 }
  0xb6   :  { %v356_v53 = vpop.f32.mrf.mxu0 }
  0xb7   :  { %v505_v54 = vpack.c.bf16 %v489_v51, %v489_v51  ;;  %v357_v55 = vadd.f32 %v1004_v28, %v356_v53  ;;  %v405_v56 = vpop.f32.mrf.mxu1 }
  0xb9   :  { %522 = vst.msk [vmem:[%s1089_s3 + $0x8] sm:$0xf] %vm519_vm1, %v505_v54  ;;  %v406_v57 = vadd.f32 %v405_v56, %v357_v55 }
  0xbb   :  { %v455_v59 = vadd.f32 %v454_v36, %v406_v57 }
  0xbd   :  { %v490_v60 = vmax.f32 %v455_v59, 0.0  ;;  %v462_v61 = vpop.f32.mrf.mxu2  ;;  %v386_v29 = vpop.f32.mrf.mxu3 }
  0xbe   :  { %v359_v62 = vpop.f32.mrf.mxu0 }
  0xbf   :  { %v506_v63 = vpack.c.bf16 %v490_v60, %v490_v60  ;;  %v360_v0 = vadd.f32 %v1004_v28, %v359_v62  ;;  %v408_v1 = vpop.f32.mrf.mxu1  ;;  %v382_v60 = vadd.f32 %v1004_v28, %v381_v4 }
  0xc1   :  { %523 = vst.msk [vmem:[%s1089_s3 + $0xc] sm:$0xf] %vm519_vm1, %v506_v63  ;;  %v409_v2 = vadd.f32 %v408_v1, %v360_v0 }
  0xc3   :  { %v458_v3 = vadd.f32 %v457_v44, %v409_v2 }
  0xc5   :  { %v491_v5 = vmax.f32 %v458_v3, 0.0  ;;  %v464_v6 = vpop.f32.mrf.mxu2  ;;  %v428_v39 = vpop.f32.mrf.mxu3 }
  0xc6   :  { %v361_v7 = vpop.f32.mrf.mxu0  ;;  %v429_v50 = vadd.f32 %v428_v39, %v380_v47 }
  0xc7   :  { %v507_v8 = vpack.c.bf16 %v491_v5, %v491_v5  ;;  %v362_v9 = vadd.f32 %v1004_v28, %v361_v7  ;;  %v410_v10 = vpop.f32.mrf.mxu1 }
  0xc9   :  { %524 = vst.msk [vmem:[%s1089_s3 + $0x10] sm:$0xf] %vm519_vm1, %v507_v8  ;;  %v411_v11 = vadd.f32 %v410_v10, %v362_v9  ;;  %v385_v9 = vadd.f32 %v1004_v28, %v384_v16  ;;  %v387_v16 = vadd.f32 %v1004_v28, %v386_v29 }
  0xcb   :  { %v460_v12 = vadd.f32 %v459_v52, %v411_v11 }
  0xcd   :  { %v492_v13 = vmax.f32 %v460_v12, 0.0  ;;  %v467_v14 = vpop.f32.mrf.mxu2  ;;  %v430_v51 = vpop.f32.mrf.mxu3 }
  0xce   :  { %v364_v15 = vpop.f32.mrf.mxu0  ;;  %v431_v0 = vadd.f32 %v430_v51, %v382_v60 }
  0xcf   :  { %v508_v17 = vpack.c.bf16 %v492_v13, %v492_v13  ;;  %v365_v18 = vadd.f32 %v1004_v28, %v364_v15  ;;  %v413_v19 = vpop.f32.mrf.mxu1 }
  0xd1   :  { %525 = vst.msk [vmem:[%s1089_s3 + $0x14] sm:$0xf] %vm519_vm1, %v508_v17  ;;  %v414_v20 = vadd.f32 %v413_v19, %v365_v18 }
  0xd3   :  { %v463_v21 = vadd.f32 %v462_v61, %v414_v20 }
  0xd5   :  { %v493_v22 = vmax.f32 %v463_v21, 0.0  ;;  %v469_v23 = vpop.f32.mrf.mxu2  ;;  %v433_v4 = vpop.f32.mrf.mxu3 }
  0xd6   :  { %v366_v24 = vpop.f32.mrf.mxu0 }
  0xd7   :  { %v509_v25 = vpack.c.bf16 %v493_v22, %v493_v22  ;;  %v367_v26 = vadd.f32 %v1004_v28, %v366_v24  ;;  %v415_v27 = vpop.f32.mrf.mxu1 }
  0xd9   :  { %526 = vst.msk [vmem:[%s1089_s3 + $0x18] sm:$0xf] %vm519_vm1, %v509_v25  ;;  %v416_v30 = vadd.f32 %v415_v27, %v367_v26 }
  0xdb   :  { %v465_v31 = vadd.f32 %v464_v6, %v416_v30 }
  0xdd   :  { %v494_v32 = vmax.f32 %v465_v31, 0.0  ;;  %v472_v33 = vpop.f32.mrf.mxu2  ;;  %v435_v21 = vpop.f32.mrf.mxu3 }
  0xde   :  { %v369_v34 = vpop.f32.mrf.mxu0 }
  0xdf   :  { %v510_v35 = vpack.c.bf16 %v494_v32, %v494_v32  ;;  %v370_v36 = vadd.f32 %v1004_v28, %v369_v34  ;;  %v418_v37 = vpop.f32.mrf.mxu1 }
  0xe1   :  { %527 = vst.msk [vmem:[%s1089_s3 + $0x1c] sm:$0xf] %vm519_vm1, %v510_v35  ;;  %v419_v38 = vadd.f32 %v418_v37, %v370_v36 }
  0xe3   :  { %v468_v40 = vadd.f32 %v467_v14, %v419_v38  ;;  %v434_v14 = vadd.f32 %v433_v4, %v385_v9 }
  0xe5   :  { %v495_v41 = vmax.f32 %v468_v40, 0.0  ;;  %v474_v42 = vpop.f32.mrf.mxu2 }
  0xe6   :  { %v371_v43 = vpop.f32.mrf.mxu0 }
  0xe7   :  { %v511_v44 = vpack.c.bf16 %v495_v41, %v495_v41  ;;  %v372_v45 = vadd.f32 %v1004_v28, %v371_v43  ;;  %v420_v46 = vpop.f32.mrf.mxu1 }
  0xe9   :  { %528 = vst.msk [vmem:[%s1089_s3 + $0x20] sm:$0xf] %vm519_vm1, %v511_v44  ;;  %v421_v48 = vadd.f32 %v420_v46, %v372_v45 }
  0xeb   :  { %v470_v49 = vadd.f32 %v469_v23, %v421_v48  ;;  %v436_v23 = vadd.f32 %v435_v21, %v387_v16 }
  0xed   :  { %v496_v52 = vmax.f32 %v470_v49, 0.0  ;;  %v477_v53 = vpop.f32.mrf.mxu2 }
  0xee   :  { %v478_v54 = vadd.f32 %v477_v53, %v429_v50  ;;  %v374_v55 = vpop.f32.mrf.mxu0 }
  0xef   :  { %v512_v56 = vpack.c.bf16 %v496_v52, %v496_v52  ;;  %v375_v57 = vadd.f32 %v1004_v28, %v374_v55  ;;  %v423_v59 = vpop.f32.mrf.mxu1 }
  0xf0   :  { %v499_v58 = vmax.f32 %v478_v54, 0.0 }
  0xf1   :  { %529 = vst.msk [vmem:[%s1089_s3 + $0x24] sm:$0xf] %vm519_vm1, %v512_v56  ;;  %v424_v61 = vadd.f32 %v423_v59, %v375_v57 }
  0xf2   :  { %v515_v62 = vpack.c.bf16 %v499_v58, %v499_v58 }
  0xf3   :  { %v473_v63 = vadd.f32 %v472_v33, %v424_v61 }
  0xf4   :  { %532 = vst.msk [vmem:[%s1089_s3 + $0x30] sm:$0xf] %vm519_vm1, %v515_v62 }
  0xf5   :  { %v497_v1 = vmax.f32 %v473_v63, 0.0  ;;  %v479_v2 = vpop.f32.mrf.mxu2 }
  0xf6   :  { %v480_v3 = vadd.f32 %v479_v2, %v431_v0  ;;  %v376_v5 = vpop.f32.mrf.mxu0 }
  0xf7   :  { %v513_v6 = vpack.c.bf16 %v497_v1, %v497_v1  ;;  %v377_v7 = vadd.f32 %v1004_v28, %v376_v5  ;;  %v425_v8 = vpop.f32.mrf.mxu1 }
  0xf8   :  { %v500_v10 = vmax.f32 %v480_v3, 0.0 }
  0xf9   :  { %530 = vst.msk [vmem:[%s1089_s3 + $0x28] sm:$0xf] %vm519_vm1, %v513_v6  ;;  %v426_v11 = vadd.f32 %v425_v8, %v377_v7 }
  0xfa   :  { %v516_v12 = vpack.c.bf16 %v500_v10, %v500_v10 }
  0xfb   :  { %v475_v13 = vadd.f32 %v474_v42, %v426_v11 }
  0xfc   :  { %533 = vst.msk [vmem:[%s1089_s3 + $0x34] sm:$0xf] %vm519_vm1, %v516_v12 }
  0xfd   :  { %v498_v15 = vmax.f32 %v475_v13, 0.0  ;;  %v482_v17 = vpop.f32.mrf.mxu2 }
  0xfe   :  { %v483_v18 = vadd.f32 %v482_v17, %v434_v14 }
  0xff   :  { %v514_v19 = vpack.c.bf16 %v498_v15, %v498_v15 }
 0x100   :  { %v501_v20 = vmax.f32 %v483_v18, 0.0 }
 0x101   :  { %531 = vst.msk [vmem:[%s1089_s3 + $0x2c] sm:$0xf] %vm519_vm1, %v514_v19 }
 0x102   :  { %v517_v22 = vpack.c.bf16 %v501_v20, %v501_v20 }
 0x104   :  { %534 = vst.msk [vmem:[%s1089_s3 + $0x38] sm:$0xf] %vm519_vm1, %v517_v22 }
 0x105   :  { %v484_v24 = vpop.f32.mrf.mxu2 }
 0x106   :  { %v485_v25 = vadd.f32 %v484_v24, %v436_v23 }
 0x108   :  { %v502_v26 = vmax.f32 %v485_v25, 0.0 }
 0x10a   :  { %v518_v27 = vpack.c.bf16 %v502_v26, %v502_v26 }
 0x10c   :  { %535 = vst.msk [vmem:[%s1089_s3 + $0x3c] sm:$0xf] %vm519_vm1, %v518_v27 }

// kernel: custom_resnet_forward.33
= control target key start
LH: loop header
LB: loop body
LE: loop exit
PB: predicated region body
PF: predicated region fallthrough
CT: control target
= control target key end

     0   :  { %vm201_vm0 = vcmask 261120   ;;  %vm273_vm1 = vcmask 519168   ;;  %s544_s1 = inlined_call_operand.vmem [shape: bf16[288,64], index: 1, kind: input, shape index: {}]   ;;  %s545_s0 = inlined_call_operand.vmem [shape: bf16[32,288], index: 0, kind: input, shape index: {}]   ;;  %s546_s2 = inlined_call_operand.vmem [shape: f32[1,64], index: 2, kind: input, shape index: {}]   ;;  %s547_s3 = inlined_call_operand.vmem [shape: bf16[32,64], index: 3, kind: output, shape index: {}]  }
   0x1   :  { %v393_v0 = vld [vmem:[%s544_s1 + $0x38] sm:$0xff]  ;;  %v392_v2 = vld [vmem:[%s544_s1 + $0x30] sm:$0xff]  ;;  %v403_v3 = vld [vmem:[%s544_s1 + $0x88] sm:$0xff] }
   0x2   :  { %v401_v1 = vld [vmem:[%s544_s1 + $0x78] sm:$0xff]  ;;  %208 = vmatpush.bf16.msra.mxu0 %v393_v0  ;;  %404 = vmatpush.bf16.msra.mxu3 %v393_v0  ;;  %v400_v4 = vld [vmem:[%s544_s1 + $0x70] sm:$0xff]  ;;  %v402_v5 = vld [vmem:[%s544_s1 + $0x80] sm:$0xff] }
   0x3   :  { %227 = vmatpush.bf16.msra.mxu1 %v401_v1  ;;  %252 = vmatpush.bf16.msra.mxu2 %v403_v3  ;;  %v292_v6 = vld [vmem:[%s545_s0 + $0x8] sm:$0xf]  ;;  %v382_v7 = vld [vmem:[%s545_s0 + $0x10] sm:$0xf0]  ;;  %v390_v11 = vld [vmem:[%s544_s1 + $0x20] sm:$0xff] }
   0x4   :  { %v391_v8 = vld [vmem:[%s544_s1 + $0x28] sm:$0xff]  ;;  %v293_v10 = vor.u32 %v382_v7, %v292_v6  ;;  %v398_v12 = vld [vmem:[%s544_s1 + $0x60] sm:$0xff]  ;;  %v389_v13 = vld [vmem:[%s544_s1 + $0x18] sm:$0xff] }
   0x5   :  { %v399_v9 = vld [vmem:[%s544_s1 + $0x68] sm:$0xff]  ;;  %v397_v14 = vld [vmem:[%s544_s1 + $0x58] sm:$0xff]  ;;  %v388_v15 = vld [vmem:[%s544_s1 + $0x10] sm:$0xff] }
   0x6   :  { %209 = vmatpush.bf16.msra.mxu0 %v392_v2  ;;  %405 = vmatpush.bf16.msra.mxu3 %v392_v2  ;;  %v396_v16 = vld [vmem:[%s544_s1 + $0x50] sm:$0xff]  ;;  %v304_v17 = vld [vmem:[%s545_s0 + $0x20] sm:$0xf]  ;;  %v385_v18 = vld [vmem:[%s545_s0 + $0x28] sm:$0xf0] }
   0x7   :  { %228 = vmatpush.bf16.msra.mxu1 %v400_v4  ;;  %253 = vmatpush.bf16.msra.mxu2 %v402_v5  ;;  %v387_v19 = vld [vmem:[%s544_s1 + $0x8] sm:$0xff]  ;;  %v305_v21 = vor.u32 %v385_v18, %v304_v17  ;;  %v386_v22 = vld [vmem:[%s544_s1] sm:$0xff]  ;;  %v296_v25 = vld [vmem:[%s545_s0 + $0x18] sm:$0xf] }
   0x8   :  { %v395_v20 = vld [vmem:[%s544_s1 + $0x48] sm:$0xff]  ;;  %v284_v23 = vld [vmem:[%s545_s0] sm:$0xf]  ;;  %v384_v26 = vld [vmem:[%s545_s0 + $0x20] sm:$0xf0] }
   0x9   :  { %v381_v24 = vld [vmem:[%s545_s0 + $0x8] sm:$0xf0]  ;;  %v394_v27 = vld [vmem:[%s544_s1 + $0x40] sm:$0xff]  ;;  %v286_v29 = vld [vmem:[%s545_s0 + $0xc] sm:$0xf0]  ;;  %v297_v31 = vor.u32 %v384_v26, %v296_v25 }
   0xa   :  { %210 = vmatpush.bf16.msra.mxu0 %v391_v8  ;;  %406 = vmatpush.bf16.msra.mxu3 %v391_v8  ;;  %v380_v28 = vld [vmem:[%s545_s0 + $0x4] sm:$0xf]  ;;  %v285_v30 = vor.u32 %v381_v24, %v284_v23  ;;  %v383_v33 = vld [vmem:[%s545_s0 + $0x1c] sm:$0xf]  ;;  %v298_v34 = vld [vmem:[%s545_s0 + $0x24] sm:$0xf0] }
   0xb   :  { %229 = vmatpush.bf16.msra.mxu1 %v399_v9  ;;  %378 = vmatmul.msk.bf16.vlgmr.msra.gmra.mxu2 %vm201_vm0, %v293_v10  ;;  %v289_v32 = vor.u32 %v380_v28, %v286_v29  ;;  %v301_v35 = vor.u32 %v383_v33, %v298_v34  ;;  %v412_v37 = vld [vmem:[%s546_s2] ss:$0 sm:$0xff] }
   0xe   :  { %211 = vmatpush.bf16.msra.mxu0 %v390_v11  ;;  %407 = vmatpush.bf16.msra.mxu3 %v390_v11 }
   0xf   :  { %230 = vmatpush.bf16.msra.mxu1 %v398_v12 }
  0x12   :  { %212 = vmatpush.bf16.msra.mxu0 %v389_v13  ;;  %408 = vmatpush.bf16.msra.mxu3 %v389_v13 }
  0x13   :  { %231 = vmatpush.bf16.msra.mxu1 %v397_v14 }
  0x16   :  { %213 = vmatpush.bf16.msra.mxu0 %v388_v15  ;;  %409 = vmatpush.bf16.msra.mxu3 %v388_v15 }
  0x17   :  { %232 = vmatpush.bf16.msra.mxu1 %v396_v16 }
  0x1a   :  { %214 = vmatpush.bf16.msra.mxu0 %v387_v19  ;;  %410 = vmatpush.bf16.msra.mxu3 %v387_v19 }
  0x1b   :  { %233 = vmatpush.bf16.msra.mxu1 %v395_v20  ;;  %379 = vmatmul.msk.bf16.gmra.mxu2 %vm201_vm0, %v305_v21 }
  0x1e   :  { %215 = vmatpush.bf16.msra.mxu0 %v386_v22  ;;  %411 = vmatpush.bf16.msra.mxu3 %v386_v22 }
  0x1f   :  { %234 = vmatpush.bf16.msra.mxu1 %v394_v27 }
  0x21   :  { %216 = vmatmul.bf16.vlgmr.msra.gmra.mxu0 %v285_v30  ;;  %221 = vmatmul.bf16.vlgmr.msra.gmra.mxu3 %v297_v31 }
  0x22   :  { %235 = vmatmul.bf16.vlgmr.msra.gmra.mxu1 %v289_v32 }
  0x32   :  { %240 = vmatmul.bf16.gmra.mxu1 %v301_v35 }
  0x8e   :  { %v255_v36 = vpop.f32.mrf.mxu2 }
  0x96   :  { %v257_v44 = vpop.f32.mrf.mxu2 }
  0x9e   :  { %v217_v38 = vpop.f32.mrf.mxu0  ;;  %v260_v55 = vpop.f32.mrf.mxu2 }
  0x9f   :  { %v218_v39 = vadd.f32 %v412_v37, %v217_v38  ;;  %v236_v40 = vpop.f32.mrf.mxu1 }
  0xa1   :  { %v237_v41 = vadd.f32 %v236_v40, %v218_v39 }
  0xa3   :  { %v256_v42 = vadd.f32 %v255_v36, %v237_v41 }
  0xa4   :  { %v222_v49 = vpop.f32.mrf.mxu3 }
  0xa5   :  { %v265_v43 = vmax.f32 %v256_v42, 0.0  ;;  %v223_v52 = vadd.f32 %v412_v37, %v222_v49 }
  0xa6   :  { %v219_v45 = vpop.f32.mrf.mxu0  ;;  %v262_v1 = vpop.f32.mrf.mxu2 }
  0xa7   :  { %v269_v46 = vpack.c.bf16 %v265_v43, %v265_v43  ;;  %v220_v47 = vadd.f32 %v412_v37, %v219_v45  ;;  %v238_v48 = vpop.f32.mrf.mxu1 }
  0xa9   :  { %274 = vst.msk [vmem:[%s547_s3] sm:$0xf] %vm273_vm1, %v269_v46  ;;  %v239_v50 = vadd.f32 %v238_v48, %v220_v47 }
  0xab   :  { %v258_v51 = vadd.f32 %v257_v44, %v239_v50 }
  0xac   :  { %v224_v59 = vpop.f32.mrf.mxu3 }
  0xad   :  { %v266_v53 = vmax.f32 %v258_v51, 0.0  ;;  %v225_v61 = vadd.f32 %v412_v37, %v224_v59 }
  0xaf   :  { %v270_v54 = vpack.c.bf16 %v266_v53, %v266_v53  ;;  %v241_v56 = vpop.f32.mrf.mxu1 }
  0xb0   :  { %v242_v57 = vadd.f32 %v241_v56, %v223_v52 }
  0xb1   :  { %275 = vst.msk [vmem:[%s547_s3 + $0x4] sm:$0xf] %vm273_vm1, %v270_v54 }
  0xb2   :  { %v261_v58 = vadd.f32 %v260_v55, %v242_v57 }
  0xb4   :  { %v267_v60 = vmax.f32 %v261_v58, 0.0 }
  0xb6   :  { %v271_v62 = vpack.c.bf16 %v267_v60, %v267_v60 }
  0xb7   :  { %v243_v63 = vpop.f32.mrf.mxu1 }
  0xb8   :  { %276 = vst.msk [vmem:[%s547_s3 + $0x8] sm:$0xf] %vm273_vm1, %v271_v62  ;;  %v244_v0 = vadd.f32 %v243_v63, %v225_v61 }
  0xba   :  { %v263_v2 = vadd.f32 %v262_v1, %v244_v0 }
  0xbc   :  { %v268_v3 = vmax.f32 %v263_v2, 0.0 }
  0xbe   :  { %v272_v4 = vpack.c.bf16 %v268_v3, %v268_v3 }
  0xc0   :  { %277 = vst.msk [vmem:[%s547_s3 + $0xc] sm:$0xf] %vm273_vm1, %v272_v4 }

// kernel: custom_resnet_forward.34
= control target key start
LH: loop header
LB: loop body
LE: loop exit
PB: predicated region body
PF: predicated region fallthrough
CT: control target
= control target key end

     0   :  { %vm49_vm0 = vcmask 261120   ;;  %vm79_vm1 = vcmask 519168   ;;  %s160_s1 = inlined_call_operand.vmem [shape: bf16[32,64], index: 1, kind: input, shape index: {}]   ;;  %s161_s2 = inlined_call_operand.vmem [shape: f32[1,64], index: 2, kind: input, shape index: {}]   ;;  %s162_s0 = inlined_call_operand.vmem [shape: bf16[32,32], index: 0, kind: input, shape index: {}]   ;;  %s163_s3 = inlined_call_operand.vmem [shape: bf16[32,64], index: 3, kind: output, shape index: {}]  }
   0x1   :  { %v109_v0 = vld [vmem:[%s160_s1 + $0x8] sm:$0xff]  ;;  %v108_v1 = vld [vmem:[%s160_s1] sm:$0xff] }
   0x2   :  { %62 = vmatpush.bf16.msra.mxu0 %v109_v0  ;;  %110 = vmatpush.bf16.msra.mxu1 %v109_v0  ;;  %v106_v2 = vld [vmem:[%s162_s0] sm:$0xff]  ;;  %v107_v3 = vld [vmem:[%s162_s0 + $0x8] sm:$0xff] }
   0x3   :  { %v112_v4 = vld [vmem:[%s161_s2] ss:$0 sm:$0xff] }
   0x6   :  { %63 = vmatpush.bf16.msra.mxu0 %v108_v1  ;;  %111 = vmatpush.bf16.msra.mxu1 %v108_v1 }
   0x9   :  { %104 = vmatmul.msk.bf16.vlgmr.msra.gmra.mxu0 %vm49_vm0, %v106_v2  ;;  %105 = vmatmul.msk.bf16.vlgmr.msra.gmra.mxu1 %vm49_vm0, %v107_v3 }
  0x86   :  { %v65_v5 = vpop.f32.mrf.mxu0  ;;  %v70_v6 = vpop.f32.mrf.mxu1 }
  0x87   :  { %v66_v7 = vadd.f32 %v112_v4, %v65_v5  ;;  %v71_v8 = vadd.f32 %v112_v4, %v70_v6 }
  0x89   :  { %v75_v9 = vpack.c.bf16 %v66_v7, %v66_v7  ;;  %v77_v10 = vpack.c.bf16 %v71_v8, %v71_v8 }
  0x8b   :  { %80 = vst.msk [vmem:[%s163_s3] sm:$0xf] %vm79_vm1, %v75_v9 }
  0x8c   :  { %82 = vst.msk [vmem:[%s163_s3 + $0x8] sm:$0xf] %vm79_vm1, %v77_v10 }
  0x8e   :  { %v67_v11 = vpop.f32.mrf.mxu0  ;;  %v72_v12 = vpop.f32.mrf.mxu1 }
  0x8f   :  { %v68_v13 = vadd.f32 %v112_v4, %v67_v11  ;;  %v73_v14 = vadd.f32 %v112_v4, %v72_v12 }
  0x91   :  { %v76_v15 = vpack.c.bf16 %v68_v13, %v68_v13  ;;  %v78_v16 = vpack.c.bf16 %v73_v14, %v73_v14 }
  0x93   :  { %81 = vst.msk [vmem:[%s163_s3 + $0x4] sm:$0xf] %vm79_vm1, %v76_v15 }
  0x94   :  { %83 = vst.msk [vmem:[%s163_s3 + $0xc] sm:$0xf] %vm79_vm1, %v78_v16 }

// kernel: custom_resnet_forward.36
= control target key start
LH: loop header
LB: loop body
LE: loop exit
PB: predicated region body
PF: predicated region fallthrough
CT: control target
= control target key end

     0   :  { %vm369_vm0 = vcmask 523264   ;;  %vm479_vm1 = vcmask 519168   ;;  %s932_s1 = inlined_call_operand.vmem [shape: bf16[576,64], index: 1, kind: input, shape index: {}]   ;;  %s933_s2 = inlined_call_operand.vmem [shape: f32[1,64], index: 2, kind: input, shape index: {}]   ;;  %s934_s0 = inlined_call_operand.vmem [shape: bf16[32,576], index: 0, kind: input, shape index: {}]   ;;  %s935_s3 = inlined_call_operand.vmem [shape: bf16[32,64], index: 3, kind: output, shape index: {}]  }
   0x1   :  { %v691_v0 = vld [vmem:[%s932_s1 + $0x38] sm:$0xff]  ;;  %v690_v4 = vld [vmem:[%s932_s1 + $0x30] sm:$0xff]  ;;  %v689_v8 = vld [vmem:[%s932_s1 + $0x28] sm:$0xff] }
   0x2   :  { %v699_v1 = vld [vmem:[%s932_s1 + $0x78] sm:$0xff]  ;;  %376 = vmatpush.bf16.msra.mxu0 %v691_v0  ;;  %v698_v5 = vld [vmem:[%s932_s1 + $0x70] sm:$0xff]  ;;  %v697_v9 = vld [vmem:[%s932_s1 + $0x68] sm:$0xff] }
   0x3   :  { %v707_v2 = vld [vmem:[%s932_s1 + $0xb8] sm:$0xff]  ;;  %395 = vmatpush.bf16.msra.mxu1 %v699_v1  ;;  %v706_v6 = vld [vmem:[%s932_s1 + $0xb0] sm:$0xff]  ;;  %v705_v10 = vld [vmem:[%s932_s1 + $0xa8] sm:$0xff] }
   0x4   :  { %v715_v3 = vld [vmem:[%s932_s1 + $0xf8] sm:$0xff]  ;;  %414 = vmatpush.bf16.msra.mxu2 %v707_v2  ;;  %v714_v7 = vld [vmem:[%s932_s1 + $0xf0] sm:$0xff]  ;;  %v713_v11 = vld [vmem:[%s932_s1 + $0xe8] sm:$0xff] }
   0x5   :  { %433 = vmatpush.bf16.msra.mxu3 %v715_v3  ;;  %v688_v12 = vld [vmem:[%s932_s1 + $0x20] sm:$0xff]  ;;  %v687_v16 = vld [vmem:[%s932_s1 + $0x18] sm:$0xff]  ;;  %v686_v20 = vld [vmem:[%s932_s1 + $0x10] sm:$0xff] }
   0x6   :  { %377 = vmatpush.bf16.msra.mxu0 %v690_v4  ;;  %v696_v13 = vld [vmem:[%s932_s1 + $0x60] sm:$0xff]  ;;  %v695_v17 = vld [vmem:[%s932_s1 + $0x58] sm:$0xff]  ;;  %v694_v21 = vld [vmem:[%s932_s1 + $0x50] sm:$0xff] }
   0x7   :  { %396 = vmatpush.bf16.msra.mxu1 %v698_v5  ;;  %v704_v14 = vld [vmem:[%s932_s1 + $0xa0] sm:$0xff]  ;;  %v703_v18 = vld [vmem:[%s932_s1 + $0x98] sm:$0xff]  ;;  %v702_v22 = vld [vmem:[%s932_s1 + $0x90] sm:$0xff] }
   0x8   :  { %415 = vmatpush.bf16.msra.mxu2 %v706_v6  ;;  %v712_v15 = vld [vmem:[%s932_s1 + $0xe0] sm:$0xff]  ;;  %v711_v19 = vld [vmem:[%s932_s1 + $0xd8] sm:$0xff]  ;;  %v710_v23 = vld [vmem:[%s932_s1 + $0xd0] sm:$0xff] }
   0x9   :  { %434 = vmatpush.bf16.msra.mxu3 %v714_v7  ;;  %v685_v24 = vld [vmem:[%s932_s1 + $0x8] sm:$0xff]  ;;  %v684_v28 = vld [vmem:[%s932_s1] sm:$0xff]  ;;  %v676_v33 = vld [vmem:[%s934_s0 + $0x10] sm:$0xf0] }
   0xa   :  { %378 = vmatpush.bf16.msra.mxu0 %v689_v8  ;;  %v693_v25 = vld [vmem:[%s932_s1 + $0x48] sm:$0xff]  ;;  %v692_v29 = vld [vmem:[%s932_s1 + $0x40] sm:$0xff]  ;;  %v492_v35 = vld [vmem:[%s934_s0 + $0x14] sm:$0xf0] }
   0xb   :  { %397 = vmatpush.bf16.msra.mxu1 %v697_v9  ;;  %v701_v26 = vld [vmem:[%s932_s1 + $0x88] sm:$0xff]  ;;  %v700_v30 = vld [vmem:[%s932_s1 + $0x80] sm:$0xff]  ;;  %v677_v37 = vld [vmem:[%s934_s0 + $0x18] sm:$0xf0] }
   0xc   :  { %416 = vmatpush.bf16.msra.mxu2 %v705_v10  ;;  %v709_v27 = vld [vmem:[%s932_s1 + $0xc8] sm:$0xff]  ;;  %v708_v31 = vld [vmem:[%s932_s1 + $0xc0] sm:$0xff]  ;;  %v719_v40 = vld [vmem:[%s932_s1 + $0x118] sm:$0xff] }
   0xd   :  { %435 = vmatpush.bf16.msra.mxu3 %v713_v11  ;;  %v490_v32 = vld [vmem:[%s934_s0] sm:$0xf]  ;;  %v674_v34 = vld [vmem:[%s934_s0 + $0x4] sm:$0xf]  ;;  %v498_v36 = vld [vmem:[%s934_s0 + $0x8] sm:$0xf] }
   0xe   :  { %379 = vmatpush.bf16.msra.mxu0 %v688_v12  ;;  %v675_v38 = vld [vmem:[%s934_s0 + $0xc] sm:$0xf]  ;;  %v500_v39 = vld [vmem:[%s934_s0 + $0x1c] sm:$0xf0]  ;;  %v491_v41 = vor.u32 %v676_v33, %v490_v32  ;;  %v495_v42 = vor.u32 %v674_v34, %v492_v35  ;;  %v499_v43 = vor.u32 %v677_v37, %v498_v36  ;;  %v718_v45 = vld [vmem:[%s932_s1 + $0x110] sm:$0xff] }
   0xf   :  { %398 = vmatpush.bf16.msra.mxu1 %v696_v13  ;;  %v503_v44 = vor.u32 %v675_v38, %v500_v39  ;;  %v717_v46 = vld [vmem:[%s932_s1 + $0x108] sm:$0xff]  ;;  %v716_v47 = vld [vmem:[%s932_s1 + $0x100] sm:$0xff]  ;;  %v681_v49 = vld [vmem:[%s934_s0 + $0x38] sm:$0xf0] }
  0x10   :  { %417 = vmatpush.bf16.msra.mxu2 %v704_v14  ;;  %v510_v48 = vld [vmem:[%s934_s0 + $0x28] sm:$0xf]  ;;  %v679_v50 = vld [vmem:[%s934_s0 + $0x2c] sm:$0xf]  ;;  %v512_v51 = vld [vmem:[%s934_s0 + $0x3c] sm:$0xf0] }
  0x11   :  { %436 = vmatpush.bf16.msra.mxu3 %v712_v15  ;;  %v518_v52 = vld [vmem:[%s934_s0 + $0x30] sm:$0xf]  ;;  %v682_v53 = vld [vmem:[%s934_s0 + $0x40] sm:$0xf0]  ;;  %v680_v54 = vld [vmem:[%s934_s0 + $0x34] sm:$0xf]  ;;  %v511_v56 = vor.u32 %v681_v49, %v510_v48  ;;  %v515_v57 = vor.u32 %v679_v50, %v512_v51 }
  0x12   :  { %380 = vmatpush.bf16.msra.mxu0 %v687_v16  ;;  %v520_v55 = vld [vmem:[%s934_s0 + $0x44] sm:$0xf0]  ;;  %v519_v58 = vor.u32 %v682_v53, %v518_v52  ;;  %v506_v60 = vld [vmem:[%s934_s0 + $0x10] sm:$0xf]  ;;  %v678_v61 = vld [vmem:[%s934_s0 + $0x20] sm:$0xf0] }
  0x13   :  { %399 = vmatpush.bf16.msra.mxu1 %v695_v17  ;;  %v523_v59 = vor.u32 %v680_v54, %v520_v55  ;;  %v526_v62 = vld [vmem:[%s934_s0 + $0x38] sm:$0xf]  ;;  %v683_v63 = vld [vmem:[%s934_s0 + $0x48] sm:$0xf0]  ;;  %v507_v0 = vor.u32 %v678_v61, %v506_v60  ;;  %v724_v11 = vld [vmem:[%s933_s2] ss:$0 sm:$0xff] }
  0x14   :  { %418 = vmatpush.bf16.msra.mxu2 %v703_v18  ;;  %v527_v1 = vor.u32 %v683_v63, %v526_v62 }
  0x15   :  { %437 = vmatpush.bf16.msra.mxu3 %v711_v19 }
  0x16   :  { %381 = vmatpush.bf16.msra.mxu0 %v686_v20 }
  0x17   :  { %400 = vmatpush.bf16.msra.mxu1 %v694_v21 }
  0x18   :  { %419 = vmatpush.bf16.msra.mxu2 %v702_v22 }
  0x19   :  { %438 = vmatpush.bf16.msra.mxu3 %v710_v23 }
  0x1a   :  { %382 = vmatpush.bf16.msra.mxu0 %v685_v24 }
  0x1b   :  { %401 = vmatpush.bf16.msra.mxu1 %v693_v25 }
  0x1c   :  { %420 = vmatpush.bf16.msra.mxu2 %v701_v26 }
  0x1d   :  { %439 = vmatpush.bf16.msra.mxu3 %v709_v27 }
  0x1e   :  { %383 = vmatpush.bf16.msra.mxu0 %v684_v28 }
  0x1f   :  { %402 = vmatpush.bf16.msra.mxu1 %v692_v29 }
  0x20   :  { %421 = vmatpush.bf16.msra.mxu2 %v700_v30 }
  0x21   :  { %440 = vmatpush.bf16.msra.mxu3 %v708_v31  ;;  %384 = vmatmul.bf16.vlgmr.msra.gmra.mxu0 %v491_v41 }
  0x22   :  { %456 = vmatpush.bf16.msrb.mxu0 %v719_v40  ;;  %403 = vmatmul.bf16.vlgmr.msra.gmra.mxu1 %v495_v42 }
  0x23   :  { %720 = vmatpush.bf16.msrb.mxu1 %v719_v40  ;;  %422 = vmatmul.bf16.vlgmr.msra.gmra.mxu2 %v499_v43 }
  0x24   :  { %441 = vmatmul.bf16.vlgmr.msra.gmra.mxu3 %v503_v44 }
  0x26   :  { %457 = vmatpush.bf16.msrb.mxu0 %v718_v45 }
  0x27   :  { %721 = vmatpush.bf16.msrb.mxu1 %v718_v45 }
  0x2a   :  { %458 = vmatpush.bf16.msrb.mxu0 %v717_v46 }
  0x2b   :  { %722 = vmatpush.bf16.msrb.mxu1 %v717_v46 }
  0x2e   :  { %459 = vmatpush.bf16.msrb.mxu0 %v716_v47 }
  0x2f   :  { %723 = vmatpush.bf16.msrb.mxu1 %v716_v47 }
  0x31   :  { %389 = vmatmul.bf16.gmra.mxu0 %v511_v56 }
  0x32   :  { %408 = vmatmul.bf16.gmra.mxu1 %v515_v57 }
  0x33   :  { %427 = vmatmul.bf16.gmra.mxu2 %v519_v58 }
  0x34   :  { %446 = vmatmul.bf16.gmra.mxu3 %v523_v59 }
  0x41   :  { %672 = vmatmul.msk.bf16.vlgmr.msrb.gmra.mxu0 %vm369_vm0, %v507_v0 }
  0x42   :  { %673 = vmatmul.msk.bf16.vlgmr.msrb.gmra.mxu1 %vm369_vm0, %v527_v1 }
  0x9e   :  { %v385_v2 = vpop.f32.mrf.mxu0 }
  0x9f   :  { %v404_v3 = vpop.f32.mrf.mxu1  ;;  %v386_v13 = vadd.f32 %v724_v11, %v385_v2 }
  0xa1   :  { %v405_v18 = vadd.f32 %v404_v3, %v386_v13 }
  0xa6   :  { %v423_v4 = vpop.f32.mrf.mxu2  ;;  %v387_v6 = vpop.f32.mrf.mxu0 }
  0xa7   :  { %v442_v5 = vpop.f32.mrf.mxu3  ;;  %v406_v7 = vpop.f32.mrf.mxu1  ;;  %v424_v20 = vadd.f32 %v423_v4, %v405_v18  ;;  %v388_v23 = vadd.f32 %v724_v11, %v387_v6 }
  0xa9   :  { %v443_v25 = vadd.f32 %v442_v5, %v424_v20  ;;  %v407_v30 = vadd.f32 %v406_v7, %v388_v23 }
  0xae   :  { %v425_v8 = vpop.f32.mrf.mxu2  ;;  %v390_v9 = vpop.f32.mrf.mxu0 }
  0xaf   :  { %v409_v10 = vpop.f32.mrf.mxu1  ;;  %v444_v12 = vpop.f32.mrf.mxu3  ;;  %v391_v14 = vadd.f32 %v724_v11, %v390_v9  ;;  %v426_v34 = vadd.f32 %v425_v8, %v407_v30 }
  0xb1   :  { %v410_v19 = vadd.f32 %v409_v10, %v391_v14  ;;  %v445_v41 = vadd.f32 %v444_v12, %v426_v34 }
  0xb6   :  { %v428_v15 = vpop.f32.mrf.mxu2  ;;  %v392_v16 = vpop.f32.mrf.mxu0 }
  0xb7   :  { %v411_v17 = vpop.f32.mrf.mxu1  ;;  %v429_v21 = vadd.f32 %v428_v15, %v410_v19  ;;  %v447_v22 = vpop.f32.mrf.mxu3  ;;  %v393_v24 = vadd.f32 %v724_v11, %v392_v16 }
  0xb9   :  { %v448_v26 = vadd.f32 %v447_v22, %v429_v21  ;;  %v412_v31 = vadd.f32 %v411_v17, %v393_v24 }
  0xbe   :  { %v430_v27 = vpop.f32.mrf.mxu2  ;;  %v461_v28 = vpop.f32.mrf.mxu0 }
  0xbf   :  { %v466_v29 = vpop.f32.mrf.mxu1  ;;  %v462_v32 = vadd.f32 %v461_v28, %v443_v25  ;;  %v431_v35 = vadd.f32 %v430_v27, %v412_v31  ;;  %v449_v40 = vpop.f32.mrf.mxu3 }
  0xc0   :  { %v467_v33 = vadd.f32 %v466_v29, %v448_v26 }
  0xc1   :  { %v471_v36 = vmax.f32 %v462_v32, 0.0  ;;  %v450_v42 = vadd.f32 %v449_v40, %v431_v35 }
  0xc2   :  { %v473_v37 = vmax.f32 %v467_v33, 0.0 }
  0xc3   :  { %v475_v38 = vpack.c.bf16 %v471_v36, %v471_v36 }
  0xc4   :  { %v477_v39 = vpack.c.bf16 %v473_v37, %v473_v37 }
  0xc5   :  { %480 = vst.msk [vmem:[%s935_s3] sm:$0xf] %vm479_vm1, %v475_v38 }
  0xc6   :  { %482 = vst.msk [vmem:[%s935_s3 + $0x8] sm:$0xf] %vm479_vm1, %v477_v39  ;;  %v463_v43 = vpop.f32.mrf.mxu0 }
  0xc7   :  { %v468_v44 = vpop.f32.mrf.mxu1  ;;  %v464_v45 = vadd.f32 %v463_v43, %v445_v41 }
  0xc8   :  { %v469_v46 = vadd.f32 %v468_v44, %v450_v42 }
  0xc9   :  { %v472_v47 = vmax.f32 %v464_v45, 0.0 }
  0xca   :  { %v474_v48 = vmax.f32 %v469_v46, 0.0 }
  0xcb   :  { %v476_v49 = vpack.c.bf16 %v472_v47, %v472_v47 }
  0xcc   :  { %v478_v50 = vpack.c.bf16 %v474_v48, %v474_v48 }
  0xcd   :  { %481 = vst.msk [vmem:[%s935_s3 + $0x4] sm:$0xf] %vm479_vm1, %v476_v49 }
  0xce   :  { %483 = vst.msk [vmem:[%s935_s3 + $0xc] sm:$0xf] %vm479_vm1, %v478_v50 }

// kernel: custom_resnet_forward.35
= control target key start
LH: loop header
LB: loop body
LE: loop exit
PB: predicated region body
PF: predicated region fallthrough
CT: control target
= control target key end

     0   :  { %vm372_vm0 = vcmask 523264   ;;  %vm494_vm1 = vcmask 519168   ;;  %s967_s1 = inlined_call_operand.vmem [shape: bf16[576,64], index: 1, kind: input, shape index: {}]   ;;  %s968_s2 = inlined_call_operand.vmem [shape: f32[1,64], index: 2, kind: input, shape index: {}]   ;;  %s969_s0 = inlined_call_operand.vmem [shape: bf16[32,576], index: 0, kind: input, shape index: {}]   ;;  %s970_s3 = inlined_call_operand.vmem [shape: bf16[32,64], index: 3, kind: input, shape index: {}]   ;;  %s971_s4 = inlined_call_operand.vmem [shape: bf16[32,64], index: 4, kind: output, shape index: {}]  }
   0x1   :  { %v706_v0 = vld [vmem:[%s967_s1 + $0x38] sm:$0xff]  ;;  %v705_v4 = vld [vmem:[%s967_s1 + $0x30] sm:$0xff]  ;;  %v704_v8 = vld [vmem:[%s967_s1 + $0x28] sm:$0xff] }
   0x2   :  { %v714_v1 = vld [vmem:[%s967_s1 + $0x78] sm:$0xff]  ;;  %379 = vmatpush.bf16.msra.mxu0 %v706_v0  ;;  %v713_v5 = vld [vmem:[%s967_s1 + $0x70] sm:$0xff]  ;;  %v712_v9 = vld [vmem:[%s967_s1 + $0x68] sm:$0xff] }
   0x3   :  { %v722_v2 = vld [vmem:[%s967_s1 + $0xb8] sm:$0xff]  ;;  %398 = vmatpush.bf16.msra.mxu1 %v714_v1  ;;  %v721_v6 = vld [vmem:[%s967_s1 + $0xb0] sm:$0xff]  ;;  %v720_v10 = vld [vmem:[%s967_s1 + $0xa8] sm:$0xff] }
   0x4   :  { %v730_v3 = vld [vmem:[%s967_s1 + $0xf8] sm:$0xff]  ;;  %417 = vmatpush.bf16.msra.mxu2 %v722_v2  ;;  %v729_v7 = vld [vmem:[%s967_s1 + $0xf0] sm:$0xff]  ;;  %v728_v11 = vld [vmem:[%s967_s1 + $0xe8] sm:$0xff] }
   0x5   :  { %436 = vmatpush.bf16.msra.mxu3 %v730_v3  ;;  %v703_v12 = vld [vmem:[%s967_s1 + $0x20] sm:$0xff]  ;;  %v702_v16 = vld [vmem:[%s967_s1 + $0x18] sm:$0xff]  ;;  %v701_v20 = vld [vmem:[%s967_s1 + $0x10] sm:$0xff] }
   0x6   :  { %380 = vmatpush.bf16.msra.mxu0 %v705_v4  ;;  %v711_v13 = vld [vmem:[%s967_s1 + $0x60] sm:$0xff]  ;;  %v710_v17 = vld [vmem:[%s967_s1 + $0x58] sm:$0xff]  ;;  %v709_v21 = vld [vmem:[%s967_s1 + $0x50] sm:$0xff] }
   0x7   :  { %399 = vmatpush.bf16.msra.mxu1 %v713_v5  ;;  %v719_v14 = vld [vmem:[%s967_s1 + $0xa0] sm:$0xff]  ;;  %v718_v18 = vld [vmem:[%s967_s1 + $0x98] sm:$0xff]  ;;  %v717_v22 = vld [vmem:[%s967_s1 + $0x90] sm:$0xff] }
   0x8   :  { %418 = vmatpush.bf16.msra.mxu2 %v721_v6  ;;  %v727_v15 = vld [vmem:[%s967_s1 + $0xe0] sm:$0xff]  ;;  %v726_v19 = vld [vmem:[%s967_s1 + $0xd8] sm:$0xff]  ;;  %v725_v23 = vld [vmem:[%s967_s1 + $0xd0] sm:$0xff] }
   0x9   :  { %437 = vmatpush.bf16.msra.mxu3 %v729_v7  ;;  %v700_v24 = vld [vmem:[%s967_s1 + $0x8] sm:$0xff]  ;;  %v699_v28 = vld [vmem:[%s967_s1] sm:$0xff]  ;;  %v691_v33 = vld [vmem:[%s969_s0 + $0x10] sm:$0xf0] }
   0xa   :  { %381 = vmatpush.bf16.msra.mxu0 %v704_v8  ;;  %v708_v25 = vld [vmem:[%s967_s1 + $0x48] sm:$0xff]  ;;  %v707_v29 = vld [vmem:[%s967_s1 + $0x40] sm:$0xff]  ;;  %v507_v35 = vld [vmem:[%s969_s0 + $0x14] sm:$0xf0] }
   0xb   :  { %400 = vmatpush.bf16.msra.mxu1 %v712_v9  ;;  %v716_v26 = vld [vmem:[%s967_s1 + $0x88] sm:$0xff]  ;;  %v715_v30 = vld [vmem:[%s967_s1 + $0x80] sm:$0xff]  ;;  %v692_v37 = vld [vmem:[%s969_s0 + $0x18] sm:$0xf0] }
   0xc   :  { %419 = vmatpush.bf16.msra.mxu2 %v720_v10  ;;  %v724_v27 = vld [vmem:[%s967_s1 + $0xc8] sm:$0xff]  ;;  %v723_v31 = vld [vmem:[%s967_s1 + $0xc0] sm:$0xff]  ;;  %v734_v40 = vld [vmem:[%s967_s1 + $0x118] sm:$0xff] }
   0xd   :  { %438 = vmatpush.bf16.msra.mxu3 %v728_v11  ;;  %v505_v32 = vld [vmem:[%s969_s0] sm:$0xf]  ;;  %v689_v34 = vld [vmem:[%s969_s0 + $0x4] sm:$0xf]  ;;  %v513_v36 = vld [vmem:[%s969_s0 + $0x8] sm:$0xf] }
   0xe   :  { %382 = vmatpush.bf16.msra.mxu0 %v703_v12  ;;  %v690_v38 = vld [vmem:[%s969_s0 + $0xc] sm:$0xf]  ;;  %v515_v39 = vld [vmem:[%s969_s0 + $0x1c] sm:$0xf0]  ;;  %v506_v41 = vor.u32 %v691_v33, %v505_v32  ;;  %v510_v42 = vor.u32 %v689_v34, %v507_v35  ;;  %v514_v43 = vor.u32 %v692_v37, %v513_v36  ;;  %v733_v45 = vld [vmem:[%s967_s1 + $0x110] sm:$0xff] }
   0xf   :  { %401 = vmatpush.bf16.msra.mxu1 %v711_v13  ;;  %v518_v44 = vor.u32 %v690_v38, %v515_v39  ;;  %v732_v46 = vld [vmem:[%s967_s1 + $0x108] sm:$0xff]  ;;  %v731_v47 = vld [vmem:[%s967_s1 + $0x100] sm:$0xff]  ;;  %v696_v49 = vld [vmem:[%s969_s0 + $0x38] sm:$0xf0] }
  0x10   :  { %420 = vmatpush.bf16.msra.mxu2 %v719_v14  ;;  %v525_v48 = vld [vmem:[%s969_s0 + $0x28] sm:$0xf]  ;;  %v694_v50 = vld [vmem:[%s969_s0 + $0x2c] sm:$0xf]  ;;  %v527_v51 = vld [vmem:[%s969_s0 + $0x3c] sm:$0xf0] }
  0x11   :  { %439 = vmatpush.bf16.msra.mxu3 %v727_v15  ;;  %v533_v52 = vld [vmem:[%s969_s0 + $0x30] sm:$0xf]  ;;  %v697_v53 = vld [vmem:[%s969_s0 + $0x40] sm:$0xf0]  ;;  %v695_v54 = vld [vmem:[%s969_s0 + $0x34] sm:$0xf]  ;;  %v526_v56 = vor.u32 %v696_v49, %v525_v48  ;;  %v530_v57 = vor.u32 %v694_v50, %v527_v51 }
  0x12   :  { %383 = vmatpush.bf16.msra.mxu0 %v702_v16  ;;  %v535_v55 = vld [vmem:[%s969_s0 + $0x44] sm:$0xf0]  ;;  %v534_v58 = vor.u32 %v697_v53, %v533_v52  ;;  %v521_v60 = vld [vmem:[%s969_s0 + $0x10] sm:$0xf]  ;;  %v693_v61 = vld [vmem:[%s969_s0 + $0x20] sm:$0xf0] }
  0x13   :  { %402 = vmatpush.bf16.msra.mxu1 %v710_v17  ;;  %v538_v59 = vor.u32 %v695_v54, %v535_v55  ;;  %v541_v62 = vld [vmem:[%s969_s0 + $0x38] sm:$0xf]  ;;  %v698_v63 = vld [vmem:[%s969_s0 + $0x48] sm:$0xf0]  ;;  %v522_v0 = vor.u32 %v693_v61, %v521_v60  ;;  %v748_v11 = vld [vmem:[%s968_s2] ss:$0 sm:$0xff] }
  0x14   :  { %421 = vmatpush.bf16.msra.mxu2 %v718_v18  ;;  %v542_v1 = vor.u32 %v698_v63, %v541_v62 }
  0x15   :  { %440 = vmatpush.bf16.msra.mxu3 %v726_v19 }
  0x16   :  { %384 = vmatpush.bf16.msra.mxu0 %v701_v20 }
  0x17   :  { %403 = vmatpush.bf16.msra.mxu1 %v709_v21 }
  0x18   :  { %422 = vmatpush.bf16.msra.mxu2 %v717_v22 }
  0x19   :  { %441 = vmatpush.bf16.msra.mxu3 %v725_v23  ;;  %v736_v23 = vld [vmem:[%s970_s3] sm:$0xff]  }
  0x1a   :  { %385 = vmatpush.bf16.msra.mxu0 %v700_v24  ;;  %v743_v24 = vld [vmem:[%s970_s3 + $0x8] sm:$0xff]  }
  0x1b   :  { %404 = vmatpush.bf16.msra.mxu1 %v708_v25 }
  0x1c   :  { %423 = vmatpush.bf16.msra.mxu2 %v716_v26 }
  0x1d   :  { %442 = vmatpush.bf16.msra.mxu3 %v724_v27 }
  0x1e   :  { %386 = vmatpush.bf16.msra.mxu0 %v699_v28 }
  0x1f   :  { %405 = vmatpush.bf16.msra.mxu1 %v707_v29 }
  0x20   :  { %424 = vmatpush.bf16.msra.mxu2 %v715_v30  ;;  %v737_v30 = vunpack.c.l.bf16 %v736_v23 }
  0x21   :  { %443 = vmatpush.bf16.msra.mxu3 %v723_v31  ;;  %387 = vmatmul.bf16.vlgmr.msra.gmra.mxu0 %v506_v41  ;;  %v741_v31 = vunpack.c.l.bf16 %v743_v24 }
  0x22   :  { %459 = vmatpush.bf16.msrb.mxu0 %v734_v40  ;;  %406 = vmatmul.bf16.vlgmr.msra.gmra.mxu1 %v510_v42 }
  0x23   :  { %744 = vmatpush.bf16.msrb.mxu1 %v734_v40  ;;  %425 = vmatmul.bf16.vlgmr.msra.gmra.mxu2 %v514_v43 }
  0x24   :  { %444 = vmatmul.bf16.vlgmr.msra.gmra.mxu3 %v518_v44 }
  0x26   :  { %460 = vmatpush.bf16.msrb.mxu0 %v733_v45 }
  0x27   :  { %745 = vmatpush.bf16.msrb.mxu1 %v733_v45  ;;  %v738_v45 = vunpack.c.h.bf16 %v736_v23 }
  0x2a   :  { %461 = vmatpush.bf16.msrb.mxu0 %v732_v46 }
  0x2b   :  { %746 = vmatpush.bf16.msrb.mxu1 %v732_v46  ;;  %v742_v46 = vunpack.c.h.bf16 %v743_v24 }
  0x2e   :  { %462 = vmatpush.bf16.msrb.mxu0 %v731_v47 }
  0x2f   :  { %747 = vmatpush.bf16.msrb.mxu1 %v731_v47 }
  0x31   :  { %392 = vmatmul.bf16.gmra.mxu0 %v526_v56 }
  0x32   :  { %411 = vmatmul.bf16.gmra.mxu1 %v530_v57 }
  0x33   :  { %430 = vmatmul.bf16.gmra.mxu2 %v534_v58 }
  0x34   :  { %449 = vmatmul.bf16.gmra.mxu3 %v538_v59 }
  0x41   :  { %687 = vmatmul.msk.bf16.vlgmr.msrb.gmra.mxu0 %vm372_vm0, %v522_v0 }
  0x42   :  { %688 = vmatmul.msk.bf16.vlgmr.msrb.gmra.mxu1 %vm372_vm0, %v542_v1 }
  0x9e   :  { %v388_v2 = vpop.f32.mrf.mxu0 }
  0x9f   :  { %v407_v3 = vpop.f32.mrf.mxu1  ;;  %v389_v13 = vadd.f32 %v748_v11, %v388_v2 }
  0xa1   :  { %v408_v18 = vadd.f32 %v407_v3, %v389_v13 }
  0xa6   :  { %v426_v4 = vpop.f32.mrf.mxu2  ;;  %v390_v6 = vpop.f32.mrf.mxu0 }
  0xa7   :  { %v445_v5 = vpop.f32.mrf.mxu3  ;;  %v409_v7 = vpop.f32.mrf.mxu1  ;;  %v427_v20 = vadd.f32 %v426_v4, %v408_v18  ;;  %v391_v25 = vadd.f32 %v748_v11, %v390_v6 }
  0xa9   :  { %v446_v27 = vadd.f32 %v445_v5, %v427_v20  ;;  %v410_v34 = vadd.f32 %v409_v7, %v391_v25 }
  0xae   :  { %v428_v8 = vpop.f32.mrf.mxu2  ;;  %v393_v9 = vpop.f32.mrf.mxu0 }
  0xaf   :  { %v412_v10 = vpop.f32.mrf.mxu1  ;;  %v447_v12 = vpop.f32.mrf.mxu3  ;;  %v394_v14 = vadd.f32 %v748_v11, %v393_v9  ;;  %v429_v38 = vadd.f32 %v428_v8, %v410_v34 }
  0xb1   :  { %v413_v19 = vadd.f32 %v412_v10, %v394_v14  ;;  %v448_v47 = vadd.f32 %v447_v12, %v429_v38 }
  0xb6   :  { %v431_v15 = vpop.f32.mrf.mxu2  ;;  %v395_v16 = vpop.f32.mrf.mxu0 }
  0xb7   :  { %v414_v17 = vpop.f32.mrf.mxu1  ;;  %v432_v21 = vadd.f32 %v431_v15, %v413_v19  ;;  %v450_v22 = vpop.f32.mrf.mxu3  ;;  %v396_v26 = vadd.f32 %v748_v11, %v395_v16 }
  0xb9   :  { %v451_v28 = vadd.f32 %v450_v22, %v432_v21  ;;  %v415_v35 = vadd.f32 %v414_v17, %v396_v26 }
  0xbe   :  { %v433_v29 = vpop.f32.mrf.mxu2  ;;  %v464_v32 = vpop.f32.mrf.mxu0 }
  0xbf   :  { %v469_v33 = vpop.f32.mrf.mxu1  ;;  %v465_v36 = vadd.f32 %v464_v32, %v446_v27  ;;  %v434_v39 = vadd.f32 %v433_v29, %v415_v35  ;;  %v452_v44 = vpop.f32.mrf.mxu3 }
  0xc0   :  { %v470_v37 = vadd.f32 %v469_v33, %v451_v28 }
  0xc1   :  { %v482_v40 = vadd.f32 %v737_v30, %v465_v36  ;;  %v453_v48 = vadd.f32 %v452_v44, %v434_v39 }
  0xc2   :  { %v484_v41 = vadd.f32 %v741_v31, %v470_v37 }
  0xc3   :  { %v486_v42 = vmax.f32 %v482_v40, 0.0 }
  0xc4   :  { %v488_v43 = vmax.f32 %v484_v41, 0.0 }
  0xc5   :  { %v490_v49 = vpack.c.bf16 %v486_v42, %v486_v42 }
  0xc6   :  { %v492_v50 = vpack.c.bf16 %v488_v43, %v488_v43  ;;  %v466_v51 = vpop.f32.mrf.mxu0 }
  0xc7   :  { %v471_v52 = vpop.f32.mrf.mxu1  ;;  %495 = vst.msk [vmem:[%s971_s4] sm:$0xf] %vm494_vm1, %v490_v49  ;;  %v467_v53 = vadd.f32 %v466_v51, %v448_v47 }
  0xc8   :  { %v472_v54 = vadd.f32 %v471_v52, %v453_v48  ;;  %497 = vst.msk [vmem:[%s971_s4 + $0x8] sm:$0xf] %vm494_vm1, %v492_v50 }
  0xc9   :  { %v483_v55 = vadd.f32 %v738_v45, %v467_v53 }
  0xca   :  { %v485_v56 = vadd.f32 %v742_v46, %v472_v54 }
  0xcb   :  { %v487_v57 = vmax.f32 %v483_v55, 0.0 }
  0xcc   :  { %v489_v58 = vmax.f32 %v485_v56, 0.0 }
  0xcd   :  { %v491_v59 = vpack.c.bf16 %v487_v57, %v487_v57 }
  0xce   :  { %v493_v60 = vpack.c.bf16 %v489_v58, %v489_v58 }
  0xcf   :  { %496 = vst.msk [vmem:[%s971_s4 + $0x4] sm:$0xf] %vm494_vm1, %v491_v59 }
  0xd0   :  { %498 = vst.msk [vmem:[%s971_s4 + $0xc] sm:$0xf] %vm494_vm1, %v493_v60 }

// kernel: custom_resnet_forward.39
= control target key start
LH: loop header
LB: loop body
LE: loop exit
PB: predicated region body
PF: predicated region fallthrough
CT: control target
= control target key end

     0   :  { %vm52_vm0 = vcmask 523264   ;;  %s138_s1 = inlined_call_operand.vmem [shape: bf16[64,128], index: 1, kind: input, shape index: {}]   ;;  %s139_s2 = inlined_call_operand.vmem [shape: f32[1,128], index: 2, kind: input, shape index: {}]   ;;  %s140_s0 = inlined_call_operand.vmem [shape: bf16[8,64], index: 0, kind: input, shape index: {}]   ;;  %s141_s3 = inlined_call_operand.vmem [shape: bf16[8,128], index: 3, kind: output, shape index: {}]  }
   0x1   :  { %v95_v0 = vld [vmem:[%s138_s1 + $0x18] sm:$0xff]  ;;  %v94_v1 = vld [vmem:[%s138_s1 + $0x10] sm:$0xff]  ;;  %v93_v2 = vld [vmem:[%s138_s1 + $0x8] sm:$0xff] }
   0x2   :  { %60 = vmatpush.bf16.msra.mxu0 %v95_v0  ;;  %v92_v3 = vld [vmem:[%s138_s1] sm:$0xff] }
   0x3   :  { %v15_v4 = vld [vmem:[%s140_s0] sm:$0xf] }
   0x4   :  { %v96_v5 = vld [vmem:[%s139_s2] ss:$0 sm:$0xff] }
   0x6   :  { %61 = vmatpush.bf16.msra.mxu0 %v94_v1 }
   0xa   :  { %62 = vmatpush.bf16.msra.mxu0 %v93_v2 }
   0xe   :  { %63 = vmatpush.bf16.msra.mxu0 %v92_v3 }
  0x11   :  { %91 = vmatmul.msk.bf16.vlgmr.msra.gmra.mxu0 %vm52_vm0, %v15_v4 }
  0x8e   :  { %v65_v6 = vpop.f32.mrf.mxu0 }
  0x8f   :  { %v66_v7 = vadd.f32 %v96_v5, %v65_v6 }
  0x91   :  { %v69_v8 = vpack.c.bf16 %v66_v7, %v66_v7 }
  0x93   :  { %70 = vst [vmem:[%s141_s3] sm:$0xf] %v69_v8 }
  0x96   :  { %v67_v9 = vpop.f32.mrf.mxu0 }

// kernel: custom_resnet_forward.38
= control target key start
LH: loop header
LB: loop body
LE: loop exit
PB: predicated region body
PF: predicated region fallthrough
CT: control target
= control target key end

     0   :  { %vm327_vm0 = vcmask 523264   ;;  %s728_s1 = inlined_call_operand.vmem [shape: bf16[576,128], index: 1, kind: input, shape index: {}]   ;;  %s729_s2 = inlined_call_operand.vmem [shape: f32[1,128], index: 2, kind: input, shape index: {}]   ;;  %s730_s0 = inlined_call_operand.vmem [shape: bf16[8,576], index: 0, kind: input, shape index: {}]   ;;  %s731_s3 = inlined_call_operand.vmem [shape: bf16[8,128], index: 3, kind: output, shape index: {}]  }
   0x1   :  { %v555_v0 = vld [vmem:[%s728_s1 + $0x38] sm:$0xff]  ;;  %v554_v4 = vld [vmem:[%s728_s1 + $0x30] sm:$0xff]  ;;  %v553_v8 = vld [vmem:[%s728_s1 + $0x28] sm:$0xff] }
   0x2   :  { %v571_v1 = vld [vmem:[%s728_s1 + $0xb8] sm:$0xff]  ;;  %331 = vmatpush.bf16.msra.mxu0 %v555_v0  ;;  %v570_v5 = vld [vmem:[%s728_s1 + $0xb0] sm:$0xff]  ;;  %v569_v9 = vld [vmem:[%s728_s1 + $0xa8] sm:$0xff] }
   0x3   :  { %v579_v2 = vld [vmem:[%s728_s1 + $0xf8] sm:$0xff]  ;;  %357 = vmatpush.bf16.msra.mxu2 %v571_v1  ;;  %v578_v6 = vld [vmem:[%s728_s1 + $0xf0] sm:$0xff]  ;;  %v577_v10 = vld [vmem:[%s728_s1 + $0xe8] sm:$0xff] }
   0x4   :  { %v563_v3 = vld [vmem:[%s728_s1 + $0x78] sm:$0xff]  ;;  %370 = vmatpush.bf16.msra.mxu3 %v579_v2  ;;  %v562_v7 = vld [vmem:[%s728_s1 + $0x70] sm:$0xff]  ;;  %v561_v11 = vld [vmem:[%s728_s1 + $0x68] sm:$0xff] }
   0x5   :  { %344 = vmatpush.bf16.msra.mxu1 %v563_v3  ;;  %v552_v12 = vld [vmem:[%s728_s1 + $0x20] sm:$0xff]  ;;  %v551_v16 = vld [vmem:[%s728_s1 + $0x18] sm:$0xff]  ;;  %v550_v20 = vld [vmem:[%s728_s1 + $0x10] sm:$0xff] }
   0x6   :  { %332 = vmatpush.bf16.msra.mxu0 %v554_v4  ;;  %v568_v13 = vld [vmem:[%s728_s1 + $0xa0] sm:$0xff]  ;;  %v567_v17 = vld [vmem:[%s728_s1 + $0x98] sm:$0xff]  ;;  %v566_v21 = vld [vmem:[%s728_s1 + $0x90] sm:$0xff] }
   0x7   :  { %358 = vmatpush.bf16.msra.mxu2 %v570_v5  ;;  %v576_v14 = vld [vmem:[%s728_s1 + $0xe0] sm:$0xff]  ;;  %v575_v18 = vld [vmem:[%s728_s1 + $0xd8] sm:$0xff]  ;;  %v574_v22 = vld [vmem:[%s728_s1 + $0xd0] sm:$0xff] }
   0x8   :  { %371 = vmatpush.bf16.msra.mxu3 %v578_v6  ;;  %v560_v15 = vld [vmem:[%s728_s1 + $0x60] sm:$0xff]  ;;  %v559_v19 = vld [vmem:[%s728_s1 + $0x58] sm:$0xff]  ;;  %v558_v23 = vld [vmem:[%s728_s1 + $0x50] sm:$0xff] }
   0x9   :  { %345 = vmatpush.bf16.msra.mxu1 %v562_v7  ;;  %v549_v24 = vld [vmem:[%s728_s1 + $0x8] sm:$0xff]  ;;  %v15_v26 = vld [vmem:[%s730_s0] sm:$0xff]  ;;  %v583_v38 = vld [vmem:[%s728_s1 + $0x118] sm:$0xff] }
   0xa   :  { %333 = vmatpush.bf16.msra.mxu0 %v553_v8  ;;  %v565_v25 = vld [vmem:[%s728_s1 + $0x88] sm:$0xff]  ;;  %v97_v30 = vunpack.c.l.b16 %v15_v26  ;;  %v548_v32 = vld [vmem:[%s728_s1] sm:$0xff]  ;;  %v98_v35 = vunpack.c.h.b16 %v15_v26  ;;  %v582_v43 = vld [vmem:[%s728_s1 + $0x110] sm:$0xff] }
   0xb   :  { %359 = vmatpush.bf16.msra.mxu2 %v569_v9  ;;  %v16_v27 = vld [vmem:[%s730_s0 + $0x8] sm:$0xff]  ;;  %v564_v33 = vld [vmem:[%s728_s1 + $0x80] sm:$0xff]  ;;  %v17_v45 = vld [vmem:[%s730_s0 + $0x10] sm:$0xf] }
   0xc   :  { %372 = vmatpush.bf16.msra.mxu3 %v577_v10  ;;  %v573_v28 = vld [vmem:[%s728_s1 + $0xc8] sm:$0xff]  ;;  %v99_v31 = vunpack.c.l.b16 %v16_v27  ;;  %v100_v34 = vunpack.c.h.b16 %v16_v27  ;;  %v572_v36 = vld [vmem:[%s728_s1 + $0xc0] sm:$0xff]  ;;  %v102_v39 = vpack.c.b16 %v97_v30, %v97_v30  ;;  %v103_v42 = vpack.c.b16 %v98_v35, %v98_v35 }
   0xd   :  { %346 = vmatpush.bf16.msra.mxu1 %v561_v11  ;;  %v557_v29 = vld [vmem:[%s728_s1 + $0x48] sm:$0xff]  ;;  %v556_v37 = vld [vmem:[%s728_s1 + $0x40] sm:$0xff]  ;;  %v101_v47 = vunpack.c.l.b16 %v17_v45 }
   0xe   :  { %334 = vmatpush.bf16.msra.mxu0 %v552_v12  ;;  %v104_v40 = vpack.c.b16 %v99_v31, %v99_v31  ;;  %v105_v41 = vpack.c.b16 %v100_v34, %v100_v34  ;;  %v581_v44 = vld [vmem:[%s728_s1 + $0x108] sm:$0xff]  ;;  %v580_v46 = vld [vmem:[%s728_s1 + $0x100] sm:$0xff] }
   0xf   :  { %360 = vmatpush.bf16.msra.mxu2 %v568_v13  ;;  %v106_v48 = vpack.c.b16 %v101_v47, %v101_v47  ;;  %v584_v50 = vld [vmem:[%s729_s2] ss:$0 sm:$0xff] }
  0x10   :  { %373 = vmatpush.bf16.msra.mxu3 %v576_v14 }
  0x11   :  { %347 = vmatpush.bf16.msra.mxu1 %v560_v15 }
  0x12   :  { %335 = vmatpush.bf16.msra.mxu0 %v551_v16 }
  0x13   :  { %361 = vmatpush.bf16.msra.mxu2 %v567_v17 }
  0x14   :  { %374 = vmatpush.bf16.msra.mxu3 %v575_v18 }
  0x15   :  { %348 = vmatpush.bf16.msra.mxu1 %v559_v19 }
  0x16   :  { %336 = vmatpush.bf16.msra.mxu0 %v550_v20 }
  0x17   :  { %362 = vmatpush.bf16.msra.mxu2 %v566_v21 }
  0x18   :  { %375 = vmatpush.bf16.msra.mxu3 %v574_v22 }
  0x19   :  { %349 = vmatpush.bf16.msra.mxu1 %v558_v23 }
  0x1a   :  { %337 = vmatpush.bf16.msra.mxu0 %v549_v24 }
  0x1b   :  { %363 = vmatpush.bf16.msra.mxu2 %v565_v25 }
  0x1c   :  { %376 = vmatpush.bf16.msra.mxu3 %v573_v28 }
  0x1d   :  { %350 = vmatpush.bf16.msra.mxu1 %v557_v29 }
  0x1e   :  { %338 = vmatpush.bf16.msra.mxu0 %v548_v32 }
  0x1f   :  { %364 = vmatpush.bf16.msra.mxu2 %v564_v33 }
  0x20   :  { %377 = vmatpush.bf16.msra.mxu3 %v572_v36 }
  0x21   :  { %351 = vmatpush.bf16.msra.mxu1 %v556_v37  ;;  %339 = vmatmul.bf16.vlgmr.msra.gmra.mxu0 %v102_v39 }
  0x22   :  { %387 = vmatpush.bf16.msrb.mxu0 %v583_v38  ;;  %365 = vmatmul.bf16.vlgmr.msra.gmra.mxu2 %v104_v40 }
  0x23   :  { %378 = vmatmul.bf16.vlgmr.msra.gmra.mxu3 %v105_v41 }
  0x24   :  { %352 = vmatmul.bf16.vlgmr.msra.gmra.mxu1 %v103_v42 }
  0x26   :  { %388 = vmatpush.bf16.msrb.mxu0 %v582_v43 }
  0x2a   :  { %389 = vmatpush.bf16.msrb.mxu0 %v581_v44 }
  0x2e   :  { %390 = vmatpush.bf16.msrb.mxu0 %v580_v46 }
  0x31   :  { %547 = vmatmul.msk.bf16.vlgmr.msrb.gmra.mxu0 %vm327_vm0, %v106_v48 }
  0x9e   :  { %v340_v49 = vpop.f32.mrf.mxu0 }
  0x9f   :  { %v341_v52 = vadd.f32 %v584_v50, %v340_v49 }
  0xa1   :  { %v353_v51 = vpop.f32.mrf.mxu1 }
  0xa2   :  { %v354_v56 = vadd.f32 %v353_v51, %v341_v52 }
  0xa5   :  { %v366_v53 = vpop.f32.mrf.mxu2 }
  0xa6   :  { %v379_v54 = vpop.f32.mrf.mxu3  ;;  %v342_v55 = vpop.f32.mrf.mxu0  ;;  %v367_v58 = vadd.f32 %v366_v53, %v354_v56 }
  0xa8   :  { %v380_v60 = vadd.f32 %v379_v54, %v367_v58 }
  0xa9   :  { %v355_v57 = vpop.f32.mrf.mxu1 }
  0xad   :  { %v368_v59 = vpop.f32.mrf.mxu2 }
  0xae   :  { %v381_v61 = vpop.f32.mrf.mxu3  ;;  %v392_v62 = vpop.f32.mrf.mxu0 }
  0xaf   :  { %v393_v63 = vadd.f32 %v392_v62, %v380_v60 }
  0xb1   :  { %v396_v0 = vmax.f32 %v393_v63, 0.0 }
  0xb3   :  { %v397_v1 = vpack.c.bf16 %v396_v0, %v396_v0 }
  0xb5   :  { %398 = vst [vmem:[%s731_s3] sm:$0xf] %v397_v1 }
  0xb6   :  { %v394_v2 = vpop.f32.mrf.mxu0 }

// kernel: custom_resnet_forward.40
= control target key start
LH: loop header
LB: loop body
LE: loop exit
PB: predicated region body
PF: predicated region fallthrough
CT: control target
= control target key end

     0   :  { %s1387_s1 = inlined_call_operand.vmem [shape: bf16[1152,128], index: 1, kind: input, shape index: {}]   ;;  %s1388_s2 = inlined_call_operand.vmem [shape: f32[1,128], index: 2, kind: input, shape index: {}]   ;;  %s1389_s0 = inlined_call_operand.vmem [shape: bf16[8,1152], index: 0, kind: input, shape index: {}]   ;;  %s1390_s3 = inlined_call_operand.vmem [shape: bf16[8,128], index: 3, kind: input, shape index: {}]   ;;  %s1391_s4 = inlined_call_operand.vmem [shape: bf16[8,128], index: 4, kind: output, shape index: {}]  }
   0x1   :  { %v1056_v0 = vld [vmem:[%s1387_s1 + $0x38] sm:$0xff]  ;;  %v1055_v4 = vld [vmem:[%s1387_s1 + $0x30] sm:$0xff]  ;;  %v1054_v8 = vld [vmem:[%s1387_s1 + $0x28] sm:$0xff] }
   0x2   :  { %v1072_v1 = vld [vmem:[%s1387_s1 + $0xb8] sm:$0xff]  ;;  %634 = vmatpush.bf16.msra.mxu0 %v1056_v0  ;;  %v1071_v5 = vld [vmem:[%s1387_s1 + $0xb0] sm:$0xff]  ;;  %v1070_v9 = vld [vmem:[%s1387_s1 + $0xa8] sm:$0xff] }
   0x3   :  { %v1080_v2 = vld [vmem:[%s1387_s1 + $0xf8] sm:$0xff]  ;;  %660 = vmatpush.bf16.msra.mxu2 %v1072_v1  ;;  %v1079_v6 = vld [vmem:[%s1387_s1 + $0xf0] sm:$0xff]  ;;  %v1078_v10 = vld [vmem:[%s1387_s1 + $0xe8] sm:$0xff] }
   0x4   :  { %v1064_v3 = vld [vmem:[%s1387_s1 + $0x78] sm:$0xff]  ;;  %673 = vmatpush.bf16.msra.mxu3 %v1080_v2  ;;  %v1063_v7 = vld [vmem:[%s1387_s1 + $0x70] sm:$0xff]  ;;  %v1062_v11 = vld [vmem:[%s1387_s1 + $0x68] sm:$0xff] }
   0x5   :  { %647 = vmatpush.bf16.msra.mxu1 %v1064_v3  ;;  %v1053_v12 = vld [vmem:[%s1387_s1 + $0x20] sm:$0xff]  ;;  %v1052_v16 = vld [vmem:[%s1387_s1 + $0x18] sm:$0xff]  ;;  %v1051_v20 = vld [vmem:[%s1387_s1 + $0x10] sm:$0xff] }
   0x6   :  { %635 = vmatpush.bf16.msra.mxu0 %v1055_v4  ;;  %v1069_v13 = vld [vmem:[%s1387_s1 + $0xa0] sm:$0xff]  ;;  %v1068_v17 = vld [vmem:[%s1387_s1 + $0x98] sm:$0xff]  ;;  %v1067_v21 = vld [vmem:[%s1387_s1 + $0x90] sm:$0xff] }
   0x7   :  { %661 = vmatpush.bf16.msra.mxu2 %v1071_v5  ;;  %v1077_v14 = vld [vmem:[%s1387_s1 + $0xe0] sm:$0xff]  ;;  %v1076_v18 = vld [vmem:[%s1387_s1 + $0xd8] sm:$0xff]  ;;  %v1075_v22 = vld [vmem:[%s1387_s1 + $0xd0] sm:$0xff] }
   0x8   :  { %674 = vmatpush.bf16.msra.mxu3 %v1079_v6  ;;  %v1061_v15 = vld [vmem:[%s1387_s1 + $0x60] sm:$0xff]  ;;  %v1060_v19 = vld [vmem:[%s1387_s1 + $0x58] sm:$0xff]  ;;  %v1059_v23 = vld [vmem:[%s1387_s1 + $0x50] sm:$0xff] }
   0x9   :  { %648 = vmatpush.bf16.msra.mxu1 %v1063_v7  ;;  %v1050_v24 = vld [vmem:[%s1387_s1 + $0x8] sm:$0xff]  ;;  %v17_v29 = vld [vmem:[%s1389_s0] sm:$0xff]  ;;  %v1088_v34 = vld [vmem:[%s1387_s1 + $0x138] sm:$0xff] }
   0xa   :  { %636 = vmatpush.bf16.msra.mxu0 %v1054_v8  ;;  %v1066_v25 = vld [vmem:[%s1387_s1 + $0x88] sm:$0xff]  ;;  %v1049_v30 = vld [vmem:[%s1387_s1] sm:$0xff]  ;;  %v175_v33 = vunpack.c.l.b16 %v17_v29  ;;  %v1104_v35 = vld [vmem:[%s1387_s1 + $0x1b8] sm:$0xff]  ;;  %v176_v39 = vunpack.c.h.b16 %v17_v29 }
   0xb   :  { %662 = vmatpush.bf16.msra.mxu2 %v1070_v9  ;;  %v1074_v26 = vld [vmem:[%s1387_s1 + $0xc8] sm:$0xff]  ;;  %v1065_v31 = vld [vmem:[%s1387_s1 + $0x80] sm:$0xff]  ;;  %v1112_v40 = vld [vmem:[%s1387_s1 + $0x1f8] sm:$0xff] }
   0xc   :  { %675 = vmatpush.bf16.msra.mxu3 %v1078_v10  ;;  %v1058_v27 = vld [vmem:[%s1387_s1 + $0x48] sm:$0xff]  ;;  %v1073_v36 = vld [vmem:[%s1387_s1 + $0xc0] sm:$0xff]  ;;  %v1096_v41 = vld [vmem:[%s1387_s1 + $0x178] sm:$0xff]  ;;  %v184_v43 = vpack.c.b16 %v175_v33, %v175_v33  ;;  %v185_v47 = vpack.c.b16 %v176_v39, %v176_v39 }
   0xd   :  { %649 = vmatpush.bf16.msra.mxu1 %v1062_v11  ;;  %v18_v28 = vld [vmem:[%s1389_s0 + $0x8] sm:$0xff]  ;;  %v1057_v37 = vld [vmem:[%s1387_s1 + $0x40] sm:$0xff]  ;;  %v1087_v44 = vld [vmem:[%s1387_s1 + $0x130] sm:$0xff] }
   0xe   :  { %637 = vmatpush.bf16.msra.mxu0 %v1053_v12  ;;  %v177_v32 = vunpack.c.l.b16 %v18_v28  ;;  %v178_v38 = vunpack.c.h.b16 %v18_v28  ;;  %v1103_v45 = vld [vmem:[%s1387_s1 + $0x1b0] sm:$0xff]  ;;  %v1086_v50 = vld [vmem:[%s1387_s1 + $0x128] sm:$0xff]  ;;  %v1085_v54 = vld [vmem:[%s1387_s1 + $0x120] sm:$0xff] }
   0xf   :  { %663 = vmatpush.bf16.msra.mxu2 %v1069_v13  ;;  %v1111_v48 = vld [vmem:[%s1387_s1 + $0x1f0] sm:$0xff]  ;;  %v1102_v51 = vld [vmem:[%s1387_s1 + $0x1a8] sm:$0xff]  ;;  %v1101_v55 = vld [vmem:[%s1387_s1 + $0x1a0] sm:$0xff] }
  0x10   :  { %676 = vmatpush.bf16.msra.mxu3 %v1077_v14  ;;  %v186_v42 = vpack.c.b16 %v177_v32, %v177_v32  ;;  %v187_v46 = vpack.c.b16 %v178_v38, %v178_v38  ;;  %v1095_v49 = vld [vmem:[%s1387_s1 + $0x170] sm:$0xff]  ;;  %v1110_v52 = vld [vmem:[%s1387_s1 + $0x1e8] sm:$0xff]  ;;  %v1109_v56 = vld [vmem:[%s1387_s1 + $0x1e0] sm:$0xff] }
  0x11   :  { %650 = vmatpush.bf16.msra.mxu1 %v1061_v15  ;;  %v1094_v53 = vld [vmem:[%s1387_s1 + $0x168] sm:$0xff]  ;;  %v1093_v57 = vld [vmem:[%s1387_s1 + $0x160] sm:$0xff]  ;;  %v1084_v58 = vld [vmem:[%s1387_s1 + $0x118] sm:$0xff] }
  0x12   :  { %638 = vmatpush.bf16.msra.mxu0 %v1052_v16  ;;  %v1100_v59 = vld [vmem:[%s1387_s1 + $0x198] sm:$0xff]  ;;  %v1083_v62 = vld [vmem:[%s1387_s1 + $0x110] sm:$0xff]  ;;  %v1082_v2 = vld [vmem:[%s1387_s1 + $0x108] sm:$0xff] }
  0x13   :  { %664 = vmatpush.bf16.msra.mxu2 %v1068_v17  ;;  %v1108_v60 = vld [vmem:[%s1387_s1 + $0x1d8] sm:$0xff]  ;;  %v1099_v63 = vld [vmem:[%s1387_s1 + $0x190] sm:$0xff]  ;;  %v1098_v3 = vld [vmem:[%s1387_s1 + $0x188] sm:$0xff] }
  0x14   :  { %677 = vmatpush.bf16.msra.mxu3 %v1076_v18  ;;  %v1092_v61 = vld [vmem:[%s1387_s1 + $0x158] sm:$0xff]  ;;  %v1107_v0 = vld [vmem:[%s1387_s1 + $0x1d0] sm:$0xff]  ;;  %v1106_v6 = vld [vmem:[%s1387_s1 + $0x1c8] sm:$0xff] }
  0x15   :  { %651 = vmatpush.bf16.msra.mxu1 %v1060_v19  ;;  %v1091_v1 = vld [vmem:[%s1387_s1 + $0x150] sm:$0xff]  ;;  %v20_v4 = vld [vmem:[%s1389_s0 + $0x18] sm:$0xff]  ;;  %v1090_v7 = vld [vmem:[%s1387_s1 + $0x148] sm:$0xff] }
  0x16   :  { %639 = vmatpush.bf16.msra.mxu0 %v1051_v20  ;;  %v19_v5 = vld [vmem:[%s1389_s0 + $0x10] sm:$0xff]  ;;  %v181_v8 = vunpack.c.l.b16 %v20_v4  ;;  %v1081_v10 = vld [vmem:[%s1387_s1 + $0x100] sm:$0xff]  ;;  %v1120_v12 = vld [vmem:[%s1387_s1 + $0x238] sm:$0xff]  ;;  %v182_v13 = vunpack.c.h.b16 %v20_v4 }
  0x17   :  { %665 = vmatpush.bf16.msra.mxu2 %v1067_v21  ;;  %v179_v9 = vunpack.c.l.b16 %v19_v5  ;;  %v1097_v11 = vld [vmem:[%s1387_s1 + $0x180] sm:$0xff]  ;;  %v180_v16 = vunpack.c.h.b16 %v19_v5  ;;  %v1119_v19 = vld [vmem:[%s1387_s1 + $0x230] sm:$0xff] }
  0x18   :  { %678 = vmatpush.bf16.msra.mxu3 %v1075_v22  ;;  %v1105_v14 = vld [vmem:[%s1387_s1 + $0x1c0] sm:$0xff]  ;;  %v190_v17 = vpack.c.b16 %v181_v8, %v181_v8  ;;  %v191_v20 = vpack.c.b16 %v182_v13, %v182_v13  ;;  %v1118_v22 = vld [vmem:[%s1387_s1 + $0x228] sm:$0xff] }
  0x19   :  { %652 = vmatpush.bf16.msra.mxu1 %v1059_v23  ;;  %v1089_v15 = vld [vmem:[%s1387_s1 + $0x140] sm:$0xff]  ;;  %v188_v18 = vpack.c.b16 %v179_v9, %v179_v9  ;;  %v189_v21 = vpack.c.b16 %v180_v16, %v180_v16 }
  0x1a   :  { %640 = vmatpush.bf16.msra.mxu0 %v1050_v24  ;;  %v1117_v23 = vld [vmem:[%s1387_s1 + $0x220] sm:$0xff]  ;;  %v1116_v24 = vld [vmem:[%s1387_s1 + $0x218] sm:$0xff] }
  0x1b   :  { %666 = vmatpush.bf16.msra.mxu2 %v1066_v25  ;;  %v1115_v25 = vld [vmem:[%s1387_s1 + $0x210] sm:$0xff]  ;;  %v1113_v29 = vld [vmem:[%s1387_s1 + $0x200] sm:$0xff] }
  0x1c   :  { %679 = vmatpush.bf16.msra.mxu3 %v1074_v26  ;;  %v1114_v26 = vld [vmem:[%s1387_s1 + $0x208] sm:$0xff]  ;;  %v1121_v39 = vld [vmem:[%s1388_s2] ss:$0 sm:$0xff] }
  0x1d   :  { %653 = vmatpush.bf16.msra.mxu1 %v1058_v27  ;;  %v21_v27 = vld [vmem:[%s1389_s0 + $0x20] sm:$0xf] }
  0x1e   :  { %641 = vmatpush.bf16.msra.mxu0 %v1049_v30  ;;  %v183_v28 = vunpack.c.l.b16 %v21_v27 }
  0x1f   :  { %667 = vmatpush.bf16.msra.mxu2 %v1065_v31 }
  0x20   :  { %680 = vmatpush.bf16.msra.mxu3 %v1073_v36  ;;  %v192_v30 = vpack.c.b16 %v183_v28, %v183_v28 }
  0x21   :  { %654 = vmatpush.bf16.msra.mxu1 %v1057_v37  ;;  %642 = vmatmul.bf16.vlgmr.msra.gmra.mxu0 %v184_v43 }
  0x22   :  { %686 = vmatpush.bf16.msrb.mxu0 %v1088_v34  ;;  %668 = vmatmul.bf16.vlgmr.msra.gmra.mxu2 %v186_v42 }
  0x23   :  { %712 = vmatpush.bf16.msrb.mxu2 %v1104_v35  ;;  %681 = vmatmul.bf16.vlgmr.msra.gmra.mxu3 %v187_v46 }
  0x24   :  { %725 = vmatpush.bf16.msrb.mxu3 %v1112_v40  ;;  %655 = vmatmul.bf16.vlgmr.msra.gmra.mxu1 %v185_v47 }
  0x25   :  { %699 = vmatpush.bf16.msrb.mxu1 %v1096_v41 }
  0x26   :  { %687 = vmatpush.bf16.msrb.mxu0 %v1087_v44 }
  0x27   :  { %713 = vmatpush.bf16.msrb.mxu2 %v1103_v45 }
  0x28   :  { %726 = vmatpush.bf16.msrb.mxu3 %v1111_v48 }
  0x29   :  { %700 = vmatpush.bf16.msrb.mxu1 %v1095_v49 }
  0x2a   :  { %688 = vmatpush.bf16.msrb.mxu0 %v1086_v50 }
  0x2b   :  { %714 = vmatpush.bf16.msrb.mxu2 %v1102_v51 }
  0x2c   :  { %727 = vmatpush.bf16.msrb.mxu3 %v1110_v52 }
  0x2d   :  { %701 = vmatpush.bf16.msrb.mxu1 %v1094_v53 }
  0x2e   :  { %689 = vmatpush.bf16.msrb.mxu0 %v1085_v54 }
  0x2f   :  { %715 = vmatpush.bf16.msrb.mxu2 %v1101_v55  ;;  %v751_v55 = vld [vmem:[%s1390_s3] sm:$0xf] }
  0x30   :  { %728 = vmatpush.bf16.msrb.mxu3 %v1109_v56 }
  0x31   :  { %702 = vmatpush.bf16.msrb.mxu1 %v1093_v57  ;;  %v752_v57 = vunpack.c.l.bf16 %v751_v55 }
  0x32   :  { %690 = vmatpush.bf16.msrb.mxu0 %v1084_v58 }
  0x33   :  { %716 = vmatpush.bf16.msrb.mxu2 %v1100_v59 }
  0x34   :  { %729 = vmatpush.bf16.msrb.mxu3 %v1108_v60 }
  0x35   :  { %703 = vmatpush.bf16.msrb.mxu1 %v1092_v61 }
  0x36   :  { %691 = vmatpush.bf16.msrb.mxu0 %v1083_v62 }
  0x37   :  { %717 = vmatpush.bf16.msrb.mxu2 %v1099_v63 }
  0x38   :  { %730 = vmatpush.bf16.msrb.mxu3 %v1107_v0 }
  0x39   :  { %704 = vmatpush.bf16.msrb.mxu1 %v1091_v1 }
  0x3a   :  { %692 = vmatpush.bf16.msrb.mxu0 %v1082_v2 }
  0x3b   :  { %718 = vmatpush.bf16.msrb.mxu2 %v1098_v3 }
  0x3c   :  { %731 = vmatpush.bf16.msrb.mxu3 %v1106_v6 }
  0x3d   :  { %705 = vmatpush.bf16.msrb.mxu1 %v1090_v7 }
  0x3e   :  { %693 = vmatpush.bf16.msrb.mxu0 %v1081_v10 }
  0x3f   :  { %719 = vmatpush.bf16.msrb.mxu2 %v1097_v11 }
  0x40   :  { %732 = vmatpush.bf16.msrb.mxu3 %v1105_v14 }
  0x41   :  { %706 = vmatpush.bf16.msrb.mxu1 %v1089_v15  ;;  %694 = vmatmul.bf16.vlgmr.msrb.gmra.mxu0 %v188_v18 }
  0x42   :  { %738 = vmatpush.bf16.msra.mxu0 %v1120_v12  ;;  %720 = vmatmul.bf16.vlgmr.msrb.gmra.mxu2 %v190_v17 }
  0x43   :  { %733 = vmatmul.bf16.vlgmr.msrb.gmra.mxu3 %v191_v20 }
  0x44   :  { %707 = vmatmul.bf16.vlgmr.msrb.gmra.mxu1 %v189_v21 }
  0x46   :  { %739 = vmatpush.bf16.msra.mxu0 %v1119_v19 }
  0x4a   :  { %740 = vmatpush.bf16.msra.mxu0 %v1118_v22 }
  0x4e   :  { %741 = vmatpush.bf16.msra.mxu0 %v1117_v23 }
  0x52   :  { %742 = vmatpush.bf16.msra.mxu0 %v1116_v24 }
  0x56   :  { %743 = vmatpush.bf16.msra.mxu0 %v1115_v25 }
  0x5a   :  { %744 = vmatpush.bf16.msra.mxu0 %v1114_v26 }
  0x5e   :  { %745 = vmatpush.bf16.msra.mxu0 %v1113_v29 }
  0x61   :  { %746 = vmatmul.bf16.vlgmr.msra.gmra.mxu0 %v192_v30 }
  0x9e   :  { %v643_v31 = vpop.f32.mrf.mxu0 }
  0x9f   :  { %v644_v40 = vadd.f32 %v1121_v39, %v643_v31 }
  0xa1   :  { %v656_v32 = vpop.f32.mrf.mxu1 }
  0xa2   :  { %v657_v43 = vadd.f32 %v656_v32, %v644_v40 }
  0xa5   :  { %v669_v33 = vpop.f32.mrf.mxu2 }
  0xa6   :  { %v682_v34 = vpop.f32.mrf.mxu3  ;;  %v645_v35 = vpop.f32.mrf.mxu0  ;;  %v670_v45 = vadd.f32 %v669_v33, %v657_v43 }
  0xa8   :  { %v683_v49 = vadd.f32 %v682_v34, %v670_v45 }
  0xa9   :  { %v658_v36 = vpop.f32.mrf.mxu1 }
  0xad   :  { %v671_v37 = vpop.f32.mrf.mxu2 }
  0xae   :  { %v684_v38 = vpop.f32.mrf.mxu3 }
  0xbe   :  { %v695_v41 = vpop.f32.mrf.mxu0 }
  0xbf   :  { %v696_v51 = vadd.f32 %v695_v41, %v683_v49 }
  0xc1   :  { %v708_v42 = vpop.f32.mrf.mxu1 }
  0xc2   :  { %v709_v53 = vadd.f32 %v708_v42, %v696_v51 }
  0xc5   :  { %v721_v44 = vpop.f32.mrf.mxu2 }
  0xc6   :  { %v734_v46 = vpop.f32.mrf.mxu3  ;;  %v697_v47 = vpop.f32.mrf.mxu0  ;;  %v722_v54 = vadd.f32 %v721_v44, %v709_v53 }
  0xc8   :  { %v735_v56 = vadd.f32 %v734_v46, %v722_v54 }
  0xc9   :  { %v710_v48 = vpop.f32.mrf.mxu1 }
  0xcd   :  { %v723_v50 = vpop.f32.mrf.mxu2 }
  0xce   :  { %v736_v52 = vpop.f32.mrf.mxu3 }
  0xde   :  { %v747_v58 = vpop.f32.mrf.mxu0 }
  0xdf   :  { %v748_v59 = vadd.f32 %v747_v58, %v735_v56 }
  0xe1   :  { %v753_v60 = vadd.f32 %v752_v57, %v748_v59 }
  0xe3   :  { %v754_v61 = vmax.f32 %v753_v60, 0.0 }
  0xe5   :  { %v755_v62 = vpack.c.bf16 %v754_v61, %v754_v61 }
  0xe6   :  { %v749_v63 = vpop.f32.mrf.mxu0 }
  0xe7   :  { %756 = vst [vmem:[%s1391_s4] sm:$0xf] %v755_v62 }

// kernel: custom_resnet_forward.41
= control target key start
LH: loop header
LB: loop body
LE: loop exit
PB: predicated region body
PF: predicated region fallthrough
CT: control target
= control target key end

     0   :  { %s1373_s1 = inlined_call_operand.vmem [shape: bf16[1152,128], index: 1, kind: input, shape index: {}]   ;;  %s1374_s2 = inlined_call_operand.vmem [shape: f32[1,128], index: 2, kind: input, shape index: {}]   ;;  %s1375_s0 = inlined_call_operand.vmem [shape: bf16[8,1152], index: 0, kind: input, shape index: {}]   ;;  %s1376_s3 = inlined_call_operand.vmem [shape: bf16[8,128], index: 3, kind: output, shape index: {}]  }
   0x1   :  { %v1050_v0 = vld [vmem:[%s1373_s1 + $0x38] sm:$0xff]  ;;  %v1049_v4 = vld [vmem:[%s1373_s1 + $0x30] sm:$0xff]  ;;  %v1048_v8 = vld [vmem:[%s1373_s1 + $0x28] sm:$0xff] }
   0x2   :  { %v1066_v1 = vld [vmem:[%s1373_s1 + $0xb8] sm:$0xff]  ;;  %631 = vmatpush.bf16.msra.mxu0 %v1050_v0  ;;  %v1065_v5 = vld [vmem:[%s1373_s1 + $0xb0] sm:$0xff]  ;;  %v1064_v9 = vld [vmem:[%s1373_s1 + $0xa8] sm:$0xff] }
   0x3   :  { %v1074_v2 = vld [vmem:[%s1373_s1 + $0xf8] sm:$0xff]  ;;  %657 = vmatpush.bf16.msra.mxu2 %v1066_v1  ;;  %v1073_v6 = vld [vmem:[%s1373_s1 + $0xf0] sm:$0xff]  ;;  %v1072_v10 = vld [vmem:[%s1373_s1 + $0xe8] sm:$0xff] }
   0x4   :  { %v1058_v3 = vld [vmem:[%s1373_s1 + $0x78] sm:$0xff]  ;;  %670 = vmatpush.bf16.msra.mxu3 %v1074_v2  ;;  %v1057_v7 = vld [vmem:[%s1373_s1 + $0x70] sm:$0xff]  ;;  %v1056_v11 = vld [vmem:[%s1373_s1 + $0x68] sm:$0xff] }
   0x5   :  { %644 = vmatpush.bf16.msra.mxu1 %v1058_v3  ;;  %v1047_v12 = vld [vmem:[%s1373_s1 + $0x20] sm:$0xff]  ;;  %v1046_v16 = vld [vmem:[%s1373_s1 + $0x18] sm:$0xff]  ;;  %v1045_v20 = vld [vmem:[%s1373_s1 + $0x10] sm:$0xff] }
   0x6   :  { %632 = vmatpush.bf16.msra.mxu0 %v1049_v4  ;;  %v1063_v13 = vld [vmem:[%s1373_s1 + $0xa0] sm:$0xff]  ;;  %v1062_v17 = vld [vmem:[%s1373_s1 + $0x98] sm:$0xff]  ;;  %v1061_v21 = vld [vmem:[%s1373_s1 + $0x90] sm:$0xff] }
   0x7   :  { %658 = vmatpush.bf16.msra.mxu2 %v1065_v5  ;;  %v1071_v14 = vld [vmem:[%s1373_s1 + $0xe0] sm:$0xff]  ;;  %v1070_v18 = vld [vmem:[%s1373_s1 + $0xd8] sm:$0xff]  ;;  %v1069_v22 = vld [vmem:[%s1373_s1 + $0xd0] sm:$0xff] }
   0x8   :  { %671 = vmatpush.bf16.msra.mxu3 %v1073_v6  ;;  %v1055_v15 = vld [vmem:[%s1373_s1 + $0x60] sm:$0xff]  ;;  %v1054_v19 = vld [vmem:[%s1373_s1 + $0x58] sm:$0xff]  ;;  %v1053_v23 = vld [vmem:[%s1373_s1 + $0x50] sm:$0xff] }
   0x9   :  { %645 = vmatpush.bf16.msra.mxu1 %v1057_v7  ;;  %v1044_v24 = vld [vmem:[%s1373_s1 + $0x8] sm:$0xff]  ;;  %v14_v29 = vld [vmem:[%s1375_s0] sm:$0xff]  ;;  %v1082_v34 = vld [vmem:[%s1373_s1 + $0x138] sm:$0xff] }
   0xa   :  { %633 = vmatpush.bf16.msra.mxu0 %v1048_v8  ;;  %v1060_v25 = vld [vmem:[%s1373_s1 + $0x88] sm:$0xff]  ;;  %v1043_v30 = vld [vmem:[%s1373_s1] sm:$0xff]  ;;  %v172_v33 = vunpack.c.l.b16 %v14_v29  ;;  %v1098_v35 = vld [vmem:[%s1373_s1 + $0x1b8] sm:$0xff]  ;;  %v173_v39 = vunpack.c.h.b16 %v14_v29 }
   0xb   :  { %659 = vmatpush.bf16.msra.mxu2 %v1064_v9  ;;  %v1068_v26 = vld [vmem:[%s1373_s1 + $0xc8] sm:$0xff]  ;;  %v1059_v31 = vld [vmem:[%s1373_s1 + $0x80] sm:$0xff]  ;;  %v1106_v40 = vld [vmem:[%s1373_s1 + $0x1f8] sm:$0xff] }
   0xc   :  { %672 = vmatpush.bf16.msra.mxu3 %v1072_v10  ;;  %v1052_v27 = vld [vmem:[%s1373_s1 + $0x48] sm:$0xff]  ;;  %v1067_v36 = vld [vmem:[%s1373_s1 + $0xc0] sm:$0xff]  ;;  %v1090_v41 = vld [vmem:[%s1373_s1 + $0x178] sm:$0xff]  ;;  %v181_v43 = vpack.c.b16 %v172_v33, %v172_v33  ;;  %v182_v47 = vpack.c.b16 %v173_v39, %v173_v39 }
   0xd   :  { %646 = vmatpush.bf16.msra.mxu1 %v1056_v11  ;;  %v15_v28 = vld [vmem:[%s1375_s0 + $0x8] sm:$0xff]  ;;  %v1051_v37 = vld [vmem:[%s1373_s1 + $0x40] sm:$0xff]  ;;  %v1081_v44 = vld [vmem:[%s1373_s1 + $0x130] sm:$0xff] }
   0xe   :  { %634 = vmatpush.bf16.msra.mxu0 %v1047_v12  ;;  %v174_v32 = vunpack.c.l.b16 %v15_v28  ;;  %v175_v38 = vunpack.c.h.b16 %v15_v28  ;;  %v1097_v45 = vld [vmem:[%s1373_s1 + $0x1b0] sm:$0xff]  ;;  %v1080_v50 = vld [vmem:[%s1373_s1 + $0x128] sm:$0xff]  ;;  %v1079_v54 = vld [vmem:[%s1373_s1 + $0x120] sm:$0xff] }
   0xf   :  { %660 = vmatpush.bf16.msra.mxu2 %v1063_v13  ;;  %v1105_v48 = vld [vmem:[%s1373_s1 + $0x1f0] sm:$0xff]  ;;  %v1096_v51 = vld [vmem:[%s1373_s1 + $0x1a8] sm:$0xff]  ;;  %v1095_v55 = vld [vmem:[%s1373_s1 + $0x1a0] sm:$0xff] }
  0x10   :  { %673 = vmatpush.bf16.msra.mxu3 %v1071_v14  ;;  %v183_v42 = vpack.c.b16 %v174_v32, %v174_v32  ;;  %v184_v46 = vpack.c.b16 %v175_v38, %v175_v38  ;;  %v1089_v49 = vld [vmem:[%s1373_s1 + $0x170] sm:$0xff]  ;;  %v1104_v52 = vld [vmem:[%s1373_s1 + $0x1e8] sm:$0xff]  ;;  %v1103_v56 = vld [vmem:[%s1373_s1 + $0x1e0] sm:$0xff] }
  0x11   :  { %647 = vmatpush.bf16.msra.mxu1 %v1055_v15  ;;  %v1088_v53 = vld [vmem:[%s1373_s1 + $0x168] sm:$0xff]  ;;  %v1087_v57 = vld [vmem:[%s1373_s1 + $0x160] sm:$0xff]  ;;  %v1078_v58 = vld [vmem:[%s1373_s1 + $0x118] sm:$0xff] }
  0x12   :  { %635 = vmatpush.bf16.msra.mxu0 %v1046_v16  ;;  %v1094_v59 = vld [vmem:[%s1373_s1 + $0x198] sm:$0xff]  ;;  %v1077_v62 = vld [vmem:[%s1373_s1 + $0x110] sm:$0xff]  ;;  %v1076_v2 = vld [vmem:[%s1373_s1 + $0x108] sm:$0xff] }
  0x13   :  { %661 = vmatpush.bf16.msra.mxu2 %v1062_v17  ;;  %v1102_v60 = vld [vmem:[%s1373_s1 + $0x1d8] sm:$0xff]  ;;  %v1093_v63 = vld [vmem:[%s1373_s1 + $0x190] sm:$0xff]  ;;  %v1092_v3 = vld [vmem:[%s1373_s1 + $0x188] sm:$0xff] }
  0x14   :  { %674 = vmatpush.bf16.msra.mxu3 %v1070_v18  ;;  %v1086_v61 = vld [vmem:[%s1373_s1 + $0x158] sm:$0xff]  ;;  %v1101_v0 = vld [vmem:[%s1373_s1 + $0x1d0] sm:$0xff]  ;;  %v1100_v6 = vld [vmem:[%s1373_s1 + $0x1c8] sm:$0xff] }
  0x15   :  { %648 = vmatpush.bf16.msra.mxu1 %v1054_v19  ;;  %v1085_v1 = vld [vmem:[%s1373_s1 + $0x150] sm:$0xff]  ;;  %v17_v4 = vld [vmem:[%s1375_s0 + $0x18] sm:$0xff]  ;;  %v1084_v7 = vld [vmem:[%s1373_s1 + $0x148] sm:$0xff] }
  0x16   :  { %636 = vmatpush.bf16.msra.mxu0 %v1045_v20  ;;  %v16_v5 = vld [vmem:[%s1375_s0 + $0x10] sm:$0xff]  ;;  %v178_v8 = vunpack.c.l.b16 %v17_v4  ;;  %v1075_v10 = vld [vmem:[%s1373_s1 + $0x100] sm:$0xff]  ;;  %v1114_v12 = vld [vmem:[%s1373_s1 + $0x238] sm:$0xff]  ;;  %v179_v13 = vunpack.c.h.b16 %v17_v4 }
  0x17   :  { %662 = vmatpush.bf16.msra.mxu2 %v1061_v21  ;;  %v176_v9 = vunpack.c.l.b16 %v16_v5  ;;  %v1091_v11 = vld [vmem:[%s1373_s1 + $0x180] sm:$0xff]  ;;  %v177_v16 = vunpack.c.h.b16 %v16_v5  ;;  %v1113_v19 = vld [vmem:[%s1373_s1 + $0x230] sm:$0xff] }
  0x18   :  { %675 = vmatpush.bf16.msra.mxu3 %v1069_v22  ;;  %v1099_v14 = vld [vmem:[%s1373_s1 + $0x1c0] sm:$0xff]  ;;  %v187_v17 = vpack.c.b16 %v178_v8, %v178_v8  ;;  %v188_v20 = vpack.c.b16 %v179_v13, %v179_v13  ;;  %v1112_v22 = vld [vmem:[%s1373_s1 + $0x228] sm:$0xff] }
  0x19   :  { %649 = vmatpush.bf16.msra.mxu1 %v1053_v23  ;;  %v1083_v15 = vld [vmem:[%s1373_s1 + $0x140] sm:$0xff]  ;;  %v185_v18 = vpack.c.b16 %v176_v9, %v176_v9  ;;  %v186_v21 = vpack.c.b16 %v177_v16, %v177_v16 }
  0x1a   :  { %637 = vmatpush.bf16.msra.mxu0 %v1044_v24  ;;  %v1111_v23 = vld [vmem:[%s1373_s1 + $0x220] sm:$0xff]  ;;  %v1110_v24 = vld [vmem:[%s1373_s1 + $0x218] sm:$0xff] }
  0x1b   :  { %663 = vmatpush.bf16.msra.mxu2 %v1060_v25  ;;  %v1109_v25 = vld [vmem:[%s1373_s1 + $0x210] sm:$0xff]  ;;  %v1107_v29 = vld [vmem:[%s1373_s1 + $0x200] sm:$0xff] }
  0x1c   :  { %676 = vmatpush.bf16.msra.mxu3 %v1068_v26  ;;  %v1108_v26 = vld [vmem:[%s1373_s1 + $0x208] sm:$0xff]  ;;  %v1115_v39 = vld [vmem:[%s1374_s2] ss:$0 sm:$0xff] }
  0x1d   :  { %650 = vmatpush.bf16.msra.mxu1 %v1052_v27  ;;  %v18_v27 = vld [vmem:[%s1375_s0 + $0x20] sm:$0xf] }
  0x1e   :  { %638 = vmatpush.bf16.msra.mxu0 %v1043_v30  ;;  %v180_v28 = vunpack.c.l.b16 %v18_v27 }
  0x1f   :  { %664 = vmatpush.bf16.msra.mxu2 %v1059_v31 }
  0x20   :  { %677 = vmatpush.bf16.msra.mxu3 %v1067_v36  ;;  %v189_v30 = vpack.c.b16 %v180_v28, %v180_v28 }
  0x21   :  { %651 = vmatpush.bf16.msra.mxu1 %v1051_v37  ;;  %639 = vmatmul.bf16.vlgmr.msra.gmra.mxu0 %v181_v43 }
  0x22   :  { %683 = vmatpush.bf16.msrb.mxu0 %v1082_v34  ;;  %665 = vmatmul.bf16.vlgmr.msra.gmra.mxu2 %v183_v42 }
  0x23   :  { %709 = vmatpush.bf16.msrb.mxu2 %v1098_v35  ;;  %678 = vmatmul.bf16.vlgmr.msra.gmra.mxu3 %v184_v46 }
  0x24   :  { %722 = vmatpush.bf16.msrb.mxu3 %v1106_v40  ;;  %652 = vmatmul.bf16.vlgmr.msra.gmra.mxu1 %v182_v47 }
  0x25   :  { %696 = vmatpush.bf16.msrb.mxu1 %v1090_v41 }
  0x26   :  { %684 = vmatpush.bf16.msrb.mxu0 %v1081_v44 }
  0x27   :  { %710 = vmatpush.bf16.msrb.mxu2 %v1097_v45 }
  0x28   :  { %723 = vmatpush.bf16.msrb.mxu3 %v1105_v48 }
  0x29   :  { %697 = vmatpush.bf16.msrb.mxu1 %v1089_v49 }
  0x2a   :  { %685 = vmatpush.bf16.msrb.mxu0 %v1080_v50 }
  0x2b   :  { %711 = vmatpush.bf16.msrb.mxu2 %v1096_v51 }
  0x2c   :  { %724 = vmatpush.bf16.msrb.mxu3 %v1104_v52 }
  0x2d   :  { %698 = vmatpush.bf16.msrb.mxu1 %v1088_v53 }
  0x2e   :  { %686 = vmatpush.bf16.msrb.mxu0 %v1079_v54 }
  0x2f   :  { %712 = vmatpush.bf16.msrb.mxu2 %v1095_v55 }
  0x30   :  { %725 = vmatpush.bf16.msrb.mxu3 %v1103_v56 }
  0x31   :  { %699 = vmatpush.bf16.msrb.mxu1 %v1087_v57 }
  0x32   :  { %687 = vmatpush.bf16.msrb.mxu0 %v1078_v58 }
  0x33   :  { %713 = vmatpush.bf16.msrb.mxu2 %v1094_v59 }
  0x34   :  { %726 = vmatpush.bf16.msrb.mxu3 %v1102_v60 }
  0x35   :  { %700 = vmatpush.bf16.msrb.mxu1 %v1086_v61 }
  0x36   :  { %688 = vmatpush.bf16.msrb.mxu0 %v1077_v62 }
  0x37   :  { %714 = vmatpush.bf16.msrb.mxu2 %v1093_v63 }
  0x38   :  { %727 = vmatpush.bf16.msrb.mxu3 %v1101_v0 }
  0x39   :  { %701 = vmatpush.bf16.msrb.mxu1 %v1085_v1 }
  0x3a   :  { %689 = vmatpush.bf16.msrb.mxu0 %v1076_v2 }
  0x3b   :  { %715 = vmatpush.bf16.msrb.mxu2 %v1092_v3 }
  0x3c   :  { %728 = vmatpush.bf16.msrb.mxu3 %v1100_v6 }
  0x3d   :  { %702 = vmatpush.bf16.msrb.mxu1 %v1084_v7 }
  0x3e   :  { %690 = vmatpush.bf16.msrb.mxu0 %v1075_v10 }
  0x3f   :  { %716 = vmatpush.bf16.msrb.mxu2 %v1091_v11 }
  0x40   :  { %729 = vmatpush.bf16.msrb.mxu3 %v1099_v14 }
  0x41   :  { %703 = vmatpush.bf16.msrb.mxu1 %v1083_v15  ;;  %691 = vmatmul.bf16.vlgmr.msrb.gmra.mxu0 %v185_v18 }
  0x42   :  { %735 = vmatpush.bf16.msra.mxu0 %v1114_v12  ;;  %717 = vmatmul.bf16.vlgmr.msrb.gmra.mxu2 %v187_v17 }
  0x43   :  { %730 = vmatmul.bf16.vlgmr.msrb.gmra.mxu3 %v188_v20 }
  0x44   :  { %704 = vmatmul.bf16.vlgmr.msrb.gmra.mxu1 %v186_v21 }
  0x46   :  { %736 = vmatpush.bf16.msra.mxu0 %v1113_v19 }
  0x4a   :  { %737 = vmatpush.bf16.msra.mxu0 %v1112_v22 }
  0x4e   :  { %738 = vmatpush.bf16.msra.mxu0 %v1111_v23 }
  0x52   :  { %739 = vmatpush.bf16.msra.mxu0 %v1110_v24 }
  0x56   :  { %740 = vmatpush.bf16.msra.mxu0 %v1109_v25 }
  0x5a   :  { %741 = vmatpush.bf16.msra.mxu0 %v1108_v26 }
  0x5e   :  { %742 = vmatpush.bf16.msra.mxu0 %v1107_v29 }
  0x61   :  { %743 = vmatmul.bf16.vlgmr.msra.gmra.mxu0 %v189_v30 }
  0x9e   :  { %v640_v31 = vpop.f32.mrf.mxu0 }
  0x9f   :  { %v641_v40 = vadd.f32 %v1115_v39, %v640_v31 }
  0xa1   :  { %v653_v32 = vpop.f32.mrf.mxu1 }
  0xa2   :  { %v654_v43 = vadd.f32 %v653_v32, %v641_v40 }
  0xa5   :  { %v666_v33 = vpop.f32.mrf.mxu2 }
  0xa6   :  { %v679_v34 = vpop.f32.mrf.mxu3  ;;  %v642_v35 = vpop.f32.mrf.mxu0  ;;  %v667_v45 = vadd.f32 %v666_v33, %v654_v43 }
  0xa8   :  { %v680_v49 = vadd.f32 %v679_v34, %v667_v45 }
  0xa9   :  { %v655_v36 = vpop.f32.mrf.mxu1 }
  0xad   :  { %v668_v37 = vpop.f32.mrf.mxu2 }
  0xae   :  { %v681_v38 = vpop.f32.mrf.mxu3 }
  0xbe   :  { %v692_v41 = vpop.f32.mrf.mxu0 }
  0xbf   :  { %v693_v51 = vadd.f32 %v692_v41, %v680_v49 }
  0xc1   :  { %v705_v42 = vpop.f32.mrf.mxu1 }
  0xc2   :  { %v706_v53 = vadd.f32 %v705_v42, %v693_v51 }
  0xc5   :  { %v718_v44 = vpop.f32.mrf.mxu2 }
  0xc6   :  { %v731_v46 = vpop.f32.mrf.mxu3  ;;  %v694_v47 = vpop.f32.mrf.mxu0  ;;  %v719_v54 = vadd.f32 %v718_v44, %v706_v53 }
  0xc8   :  { %v732_v55 = vadd.f32 %v731_v46, %v719_v54 }
  0xc9   :  { %v707_v48 = vpop.f32.mrf.mxu1 }
  0xcd   :  { %v720_v50 = vpop.f32.mrf.mxu2 }
  0xce   :  { %v733_v52 = vpop.f32.mrf.mxu3 }
  0xde   :  { %v744_v56 = vpop.f32.mrf.mxu0 }
  0xdf   :  { %v745_v57 = vadd.f32 %v744_v56, %v732_v55 }
  0xe1   :  { %v748_v58 = vmax.f32 %v745_v57, 0.0 }
  0xe3   :  { %v749_v59 = vpack.c.bf16 %v748_v58, %v748_v58 }
  0xe5   :  { %750 = vst [vmem:[%s1376_s3] sm:$0xf] %v749_v59 }
  0xe6   :  { %v746_v60 = vpop.f32.mrf.mxu0 }

// kernel: custom_resnet_forward.43
= control target key start
LH: loop header
LB: loop body
LE: loop exit
PB: predicated region body
PF: predicated region fallthrough
CT: control target
= control target key end

     0   :  { %9 = vsyncpa [#allocation3], 0  ;;  %s249_s0 = inlined_call_operand.vmem [shape: bf16[2,4,128], index: 0, kind: input, shape index: {}]   ;;  %s250_s1 = inlined_call_operand.vmem [shape: f32[8,128], index: 1, kind: input, shape index: {}]   ;;  %s251_s2 = inlined_call_operand.hbm [shape: f32[2,8], index: 2, kind: output, shape index: {0}]   ;;  %s252_s3 = inlined_call_operand.hbm [shape: f32[2,128], index: 3, kind: output, shape index: {1}]  }
   0x1   :  { %v43_v0 = vld [vmem:[%s250_s1] sm:$0xff] }
   0x2   :  { %10 = vsyncpa [#allocation5], 0  ;;  %v55_v1 = vmul.f32 %v43_v0, %v43_v0  ;;  %77 = vmatpush.xpose.msra.mxu0 %v43_v0  ;;  %v15_v2 = vld [vmem:[%s249_s0] sm:$0x3]  ;;  %v16_v3 = vld [vmem:[%s249_s0 + $0x2] sm:$0x3] }
   0x3   :  { %vm19_vm0 = vcmask 1043456   ;;  %v17_v4 = vunpack.c.l.bf16 %v15_v2  ;;  %v18_v5 = vunpack.c.l.bf16 %v16_v3  ;;  %v211_v6 = vmov 4.0   ;;  %s212_s0 = smov [#allocation4]   ;;  %s139_s20 = sshll.u32 %s252_s3, 4  ;;  %s140_s20 = int_to_ptr.hbm [resolvable:$true] %s139_s20 }
   0x4   :  { %56 = vadd.xlane.f32.xlu0 %v55_v1  ;;  %157 = vrcp.f32 %v211_v6  ;;  %vm48_vm2 = vcmask 1041409   ;;  %vm51_vm3 = vcmask 1041408   ;;  %s137_s1 = sshll.u32 %s212_s0, 4  ;;  %s213_s21 = smov [#allocation2]   ;;  %vm118_vm4 = vcmask 58368   ;;  %s138_s1 = int_to_ptr.vmem [resolvable:$true] %s137_s1 }
   0x5   :  { %v20_v7 = vsel %vm19_vm0, %v17_v4, 0.0  ;;  %v27_v8 = vsel %vm19_vm0, %v18_v5, 0.0  ;;  %s126_s22 = sshll.u32 %s213_s21, 4  ;;  %s128_s25 = sshll.u32 %s251_s2, 4  ;;  %s127_s22 = int_to_ptr.vmem [resolvable:$true] %s126_s22  ;;  %s129_s25 = int_to_ptr.hbm [resolvable:$true] %s128_s25 }
   0x6   :  { %v21_v9 = vrot.slane %v20_v7, 4  ;;  %v28_v10 = vrot.slane %v27_v8, 4 }
   0x8   :  { %v22_v11 = vadd.f32 %v21_v9, %v20_v7  ;;  %v29_v12 = vadd.f32 %v28_v10, %v27_v8 }
   0xa   :  { %v158_v13 = vpop.eup %157  ;;  %v23_v14 = vrot.slane %v22_v11, 2  ;;  %v30_v15 = vrot.slane %v29_v12, 2 }
   0xb   :  { %v35_v16 = vmul.f32 4.0, %v158_v13  ;;  %vm39_vm1 = vweird.f32 %v158_v13 }
   0xc   :  { %v24_v17 = vadd.f32 %v23_v14, %v22_v11  ;;  %v31_v18 = vadd.f32 %v30_v15, %v29_v12 }
   0xd   :  { %v36_v19 = vsub.f32 1.0, %v35_v16 }
   0xe   :  { %v25_v20 = vrot.slane %v24_v17, 1  ;;  %v32_v21 = vrot.slane %v31_v18, 1 }
   0xf   :  { %v37_v22 = vmul.f32 %v158_v13, %v36_v19 }
  0x10   :  { %v26_v23 = vadd.f32 %v25_v20, %v24_v17  ;;  %v33_v24 = vadd.f32 %v32_v21, %v31_v18 }
  0x11   :  { %v38_v25 = vadd.f32 %v158_v13, %v37_v22 }
  0x13   :  { %v40_v26 = vsel %vm39_vm1, %v158_v13, %v38_v25 }
  0x14   :  { %v41_v27 = vmul.f32 %v40_v26, %v26_v23  ;;  %v42_v28 = vmul.f32 %v40_v26, %v33_v24 }
  0x16   :  { %v60_v29 = vsel %vm48_vm2, %v42_v28, %v41_v27  ;;  %v44_v30 = vmul.f32 %v41_v27, %v41_v27  ;;  %v45_v31 = vmul.f32 %v42_v28, %v42_v28 }
  0x17   :  { %78 = vmatmul.f32.vlgmr.msra.gmra.mxu0 %v60_v29  ;;  %120 = vst [vmem:[#allocation4] sm:$0x3] %v60_v29 }
  0x18   :  { %v49_v32 = vsel %vm48_vm2, %v45_v31, %v44_v30  ;;  %142 = dma.vmem_to_hbm [thread:$0]  %s138_s1, 32, %s140_s20, [#allocation5]  }
  0x19   :  { %v52_v33 = vsel %vm51_vm3, %v49_v32, 0.0 }
  0x1a   :  { %53 = vadd.xlane.f32.xlu0 %v52_v33 }
  0x77   :  { %v57_v34 = vpop.xlane.xlu0 %56 }
  0x78   :  { %84 = vxpose.xlu1.b32.start.end [1/1] (short) (narrow) %v57_v34, 8 }
  0x8d   :  { %v54_v37 = vpop.xlane.xlu0 %53 }
  0x94   :  { %v79_v35 = vpop.f32.mrf.mxu0 }
  0x95   :  { %v82_v36 = vmul.f32 2.0, %v79_v35 }
  0x97   :  { %v83_v38 = vsub.f32 %v54_v37, %v82_v36 }
 0x11c   :  { %v100_v39 = vpop.trf.xlu1 }
 0x11d   :  { %v116_v40 = vperm.slane %v100_v39, 0 }
 0x11f   :  { %v117_v41 = vadd.f32 %v116_v40, %v83_v38 }
 0x121   :  { %119 = vst.msk [vmem:[#allocation2] sm:$0x3] %vm118_vm4, %v117_v41 }
 0x122   :  { %131 = dma.vmem_to_hbm [thread:$0]  %s127_s22, 32, %s129_s25, [#allocation3]  }
 0x123   :  { %207 = dma.done.wait [#allocation3], 32  }
 0x124   :  { %208 = vsyncadd [#allocation3], 4294967264 }
 0x125   :  { %209 = dma.done.wait [#allocation5], 32  }
 0x126   :  { %210 = vsyncadd [#allocation5], 4294967264 }
 0x127   :  { %151 = vsyncpa [#allocation3], 1 }
 0x128   :  { %152 = vsyncpa [#allocation5], 1 }

</bundles_post_ra>
